<compile_context>
chip_gen: v6e
topology: v6e:2x2x1
jax: 0.10.0
libtpu: 0.0.40
codegen_flags: <defaults>
</compile_context>

<pallas_src>
import functools
import math

import jax
import jax.numpy as jnp
from jax.experimental import pallas as pl
from jax.experimental.pallas import tpu as pltpu

F32 = jnp.float32

_ENC_NAMES = ["wqkv", "bqkv", "wo", "bo", "ln1g", "ln1b",
              "w1", "b1", "w2", "b2", "ln2g", "ln2b"]
_DEC_NAMES = ["wqkv1", "bqkv1", "wo1", "bo1", "ln1g", "ln1b",
              "wq2", "bq2", "wkv2", "bkv2", "wo2", "bo2", "ln2g", "ln2b",
              "w1", "b1", "w2", "b2", "ln3g", "ln3b"]


# --------------------------------------------------------------------------
# In-kernel helpers
# --------------------------------------------------------------------------
def _layernorm(h, g, b):
    mu = jnp.mean(h, axis=-1, keepdims=True)
    var = jnp.mean(jnp.square(h - mu), axis=-1, keepdims=True)
    return (h - mu) * jax.lax.rsqrt(var + 1e-5) * g + b


def _attn(q, k, v, scale, mask=None):
    # scores: contract last dims of q and k (no explicit k.T relayout).
    s = jax.lax.dot_general(
        q, k, (((1,), (1,)), ((), ())), preferred_element_type=F32
    ) * scale
    if mask is not None:
        s = jnp.where(mask, s, -1e9)
    s = s - jnp.max(s, axis=-1, keepdims=True)
    es = jnp.exp(s)
    # exact division: keeps fp32 parity with the PyTorch reference softmax
    p = es / jnp.sum(es, axis=-1, keepdims=True)
    return jnp.dot(p, v, preferred_element_type=F32)


# --------------------------------------------------------------------------
# Single fused kernel: encoder stack + decoder stack + classifier
# --------------------------------------------------------------------------
def _transformer_kernel(
    x_ref, y_ref,
    # encoder stacked weights ([N, ...] each, fully VMEM-resident)
    e_wqkv, e_bqkv, e_wo, e_bo, e_ln1g, e_ln1b,
    e_w1, e_b1, e_w2, e_b2, e_ln2g, e_ln2b,
    # decoder stacked weights
    d_wqkv1, d_bqkv1, d_wo1, d_bo1, d_ln1g, d_ln1b,
    d_wq2, d_bq2, d_wkv2, d_bkv2, d_wo2, d_bo2, d_ln2g, d_ln2b,
    d_w1, d_b1, d_w2, d_b2, d_ln3g, d_ln3b,
    # classifier (lane-dense padded)
    cw_ref, cb_ref,
    o_ref,
    *, N, D, scale,
):
    L_out = y_ref.shape[0]

    # Causal mask for decoder self-attention: built ONCE, reused by all N
    # decoder layers.
    row = jax.lax.broadcasted_iota(jnp.int32, (L_out, L_out), 0)
    col = jax.lax.broadcasted_iota(jnp.int32, (L_out, L_out), 1)
    causal = col <= row

    # ------------------- encoder stack (unrolled over N) -------------------
    h = x_ref[...]                                                # [L_in, D]
    for l in range(N):
        # fused QKV: one wide [D, 3D] MXU push; the sub-lane-group slices
        # below are a handful of lane selects (negligible at D=32).
        qkv = jnp.dot(h, e_wqkv[l], preferred_element_type=F32) + e_bqkv[l]
        a = _attn(qkv[:, :D], qkv[:, D:2 * D], qkv[:, 2 * D:], scale)
        a = jnp.dot(a, e_wo[l], preferred_element_type=F32) + e_bo[l]
        h1 = _layernorm(h + a, e_ln1g[l], e_ln1b[l])
        f = jnp.maximum(
            jnp.dot(h1, e_w1[l], preferred_element_type=F32) + e_b1[l], 0.0)
        f = jnp.dot(f, e_w2[l], preferred_element_type=F32) + e_b2[l]
        h = _layernorm(h1 + f, e_ln2g[l], e_ln2b[l])
    enc = h                                                       # [L_in, D]

    # ------------------- decoder stack (unrolled over N) -------------------
    h = y_ref[...]                                                # [L_out, D]
    for l in range(N):
        # masked (causal) self-attention - fused QKV
        qkv = jnp.dot(h, d_wqkv1[l], preferred_element_type=F32) + d_bqkv1[l]
        a = _attn(qkv[:, :D], qkv[:, D:2 * D], qkv[:, 2 * D:], scale, causal)
        a = jnp.dot(a, d_wo1[l], preferred_element_type=F32) + d_bo1[l]
        h1 = _layernorm(h + a, d_ln1g[l], d_ln1b[l])

        # cross-attention against the VMEM-resident encoder output - fused KV
        q = jnp.dot(h1, d_wq2[l], preferred_element_type=F32) + d_bq2[l]
        kv = jnp.dot(enc, d_wkv2[l], preferred_element_type=F32) + d_bkv2[l]
        a = _attn(q, kv[:, :D], kv[:, D:], scale)
        a = jnp.dot(a, d_wo2[l], preferred_element_type=F32) + d_bo2[l]
        h2 = _layernorm(h1 + a, d_ln2g[l], d_ln2b[l])

        # FFN (ReLU)
        f = jnp.maximum(
            jnp.dot(h2, d_w1[l], preferred_element_type=F32) + d_b1[l], 0.0)
        f = jnp.dot(f, d_w2[l], preferred_element_type=F32) + d_b2[l]
        h = _layernorm(h2 + f, d_ln3g[l], d_ln3b[l])

    # ----------------- classifier: linear + softmax (lane-dense) -----------
    z = jnp.dot(h, cw_ref[...], preferred_element_type=F32) + cb_ref[...]
    z = z - jnp.max(z, axis=-1, keepdims=True)
    ez = jnp.exp(z)
    # exact divide: the classifier softmax is the externally-visible output
    o_ref[...] = ez / jnp.sum(ez, axis=-1, keepdims=True)


def transformer_pallas(x2d, y2d, enc_p, dec_p, cw_pad, cb_pad,
                       *, B, L_in, L_out, D, N):
    C_pad = cw_pad.shape[1]
    scale = 1.0 / math.sqrt(D)
    kern = functools.partial(_transformer_kernel, N=N, D=D, scale=scale)

    def resident(arr):
        # full-extent block + constant index_map -> fetched once, VMEM-resident
        nd = arr.ndim
        return pl.BlockSpec(arr.shape, lambda b, _nd=nd: (0,) * _nd)

    in_specs = (
        [pl.BlockSpec((L_in, D), lambda b: (b, 0)),    # per-example activations
         pl.BlockSpec((L_out, D), lambda b: (b, 0))]
        + [resident(enc_p[n]) for n in _ENC_NAMES]
        + [resident(dec_p[n]) for n in _DEC_NAMES]
        + [resident(cw_pad), resident(cb_pad)]
    )

    return pl.pallas_call(
        kern,
        out_shape=jax.ShapeDtypeStruct((B * L_out, C_pad), F32),
        grid=(B,),                                     # independent examples
        in_specs=in_specs,
        out_specs=pl.BlockSpec((L_out, C_pad), lambda b: (b, 0)),
        compiler_params=pltpu.CompilerParams(
            dimension_semantics=("parallel",)),        # both TCs on v7x
    )(x2d, y2d,
      *[enc_p[n] for n in _ENC_NAMES],
      *[dec_p[n] for n in _DEC_NAMES],
      cw_pad, cb_pad)


# --------------------------------------------------------------------------
# Glue: positional encoding, embedding lookup, full forward (plain JAX)
# --------------------------------------------------------------------------
def positional_encoding(L, d_model):
    pos = jnp.arange(L, dtype=F32)[:, None]               # [L, 1]
    i = jnp.arange(d_model // 2, dtype=F32)[None, :]       # [1, d/2]
    angle = pos / jnp.power(10000.0, 2.0 * i / d_model)    # [L, d/2]
    pe = jnp.zeros((L, d_model), F32)
    pe = pe.at[:, 0::2].set(jnp.sin(angle))
    pe = pe.at[:, 1::2].set(jnp.cos(angle))
    return pe


def transformer_forward(params, inp_ids, out_ids):
    D = params["input_embedding"].shape[1]
    C = params["out_w"].shape[1]
    N = params["encoders"]["wqkv"].shape[0]
    B, L_in = inp_ids.shape
    _, L_out = out_ids.shape

    # TODO(synk): embedding gather + positional-encoding add stay in plain JAX;
    # they are one-time tiny ops with no useful Pallas kernel at these shapes.
    x = jnp.take(params["input_embedding"], inp_ids, axis=0)      # [B, L_in, D]
    x = x + positional_encoding(L_in, D)[None]
    y = jnp.take(params["output_embedding"], out_ids, axis=0)     # [B, L_out, D]
    y = y + positional_encoding(L_out, D)[None]

    # lane-dense classifier padding: zero weight columns / -1e30 (f32) bias in
    # the padding lanes -> exp underflows to 0, softmax unchanged, stores unmasked.
    C_pad = ((C + 127) // 128) * 128
    w_pad = jnp.zeros((D, C_pad), F32).at[:, :C].set(params["out_w"])
    b_pad = jnp.full((1, C_pad), -1e30, F32).at[0, :C].set(params["out_b"])

    out = transformer_pallas(
        x.reshape(B * L_in, D).astype(F32),
        y.reshape(B * L_out, D).astype(F32),
        params["encoders"], params["decoders"], w_pad, b_pad,
        B=B, L_in=L_in, L_out=L_out, D=D, N=N)
    return out.reshape(B, L_out, C_pad)[:, :, :C]                 # [B, L_out, classes]


# --------------------------------------------------------------------------
# Deterministic parameter initialization (weights pre-stacked per layer)
# --------------------------------------------------------------------------
def init_params(key, d_input, classes, dim_model, d_ff, N):
    keys = iter(jax.random.split(key, 256))

    def w(*shape):
        return jax.random.normal(next(keys), shape, F32) * 0.02

    def zeros(*shape):
        return jnp.zeros(shape, F32)

    def ones(*shape):
        return jnp.ones(shape, F32)

    D, H = dim_model, d_ff
    enc = dict(
        wqkv=w(N, D, 3 * D), bqkv=zeros(N, 1, 3 * D),
        wo=w(N, D, D), bo=zeros(N, 1, D),
        ln1g=ones(N, 1, D), ln1b=zeros(N, 1, D),
        w1=w(N, D, H), b1=zeros(N, 1, H),
        w2=w(N, H, D), b2=zeros(N, 1, D),
        ln2g=ones(N, 1, D), ln2b=zeros(N, 1, D),
    )
    dec = dict(
        wqkv1=w(N, D, 3 * D), bqkv1=zeros(N, 1, 3 * D),
        wo1=w(N, D, D), bo1=zeros(N, 1, D),
        ln1g=ones(N, 1, D), ln1b=zeros(N, 1, D),
        wq2=w(N, D, D), bq2=zeros(N, 1, D),
        wkv2=w(N, D, 2 * D), bkv2=zeros(N, 1, 2 * D),
        wo2=w(N, D, D), bo2=zeros(N, 1, D),
        ln2g=ones(N, 1, D), ln2b=zeros(N, 1, D),
        w1=w(N, D, H), b1=zeros(N, 1, H),
        w2=w(N, H, D), b2=zeros(N, 1, D),
        ln3g=ones(N, 1, D), ln3b=zeros(N, 1, D),
    )
    params = dict(
        input_embedding=w(d_input, dim_model),
        output_embedding=w(classes, dim_model),
        encoders=enc,
        decoders=dec,
        out_w=w(dim_model, classes),
        out_b=zeros(classes),
    )
    return params


# --------------------------------------------------------------------------
if __name__ == "__main__":
    # Small shapes consistent with the module's forward signature.
    d_input, classes = 16, 10          # source / target vocab sizes
    dim_model, d_ff, N = 32, 64, 6     # N hard-coded to 6 in the PyTorch __init__
    B, L_in, L_out = 2, 8, 8

    key = jax.random.PRNGKey(0)
    k_param, k_in, k_out = jax.random.split(key, 3)
    params = init_params(k_param, d_input, classes, dim_model, d_ff, N)

    inp_ids = jax.random.randint(k_in, (B, L_in), 0, d_input, dtype=jnp.int32)
    out_ids = jax.random.randint(k_out, (B, L_out), 0, classes, dtype=jnp.int32)

    fwd = jax.jit(transformer_forward)
    result = jax.block_until_ready(fwd(params, inp_ids, out_ids))

    assert result.shape == (B, L_out, classes)
    assert bool(jnp.all(jnp.isfinite(result)))
    # softmax rows must sum to ~1
    assert bool(jnp.allclose(jnp.sum(result, axis=-1), 1.0, atol=1e-5))
    print("KERNEL_OK")
</pallas_src>

<mosaic_0001>
module attributes {stable_mosaic.version = 11 : i64} {
  func.func @_transformer_kernel(%arg0: i32, %arg1: memref<8x32xf32, #tpu.memory_space<vmem>>, %arg2: memref<8x32xf32, #tpu.memory_space<vmem>>, %arg3: memref<6x32x96xf32, #tpu.memory_space<vmem>>, %arg4: memref<6x1x96xf32, #tpu.memory_space<vmem>>, %arg5: memref<6x32x32xf32, #tpu.memory_space<vmem>>, %arg6: memref<6x1x32xf32, #tpu.memory_space<vmem>>, %arg7: memref<6x1x32xf32, #tpu.memory_space<vmem>>, %arg8: memref<6x1x32xf32, #tpu.memory_space<vmem>>, %arg9: memref<6x32x64xf32, #tpu.memory_space<vmem>>, %arg10: memref<6x1x64xf32, #tpu.memory_space<vmem>>, %arg11: memref<6x64x32xf32, #tpu.memory_space<vmem>>, %arg12: memref<6x1x32xf32, #tpu.memory_space<vmem>>, %arg13: memref<6x1x32xf32, #tpu.memory_space<vmem>>, %arg14: memref<6x1x32xf32, #tpu.memory_space<vmem>>, %arg15: memref<6x32x96xf32, #tpu.memory_space<vmem>>, %arg16: memref<6x1x96xf32, #tpu.memory_space<vmem>>, %arg17: memref<6x32x32xf32, #tpu.memory_space<vmem>>, %arg18: memref<6x1x32xf32, #tpu.memory_space<vmem>>, %arg19: memref<6x1x32xf32, #tpu.memory_space<vmem>>, %arg20: memref<6x1x32xf32, #tpu.memory_space<vmem>>, %arg21: memref<6x32x32xf32, #tpu.memory_space<vmem>>, %arg22: memref<6x1x32xf32, #tpu.memory_space<vmem>>, %arg23: memref<6x32x64xf32, #tpu.memory_space<vmem>>, %arg24: memref<6x1x64xf32, #tpu.memory_space<vmem>>, %arg25: memref<6x32x32xf32, #tpu.memory_space<vmem>>, %arg26: memref<6x1x32xf32, #tpu.memory_space<vmem>>, %arg27: memref<6x1x32xf32, #tpu.memory_space<vmem>>, %arg28: memref<6x1x32xf32, #tpu.memory_space<vmem>>, %arg29: memref<6x32x64xf32, #tpu.memory_space<vmem>>, %arg30: memref<6x1x64xf32, #tpu.memory_space<vmem>>, %arg31: memref<6x64x32xf32, #tpu.memory_space<vmem>>, %arg32: memref<6x1x32xf32, #tpu.memory_space<vmem>>, %arg33: memref<6x1x32xf32, #tpu.memory_space<vmem>>, %arg34: memref<6x1x32xf32, #tpu.memory_space<vmem>>, %arg35: memref<32x128xf32, #tpu.memory_space<vmem>>, %arg36: memref<1x128xf32, #tpu.memory_space<vmem>>, %arg37: memref<8x128xf32, #tpu.memory_space<vmem>>) attributes {dimension_semantics = [#tpu.dimension_semantics<parallel>], iteration_bounds = array<i64: 2>, scalar_prefetch = 0 : i64, scratch_operands = 0 : i64, tpu.core_type = #tpu.core_type<tc>, window_params = [{transform_indices = @transform_0, window_bounds = array<i64: 8, 32>}, {transform_indices = @transform_1, window_bounds = array<i64: 8, 32>}, {pipeline_mode = #tpu.pipeline_mode<synchronous>, transform_indices = @transform_2, window_bounds = array<i64: 6, 32, 96>}, {pipeline_mode = #tpu.pipeline_mode<synchronous>, transform_indices = @transform_3, window_bounds = array<i64: 6, 1, 96>}, {pipeline_mode = #tpu.pipeline_mode<synchronous>, transform_indices = @transform_4, window_bounds = array<i64: 6, 32, 32>}, {pipeline_mode = #tpu.pipeline_mode<synchronous>, transform_indices = @transform_5, window_bounds = array<i64: 6, 1, 32>}, {pipeline_mode = #tpu.pipeline_mode<synchronous>, transform_indices = @transform_6, window_bounds = array<i64: 6, 1, 32>}, {pipeline_mode = #tpu.pipeline_mode<synchronous>, transform_indices = @transform_7, window_bounds = array<i64: 6, 1, 32>}, {pipeline_mode = #tpu.pipeline_mode<synchronous>, transform_indices = @transform_8, window_bounds = array<i64: 6, 32, 64>}, {pipeline_mode = #tpu.pipeline_mode<synchronous>, transform_indices = @transform_9, window_bounds = array<i64: 6, 1, 64>}, {pipeline_mode = #tpu.pipeline_mode<synchronous>, transform_indices = @transform_10, window_bounds = array<i64: 6, 64, 32>}, {pipeline_mode = #tpu.pipeline_mode<synchronous>, transform_indices = @transform_11, window_bounds = array<i64: 6, 1, 32>}, {pipeline_mode = #tpu.pipeline_mode<synchronous>, transform_indices = @transform_12, window_bounds = array<i64: 6, 1, 32>}, {pipeline_mode = #tpu.pipeline_mode<synchronous>, transform_indices = @transform_13, window_bounds = array<i64: 6, 1, 32>}, {pipeline_mode = #tpu.pipeline_mode<synchronous>, transform_indices = @transform_14, window_bounds = array<i64: 6, 32, 96>}, {pipeline_mode = #tpu.pipeline_mode<synchronous>, transform_indices = @transform_15, window_bounds = array<i64: 6, 1, 96>}, {pipeline_mode = #tpu.pipeline_mode<synchronous>, transform_indices = @transform_16, window_bounds = array<i64: 6, 32, 32>}, {pipeline_mode = #tpu.pipeline_mode<synchronous>, transform_indices = @transform_17, window_bounds = array<i64: 6, 1, 32>}, {pipeline_mode = #tpu.pipeline_mode<synchronous>, transform_indices = @transform_18, window_bounds = array<i64: 6, 1, 32>}, {pipeline_mode = #tpu.pipeline_mode<synchronous>, transform_indices = @transform_19, window_bounds = array<i64: 6, 1, 32>}, {pipeline_mode = #tpu.pipeline_mode<synchronous>, transform_indices = @transform_20, window_bounds = array<i64: 6, 32, 32>}, {pipeline_mode = #tpu.pipeline_mode<synchronous>, transform_indices = @transform_21, window_bounds = array<i64: 6, 1, 32>}, {pipeline_mode = #tpu.pipeline_mode<synchronous>, transform_indices = @transform_22, window_bounds = array<i64: 6, 32, 64>}, {pipeline_mode = #tpu.pipeline_mode<synchronous>, transform_indices = @transform_23, window_bounds = array<i64: 6, 1, 64>}, {pipeline_mode = #tpu.pipeline_mode<synchronous>, transform_indices = @transform_24, window_bounds = array<i64: 6, 32, 32>}, {pipeline_mode = #tpu.pipeline_mode<synchronous>, transform_indices = @transform_25, window_bounds = array<i64: 6, 1, 32>}, {pipeline_mode = #tpu.pipeline_mode<synchronous>, transform_indices = @transform_26, window_bounds = array<i64: 6, 1, 32>}, {pipeline_mode = #tpu.pipeline_mode<synchronous>, transform_indices = @transform_27, window_bounds = array<i64: 6, 1, 32>}, {pipeline_mode = #tpu.pipeline_mode<synchronous>, transform_indices = @transform_28, window_bounds = array<i64: 6, 32, 64>}, {pipeline_mode = #tpu.pipeline_mode<synchronous>, transform_indices = @transform_29, window_bounds = array<i64: 6, 1, 64>}, {pipeline_mode = #tpu.pipeline_mode<synchronous>, transform_indices = @transform_30, window_bounds = array<i64: 6, 64, 32>}, {pipeline_mode = #tpu.pipeline_mode<synchronous>, transform_indices = @transform_31, window_bounds = array<i64: 6, 1, 32>}, {pipeline_mode = #tpu.pipeline_mode<synchronous>, transform_indices = @transform_32, window_bounds = array<i64: 6, 1, 32>}, {pipeline_mode = #tpu.pipeline_mode<synchronous>, transform_indices = @transform_33, window_bounds = array<i64: 6, 1, 32>}, {pipeline_mode = #tpu.pipeline_mode<synchronous>, transform_indices = @transform_34, window_bounds = array<i64: 32, 128>}, {pipeline_mode = #tpu.pipeline_mode<synchronous>, transform_indices = @transform_35, window_bounds = array<i64: 1, 128>}, {transform_indices = @transform_36, window_bounds = array<i64: 8, 128>}]} {
    %0 = tpu.iota {dimensions = array<i32: 0>} : vector<8x8xi32>
    %1 = tpu.iota {dimensions = array<i32: 1>} : vector<8x8xi32>
    %2 = arith.cmpi sle, %1, %0 : vector<8x8xi32>
    %c0 = arith.constant 0 : index
    %c0_0 = arith.constant 0 : index
    %3 = vector.load %arg1[%c0, %c0_0] : memref<8x32xf32, #tpu.memory_space<vmem>>, vector<8x32xf32>
    %c0_1 = arith.constant 0 : index
    %c0_2 = arith.constant 0 : index
    %c0_3 = arith.constant 0 : index
    %4 = vector.load %arg3[%c0_1, %c0_2, %c0_3] : memref<6x32x96xf32, #tpu.memory_space<vmem>>, vector<1x32x96xf32>
    %5 = vector.shape_cast %4 : vector<1x32x96xf32> to vector<32x96xf32>
    %cst = arith.constant dense<0.000000e+00> : vector<8x96xf32>
    %6 = tpu.matmul %3, %5, %cst {dimension_numbers = #tpu.dot_dimension_numbers<[1], [0], [0], [1], [0, 0, 1, 1], [], []>} : vector<8x32xf32>, vector<32x96xf32>, vector<8x96xf32> -> vector<8x96xf32>
    %c0_4 = arith.constant 0 : index
    %c0_5 = arith.constant 0 : index
    %c0_6 = arith.constant 0 : index
    %7 = vector.load %arg4[%c0_4, %c0_5, %c0_6] : memref<6x1x96xf32, #tpu.memory_space<vmem>>, vector<1x1x96xf32>
    %8 = vector.shape_cast %7 : vector<1x1x96xf32> to vector<1x96xf32>
    %9 = vector.broadcast %8 : vector<1x96xf32> to vector<8x96xf32>
    %10 = arith.addf %6, %9 : vector<8x96xf32>
    %11 = vector.extract_strided_slice %10 {offsets = [0, 0], sizes = [8, 32], strides = [1, 1]} : vector<8x96xf32> to vector<8x32xf32>
    %12 = vector.extract_strided_slice %10 {offsets = [0, 32], sizes = [8, 32], strides = [1, 1]} : vector<8x96xf32> to vector<8x32xf32>
    %13 = vector.extract_strided_slice %10 {offsets = [0, 64], sizes = [8, 32], strides = [1, 1]} : vector<8x96xf32> to vector<8x32xf32>
    %cst_7 = arith.constant dense<0.000000e+00> : vector<8x8xf32>
    %14 = tpu.matmul %11, %12, %cst_7 {dimension_numbers = #tpu.dot_dimension_numbers<[1], [1], [0], [0], [0, 0, 1, 0], [], []>} : vector<8x32xf32>, vector<8x32xf32>, vector<8x8xf32> -> vector<8x8xf32>
    %cst_8 = arith.constant 0.176776692 : f32
    %15 = vector.broadcast %cst_8 : f32 to vector<8x8xf32>
    %16 = arith.mulf %14, %15 : vector<8x8xf32>
    %cst_9 = arith.constant dense<0xFF800000> : vector<8xf32>
    %17 = vector.multi_reduction <maximumf>, %16, %cst_9 [1] : vector<8x8xf32> to vector<8xf32>
    %18 = vector.shape_cast %17 : vector<8xf32> to vector<8x1xf32>
    %19 = vector.broadcast %18 : vector<8x1xf32> to vector<8x8xf32>
    %20 = arith.subf %16, %19 : vector<8x8xf32>
    %21 = math.exp %20 : vector<8x8xf32>
    %cst_10 = arith.constant dense<0.000000e+00> : vector<8xf32>
    %22 = vector.multi_reduction <add>, %21, %cst_10 [1] : vector<8x8xf32> to vector<8xf32>
    %23 = vector.shape_cast %22 : vector<8xf32> to vector<8x1xf32>
    %24 = vector.broadcast %23 : vector<8x1xf32> to vector<8x8xf32>
    %25 = arith.divf %21, %24 : vector<8x8xf32>
    %cst_11 = arith.constant dense<0.000000e+00> : vector<8x32xf32>
    %26 = tpu.matmul %25, %13, %cst_11 {dimension_numbers = #tpu.dot_dimension_numbers<[1], [0], [0], [1], [0, 0, 1, 1], [], []>} : vector<8x8xf32>, vector<8x32xf32>, vector<8x32xf32> -> vector<8x32xf32>
    %c0_12 = arith.constant 0 : index
    %c0_13 = arith.constant 0 : index
    %c0_14 = arith.constant 0 : index
    %27 = vector.load %arg5[%c0_12, %c0_13, %c0_14] : memref<6x32x32xf32, #tpu.memory_space<vmem>>, vector<1x32x32xf32>
    %28 = vector.shape_cast %27 : vector<1x32x32xf32> to vector<32x32xf32>
    %cst_15 = arith.constant dense<0.000000e+00> : vector<8x32xf32>
    %29 = tpu.matmul %26, %28, %cst_15 {dimension_numbers = #tpu.dot_dimension_numbers<[1], [0], [0], [1], [0, 0, 1, 1], [], []>} : vector<8x32xf32>, vector<32x32xf32>, vector<8x32xf32> -> vector<8x32xf32>
    %c0_16 = arith.constant 0 : index
    %c0_17 = arith.constant 0 : index
    %c0_18 = arith.constant 0 : index
    %30 = vector.load %arg6[%c0_16, %c0_17, %c0_18] : memref<6x1x32xf32, #tpu.memory_space<vmem>>, vector<1x1x32xf32>
    %31 = vector.shape_cast %30 : vector<1x1x32xf32> to vector<1x32xf32>
    %32 = vector.broadcast %31 : vector<1x32xf32> to vector<8x32xf32>
    %33 = arith.addf %29, %32 : vector<8x32xf32>
    %34 = arith.addf %3, %33 : vector<8x32xf32>
    %c0_19 = arith.constant 0 : index
    %c0_20 = arith.constant 0 : index
    %c0_21 = arith.constant 0 : index
    %35 = vector.load %arg7[%c0_19, %c0_20, %c0_21] : memref<6x1x32xf32, #tpu.memory_space<vmem>>, vector<1x1x32xf32>
    %36 = vector.shape_cast %35 : vector<1x1x32xf32> to vector<1x32xf32>
    %c0_22 = arith.constant 0 : index
    %c0_23 = arith.constant 0 : index
    %c0_24 = arith.constant 0 : index
    %37 = vector.load %arg8[%c0_22, %c0_23, %c0_24] : memref<6x1x32xf32, #tpu.memory_space<vmem>>, vector<1x1x32xf32>
    %38 = vector.shape_cast %37 : vector<1x1x32xf32> to vector<1x32xf32>
    %cst_25 = arith.constant dense<0.000000e+00> : vector<8xf32>
    %39 = vector.multi_reduction <add>, %34, %cst_25 [1] : vector<8x32xf32> to vector<8xf32>
    %40 = vector.shape_cast %39 : vector<8xf32> to vector<8x1xf32>
    %cst_26 = arith.constant 3.200000e+01 : f32
    %41 = vector.broadcast %cst_26 : f32 to vector<8x1xf32>
    %42 = arith.divf %40, %41 : vector<8x1xf32>
    %43 = vector.broadcast %42 : vector<8x1xf32> to vector<8x32xf32>
    %44 = arith.subf %34, %43 : vector<8x32xf32>
    %45 = arith.mulf %44, %44 : vector<8x32xf32>
    %cst_27 = arith.constant dense<0.000000e+00> : vector<8xf32>
    %46 = vector.multi_reduction <add>, %45, %cst_27 [1] : vector<8x32xf32> to vector<8xf32>
    %47 = vector.shape_cast %46 : vector<8xf32> to vector<8x1xf32>
    %cst_28 = arith.constant 3.200000e+01 : f32
    %48 = vector.broadcast %cst_28 : f32 to vector<8x1xf32>
    %49 = arith.divf %47, %48 : vector<8x1xf32>
    %50 = vector.broadcast %42 : vector<8x1xf32> to vector<8x32xf32>
    %51 = arith.subf %34, %50 : vector<8x32xf32>
    %cst_29 = arith.constant 9.99999974E-6 : f32
    %52 = vector.broadcast %cst_29 : f32 to vector<8x1xf32>
    %53 = arith.addf %49, %52 : vector<8x1xf32>
    %54 = math.rsqrt %53 : vector<8x1xf32>
    %55 = vector.broadcast %54 : vector<8x1xf32> to vector<8x32xf32>
    %56 = arith.mulf %51, %55 : vector<8x32xf32>
    %57 = vector.broadcast %36 : vector<1x32xf32> to vector<8x32xf32>
    %58 = arith.mulf %56, %57 : vector<8x32xf32>
    %59 = vector.broadcast %38 : vector<1x32xf32> to vector<8x32xf32>
    %60 = arith.addf %58, %59 : vector<8x32xf32>
    %c0_30 = arith.constant 0 : index
    %c0_31 = arith.constant 0 : index
    %c0_32 = arith.constant 0 : index
    %61 = vector.load %arg9[%c0_30, %c0_31, %c0_32] : memref<6x32x64xf32, #tpu.memory_space<vmem>>, vector<1x32x64xf32>
    %62 = vector.shape_cast %61 : vector<1x32x64xf32> to vector<32x64xf32>
    %cst_33 = arith.constant dense<0.000000e+00> : vector<8x64xf32>
    %63 = tpu.matmul %60, %62, %cst_33 {dimension_numbers = #tpu.dot_dimension_numbers<[1], [0], [0], [1], [0, 0, 1, 1], [], []>} : vector<8x32xf32>, vector<32x64xf32>, vector<8x64xf32> -> vector<8x64xf32>
    %c0_34 = arith.constant 0 : index
    %c0_35 = arith.constant 0 : index
    %c0_36 = arith.constant 0 : index
    %64 = vector.load %arg10[%c0_34, %c0_35, %c0_36] : memref<6x1x64xf32, #tpu.memory_space<vmem>>, vector<1x1x64xf32>
    %65 = vector.shape_cast %64 : vector<1x1x64xf32> to vector<1x64xf32>
    %66 = vector.broadcast %65 : vector<1x64xf32> to vector<8x64xf32>
    %67 = arith.addf %63, %66 : vector<8x64xf32>
    %cst_37 = arith.constant 0.000000e+00 : f32
    %68 = vector.broadcast %cst_37 : f32 to vector<8x64xf32>
    %69 = arith.maximumf %67, %68 : vector<8x64xf32>
    %c0_38 = arith.constant 0 : index
    %c0_39 = arith.constant 0 : index
    %c0_40 = arith.constant 0 : index
    %70 = vector.load %arg11[%c0_38, %c0_39, %c0_40] : memref<6x64x32xf32, #tpu.memory_space<vmem>>, vector<1x64x32xf32>
    %71 = vector.shape_cast %70 : vector<1x64x32xf32> to vector<64x32xf32>
    %cst_41 = arith.constant dense<0.000000e+00> : vector<8x32xf32>
    %72 = tpu.matmul %69, %71, %cst_41 {dimension_numbers = #tpu.dot_dimension_numbers<[1], [0], [0], [1], [0, 0, 1, 1], [], []>} : vector<8x64xf32>, vector<64x32xf32>, vector<8x32xf32> -> vector<8x32xf32>
    %c0_42 = arith.constant 0 : index
    %c0_43 = arith.constant 0 : index
    %c0_44 = arith.constant 0 : index
    %73 = vector.load %arg12[%c0_42, %c0_43, %c0_44] : memref<6x1x32xf32, #tpu.memory_space<vmem>>, vector<1x1x32xf32>
    %74 = vector.shape_cast %73 : vector<1x1x32xf32> to vector<1x32xf32>
    %75 = vector.broadcast %74 : vector<1x32xf32> to vector<8x32xf32>
    %76 = arith.addf %72, %75 : vector<8x32xf32>
    %77 = arith.addf %60, %76 : vector<8x32xf32>
    %c0_45 = arith.constant 0 : index
    %c0_46 = arith.constant 0 : index
    %c0_47 = arith.constant 0 : index
    %78 = vector.load %arg13[%c0_45, %c0_46, %c0_47] : memref<6x1x32xf32, #tpu.memory_space<vmem>>, vector<1x1x32xf32>
    %79 = vector.shape_cast %78 : vector<1x1x32xf32> to vector<1x32xf32>
    %c0_48 = arith.constant 0 : index
    %c0_49 = arith.constant 0 : index
    %c0_50 = arith.constant 0 : index
    %80 = vector.load %arg14[%c0_48, %c0_49, %c0_50] : memref<6x1x32xf32, #tpu.memory_space<vmem>>, vector<1x1x32xf32>
    %81 = vector.shape_cast %80 : vector<1x1x32xf32> to vector<1x32xf32>
    %cst_51 = arith.constant dense<0.000000e+00> : vector<8xf32>
    %82 = vector.multi_reduction <add>, %77, %cst_51 [1] : vector<8x32xf32> to vector<8xf32>
    %83 = vector.shape_cast %82 : vector<8xf32> to vector<8x1xf32>
    %cst_52 = arith.constant 3.200000e+01 : f32
    %84 = vector.broadcast %cst_52 : f32 to vector<8x1xf32>
    %85 = arith.divf %83, %84 : vector<8x1xf32>
    %86 = vector.broadcast %85 : vector<8x1xf32> to vector<8x32xf32>
    %87 = arith.subf %77, %86 : vector<8x32xf32>
    %88 = arith.mulf %87, %87 : vector<8x32xf32>
    %cst_53 = arith.constant dense<0.000000e+00> : vector<8xf32>
    %89 = vector.multi_reduction <add>, %88, %cst_53 [1] : vector<8x32xf32> to vector<8xf32>
    %90 = vector.shape_cast %89 : vector<8xf32> to vector<8x1xf32>
    %cst_54 = arith.constant 3.200000e+01 : f32
    %91 = vector.broadcast %cst_54 : f32 to vector<8x1xf32>
    %92 = arith.divf %90, %91 : vector<8x1xf32>
    %93 = vector.broadcast %85 : vector<8x1xf32> to vector<8x32xf32>
    %94 = arith.subf %77, %93 : vector<8x32xf32>
    %cst_55 = arith.constant 9.99999974E-6 : f32
    %95 = vector.broadcast %cst_55 : f32 to vector<8x1xf32>
    %96 = arith.addf %92, %95 : vector<8x1xf32>
    %97 = math.rsqrt %96 : vector<8x1xf32>
    %98 = vector.broadcast %97 : vector<8x1xf32> to vector<8x32xf32>
    %99 = arith.mulf %94, %98 : vector<8x32xf32>
    %100 = vector.broadcast %79 : vector<1x32xf32> to vector<8x32xf32>
    %101 = arith.mulf %99, %100 : vector<8x32xf32>
    %102 = vector.broadcast %81 : vector<1x32xf32> to vector<8x32xf32>
    %103 = arith.addf %101, %102 : vector<8x32xf32>
    %c1 = arith.constant 1 : index
    %c0_56 = arith.constant 0 : index
    %c0_57 = arith.constant 0 : index
    %104 = vector.load %arg3[%c1, %c0_56, %c0_57] : memref<6x32x96xf32, #tpu.memory_space<vmem>>, vector<1x32x96xf32>
    %105 = vector.shape_cast %104 : vector<1x32x96xf32> to vector<32x96xf32>
    %cst_58 = arith.constant dense<0.000000e+00> : vector<8x96xf32>
    %106 = tpu.matmul %103, %105, %cst_58 {dimension_numbers = #tpu.dot_dimension_numbers<[1], [0], [0], [1], [0, 0, 1, 1], [], []>} : vector<8x32xf32>, vector<32x96xf32>, vector<8x96xf32> -> vector<8x96xf32>
    %c1_59 = arith.constant 1 : index
    %c0_60 = arith.constant 0 : index
    %c0_61 = arith.constant 0 : index
    %107 = vector.load %arg4[%c1_59, %c0_60, %c0_61] : memref<6x1x96xf32, #tpu.memory_space<vmem>>, vector<1x1x96xf32>
    %108 = vector.shape_cast %107 : vector<1x1x96xf32> to vector<1x96xf32>
    %109 = vector.broadcast %108 : vector<1x96xf32> to vector<8x96xf32>
    %110 = arith.addf %106, %109 : vector<8x96xf32>
    %111 = vector.extract_strided_slice %110 {offsets = [0, 0], sizes = [8, 32], strides = [1, 1]} : vector<8x96xf32> to vector<8x32xf32>
    %112 = vector.extract_strided_slice %110 {offsets = [0, 32], sizes = [8, 32], strides = [1, 1]} : vector<8x96xf32> to vector<8x32xf32>
    %113 = vector.extract_strided_slice %110 {offsets = [0, 64], sizes = [8, 32], strides = [1, 1]} : vector<8x96xf32> to vector<8x32xf32>
    %cst_62 = arith.constant dense<0.000000e+00> : vector<8x8xf32>
    %114 = tpu.matmul %111, %112, %cst_62 {dimension_numbers = #tpu.dot_dimension_numbers<[1], [1], [0], [0], [0, 0, 1, 0], [], []>} : vector<8x32xf32>, vector<8x32xf32>, vector<8x8xf32> -> vector<8x8xf32>
    %cst_63 = arith.constant 0.176776692 : f32
    %115 = vector.broadcast %cst_63 : f32 to vector<8x8xf32>
    %116 = arith.mulf %114, %115 : vector<8x8xf32>
    %cst_64 = arith.constant dense<0xFF800000> : vector<8xf32>
    %117 = vector.multi_reduction <maximumf>, %116, %cst_64 [1] : vector<8x8xf32> to vector<8xf32>
    %118 = vector.shape_cast %117 : vector<8xf32> to vector<8x1xf32>
    %119 = vector.broadcast %118 : vector<8x1xf32> to vector<8x8xf32>
    %120 = arith.subf %116, %119 : vector<8x8xf32>
    %121 = math.exp %120 : vector<8x8xf32>
    %cst_65 = arith.constant dense<0.000000e+00> : vector<8xf32>
    %122 = vector.multi_reduction <add>, %121, %cst_65 [1] : vector<8x8xf32> to vector<8xf32>
    %123 = vector.shape_cast %122 : vector<8xf32> to vector<8x1xf32>
    %124 = vector.broadcast %123 : vector<8x1xf32> to vector<8x8xf32>
    %125 = arith.divf %121, %124 : vector<8x8xf32>
    %cst_66 = arith.constant dense<0.000000e+00> : vector<8x32xf32>
    %126 = tpu.matmul %125, %113, %cst_66 {dimension_numbers = #tpu.dot_dimension_numbers<[1], [0], [0], [1], [0, 0, 1, 1], [], []>} : vector<8x8xf32>, vector<8x32xf32>, vector<8x32xf32> -> vector<8x32xf32>
    %c1_67 = arith.constant 1 : index
    %c0_68 = arith.constant 0 : index
    %c0_69 = arith.constant 0 : index
    %127 = vector.load %arg5[%c1_67, %c0_68, %c0_69] : memref<6x32x32xf32, #tpu.memory_space<vmem>>, vector<1x32x32xf32>
    %128 = vector.shape_cast %127 : vector<1x32x32xf32> to vector<32x32xf32>
    %cst_70 = arith.constant dense<0.000000e+00> : vector<8x32xf32>
    %129 = tpu.matmul %126, %128, %cst_70 {dimension_numbers = #tpu.dot_dimension_numbers<[1], [0], [0], [1], [0, 0, 1, 1], [], []>} : vector<8x32xf32>, vector<32x32xf32>, vector<8x32xf32> -> vector<8x32xf32>
    %c1_71 = arith.constant 1 : index
    %c0_72 = arith.constant 0 : index
    %c0_73 = arith.constant 0 : index
    %130 = vector.load %arg6[%c1_71, %c0_72, %c0_73] : memref<6x1x32xf32, #tpu.memory_space<vmem>>, vector<1x1x32xf32>
    %131 = vector.shape_cast %130 : vector<1x1x32xf32> to vector<1x32xf32>
    %132 = vector.broadcast %131 : vector<1x32xf32> to vector<8x32xf32>
    %133 = arith.addf %129, %132 : vector<8x32xf32>
    %134 = arith.addf %103, %133 : vector<8x32xf32>
    %c1_74 = arith.constant 1 : index
    %c0_75 = arith.constant 0 : index
    %c0_76 = arith.constant 0 : index
    %135 = vector.load %arg7[%c1_74, %c0_75, %c0_76] : memref<6x1x32xf32, #tpu.memory_space<vmem>>, vector<1x1x32xf32>
    %136 = vector.shape_cast %135 : vector<1x1x32xf32> to vector<1x32xf32>
    %c1_77 = arith.constant 1 : index
    %c0_78 = arith.constant 0 : index
    %c0_79 = arith.constant 0 : index
    %137 = vector.load %arg8[%c1_77, %c0_78, %c0_79] : memref<6x1x32xf32, #tpu.memory_space<vmem>>, vector<1x1x32xf32>
    %138 = vector.shape_cast %137 : vector<1x1x32xf32> to vector<1x32xf32>
    %cst_80 = arith.constant dense<0.000000e+00> : vector<8xf32>
    %139 = vector.multi_reduction <add>, %134, %cst_80 [1] : vector<8x32xf32> to vector<8xf32>
    %140 = vector.shape_cast %139 : vector<8xf32> to vector<8x1xf32>
    %cst_81 = arith.constant 3.200000e+01 : f32
    %141 = vector.broadcast %cst_81 : f32 to vector<8x1xf32>
    %142 = arith.divf %140, %141 : vector<8x1xf32>
    %143 = vector.broadcast %142 : vector<8x1xf32> to vector<8x32xf32>
    %144 = arith.subf %134, %143 : vector<8x32xf32>
    %145 = arith.mulf %144, %144 : vector<8x32xf32>
    %cst_82 = arith.constant dense<0.000000e+00> : vector<8xf32>
    %146 = vector.multi_reduction <add>, %145, %cst_82 [1] : vector<8x32xf32> to vector<8xf32>
    %147 = vector.shape_cast %146 : vector<8xf32> to vector<8x1xf32>
    %cst_83 = arith.constant 3.200000e+01 : f32
    %148 = vector.broadcast %cst_83 : f32 to vector<8x1xf32>
    %149 = arith.divf %147, %148 : vector<8x1xf32>
    %150 = vector.broadcast %142 : vector<8x1xf32> to vector<8x32xf32>
    %151 = arith.subf %134, %150 : vector<8x32xf32>
    %cst_84 = arith.constant 9.99999974E-6 : f32
    %152 = vector.broadcast %cst_84 : f32 to vector<8x1xf32>
    %153 = arith.addf %149, %152 : vector<8x1xf32>
    %154 = math.rsqrt %153 : vector<8x1xf32>
    %155 = vector.broadcast %154 : vector<8x1xf32> to vector<8x32xf32>
    %156 = arith.mulf %151, %155 : vector<8x32xf32>
    %157 = vector.broadcast %136 : vector<1x32xf32> to vector<8x32xf32>
    %158 = arith.mulf %156, %157 : vector<8x32xf32>
    %159 = vector.broadcast %138 : vector<1x32xf32> to vector<8x32xf32>
    %160 = arith.addf %158, %159 : vector<8x32xf32>
    %c1_85 = arith.constant 1 : index
    %c0_86 = arith.constant 0 : index
    %c0_87 = arith.constant 0 : index
    %161 = vector.load %arg9[%c1_85, %c0_86, %c0_87] : memref<6x32x64xf32, #tpu.memory_space<vmem>>, vector<1x32x64xf32>
    %162 = vector.shape_cast %161 : vector<1x32x64xf32> to vector<32x64xf32>
    %cst_88 = arith.constant dense<0.000000e+00> : vector<8x64xf32>
    %163 = tpu.matmul %160, %162, %cst_88 {dimension_numbers = #tpu.dot_dimension_numbers<[1], [0], [0], [1], [0, 0, 1, 1], [], []>} : vector<8x32xf32>, vector<32x64xf32>, vector<8x64xf32> -> vector<8x64xf32>
    %c1_89 = arith.constant 1 : index
    %c0_90 = arith.constant 0 : index
    %c0_91 = arith.constant 0 : index
    %164 = vector.load %arg10[%c1_89, %c0_90, %c0_91] : memref<6x1x64xf32, #tpu.memory_space<vmem>>, vector<1x1x64xf32>
    %165 = vector.shape_cast %164 : vector<1x1x64xf32> to vector<1x64xf32>
    %166 = vector.broadcast %165 : vector<1x64xf32> to vector<8x64xf32>
    %167 = arith.addf %163, %166 : vector<8x64xf32>
    %cst_92 = arith.constant 0.000000e+00 : f32
    %168 = vector.broadcast %cst_92 : f32 to vector<8x64xf32>
    %169 = arith.maximumf %167, %168 : vector<8x64xf32>
    %c1_93 = arith.constant 1 : index
    %c0_94 = arith.constant 0 : index
    %c0_95 = arith.constant 0 : index
    %170 = vector.load %arg11[%c1_93, %c0_94, %c0_95] : memref<6x64x32xf32, #tpu.memory_space<vmem>>, vector<1x64x32xf32>
    %171 = vector.shape_cast %170 : vector<1x64x32xf32> to vector<64x32xf32>
    %cst_96 = arith.constant dense<0.000000e+00> : vector<8x32xf32>
    %172 = tpu.matmul %169, %171, %cst_96 {dimension_numbers = #tpu.dot_dimension_numbers<[1], [0], [0], [1], [0, 0, 1, 1], [], []>} : vector<8x64xf32>, vector<64x32xf32>, vector<8x32xf32> -> vector<8x32xf32>
    %c1_97 = arith.constant 1 : index
    %c0_98 = arith.constant 0 : index
    %c0_99 = arith.constant 0 : index
    %173 = vector.load %arg12[%c1_97, %c0_98, %c0_99] : memref<6x1x32xf32, #tpu.memory_space<vmem>>, vector<1x1x32xf32>
    %174 = vector.shape_cast %173 : vector<1x1x32xf32> to vector<1x32xf32>
    %175 = vector.broadcast %174 : vector<1x32xf32> to vector<8x32xf32>
    %176 = arith.addf %172, %175 : vector<8x32xf32>
    %177 = arith.addf %160, %176 : vector<8x32xf32>
    %c1_100 = arith.constant 1 : index
    %c0_101 = arith.constant 0 : index
    %c0_102 = arith.constant 0 : index
    %178 = vector.load %arg13[%c1_100, %c0_101, %c0_102] : memref<6x1x32xf32, #tpu.memory_space<vmem>>, vector<1x1x32xf32>
    %179 = vector.shape_cast %178 : vector<1x1x32xf32> to vector<1x32xf32>
    %c1_103 = arith.constant 1 : index
    %c0_104 = arith.constant 0 : index
    %c0_105 = arith.constant 0 : index
    %180 = vector.load %arg14[%c1_103, %c0_104, %c0_105] : memref<6x1x32xf32, #tpu.memory_space<vmem>>, vector<1x1x32xf32>
    %181 = vector.shape_cast %180 : vector<1x1x32xf32> to vector<1x32xf32>
    %cst_106 = arith.constant dense<0.000000e+00> : vector<8xf32>
    %182 = vector.multi_reduction <add>, %177, %cst_106 [1] : vector<8x32xf32> to vector<8xf32>
    %183 = vector.shape_cast %182 : vector<8xf32> to vector<8x1xf32>
    %cst_107 = arith.constant 3.200000e+01 : f32
    %184 = vector.broadcast %cst_107 : f32 to vector<8x1xf32>
    %185 = arith.divf %183, %184 : vector<8x1xf32>
    %186 = vector.broadcast %185 : vector<8x1xf32> to vector<8x32xf32>
    %187 = arith.subf %177, %186 : vector<8x32xf32>
    %188 = arith.mulf %187, %187 : vector<8x32xf32>
    %cst_108 = arith.constant dense<0.000000e+00> : vector<8xf32>
    %189 = vector.multi_reduction <add>, %188, %cst_108 [1] : vector<8x32xf32> to vector<8xf32>
    %190 = vector.shape_cast %189 : vector<8xf32> to vector<8x1xf32>
    %cst_109 = arith.constant 3.200000e+01 : f32
    %191 = vector.broadcast %cst_109 : f32 to vector<8x1xf32>
    %192 = arith.divf %190, %191 : vector<8x1xf32>
    %193 = vector.broadcast %185 : vector<8x1xf32> to vector<8x32xf32>
    %194 = arith.subf %177, %193 : vector<8x32xf32>
    %cst_110 = arith.constant 9.99999974E-6 : f32
    %195 = vector.broadcast %cst_110 : f32 to vector<8x1xf32>
    %196 = arith.addf %192, %195 : vector<8x1xf32>
    %197 = math.rsqrt %196 : vector<8x1xf32>
    %198 = vector.broadcast %197 : vector<8x1xf32> to vector<8x32xf32>
    %199 = arith.mulf %194, %198 : vector<8x32xf32>
    %200 = vector.broadcast %179 : vector<1x32xf32> to vector<8x32xf32>
    %201 = arith.mulf %199, %200 : vector<8x32xf32>
    %202 = vector.broadcast %181 : vector<1x32xf32> to vector<8x32xf32>
    %203 = arith.addf %201, %202 : vector<8x32xf32>
    %c2 = arith.constant 2 : index
    %c0_111 = arith.constant 0 : index
    %c0_112 = arith.constant 0 : index
    %204 = vector.load %arg3[%c2, %c0_111, %c0_112] : memref<6x32x96xf32, #tpu.memory_space<vmem>>, vector<1x32x96xf32>
    %205 = vector.shape_cast %204 : vector<1x32x96xf32> to vector<32x96xf32>
    %cst_113 = arith.constant dense<0.000000e+00> : vector<8x96xf32>
    %206 = tpu.matmul %203, %205, %cst_113 {dimension_numbers = #tpu.dot_dimension_numbers<[1], [0], [0], [1], [0, 0, 1, 1], [], []>} : vector<8x32xf32>, vector<32x96xf32>, vector<8x96xf32> -> vector<8x96xf32>
    %c2_114 = arith.constant 2 : index
    %c0_115 = arith.constant 0 : index
    %c0_116 = arith.constant 0 : index
    %207 = vector.load %arg4[%c2_114, %c0_115, %c0_116] : memref<6x1x96xf32, #tpu.memory_space<vmem>>, vector<1x1x96xf32>
    %208 = vector.shape_cast %207 : vector<1x1x96xf32> to vector<1x96xf32>
    %209 = vector.broadcast %208 : vector<1x96xf32> to vector<8x96xf32>
    %210 = arith.addf %206, %209 : vector<8x96xf32>
    %211 = vector.extract_strided_slice %210 {offsets = [0, 0], sizes = [8, 32], strides = [1, 1]} : vector<8x96xf32> to vector<8x32xf32>
    %212 = vector.extract_strided_slice %210 {offsets = [0, 32], sizes = [8, 32], strides = [1, 1]} : vector<8x96xf32> to vector<8x32xf32>
    %213 = vector.extract_strided_slice %210 {offsets = [0, 64], sizes = [8, 32], strides = [1, 1]} : vector<8x96xf32> to vector<8x32xf32>
    %cst_117 = arith.constant dense<0.000000e+00> : vector<8x8xf32>
    %214 = tpu.matmul %211, %212, %cst_117 {dimension_numbers = #tpu.dot_dimension_numbers<[1], [1], [0], [0], [0, 0, 1, 0], [], []>} : vector<8x32xf32>, vector<8x32xf32>, vector<8x8xf32> -> vector<8x8xf32>
    %cst_118 = arith.constant 0.176776692 : f32
    %215 = vector.broadcast %cst_118 : f32 to vector<8x8xf32>
    %216 = arith.mulf %214, %215 : vector<8x8xf32>
    %cst_119 = arith.constant dense<0xFF800000> : vector<8xf32>
    %217 = vector.multi_reduction <maximumf>, %216, %cst_119 [1] : vector<8x8xf32> to vector<8xf32>
    %218 = vector.shape_cast %217 : vector<8xf32> to vector<8x1xf32>
    %219 = vector.broadcast %218 : vector<8x1xf32> to vector<8x8xf32>
    %220 = arith.subf %216, %219 : vector<8x8xf32>
    %221 = math.exp %220 : vector<8x8xf32>
    %cst_120 = arith.constant dense<0.000000e+00> : vector<8xf32>
    %222 = vector.multi_reduction <add>, %221, %cst_120 [1] : vector<8x8xf32> to vector<8xf32>
    %223 = vector.shape_cast %222 : vector<8xf32> to vector<8x1xf32>
    %224 = vector.broadcast %223 : vector<8x1xf32> to vector<8x8xf32>
    %225 = arith.divf %221, %224 : vector<8x8xf32>
    %cst_121 = arith.constant dense<0.000000e+00> : vector<8x32xf32>
    %226 = tpu.matmul %225, %213, %cst_121 {dimension_numbers = #tpu.dot_dimension_numbers<[1], [0], [0], [1], [0, 0, 1, 1], [], []>} : vector<8x8xf32>, vector<8x32xf32>, vector<8x32xf32> -> vector<8x32xf32>
    %c2_122 = arith.constant 2 : index
    %c0_123 = arith.constant 0 : index
    %c0_124 = arith.constant 0 : index
    %227 = vector.load %arg5[%c2_122, %c0_123, %c0_124] : memref<6x32x32xf32, #tpu.memory_space<vmem>>, vector<1x32x32xf32>
    %228 = vector.shape_cast %227 : vector<1x32x32xf32> to vector<32x32xf32>
    %cst_125 = arith.constant dense<0.000000e+00> : vector<8x32xf32>
    %229 = tpu.matmul %226, %228, %cst_125 {dimension_numbers = #tpu.dot_dimension_numbers<[1], [0], [0], [1], [0, 0, 1, 1], [], []>} : vector<8x32xf32>, vector<32x32xf32>, vector<8x32xf32> -> vector<8x32xf32>
    %c2_126 = arith.constant 2 : index
    %c0_127 = arith.constant 0 : index
    %c0_128 = arith.constant 0 : index
    %230 = vector.load %arg6[%c2_126, %c0_127, %c0_128] : memref<6x1x32xf32, #tpu.memory_space<vmem>>, vector<1x1x32xf32>
    %231 = vector.shape_cast %230 : vector<1x1x32xf32> to vector<1x32xf32>
    %232 = vector.broadcast %231 : vector<1x32xf32> to vector<8x32xf32>
    %233 = arith.addf %229, %232 : vector<8x32xf32>
    %234 = arith.addf %203, %233 : vector<8x32xf32>
    %c2_129 = arith.constant 2 : index
    %c0_130 = arith.constant 0 : index
    %c0_131 = arith.constant 0 : index
    %235 = vector.load %arg7[%c2_129, %c0_130, %c0_131] : memref<6x1x32xf32, #tpu.memory_space<vmem>>, vector<1x1x32xf32>
    %236 = vector.shape_cast %235 : vector<1x1x32xf32> to vector<1x32xf32>
    %c2_132 = arith.constant 2 : index
    %c0_133 = arith.constant 0 : index
    %c0_134 = arith.constant 0 : index
    %237 = vector.load %arg8[%c2_132, %c0_133, %c0_134] : memref<6x1x32xf32, #tpu.memory_space<vmem>>, vector<1x1x32xf32>
    %238 = vector.shape_cast %237 : vector<1x1x32xf32> to vector<1x32xf32>
    %cst_135 = arith.constant dense<0.000000e+00> : vector<8xf32>
    %239 = vector.multi_reduction <add>, %234, %cst_135 [1] : vector<8x32xf32> to vector<8xf32>
    %240 = vector.shape_cast %239 : vector<8xf32> to vector<8x1xf32>
    %cst_136 = arith.constant 3.200000e+01 : f32
    %241 = vector.broadcast %cst_136 : f32 to vector<8x1xf32>
    %242 = arith.divf %240, %241 : vector<8x1xf32>
    %243 = vector.broadcast %242 : vector<8x1xf32> to vector<8x32xf32>
    %244 = arith.subf %234, %243 : vector<8x32xf32>
    %245 = arith.mulf %244, %244 : vector<8x32xf32>
    %cst_137 = arith.constant dense<0.000000e+00> : vector<8xf32>
    %246 = vector.multi_reduction <add>, %245, %cst_137 [1] : vector<8x32xf32> to vector<8xf32>
    %247 = vector.shape_cast %246 : vector<8xf32> to vector<8x1xf32>
    %cst_138 = arith.constant 3.200000e+01 : f32
    %248 = vector.broadcast %cst_138 : f32 to vector<8x1xf32>
    %249 = arith.divf %247, %248 : vector<8x1xf32>
    %250 = vector.broadcast %242 : vector<8x1xf32> to vector<8x32xf32>
    %251 = arith.subf %234, %250 : vector<8x32xf32>
    %cst_139 = arith.constant 9.99999974E-6 : f32
    %252 = vector.broadcast %cst_139 : f32 to vector<8x1xf32>
    %253 = arith.addf %249, %252 : vector<8x1xf32>
    %254 = math.rsqrt %253 : vector<8x1xf32>
    %255 = vector.broadcast %254 : vector<8x1xf32> to vector<8x32xf32>
    %256 = arith.mulf %251, %255 : vector<8x32xf32>
    %257 = vector.broadcast %236 : vector<1x32xf32> to vector<8x32xf32>
    %258 = arith.mulf %256, %257 : vector<8x32xf32>
    %259 = vector.broadcast %238 : vector<1x32xf32> to vector<8x32xf32>
    %260 = arith.addf %258, %259 : vector<8x32xf32>
    %c2_140 = arith.constant 2 : index
    %c0_141 = arith.constant 0 : index
    %c0_142 = arith.constant 0 : index
    %261 = vector.load %arg9[%c2_140, %c0_141, %c0_142] : memref<6x32x64xf32, #tpu.memory_space<vmem>>, vector<1x32x64xf32>
    %262 = vector.shape_cast %261 : vector<1x32x64xf32> to vector<32x64xf32>
    %cst_143 = arith.constant dense<0.000000e+00> : vector<8x64xf32>
    %263 = tpu.matmul %260, %262, %cst_143 {dimension_numbers = #tpu.dot_dimension_numbers<[1], [0], [0], [1], [0, 0, 1, 1], [], []>} : vector<8x32xf32>, vector<32x64xf32>, vector<8x64xf32> -> vector<8x64xf32>
    %c2_144 = arith.constant 2 : index
    %c0_145 = arith.constant 0 : index
    %c0_146 = arith.constant 0 : index
    %264 = vector.load %arg10[%c2_144, %c0_145, %c0_146] : memref<6x1x64xf32, #tpu.memory_space<vmem>>, vector<1x1x64xf32>
    %265 = vector.shape_cast %264 : vector<1x1x64xf32> to vector<1x64xf32>
    %266 = vector.broadcast %265 : vector<1x64xf32> to vector<8x64xf32>
    %267 = arith.addf %263, %266 : vector<8x64xf32>
    %cst_147 = arith.constant 0.000000e+00 : f32
    %268 = vector.broadcast %cst_147 : f32 to vector<8x64xf32>
    %269 = arith.maximumf %267, %268 : vector<8x64xf32>
    %c2_148 = arith.constant 2 : index
    %c0_149 = arith.constant 0 : index
    %c0_150 = arith.constant 0 : index
    %270 = vector.load %arg11[%c2_148, %c0_149, %c0_150] : memref<6x64x32xf32, #tpu.memory_space<vmem>>, vector<1x64x32xf32>
    %271 = vector.shape_cast %270 : vector<1x64x32xf32> to vector<64x32xf32>
    %cst_151 = arith.constant dense<0.000000e+00> : vector<8x32xf32>
    %272 = tpu.matmul %269, %271, %cst_151 {dimension_numbers = #tpu.dot_dimension_numbers<[1], [0], [0], [1], [0, 0, 1, 1], [], []>} : vector<8x64xf32>, vector<64x32xf32>, vector<8x32xf32> -> vector<8x32xf32>
    %c2_152 = arith.constant 2 : index
    %c0_153 = arith.constant 0 : index
    %c0_154 = arith.constant 0 : index
    %273 = vector.load %arg12[%c2_152, %c0_153, %c0_154] : memref<6x1x32xf32, #tpu.memory_space<vmem>>, vector<1x1x32xf32>
    %274 = vector.shape_cast %273 : vector<1x1x32xf32> to vector<1x32xf32>
    %275 = vector.broadcast %274 : vector<1x32xf32> to vector<8x32xf32>
    %276 = arith.addf %272, %275 : vector<8x32xf32>
    %277 = arith.addf %260, %276 : vector<8x32xf32>
    %c2_155 = arith.constant 2 : index
    %c0_156 = arith.constant 0 : index
    %c0_157 = arith.constant 0 : index
    %278 = vector.load %arg13[%c2_155, %c0_156, %c0_157] : memref<6x1x32xf32, #tpu.memory_space<vmem>>, vector<1x1x32xf32>
    %279 = vector.shape_cast %278 : vector<1x1x32xf32> to vector<1x32xf32>
    %c2_158 = arith.constant 2 : index
    %c0_159 = arith.constant 0 : index
    %c0_160 = arith.constant 0 : index
    %280 = vector.load %arg14[%c2_158, %c0_159, %c0_160] : memref<6x1x32xf32, #tpu.memory_space<vmem>>, vector<1x1x32xf32>
    %281 = vector.shape_cast %280 : vector<1x1x32xf32> to vector<1x32xf32>
    %cst_161 = arith.constant dense<0.000000e+00> : vector<8xf32>
    %282 = vector.multi_reduction <add>, %277, %cst_161 [1] : vector<8x32xf32> to vector<8xf32>
    %283 = vector.shape_cast %282 : vector<8xf32> to vector<8x1xf32>
    %cst_162 = arith.constant 3.200000e+01 : f32
    %284 = vector.broadcast %cst_162 : f32 to vector<8x1xf32>
    %285 = arith.divf %283, %284 : vector<8x1xf32>
    %286 = vector.broadcast %285 : vector<8x1xf32> to vector<8x32xf32>
    %287 = arith.subf %277, %286 : vector<8x32xf32>
    %288 = arith.mulf %287, %287 : vector<8x32xf32>
    %cst_163 = arith.constant dense<0.000000e+00> : vector<8xf32>
    %289 = vector.multi_reduction <add>, %288, %cst_163 [1] : vector<8x32xf32> to vector<8xf32>
    %290 = vector.shape_cast %289 : vector<8xf32> to vector<8x1xf32>
    %cst_164 = arith.constant 3.200000e+01 : f32
    %291 = vector.broadcast %cst_164 : f32 to vector<8x1xf32>
    %292 = arith.divf %290, %291 : vector<8x1xf32>
    %293 = vector.broadcast %285 : vector<8x1xf32> to vector<8x32xf32>
    %294 = arith.subf %277, %293 : vector<8x32xf32>
    %cst_165 = arith.constant 9.99999974E-6 : f32
    %295 = vector.broadcast %cst_165 : f32 to vector<8x1xf32>
    %296 = arith.addf %292, %295 : vector<8x1xf32>
    %297 = math.rsqrt %296 : vector<8x1xf32>
    %298 = vector.broadcast %297 : vector<8x1xf32> to vector<8x32xf32>
    %299 = arith.mulf %294, %298 : vector<8x32xf32>
    %300 = vector.broadcast %279 : vector<1x32xf32> to vector<8x32xf32>
    %301 = arith.mulf %299, %300 : vector<8x32xf32>
    %302 = vector.broadcast %281 : vector<1x32xf32> to vector<8x32xf32>
    %303 = arith.addf %301, %302 : vector<8x32xf32>
    %c3 = arith.constant 3 : index
    %c0_166 = arith.constant 0 : index
    %c0_167 = arith.constant 0 : index
    %304 = vector.load %arg3[%c3, %c0_166, %c0_167] : memref<6x32x96xf32, #tpu.memory_space<vmem>>, vector<1x32x96xf32>
    %305 = vector.shape_cast %304 : vector<1x32x96xf32> to vector<32x96xf32>
    %cst_168 = arith.constant dense<0.000000e+00> : vector<8x96xf32>
    %306 = tpu.matmul %303, %305, %cst_168 {dimension_numbers = #tpu.dot_dimension_numbers<[1], [0], [0], [1], [0, 0, 1, 1], [], []>} : vector<8x32xf32>, vector<32x96xf32>, vector<8x96xf32> -> vector<8x96xf32>
    %c3_169 = arith.constant 3 : index
    %c0_170 = arith.constant 0 : index
    %c0_171 = arith.constant 0 : index
    %307 = vector.load %arg4[%c3_169, %c0_170, %c0_171] : memref<6x1x96xf32, #tpu.memory_space<vmem>>, vector<1x1x96xf32>
    %308 = vector.shape_cast %307 : vector<1x1x96xf32> to vector<1x96xf32>
    %309 = vector.broadcast %308 : vector<1x96xf32> to vector<8x96xf32>
    %310 = arith.addf %306, %309 : vector<8x96xf32>
    %311 = vector.extract_strided_slice %310 {offsets = [0, 0], sizes = [8, 32], strides = [1, 1]} : vector<8x96xf32> to vector<8x32xf32>
    %312 = vector.extract_strided_slice %310 {offsets = [0, 32], sizes = [8, 32], strides = [1, 1]} : vector<8x96xf32> to vector<8x32xf32>
    %313 = vector.extract_strided_slice %310 {offsets = [0, 64], sizes = [8, 32], strides = [1, 1]} : vector<8x96xf32> to vector<8x32xf32>
    %cst_172 = arith.constant dense<0.000000e+00> : vector<8x8xf32>
    %314 = tpu.matmul %311, %312, %cst_172 {dimension_numbers = #tpu.dot_dimension_numbers<[1], [1], [0], [0], [0, 0, 1, 0], [], []>} : vector<8x32xf32>, vector<8x32xf32>, vector<8x8xf32> -> vector<8x8xf32>
    %cst_173 = arith.constant 0.176776692 : f32
    %315 = vector.broadcast %cst_173 : f32 to vector<8x8xf32>
    %316 = arith.mulf %314, %315 : vector<8x8xf32>
    %cst_174 = arith.constant dense<0xFF800000> : vector<8xf32>
    %317 = vector.multi_reduction <maximumf>, %316, %cst_174 [1] : vector<8x8xf32> to vector<8xf32>
    %318 = vector.shape_cast %317 : vector<8xf32> to vector<8x1xf32>
    %319 = vector.broadcast %318 : vector<8x1xf32> to vector<8x8xf32>
    %320 = arith.subf %316, %319 : vector<8x8xf32>
    %321 = math.exp %320 : vector<8x8xf32>
    %cst_175 = arith.constant dense<0.000000e+00> : vector<8xf32>
    %322 = vector.multi_reduction <add>, %321, %cst_175 [1] : vector<8x8xf32> to vector<8xf32>
    %323 = vector.shape_cast %322 : vector<8xf32> to vector<8x1xf32>
    %324 = vector.broadcast %323 : vector<8x1xf32> to vector<8x8xf32>
    %325 = arith.divf %321, %324 : vector<8x8xf32>
    %cst_176 = arith.constant dense<0.000000e+00> : vector<8x32xf32>
    %326 = tpu.matmul %325, %313, %cst_176 {dimension_numbers = #tpu.dot_dimension_numbers<[1], [0], [0], [1], [0, 0, 1, 1], [], []>} : vector<8x8xf32>, vector<8x32xf32>, vector<8x32xf32> -> vector<8x32xf32>
    %c3_177 = arith.constant 3 : index
    %c0_178 = arith.constant 0 : index
    %c0_179 = arith.constant 0 : index
    %327 = vector.load %arg5[%c3_177, %c0_178, %c0_179] : memref<6x32x32xf32, #tpu.memory_space<vmem>>, vector<1x32x32xf32>
    %328 = vector.shape_cast %327 : vector<1x32x32xf32> to vector<32x32xf32>
    %cst_180 = arith.constant dense<0.000000e+00> : vector<8x32xf32>
    %329 = tpu.matmul %326, %328, %cst_180 {dimension_numbers = #tpu.dot_dimension_numbers<[1], [0], [0], [1], [0, 0, 1, 1], [], []>} : vector<8x32xf32>, vector<32x32xf32>, vector<8x32xf32> -> vector<8x32xf32>
    %c3_181 = arith.constant 3 : index
    %c0_182 = arith.constant 0 : index
    %c0_183 = arith.constant 0 : index
    %330 = vector.load %arg6[%c3_181, %c0_182, %c0_183] : memref<6x1x32xf32, #tpu.memory_space<vmem>>, vector<1x1x32xf32>
    %331 = vector.shape_cast %330 : vector<1x1x32xf32> to vector<1x32xf32>
    %332 = vector.broadcast %331 : vector<1x32xf32> to vector<8x32xf32>
    %333 = arith.addf %329, %332 : vector<8x32xf32>
    %334 = arith.addf %303, %333 : vector<8x32xf32>
    %c3_184 = arith.constant 3 : index
    %c0_185 = arith.constant 0 : index
    %c0_186 = arith.constant 0 : index
    %335 = vector.load %arg7[%c3_184, %c0_185, %c0_186] : memref<6x1x32xf32, #tpu.memory_space<vmem>>, vector<1x1x32xf32>
    %336 = vector.shape_cast %335 : vector<1x1x32xf32> to vector<1x32xf32>
    %c3_187 = arith.constant 3 : index
    %c0_188 = arith.constant 0 : index
    %c0_189 = arith.constant 0 : index
    %337 = vector.load %arg8[%c3_187, %c0_188, %c0_189] : memref<6x1x32xf32, #tpu.memory_space<vmem>>, vector<1x1x32xf32>
    %338 = vector.shape_cast %337 : vector<1x1x32xf32> to vector<1x32xf32>
    %cst_190 = arith.constant dense<0.000000e+00> : vector<8xf32>
    %339 = vector.multi_reduction <add>, %334, %cst_190 [1] : vector<8x32xf32> to vector<8xf32>
    %340 = vector.shape_cast %339 : vector<8xf32> to vector<8x1xf32>
    %cst_191 = arith.constant 3.200000e+01 : f32
    %341 = vector.broadcast %cst_191 : f32 to vector<8x1xf32>
    %342 = arith.divf %340, %341 : vector<8x1xf32>
    %343 = vector.broadcast %342 : vector<8x1xf32> to vector<8x32xf32>
    %344 = arith.subf %334, %343 : vector<8x32xf32>
    %345 = arith.mulf %344, %344 : vector<8x32xf32>
    %cst_192 = arith.constant dense<0.000000e+00> : vector<8xf32>
    %346 = vector.multi_reduction <add>, %345, %cst_192 [1] : vector<8x32xf32> to vector<8xf32>
    %347 = vector.shape_cast %346 : vector<8xf32> to vector<8x1xf32>
    %cst_193 = arith.constant 3.200000e+01 : f32
    %348 = vector.broadcast %cst_193 : f32 to vector<8x1xf32>
    %349 = arith.divf %347, %348 : vector<8x1xf32>
    %350 = vector.broadcast %342 : vector<8x1xf32> to vector<8x32xf32>
    %351 = arith.subf %334, %350 : vector<8x32xf32>
    %cst_194 = arith.constant 9.99999974E-6 : f32
    %352 = vector.broadcast %cst_194 : f32 to vector<8x1xf32>
    %353 = arith.addf %349, %352 : vector<8x1xf32>
    %354 = math.rsqrt %353 : vector<8x1xf32>
    %355 = vector.broadcast %354 : vector<8x1xf32> to vector<8x32xf32>
    %356 = arith.mulf %351, %355 : vector<8x32xf32>
    %357 = vector.broadcast %336 : vector<1x32xf32> to vector<8x32xf32>
    %358 = arith.mulf %356, %357 : vector<8x32xf32>
    %359 = vector.broadcast %338 : vector<1x32xf32> to vector<8x32xf32>
    %360 = arith.addf %358, %359 : vector<8x32xf32>
    %c3_195 = arith.constant 3 : index
    %c0_196 = arith.constant 0 : index
    %c0_197 = arith.constant 0 : index
    %361 = vector.load %arg9[%c3_195, %c0_196, %c0_197] : memref<6x32x64xf32, #tpu.memory_space<vmem>>, vector<1x32x64xf32>
    %362 = vector.shape_cast %361 : vector<1x32x64xf32> to vector<32x64xf32>
    %cst_198 = arith.constant dense<0.000000e+00> : vector<8x64xf32>
    %363 = tpu.matmul %360, %362, %cst_198 {dimension_numbers = #tpu.dot_dimension_numbers<[1], [0], [0], [1], [0, 0, 1, 1], [], []>} : vector<8x32xf32>, vector<32x64xf32>, vector<8x64xf32> -> vector<8x64xf32>
    %c3_199 = arith.constant 3 : index
    %c0_200 = arith.constant 0 : index
    %c0_201 = arith.constant 0 : index
    %364 = vector.load %arg10[%c3_199, %c0_200, %c0_201] : memref<6x1x64xf32, #tpu.memory_space<vmem>>, vector<1x1x64xf32>
    %365 = vector.shape_cast %364 : vector<1x1x64xf32> to vector<1x64xf32>
    %366 = vector.broadcast %365 : vector<1x64xf32> to vector<8x64xf32>
    %367 = arith.addf %363, %366 : vector<8x64xf32>
    %cst_202 = arith.constant 0.000000e+00 : f32
    %368 = vector.broadcast %cst_202 : f32 to vector<8x64xf32>
    %369 = arith.maximumf %367, %368 : vector<8x64xf32>
    %c3_203 = arith.constant 3 : index
    %c0_204 = arith.constant 0 : index
    %c0_205 = arith.constant 0 : index
    %370 = vector.load %arg11[%c3_203, %c0_204, %c0_205] : memref<6x64x32xf32, #tpu.memory_space<vmem>>, vector<1x64x32xf32>
    %371 = vector.shape_cast %370 : vector<1x64x32xf32> to vector<64x32xf32>
    %cst_206 = arith.constant dense<0.000000e+00> : vector<8x32xf32>
    %372 = tpu.matmul %369, %371, %cst_206 {dimension_numbers = #tpu.dot_dimension_numbers<[1], [0], [0], [1], [0, 0, 1, 1], [], []>} : vector<8x64xf32>, vector<64x32xf32>, vector<8x32xf32> -> vector<8x32xf32>
    %c3_207 = arith.constant 3 : index
    %c0_208 = arith.constant 0 : index
    %c0_209 = arith.constant 0 : index
    %373 = vector.load %arg12[%c3_207, %c0_208, %c0_209] : memref<6x1x32xf32, #tpu.memory_space<vmem>>, vector<1x1x32xf32>
    %374 = vector.shape_cast %373 : vector<1x1x32xf32> to vector<1x32xf32>
    %375 = vector.broadcast %374 : vector<1x32xf32> to vector<8x32xf32>
    %376 = arith.addf %372, %375 : vector<8x32xf32>
    %377 = arith.addf %360, %376 : vector<8x32xf32>
    %c3_210 = arith.constant 3 : index
    %c0_211 = arith.constant 0 : index
    %c0_212 = arith.constant 0 : index
    %378 = vector.load %arg13[%c3_210, %c0_211, %c0_212] : memref<6x1x32xf32, #tpu.memory_space<vmem>>, vector<1x1x32xf32>
    %379 = vector.shape_cast %378 : vector<1x1x32xf32> to vector<1x32xf32>
    %c3_213 = arith.constant 3 : index
    %c0_214 = arith.constant 0 : index
    %c0_215 = arith.constant 0 : index
    %380 = vector.load %arg14[%c3_213, %c0_214, %c0_215] : memref<6x1x32xf32, #tpu.memory_space<vmem>>, vector<1x1x32xf32>
    %381 = vector.shape_cast %380 : vector<1x1x32xf32> to vector<1x32xf32>
    %cst_216 = arith.constant dense<0.000000e+00> : vector<8xf32>
    %382 = vector.multi_reduction <add>, %377, %cst_216 [1] : vector<8x32xf32> to vector<8xf32>
    %383 = vector.shape_cast %382 : vector<8xf32> to vector<8x1xf32>
    %cst_217 = arith.constant 3.200000e+01 : f32
    %384 = vector.broadcast %cst_217 : f32 to vector<8x1xf32>
    %385 = arith.divf %383, %384 : vector<8x1xf32>
    %386 = vector.broadcast %385 : vector<8x1xf32> to vector<8x32xf32>
    %387 = arith.subf %377, %386 : vector<8x32xf32>
    %388 = arith.mulf %387, %387 : vector<8x32xf32>
    %cst_218 = arith.constant dense<0.000000e+00> : vector<8xf32>
    %389 = vector.multi_reduction <add>, %388, %cst_218 [1] : vector<8x32xf32> to vector<8xf32>
    %390 = vector.shape_cast %389 : vector<8xf32> to vector<8x1xf32>
    %cst_219 = arith.constant 3.200000e+01 : f32
    %391 = vector.broadcast %cst_219 : f32 to vector<8x1xf32>
    %392 = arith.divf %390, %391 : vector<8x1xf32>
    %393 = vector.broadcast %385 : vector<8x1xf32> to vector<8x32xf32>
    %394 = arith.subf %377, %393 : vector<8x32xf32>
    %cst_220 = arith.constant 9.99999974E-6 : f32
    %395 = vector.broadcast %cst_220 : f32 to vector<8x1xf32>
    %396 = arith.addf %392, %395 : vector<8x1xf32>
    %397 = math.rsqrt %396 : vector<8x1xf32>
    %398 = vector.broadcast %397 : vector<8x1xf32> to vector<8x32xf32>
    %399 = arith.mulf %394, %398 : vector<8x32xf32>
    %400 = vector.broadcast %379 : vector<1x32xf32> to vector<8x32xf32>
    %401 = arith.mulf %399, %400 : vector<8x32xf32>
    %402 = vector.broadcast %381 : vector<1x32xf32> to vector<8x32xf32>
    %403 = arith.addf %401, %402 : vector<8x32xf32>
    %c4 = arith.constant 4 : index
    %c0_221 = arith.constant 0 : index
    %c0_222 = arith.constant 0 : index
    %404 = vector.load %arg3[%c4, %c0_221, %c0_222] : memref<6x32x96xf32, #tpu.memory_space<vmem>>, vector<1x32x96xf32>
    %405 = vector.shape_cast %404 : vector<1x32x96xf32> to vector<32x96xf32>
    %cst_223 = arith.constant dense<0.000000e+00> : vector<8x96xf32>
    %406 = tpu.matmul %403, %405, %cst_223 {dimension_numbers = #tpu.dot_dimension_numbers<[1], [0], [0], [1], [0, 0, 1, 1], [], []>} : vector<8x32xf32>, vector<32x96xf32>, vector<8x96xf32> -> vector<8x96xf32>
    %c4_224 = arith.constant 4 : index
    %c0_225 = arith.constant 0 : index
    %c0_226 = arith.constant 0 : index
    %407 = vector.load %arg4[%c4_224, %c0_225, %c0_226] : memref<6x1x96xf32, #tpu.memory_space<vmem>>, vector<1x1x96xf32>
    %408 = vector.shape_cast %407 : vector<1x1x96xf32> to vector<1x96xf32>
    %409 = vector.broadcast %408 : vector<1x96xf32> to vector<8x96xf32>
    %410 = arith.addf %406, %409 : vector<8x96xf32>
    %411 = vector.extract_strided_slice %410 {offsets = [0, 0], sizes = [8, 32], strides = [1, 1]} : vector<8x96xf32> to vector<8x32xf32>
    %412 = vector.extract_strided_slice %410 {offsets = [0, 32], sizes = [8, 32], strides = [1, 1]} : vector<8x96xf32> to vector<8x32xf32>
    %413 = vector.extract_strided_slice %410 {offsets = [0, 64], sizes = [8, 32], strides = [1, 1]} : vector<8x96xf32> to vector<8x32xf32>
    %cst_227 = arith.constant dense<0.000000e+00> : vector<8x8xf32>
    %414 = tpu.matmul %411, %412, %cst_227 {dimension_numbers = #tpu.dot_dimension_numbers<[1], [1], [0], [0], [0, 0, 1, 0], [], []>} : vector<8x32xf32>, vector<8x32xf32>, vector<8x8xf32> -> vector<8x8xf32>
    %cst_228 = arith.constant 0.176776692 : f32
    %415 = vector.broadcast %cst_228 : f32 to vector<8x8xf32>
    %416 = arith.mulf %414, %415 : vector<8x8xf32>
    %cst_229 = arith.constant dense<0xFF800000> : vector<8xf32>
    %417 = vector.multi_reduction <maximumf>, %416, %cst_229 [1] : vector<8x8xf32> to vector<8xf32>
    %418 = vector.shape_cast %417 : vector<8xf32> to vector<8x1xf32>
    %419 = vector.broadcast %418 : vector<8x1xf32> to vector<8x8xf32>
    %420 = arith.subf %416, %419 : vector<8x8xf32>
    %421 = math.exp %420 : vector<8x8xf32>
    %cst_230 = arith.constant dense<0.000000e+00> : vector<8xf32>
    %422 = vector.multi_reduction <add>, %421, %cst_230 [1] : vector<8x8xf32> to vector<8xf32>
    %423 = vector.shape_cast %422 : vector<8xf32> to vector<8x1xf32>
    %424 = vector.broadcast %423 : vector<8x1xf32> to vector<8x8xf32>
    %425 = arith.divf %421, %424 : vector<8x8xf32>
    %cst_231 = arith.constant dense<0.000000e+00> : vector<8x32xf32>
    %426 = tpu.matmul %425, %413, %cst_231 {dimension_numbers = #tpu.dot_dimension_numbers<[1], [0], [0], [1], [0, 0, 1, 1], [], []>} : vector<8x8xf32>, vector<8x32xf32>, vector<8x32xf32> -> vector<8x32xf32>
    %c4_232 = arith.constant 4 : index
    %c0_233 = arith.constant 0 : index
    %c0_234 = arith.constant 0 : index
    %427 = vector.load %arg5[%c4_232, %c0_233, %c0_234] : memref<6x32x32xf32, #tpu.memory_space<vmem>>, vector<1x32x32xf32>
    %428 = vector.shape_cast %427 : vector<1x32x32xf32> to vector<32x32xf32>
    %cst_235 = arith.constant dense<0.000000e+00> : vector<8x32xf32>
    %429 = tpu.matmul %426, %428, %cst_235 {dimension_numbers = #tpu.dot_dimension_numbers<[1], [0], [0], [1], [0, 0, 1, 1], [], []>} : vector<8x32xf32>, vector<32x32xf32>, vector<8x32xf32> -> vector<8x32xf32>
    %c4_236 = arith.constant 4 : index
    %c0_237 = arith.constant 0 : index
    %c0_238 = arith.constant 0 : index
    %430 = vector.load %arg6[%c4_236, %c0_237, %c0_238] : memref<6x1x32xf32, #tpu.memory_space<vmem>>, vector<1x1x32xf32>
    %431 = vector.shape_cast %430 : vector<1x1x32xf32> to vector<1x32xf32>
    %432 = vector.broadcast %431 : vector<1x32xf32> to vector<8x32xf32>
    %433 = arith.addf %429, %432 : vector<8x32xf32>
    %434 = arith.addf %403, %433 : vector<8x32xf32>
    %c4_239 = arith.constant 4 : index
    %c0_240 = arith.constant 0 : index
    %c0_241 = arith.constant 0 : index
    %435 = vector.load %arg7[%c4_239, %c0_240, %c0_241] : memref<6x1x32xf32, #tpu.memory_space<vmem>>, vector<1x1x32xf32>
    %436 = vector.shape_cast %435 : vector<1x1x32xf32> to vector<1x32xf32>
    %c4_242 = arith.constant 4 : index
    %c0_243 = arith.constant 0 : index
    %c0_244 = arith.constant 0 : index
    %437 = vector.load %arg8[%c4_242, %c0_243, %c0_244] : memref<6x1x32xf32, #tpu.memory_space<vmem>>, vector<1x1x32xf32>
    %438 = vector.shape_cast %437 : vector<1x1x32xf32> to vector<1x32xf32>
    %cst_245 = arith.constant dense<0.000000e+00> : vector<8xf32>
    %439 = vector.multi_reduction <add>, %434, %cst_245 [1] : vector<8x32xf32> to vector<8xf32>
    %440 = vector.shape_cast %439 : vector<8xf32> to vector<8x1xf32>
    %cst_246 = arith.constant 3.200000e+01 : f32
    %441 = vector.broadcast %cst_246 : f32 to vector<8x1xf32>
    %442 = arith.divf %440, %441 : vector<8x1xf32>
    %443 = vector.broadcast %442 : vector<8x1xf32> to vector<8x32xf32>
    %444 = arith.subf %434, %443 : vector<8x32xf32>
    %445 = arith.mulf %444, %444 : vector<8x32xf32>
    %cst_247 = arith.constant dense<0.000000e+00> : vector<8xf32>
    %446 = vector.multi_reduction <add>, %445, %cst_247 [1] : vector<8x32xf32> to vector<8xf32>
    %447 = vector.shape_cast %446 : vector<8xf32> to vector<8x1xf32>
    %cst_248 = arith.constant 3.200000e+01 : f32
    %448 = vector.broadcast %cst_248 : f32 to vector<8x1xf32>
    %449 = arith.divf %447, %448 : vector<8x1xf32>
    %450 = vector.broadcast %442 : vector<8x1xf32> to vector<8x32xf32>
    %451 = arith.subf %434, %450 : vector<8x32xf32>
    %cst_249 = arith.constant 9.99999974E-6 : f32
    %452 = vector.broadcast %cst_249 : f32 to vector<8x1xf32>
    %453 = arith.addf %449, %452 : vector<8x1xf32>
    %454 = math.rsqrt %453 : vector<8x1xf32>
    %455 = vector.broadcast %454 : vector<8x1xf32> to vector<8x32xf32>
    %456 = arith.mulf %451, %455 : vector<8x32xf32>
    %457 = vector.broadcast %436 : vector<1x32xf32> to vector<8x32xf32>
    %458 = arith.mulf %456, %457 : vector<8x32xf32>
    %459 = vector.broadcast %438 : vector<1x32xf32> to vector<8x32xf32>
    %460 = arith.addf %458, %459 : vector<8x32xf32>
    %c4_250 = arith.constant 4 : index
    %c0_251 = arith.constant 0 : index
    %c0_252 = arith.constant 0 : index
    %461 = vector.load %arg9[%c4_250, %c0_251, %c0_252] : memref<6x32x64xf32, #tpu.memory_space<vmem>>, vector<1x32x64xf32>
    %462 = vector.shape_cast %461 : vector<1x32x64xf32> to vector<32x64xf32>
    %cst_253 = arith.constant dense<0.000000e+00> : vector<8x64xf32>
    %463 = tpu.matmul %460, %462, %cst_253 {dimension_numbers = #tpu.dot_dimension_numbers<[1], [0], [0], [1], [0, 0, 1, 1], [], []>} : vector<8x32xf32>, vector<32x64xf32>, vector<8x64xf32> -> vector<8x64xf32>
    %c4_254 = arith.constant 4 : index
    %c0_255 = arith.constant 0 : index
    %c0_256 = arith.constant 0 : index
    %464 = vector.load %arg10[%c4_254, %c0_255, %c0_256] : memref<6x1x64xf32, #tpu.memory_space<vmem>>, vector<1x1x64xf32>
    %465 = vector.shape_cast %464 : vector<1x1x64xf32> to vector<1x64xf32>
    %466 = vector.broadcast %465 : vector<1x64xf32> to vector<8x64xf32>
    %467 = arith.addf %463, %466 : vector<8x64xf32>
    %cst_257 = arith.constant 0.000000e+00 : f32
    %468 = vector.broadcast %cst_257 : f32 to vector<8x64xf32>
    %469 = arith.maximumf %467, %468 : vector<8x64xf32>
    %c4_258 = arith.constant 4 : index
    %c0_259 = arith.constant 0 : index
    %c0_260 = arith.constant 0 : index
    %470 = vector.load %arg11[%c4_258, %c0_259, %c0_260] : memref<6x64x32xf32, #tpu.memory_space<vmem>>, vector<1x64x32xf32>
    %471 = vector.shape_cast %470 : vector<1x64x32xf32> to vector<64x32xf32>
    %cst_261 = arith.constant dense<0.000000e+00> : vector<8x32xf32>
    %472 = tpu.matmul %469, %471, %cst_261 {dimension_numbers = #tpu.dot_dimension_numbers<[1], [0], [0], [1], [0, 0, 1, 1], [], []>} : vector<8x64xf32>, vector<64x32xf32>, vector<8x32xf32> -> vector<8x32xf32>
    %c4_262 = arith.constant 4 : index
    %c0_263 = arith.constant 0 : index
    %c0_264 = arith.constant 0 : index
    %473 = vector.load %arg12[%c4_262, %c0_263, %c0_264] : memref<6x1x32xf32, #tpu.memory_space<vmem>>, vector<1x1x32xf32>
    %474 = vector.shape_cast %473 : vector<1x1x32xf32> to vector<1x32xf32>
    %475 = vector.broadcast %474 : vector<1x32xf32> to vector<8x32xf32>
    %476 = arith.addf %472, %475 : vector<8x32xf32>
    %477 = arith.addf %460, %476 : vector<8x32xf32>
    %c4_265 = arith.constant 4 : index
    %c0_266 = arith.constant 0 : index
    %c0_267 = arith.constant 0 : index
    %478 = vector.load %arg13[%c4_265, %c0_266, %c0_267] : memref<6x1x32xf32, #tpu.memory_space<vmem>>, vector<1x1x32xf32>
    %479 = vector.shape_cast %478 : vector<1x1x32xf32> to vector<1x32xf32>
    %c4_268 = arith.constant 4 : index
    %c0_269 = arith.constant 0 : index
    %c0_270 = arith.constant 0 : index
    %480 = vector.load %arg14[%c4_268, %c0_269, %c0_270] : memref<6x1x32xf32, #tpu.memory_space<vmem>>, vector<1x1x32xf32>
    %481 = vector.shape_cast %480 : vector<1x1x32xf32> to vector<1x32xf32>
    %cst_271 = arith.constant dense<0.000000e+00> : vector<8xf32>
    %482 = vector.multi_reduction <add>, %477, %cst_271 [1] : vector<8x32xf32> to vector<8xf32>
    %483 = vector.shape_cast %482 : vector<8xf32> to vector<8x1xf32>
    %cst_272 = arith.constant 3.200000e+01 : f32
    %484 = vector.broadcast %cst_272 : f32 to vector<8x1xf32>
    %485 = arith.divf %483, %484 : vector<8x1xf32>
    %486 = vector.broadcast %485 : vector<8x1xf32> to vector<8x32xf32>
    %487 = arith.subf %477, %486 : vector<8x32xf32>
    %488 = arith.mulf %487, %487 : vector<8x32xf32>
    %cst_273 = arith.constant dense<0.000000e+00> : vector<8xf32>
    %489 = vector.multi_reduction <add>, %488, %cst_273 [1] : vector<8x32xf32> to vector<8xf32>
    %490 = vector.shape_cast %489 : vector<8xf32> to vector<8x1xf32>
    %cst_274 = arith.constant 3.200000e+01 : f32
    %491 = vector.broadcast %cst_274 : f32 to vector<8x1xf32>
    %492 = arith.divf %490, %491 : vector<8x1xf32>
    %493 = vector.broadcast %485 : vector<8x1xf32> to vector<8x32xf32>
    %494 = arith.subf %477, %493 : vector<8x32xf32>
    %cst_275 = arith.constant 9.99999974E-6 : f32
    %495 = vector.broadcast %cst_275 : f32 to vector<8x1xf32>
    %496 = arith.addf %492, %495 : vector<8x1xf32>
    %497 = math.rsqrt %496 : vector<8x1xf32>
    %498 = vector.broadcast %497 : vector<8x1xf32> to vector<8x32xf32>
    %499 = arith.mulf %494, %498 : vector<8x32xf32>
    %500 = vector.broadcast %479 : vector<1x32xf32> to vector<8x32xf32>
    %501 = arith.mulf %499, %500 : vector<8x32xf32>
    %502 = vector.broadcast %481 : vector<1x32xf32> to vector<8x32xf32>
    %503 = arith.addf %501, %502 : vector<8x32xf32>
    %c5 = arith.constant 5 : index
    %c0_276 = arith.constant 0 : index
    %c0_277 = arith.constant 0 : index
    %504 = vector.load %arg3[%c5, %c0_276, %c0_277] : memref<6x32x96xf32, #tpu.memory_space<vmem>>, vector<1x32x96xf32>
    %505 = vector.shape_cast %504 : vector<1x32x96xf32> to vector<32x96xf32>
    %cst_278 = arith.constant dense<0.000000e+00> : vector<8x96xf32>
    %506 = tpu.matmul %503, %505, %cst_278 {dimension_numbers = #tpu.dot_dimension_numbers<[1], [0], [0], [1], [0, 0, 1, 1], [], []>} : vector<8x32xf32>, vector<32x96xf32>, vector<8x96xf32> -> vector<8x96xf32>
    %c5_279 = arith.constant 5 : index
    %c0_280 = arith.constant 0 : index
    %c0_281 = arith.constant 0 : index
    %507 = vector.load %arg4[%c5_279, %c0_280, %c0_281] : memref<6x1x96xf32, #tpu.memory_space<vmem>>, vector<1x1x96xf32>
    %508 = vector.shape_cast %507 : vector<1x1x96xf32> to vector<1x96xf32>
    %509 = vector.broadcast %508 : vector<1x96xf32> to vector<8x96xf32>
    %510 = arith.addf %506, %509 : vector<8x96xf32>
    %511 = vector.extract_strided_slice %510 {offsets = [0, 0], sizes = [8, 32], strides = [1, 1]} : vector<8x96xf32> to vector<8x32xf32>
    %512 = vector.extract_strided_slice %510 {offsets = [0, 32], sizes = [8, 32], strides = [1, 1]} : vector<8x96xf32> to vector<8x32xf32>
    %513 = vector.extract_strided_slice %510 {offsets = [0, 64], sizes = [8, 32], strides = [1, 1]} : vector<8x96xf32> to vector<8x32xf32>
    %cst_282 = arith.constant dense<0.000000e+00> : vector<8x8xf32>
    %514 = tpu.matmul %511, %512, %cst_282 {dimension_numbers = #tpu.dot_dimension_numbers<[1], [1], [0], [0], [0, 0, 1, 0], [], []>} : vector<8x32xf32>, vector<8x32xf32>, vector<8x8xf32> -> vector<8x8xf32>
    %cst_283 = arith.constant 0.176776692 : f32
    %515 = vector.broadcast %cst_283 : f32 to vector<8x8xf32>
    %516 = arith.mulf %514, %515 : vector<8x8xf32>
    %cst_284 = arith.constant dense<0xFF800000> : vector<8xf32>
    %517 = vector.multi_reduction <maximumf>, %516, %cst_284 [1] : vector<8x8xf32> to vector<8xf32>
    %518 = vector.shape_cast %517 : vector<8xf32> to vector<8x1xf32>
    %519 = vector.broadcast %518 : vector<8x1xf32> to vector<8x8xf32>
    %520 = arith.subf %516, %519 : vector<8x8xf32>
    %521 = math.exp %520 : vector<8x8xf32>
    %cst_285 = arith.constant dense<0.000000e+00> : vector<8xf32>
    %522 = vector.multi_reduction <add>, %521, %cst_285 [1] : vector<8x8xf32> to vector<8xf32>
    %523 = vector.shape_cast %522 : vector<8xf32> to vector<8x1xf32>
    %524 = vector.broadcast %523 : vector<8x1xf32> to vector<8x8xf32>
    %525 = arith.divf %521, %524 : vector<8x8xf32>
    %cst_286 = arith.constant dense<0.000000e+00> : vector<8x32xf32>
    %526 = tpu.matmul %525, %513, %cst_286 {dimension_numbers = #tpu.dot_dimension_numbers<[1], [0], [0], [1], [0, 0, 1, 1], [], []>} : vector<8x8xf32>, vector<8x32xf32>, vector<8x32xf32> -> vector<8x32xf32>
    %c5_287 = arith.constant 5 : index
    %c0_288 = arith.constant 0 : index
    %c0_289 = arith.constant 0 : index
    %527 = vector.load %arg5[%c5_287, %c0_288, %c0_289] : memref<6x32x32xf32, #tpu.memory_space<vmem>>, vector<1x32x32xf32>
    %528 = vector.shape_cast %527 : vector<1x32x32xf32> to vector<32x32xf32>
    %cst_290 = arith.constant dense<0.000000e+00> : vector<8x32xf32>
    %529 = tpu.matmul %526, %528, %cst_290 {dimension_numbers = #tpu.dot_dimension_numbers<[1], [0], [0], [1], [0, 0, 1, 1], [], []>} : vector<8x32xf32>, vector<32x32xf32>, vector<8x32xf32> -> vector<8x32xf32>
    %c5_291 = arith.constant 5 : index
    %c0_292 = arith.constant 0 : index
    %c0_293 = arith.constant 0 : index
    %530 = vector.load %arg6[%c5_291, %c0_292, %c0_293] : memref<6x1x32xf32, #tpu.memory_space<vmem>>, vector<1x1x32xf32>
    %531 = vector.shape_cast %530 : vector<1x1x32xf32> to vector<1x32xf32>
    %532 = vector.broadcast %531 : vector<1x32xf32> to vector<8x32xf32>
    %533 = arith.addf %529, %532 : vector<8x32xf32>
    %534 = arith.addf %503, %533 : vector<8x32xf32>
    %c5_294 = arith.constant 5 : index
    %c0_295 = arith.constant 0 : index
    %c0_296 = arith.constant 0 : index
    %535 = vector.load %arg7[%c5_294, %c0_295, %c0_296] : memref<6x1x32xf32, #tpu.memory_space<vmem>>, vector<1x1x32xf32>
    %536 = vector.shape_cast %535 : vector<1x1x32xf32> to vector<1x32xf32>
    %c5_297 = arith.constant 5 : index
    %c0_298 = arith.constant 0 : index
    %c0_299 = arith.constant 0 : index
    %537 = vector.load %arg8[%c5_297, %c0_298, %c0_299] : memref<6x1x32xf32, #tpu.memory_space<vmem>>, vector<1x1x32xf32>
    %538 = vector.shape_cast %537 : vector<1x1x32xf32> to vector<1x32xf32>
    %cst_300 = arith.constant dense<0.000000e+00> : vector<8xf32>
    %539 = vector.multi_reduction <add>, %534, %cst_300 [1] : vector<8x32xf32> to vector<8xf32>
    %540 = vector.shape_cast %539 : vector<8xf32> to vector<8x1xf32>
    %cst_301 = arith.constant 3.200000e+01 : f32
    %541 = vector.broadcast %cst_301 : f32 to vector<8x1xf32>
    %542 = arith.divf %540, %541 : vector<8x1xf32>
    %543 = vector.broadcast %542 : vector<8x1xf32> to vector<8x32xf32>
    %544 = arith.subf %534, %543 : vector<8x32xf32>
    %545 = arith.mulf %544, %544 : vector<8x32xf32>
    %cst_302 = arith.constant dense<0.000000e+00> : vector<8xf32>
    %546 = vector.multi_reduction <add>, %545, %cst_302 [1] : vector<8x32xf32> to vector<8xf32>
    %547 = vector.shape_cast %546 : vector<8xf32> to vector<8x1xf32>
    %cst_303 = arith.constant 3.200000e+01 : f32
    %548 = vector.broadcast %cst_303 : f32 to vector<8x1xf32>
    %549 = arith.divf %547, %548 : vector<8x1xf32>
    %550 = vector.broadcast %542 : vector<8x1xf32> to vector<8x32xf32>
    %551 = arith.subf %534, %550 : vector<8x32xf32>
    %cst_304 = arith.constant 9.99999974E-6 : f32
    %552 = vector.broadcast %cst_304 : f32 to vector<8x1xf32>
    %553 = arith.addf %549, %552 : vector<8x1xf32>
    %554 = math.rsqrt %553 : vector<8x1xf32>
    %555 = vector.broadcast %554 : vector<8x1xf32> to vector<8x32xf32>
    %556 = arith.mulf %551, %555 : vector<8x32xf32>
    %557 = vector.broadcast %536 : vector<1x32xf32> to vector<8x32xf32>
    %558 = arith.mulf %556, %557 : vector<8x32xf32>
    %559 = vector.broadcast %538 : vector<1x32xf32> to vector<8x32xf32>
    %560 = arith.addf %558, %559 : vector<8x32xf32>
    %c5_305 = arith.constant 5 : index
    %c0_306 = arith.constant 0 : index
    %c0_307 = arith.constant 0 : index
    %561 = vector.load %arg9[%c5_305, %c0_306, %c0_307] : memref<6x32x64xf32, #tpu.memory_space<vmem>>, vector<1x32x64xf32>
    %562 = vector.shape_cast %561 : vector<1x32x64xf32> to vector<32x64xf32>
    %cst_308 = arith.constant dense<0.000000e+00> : vector<8x64xf32>
    %563 = tpu.matmul %560, %562, %cst_308 {dimension_numbers = #tpu.dot_dimension_numbers<[1], [0], [0], [1], [0, 0, 1, 1], [], []>} : vector<8x32xf32>, vector<32x64xf32>, vector<8x64xf32> -> vector<8x64xf32>
    %c5_309 = arith.constant 5 : index
    %c0_310 = arith.constant 0 : index
    %c0_311 = arith.constant 0 : index
    %564 = vector.load %arg10[%c5_309, %c0_310, %c0_311] : memref<6x1x64xf32, #tpu.memory_space<vmem>>, vector<1x1x64xf32>
    %565 = vector.shape_cast %564 : vector<1x1x64xf32> to vector<1x64xf32>
    %566 = vector.broadcast %565 : vector<1x64xf32> to vector<8x64xf32>
    %567 = arith.addf %563, %566 : vector<8x64xf32>
    %cst_312 = arith.constant 0.000000e+00 : f32
    %568 = vector.broadcast %cst_312 : f32 to vector<8x64xf32>
    %569 = arith.maximumf %567, %568 : vector<8x64xf32>
    %c5_313 = arith.constant 5 : index
    %c0_314 = arith.constant 0 : index
    %c0_315 = arith.constant 0 : index
    %570 = vector.load %arg11[%c5_313, %c0_314, %c0_315] : memref<6x64x32xf32, #tpu.memory_space<vmem>>, vector<1x64x32xf32>
    %571 = vector.shape_cast %570 : vector<1x64x32xf32> to vector<64x32xf32>
    %cst_316 = arith.constant dense<0.000000e+00> : vector<8x32xf32>
    %572 = tpu.matmul %569, %571, %cst_316 {dimension_numbers = #tpu.dot_dimension_numbers<[1], [0], [0], [1], [0, 0, 1, 1], [], []>} : vector<8x64xf32>, vector<64x32xf32>, vector<8x32xf32> -> vector<8x32xf32>
    %c5_317 = arith.constant 5 : index
    %c0_318 = arith.constant 0 : index
    %c0_319 = arith.constant 0 : index
    %573 = vector.load %arg12[%c5_317, %c0_318, %c0_319] : memref<6x1x32xf32, #tpu.memory_space<vmem>>, vector<1x1x32xf32>
    %574 = vector.shape_cast %573 : vector<1x1x32xf32> to vector<1x32xf32>
    %575 = vector.broadcast %574 : vector<1x32xf32> to vector<8x32xf32>
    %576 = arith.addf %572, %575 : vector<8x32xf32>
    %577 = arith.addf %560, %576 : vector<8x32xf32>
    %c5_320 = arith.constant 5 : index
    %c0_321 = arith.constant 0 : index
    %c0_322 = arith.constant 0 : index
    %578 = vector.load %arg13[%c5_320, %c0_321, %c0_322] : memref<6x1x32xf32, #tpu.memory_space<vmem>>, vector<1x1x32xf32>
    %579 = vector.shape_cast %578 : vector<1x1x32xf32> to vector<1x32xf32>
    %c5_323 = arith.constant 5 : index
    %c0_324 = arith.constant 0 : index
    %c0_325 = arith.constant 0 : index
    %580 = vector.load %arg14[%c5_323, %c0_324, %c0_325] : memref<6x1x32xf32, #tpu.memory_space<vmem>>, vector<1x1x32xf32>
    %581 = vector.shape_cast %580 : vector<1x1x32xf32> to vector<1x32xf32>
    %cst_326 = arith.constant dense<0.000000e+00> : vector<8xf32>
    %582 = vector.multi_reduction <add>, %577, %cst_326 [1] : vector<8x32xf32> to vector<8xf32>
    %583 = vector.shape_cast %582 : vector<8xf32> to vector<8x1xf32>
    %cst_327 = arith.constant 3.200000e+01 : f32
    %584 = vector.broadcast %cst_327 : f32 to vector<8x1xf32>
    %585 = arith.divf %583, %584 : vector<8x1xf32>
    %586 = vector.broadcast %585 : vector<8x1xf32> to vector<8x32xf32>
    %587 = arith.subf %577, %586 : vector<8x32xf32>
    %588 = arith.mulf %587, %587 : vector<8x32xf32>
    %cst_328 = arith.constant dense<0.000000e+00> : vector<8xf32>
    %589 = vector.multi_reduction <add>, %588, %cst_328 [1] : vector<8x32xf32> to vector<8xf32>
    %590 = vector.shape_cast %589 : vector<8xf32> to vector<8x1xf32>
    %cst_329 = arith.constant 3.200000e+01 : f32
    %591 = vector.broadcast %cst_329 : f32 to vector<8x1xf32>
    %592 = arith.divf %590, %591 : vector<8x1xf32>
    %593 = vector.broadcast %585 : vector<8x1xf32> to vector<8x32xf32>
    %594 = arith.subf %577, %593 : vector<8x32xf32>
    %cst_330 = arith.constant 9.99999974E-6 : f32
    %595 = vector.broadcast %cst_330 : f32 to vector<8x1xf32>
    %596 = arith.addf %592, %595 : vector<8x1xf32>
    %597 = math.rsqrt %596 : vector<8x1xf32>
    %598 = vector.broadcast %597 : vector<8x1xf32> to vector<8x32xf32>
    %599 = arith.mulf %594, %598 : vector<8x32xf32>
    %600 = vector.broadcast %579 : vector<1x32xf32> to vector<8x32xf32>
    %601 = arith.mulf %599, %600 : vector<8x32xf32>
    %602 = vector.broadcast %581 : vector<1x32xf32> to vector<8x32xf32>
    %603 = arith.addf %601, %602 : vector<8x32xf32>
    %c0_331 = arith.constant 0 : index
    %c0_332 = arith.constant 0 : index
    %604 = vector.load %arg2[%c0_331, %c0_332] : memref<8x32xf32, #tpu.memory_space<vmem>>, vector<8x32xf32>
    %c0_333 = arith.constant 0 : index
    %c0_334 = arith.constant 0 : index
    %c0_335 = arith.constant 0 : index
    %605 = vector.load %arg15[%c0_333, %c0_334, %c0_335] : memref<6x32x96xf32, #tpu.memory_space<vmem>>, vector<1x32x96xf32>
    %606 = vector.shape_cast %605 : vector<1x32x96xf32> to vector<32x96xf32>
    %cst_336 = arith.constant dense<0.000000e+00> : vector<8x96xf32>
    %607 = tpu.matmul %604, %606, %cst_336 {dimension_numbers = #tpu.dot_dimension_numbers<[1], [0], [0], [1], [0, 0, 1, 1], [], []>} : vector<8x32xf32>, vector<32x96xf32>, vector<8x96xf32> -> vector<8x96xf32>
    %c0_337 = arith.constant 0 : index
    %c0_338 = arith.constant 0 : index
    %c0_339 = arith.constant 0 : index
    %608 = vector.load %arg16[%c0_337, %c0_338, %c0_339] : memref<6x1x96xf32, #tpu.memory_space<vmem>>, vector<1x1x96xf32>
    %609 = vector.shape_cast %608 : vector<1x1x96xf32> to vector<1x96xf32>
    %610 = vector.broadcast %609 : vector<1x96xf32> to vector<8x96xf32>
    %611 = arith.addf %607, %610 : vector<8x96xf32>
    %612 = vector.extract_strided_slice %611 {offsets = [0, 0], sizes = [8, 32], strides = [1, 1]} : vector<8x96xf32> to vector<8x32xf32>
    %613 = vector.extract_strided_slice %611 {offsets = [0, 32], sizes = [8, 32], strides = [1, 1]} : vector<8x96xf32> to vector<8x32xf32>
    %614 = vector.extract_strided_slice %611 {offsets = [0, 64], sizes = [8, 32], strides = [1, 1]} : vector<8x96xf32> to vector<8x32xf32>
    %cst_340 = arith.constant dense<0.000000e+00> : vector<8x8xf32>
    %615 = tpu.matmul %612, %613, %cst_340 {dimension_numbers = #tpu.dot_dimension_numbers<[1], [1], [0], [0], [0, 0, 1, 0], [], []>} : vector<8x32xf32>, vector<8x32xf32>, vector<8x8xf32> -> vector<8x8xf32>
    %cst_341 = arith.constant 0.176776692 : f32
    %616 = vector.broadcast %cst_341 : f32 to vector<8x8xf32>
    %617 = arith.mulf %615, %616 : vector<8x8xf32>
    %cst_342 = arith.constant -1.000000e+09 : f32
    %618 = vector.broadcast %cst_342 : f32 to vector<8x8xf32>
    %619 = arith.select %2, %617, %618 : vector<8x8xi1>, vector<8x8xf32>
    %cst_343 = arith.constant dense<0xFF800000> : vector<8xf32>
    %620 = vector.multi_reduction <maximumf>, %619, %cst_343 [1] : vector<8x8xf32> to vector<8xf32>
    %621 = vector.shape_cast %620 : vector<8xf32> to vector<8x1xf32>
    %622 = vector.broadcast %621 : vector<8x1xf32> to vector<8x8xf32>
    %623 = arith.subf %619, %622 : vector<8x8xf32>
    %624 = math.exp %623 : vector<8x8xf32>
    %cst_344 = arith.constant dense<0.000000e+00> : vector<8xf32>
    %625 = vector.multi_reduction <add>, %624, %cst_344 [1] : vector<8x8xf32> to vector<8xf32>
    %626 = vector.shape_cast %625 : vector<8xf32> to vector<8x1xf32>
    %627 = vector.broadcast %626 : vector<8x1xf32> to vector<8x8xf32>
    %628 = arith.divf %624, %627 : vector<8x8xf32>
    %cst_345 = arith.constant dense<0.000000e+00> : vector<8x32xf32>
    %629 = tpu.matmul %628, %614, %cst_345 {dimension_numbers = #tpu.dot_dimension_numbers<[1], [0], [0], [1], [0, 0, 1, 1], [], []>} : vector<8x8xf32>, vector<8x32xf32>, vector<8x32xf32> -> vector<8x32xf32>
    %c0_346 = arith.constant 0 : index
    %c0_347 = arith.constant 0 : index
    %c0_348 = arith.constant 0 : index
    %630 = vector.load %arg17[%c0_346, %c0_347, %c0_348] : memref<6x32x32xf32, #tpu.memory_space<vmem>>, vector<1x32x32xf32>
    %631 = vector.shape_cast %630 : vector<1x32x32xf32> to vector<32x32xf32>
    %cst_349 = arith.constant dense<0.000000e+00> : vector<8x32xf32>
    %632 = tpu.matmul %629, %631, %cst_349 {dimension_numbers = #tpu.dot_dimension_numbers<[1], [0], [0], [1], [0, 0, 1, 1], [], []>} : vector<8x32xf32>, vector<32x32xf32>, vector<8x32xf32> -> vector<8x32xf32>
    %c0_350 = arith.constant 0 : index
    %c0_351 = arith.constant 0 : index
    %c0_352 = arith.constant 0 : index
    %633 = vector.load %arg18[%c0_350, %c0_351, %c0_352] : memref<6x1x32xf32, #tpu.memory_space<vmem>>, vector<1x1x32xf32>
    %634 = vector.shape_cast %633 : vector<1x1x32xf32> to vector<1x32xf32>
    %635 = vector.broadcast %634 : vector<1x32xf32> to vector<8x32xf32>
    %636 = arith.addf %632, %635 : vector<8x32xf32>
    %637 = arith.addf %604, %636 : vector<8x32xf32>
    %c0_353 = arith.constant 0 : index
    %c0_354 = arith.constant 0 : index
    %c0_355 = arith.constant 0 : index
    %638 = vector.load %arg19[%c0_353, %c0_354, %c0_355] : memref<6x1x32xf32, #tpu.memory_space<vmem>>, vector<1x1x32xf32>
    %639 = vector.shape_cast %638 : vector<1x1x32xf32> to vector<1x32xf32>
    %c0_356 = arith.constant 0 : index
    %c0_357 = arith.constant 0 : index
    %c0_358 = arith.constant 0 : index
    %640 = vector.load %arg20[%c0_356, %c0_357, %c0_358] : memref<6x1x32xf32, #tpu.memory_space<vmem>>, vector<1x1x32xf32>
    %641 = vector.shape_cast %640 : vector<1x1x32xf32> to vector<1x32xf32>
    %cst_359 = arith.constant dense<0.000000e+00> : vector<8xf32>
    %642 = vector.multi_reduction <add>, %637, %cst_359 [1] : vector<8x32xf32> to vector<8xf32>
    %643 = vector.shape_cast %642 : vector<8xf32> to vector<8x1xf32>
    %cst_360 = arith.constant 3.200000e+01 : f32
    %644 = vector.broadcast %cst_360 : f32 to vector<8x1xf32>
    %645 = arith.divf %643, %644 : vector<8x1xf32>
    %646 = vector.broadcast %645 : vector<8x1xf32> to vector<8x32xf32>
    %647 = arith.subf %637, %646 : vector<8x32xf32>
    %648 = arith.mulf %647, %647 : vector<8x32xf32>
    %cst_361 = arith.constant dense<0.000000e+00> : vector<8xf32>
    %649 = vector.multi_reduction <add>, %648, %cst_361 [1] : vector<8x32xf32> to vector<8xf32>
    %650 = vector.shape_cast %649 : vector<8xf32> to vector<8x1xf32>
    %cst_362 = arith.constant 3.200000e+01 : f32
    %651 = vector.broadcast %cst_362 : f32 to vector<8x1xf32>
    %652 = arith.divf %650, %651 : vector<8x1xf32>
    %653 = vector.broadcast %645 : vector<8x1xf32> to vector<8x32xf32>
    %654 = arith.subf %637, %653 : vector<8x32xf32>
    %cst_363 = arith.constant 9.99999974E-6 : f32
    %655 = vector.broadcast %cst_363 : f32 to vector<8x1xf32>
    %656 = arith.addf %652, %655 : vector<8x1xf32>
    %657 = math.rsqrt %656 : vector<8x1xf32>
    %658 = vector.broadcast %657 : vector<8x1xf32> to vector<8x32xf32>
    %659 = arith.mulf %654, %658 : vector<8x32xf32>
    %660 = vector.broadcast %639 : vector<1x32xf32> to vector<8x32xf32>
    %661 = arith.mulf %659, %660 : vector<8x32xf32>
    %662 = vector.broadcast %641 : vector<1x32xf32> to vector<8x32xf32>
    %663 = arith.addf %661, %662 : vector<8x32xf32>
    %c0_364 = arith.constant 0 : index
    %c0_365 = arith.constant 0 : index
    %c0_366 = arith.constant 0 : index
    %664 = vector.load %arg21[%c0_364, %c0_365, %c0_366] : memref<6x32x32xf32, #tpu.memory_space<vmem>>, vector<1x32x32xf32>
    %665 = vector.shape_cast %664 : vector<1x32x32xf32> to vector<32x32xf32>
    %cst_367 = arith.constant dense<0.000000e+00> : vector<8x32xf32>
    %666 = tpu.matmul %663, %665, %cst_367 {dimension_numbers = #tpu.dot_dimension_numbers<[1], [0], [0], [1], [0, 0, 1, 1], [], []>} : vector<8x32xf32>, vector<32x32xf32>, vector<8x32xf32> -> vector<8x32xf32>
    %c0_368 = arith.constant 0 : index
    %c0_369 = arith.constant 0 : index
    %c0_370 = arith.constant 0 : index
    %667 = vector.load %arg22[%c0_368, %c0_369, %c0_370] : memref<6x1x32xf32, #tpu.memory_space<vmem>>, vector<1x1x32xf32>
    %668 = vector.shape_cast %667 : vector<1x1x32xf32> to vector<1x32xf32>
    %669 = vector.broadcast %668 : vector<1x32xf32> to vector<8x32xf32>
    %670 = arith.addf %666, %669 : vector<8x32xf32>
    %c0_371 = arith.constant 0 : index
    %c0_372 = arith.constant 0 : index
    %c0_373 = arith.constant 0 : index
    %671 = vector.load %arg23[%c0_371, %c0_372, %c0_373] : memref<6x32x64xf32, #tpu.memory_space<vmem>>, vector<1x32x64xf32>
    %672 = vector.shape_cast %671 : vector<1x32x64xf32> to vector<32x64xf32>
    %cst_374 = arith.constant dense<0.000000e+00> : vector<8x64xf32>
    %673 = tpu.matmul %603, %672, %cst_374 {dimension_numbers = #tpu.dot_dimension_numbers<[1], [0], [0], [1], [0, 0, 1, 1], [], []>} : vector<8x32xf32>, vector<32x64xf32>, vector<8x64xf32> -> vector<8x64xf32>
    %c0_375 = arith.constant 0 : index
    %c0_376 = arith.constant 0 : index
    %c0_377 = arith.constant 0 : index
    %674 = vector.load %arg24[%c0_375, %c0_376, %c0_377] : memref<6x1x64xf32, #tpu.memory_space<vmem>>, vector<1x1x64xf32>
    %675 = vector.shape_cast %674 : vector<1x1x64xf32> to vector<1x64xf32>
    %676 = vector.broadcast %675 : vector<1x64xf32> to vector<8x64xf32>
    %677 = arith.addf %673, %676 : vector<8x64xf32>
    %678 = vector.extract_strided_slice %677 {offsets = [0, 0], sizes = [8, 32], strides = [1, 1]} : vector<8x64xf32> to vector<8x32xf32>
    %679 = vector.extract_strided_slice %677 {offsets = [0, 32], sizes = [8, 32], strides = [1, 1]} : vector<8x64xf32> to vector<8x32xf32>
    %cst_378 = arith.constant dense<0.000000e+00> : vector<8x8xf32>
    %680 = tpu.matmul %670, %678, %cst_378 {dimension_numbers = #tpu.dot_dimension_numbers<[1], [1], [0], [0], [0, 0, 1, 0], [], []>} : vector<8x32xf32>, vector<8x32xf32>, vector<8x8xf32> -> vector<8x8xf32>
    %cst_379 = arith.constant 0.176776692 : f32
    %681 = vector.broadcast %cst_379 : f32 to vector<8x8xf32>
    %682 = arith.mulf %680, %681 : vector<8x8xf32>
    %cst_380 = arith.constant dense<0xFF800000> : vector<8xf32>
    %683 = vector.multi_reduction <maximumf>, %682, %cst_380 [1] : vector<8x8xf32> to vector<8xf32>
    %684 = vector.shape_cast %683 : vector<8xf32> to vector<8x1xf32>
    %685 = vector.broadcast %684 : vector<8x1xf32> to vector<8x8xf32>
    %686 = arith.subf %682, %685 : vector<8x8xf32>
    %687 = math.exp %686 : vector<8x8xf32>
    %cst_381 = arith.constant dense<0.000000e+00> : vector<8xf32>
    %688 = vector.multi_reduction <add>, %687, %cst_381 [1] : vector<8x8xf32> to vector<8xf32>
    %689 = vector.shape_cast %688 : vector<8xf32> to vector<8x1xf32>
    %690 = vector.broadcast %689 : vector<8x1xf32> to vector<8x8xf32>
    %691 = arith.divf %687, %690 : vector<8x8xf32>
    %cst_382 = arith.constant dense<0.000000e+00> : vector<8x32xf32>
    %692 = tpu.matmul %691, %679, %cst_382 {dimension_numbers = #tpu.dot_dimension_numbers<[1], [0], [0], [1], [0, 0, 1, 1], [], []>} : vector<8x8xf32>, vector<8x32xf32>, vector<8x32xf32> -> vector<8x32xf32>
    %c0_383 = arith.constant 0 : index
    %c0_384 = arith.constant 0 : index
    %c0_385 = arith.constant 0 : index
    %693 = vector.load %arg25[%c0_383, %c0_384, %c0_385] : memref<6x32x32xf32, #tpu.memory_space<vmem>>, vector<1x32x32xf32>
    %694 = vector.shape_cast %693 : vector<1x32x32xf32> to vector<32x32xf32>
    %cst_386 = arith.constant dense<0.000000e+00> : vector<8x32xf32>
    %695 = tpu.matmul %692, %694, %cst_386 {dimension_numbers = #tpu.dot_dimension_numbers<[1], [0], [0], [1], [0, 0, 1, 1], [], []>} : vector<8x32xf32>, vector<32x32xf32>, vector<8x32xf32> -> vector<8x32xf32>
    %c0_387 = arith.constant 0 : index
    %c0_388 = arith.constant 0 : index
    %c0_389 = arith.constant 0 : index
    %696 = vector.load %arg26[%c0_387, %c0_388, %c0_389] : memref<6x1x32xf32, #tpu.memory_space<vmem>>, vector<1x1x32xf32>
    %697 = vector.shape_cast %696 : vector<1x1x32xf32> to vector<1x32xf32>
    %698 = vector.broadcast %697 : vector<1x32xf32> to vector<8x32xf32>
    %699 = arith.addf %695, %698 : vector<8x32xf32>
    %700 = arith.addf %663, %699 : vector<8x32xf32>
    %c0_390 = arith.constant 0 : index
    %c0_391 = arith.constant 0 : index
    %c0_392 = arith.constant 0 : index
    %701 = vector.load %arg27[%c0_390, %c0_391, %c0_392] : memref<6x1x32xf32, #tpu.memory_space<vmem>>, vector<1x1x32xf32>
    %702 = vector.shape_cast %701 : vector<1x1x32xf32> to vector<1x32xf32>
    %c0_393 = arith.constant 0 : index
    %c0_394 = arith.constant 0 : index
    %c0_395 = arith.constant 0 : index
    %703 = vector.load %arg28[%c0_393, %c0_394, %c0_395] : memref<6x1x32xf32, #tpu.memory_space<vmem>>, vector<1x1x32xf32>
    %704 = vector.shape_cast %703 : vector<1x1x32xf32> to vector<1x32xf32>
    %cst_396 = arith.constant dense<0.000000e+00> : vector<8xf32>
    %705 = vector.multi_reduction <add>, %700, %cst_396 [1] : vector<8x32xf32> to vector<8xf32>
    %706 = vector.shape_cast %705 : vector<8xf32> to vector<8x1xf32>
    %cst_397 = arith.constant 3.200000e+01 : f32
    %707 = vector.broadcast %cst_397 : f32 to vector<8x1xf32>
    %708 = arith.divf %706, %707 : vector<8x1xf32>
    %709 = vector.broadcast %708 : vector<8x1xf32> to vector<8x32xf32>
    %710 = arith.subf %700, %709 : vector<8x32xf32>
    %711 = arith.mulf %710, %710 : vector<8x32xf32>
    %cst_398 = arith.constant dense<0.000000e+00> : vector<8xf32>
    %712 = vector.multi_reduction <add>, %711, %cst_398 [1] : vector<8x32xf32> to vector<8xf32>
    %713 = vector.shape_cast %712 : vector<8xf32> to vector<8x1xf32>
    %cst_399 = arith.constant 3.200000e+01 : f32
    %714 = vector.broadcast %cst_399 : f32 to vector<8x1xf32>
    %715 = arith.divf %713, %714 : vector<8x1xf32>
    %716 = vector.broadcast %708 : vector<8x1xf32> to vector<8x32xf32>
    %717 = arith.subf %700, %716 : vector<8x32xf32>
    %cst_400 = arith.constant 9.99999974E-6 : f32
    %718 = vector.broadcast %cst_400 : f32 to vector<8x1xf32>
    %719 = arith.addf %715, %718 : vector<8x1xf32>
    %720 = math.rsqrt %719 : vector<8x1xf32>
    %721 = vector.broadcast %720 : vector<8x1xf32> to vector<8x32xf32>
    %722 = arith.mulf %717, %721 : vector<8x32xf32>
    %723 = vector.broadcast %702 : vector<1x32xf32> to vector<8x32xf32>
    %724 = arith.mulf %722, %723 : vector<8x32xf32>
    %725 = vector.broadcast %704 : vector<1x32xf32> to vector<8x32xf32>
    %726 = arith.addf %724, %725 : vector<8x32xf32>
    %c0_401 = arith.constant 0 : index
    %c0_402 = arith.constant 0 : index
    %c0_403 = arith.constant 0 : index
    %727 = vector.load %arg29[%c0_401, %c0_402, %c0_403] : memref<6x32x64xf32, #tpu.memory_space<vmem>>, vector<1x32x64xf32>
    %728 = vector.shape_cast %727 : vector<1x32x64xf32> to vector<32x64xf32>
    %cst_404 = arith.constant dense<0.000000e+00> : vector<8x64xf32>
    %729 = tpu.matmul %726, %728, %cst_404 {dimension_numbers = #tpu.dot_dimension_numbers<[1], [0], [0], [1], [0, 0, 1, 1], [], []>} : vector<8x32xf32>, vector<32x64xf32>, vector<8x64xf32> -> vector<8x64xf32>
    %c0_405 = arith.constant 0 : index
    %c0_406 = arith.constant 0 : index
    %c0_407 = arith.constant 0 : index
    %730 = vector.load %arg30[%c0_405, %c0_406, %c0_407] : memref<6x1x64xf32, #tpu.memory_space<vmem>>, vector<1x1x64xf32>
    %731 = vector.shape_cast %730 : vector<1x1x64xf32> to vector<1x64xf32>
    %732 = vector.broadcast %731 : vector<1x64xf32> to vector<8x64xf32>
    %733 = arith.addf %729, %732 : vector<8x64xf32>
    %cst_408 = arith.constant 0.000000e+00 : f32
    %734 = vector.broadcast %cst_408 : f32 to vector<8x64xf32>
    %735 = arith.maximumf %733, %734 : vector<8x64xf32>
    %c0_409 = arith.constant 0 : index
    %c0_410 = arith.constant 0 : index
    %c0_411 = arith.constant 0 : index
    %736 = vector.load %arg31[%c0_409, %c0_410, %c0_411] : memref<6x64x32xf32, #tpu.memory_space<vmem>>, vector<1x64x32xf32>
    %737 = vector.shape_cast %736 : vector<1x64x32xf32> to vector<64x32xf32>
    %cst_412 = arith.constant dense<0.000000e+00> : vector<8x32xf32>
    %738 = tpu.matmul %735, %737, %cst_412 {dimension_numbers = #tpu.dot_dimension_numbers<[1], [0], [0], [1], [0, 0, 1, 1], [], []>} : vector<8x64xf32>, vector<64x32xf32>, vector<8x32xf32> -> vector<8x32xf32>
    %c0_413 = arith.constant 0 : index
    %c0_414 = arith.constant 0 : index
    %c0_415 = arith.constant 0 : index
    %739 = vector.load %arg32[%c0_413, %c0_414, %c0_415] : memref<6x1x32xf32, #tpu.memory_space<vmem>>, vector<1x1x32xf32>
    %740 = vector.shape_cast %739 : vector<1x1x32xf32> to vector<1x32xf32>
    %741 = vector.broadcast %740 : vector<1x32xf32> to vector<8x32xf32>
    %742 = arith.addf %738, %741 : vector<8x32xf32>
    %743 = arith.addf %726, %742 : vector<8x32xf32>
    %c0_416 = arith.constant 0 : index
    %c0_417 = arith.constant 0 : index
    %c0_418 = arith.constant 0 : index
    %744 = vector.load %arg33[%c0_416, %c0_417, %c0_418] : memref<6x1x32xf32, #tpu.memory_space<vmem>>, vector<1x1x32xf32>
    %745 = vector.shape_cast %744 : vector<1x1x32xf32> to vector<1x32xf32>
    %c0_419 = arith.constant 0 : index
    %c0_420 = arith.constant 0 : index
    %c0_421 = arith.constant 0 : index
    %746 = vector.load %arg34[%c0_419, %c0_420, %c0_421] : memref<6x1x32xf32, #tpu.memory_space<vmem>>, vector<1x1x32xf32>
    %747 = vector.shape_cast %746 : vector<1x1x32xf32> to vector<1x32xf32>
    %cst_422 = arith.constant dense<0.000000e+00> : vector<8xf32>
    %748 = vector.multi_reduction <add>, %743, %cst_422 [1] : vector<8x32xf32> to vector<8xf32>
    %749 = vector.shape_cast %748 : vector<8xf32> to vector<8x1xf32>
    %cst_423 = arith.constant 3.200000e+01 : f32
    %750 = vector.broadcast %cst_423 : f32 to vector<8x1xf32>
    %751 = arith.divf %749, %750 : vector<8x1xf32>
    %752 = vector.broadcast %751 : vector<8x1xf32> to vector<8x32xf32>
    %753 = arith.subf %743, %752 : vector<8x32xf32>
    %754 = arith.mulf %753, %753 : vector<8x32xf32>
    %cst_424 = arith.constant dense<0.000000e+00> : vector<8xf32>
    %755 = vector.multi_reduction <add>, %754, %cst_424 [1] : vector<8x32xf32> to vector<8xf32>
    %756 = vector.shape_cast %755 : vector<8xf32> to vector<8x1xf32>
    %cst_425 = arith.constant 3.200000e+01 : f32
    %757 = vector.broadcast %cst_425 : f32 to vector<8x1xf32>
    %758 = arith.divf %756, %757 : vector<8x1xf32>
    %759 = vector.broadcast %751 : vector<8x1xf32> to vector<8x32xf32>
    %760 = arith.subf %743, %759 : vector<8x32xf32>
    %cst_426 = arith.constant 9.99999974E-6 : f32
    %761 = vector.broadcast %cst_426 : f32 to vector<8x1xf32>
    %762 = arith.addf %758, %761 : vector<8x1xf32>
    %763 = math.rsqrt %762 : vector<8x1xf32>
    %764 = vector.broadcast %763 : vector<8x1xf32> to vector<8x32xf32>
    %765 = arith.mulf %760, %764 : vector<8x32xf32>
    %766 = vector.broadcast %745 : vector<1x32xf32> to vector<8x32xf32>
    %767 = arith.mulf %765, %766 : vector<8x32xf32>
    %768 = vector.broadcast %747 : vector<1x32xf32> to vector<8x32xf32>
    %769 = arith.addf %767, %768 : vector<8x32xf32>
    %c1_427 = arith.constant 1 : index
    %c0_428 = arith.constant 0 : index
    %c0_429 = arith.constant 0 : index
    %770 = vector.load %arg15[%c1_427, %c0_428, %c0_429] : memref<6x32x96xf32, #tpu.memory_space<vmem>>, vector<1x32x96xf32>
    %771 = vector.shape_cast %770 : vector<1x32x96xf32> to vector<32x96xf32>
    %cst_430 = arith.constant dense<0.000000e+00> : vector<8x96xf32>
    %772 = tpu.matmul %769, %771, %cst_430 {dimension_numbers = #tpu.dot_dimension_numbers<[1], [0], [0], [1], [0, 0, 1, 1], [], []>} : vector<8x32xf32>, vector<32x96xf32>, vector<8x96xf32> -> vector<8x96xf32>
    %c1_431 = arith.constant 1 : index
    %c0_432 = arith.constant 0 : index
    %c0_433 = arith.constant 0 : index
    %773 = vector.load %arg16[%c1_431, %c0_432, %c0_433] : memref<6x1x96xf32, #tpu.memory_space<vmem>>, vector<1x1x96xf32>
    %774 = vector.shape_cast %773 : vector<1x1x96xf32> to vector<1x96xf32>
    %775 = vector.broadcast %774 : vector<1x96xf32> to vector<8x96xf32>
    %776 = arith.addf %772, %775 : vector<8x96xf32>
    %777 = vector.extract_strided_slice %776 {offsets = [0, 0], sizes = [8, 32], strides = [1, 1]} : vector<8x96xf32> to vector<8x32xf32>
    %778 = vector.extract_strided_slice %776 {offsets = [0, 32], sizes = [8, 32], strides = [1, 1]} : vector<8x96xf32> to vector<8x32xf32>
    %779 = vector.extract_strided_slice %776 {offsets = [0, 64], sizes = [8, 32], strides = [1, 1]} : vector<8x96xf32> to vector<8x32xf32>
    %cst_434 = arith.constant dense<0.000000e+00> : vector<8x8xf32>
    %780 = tpu.matmul %777, %778, %cst_434 {dimension_numbers = #tpu.dot_dimension_numbers<[1], [1], [0], [0], [0, 0, 1, 0], [], []>} : vector<8x32xf32>, vector<8x32xf32>, vector<8x8xf32> -> vector<8x8xf32>
    %cst_435 = arith.constant 0.176776692 : f32
    %781 = vector.broadcast %cst_435 : f32 to vector<8x8xf32>
    %782 = arith.mulf %780, %781 : vector<8x8xf32>
    %cst_436 = arith.constant -1.000000e+09 : f32
    %783 = vector.broadcast %cst_436 : f32 to vector<8x8xf32>
    %784 = arith.select %2, %782, %783 : vector<8x8xi1>, vector<8x8xf32>
    %cst_437 = arith.constant dense<0xFF800000> : vector<8xf32>
    %785 = vector.multi_reduction <maximumf>, %784, %cst_437 [1] : vector<8x8xf32> to vector<8xf32>
    %786 = vector.shape_cast %785 : vector<8xf32> to vector<8x1xf32>
    %787 = vector.broadcast %786 : vector<8x1xf32> to vector<8x8xf32>
    %788 = arith.subf %784, %787 : vector<8x8xf32>
    %789 = math.exp %788 : vector<8x8xf32>
    %cst_438 = arith.constant dense<0.000000e+00> : vector<8xf32>
    %790 = vector.multi_reduction <add>, %789, %cst_438 [1] : vector<8x8xf32> to vector<8xf32>
    %791 = vector.shape_cast %790 : vector<8xf32> to vector<8x1xf32>
    %792 = vector.broadcast %791 : vector<8x1xf32> to vector<8x8xf32>
    %793 = arith.divf %789, %792 : vector<8x8xf32>
    %cst_439 = arith.constant dense<0.000000e+00> : vector<8x32xf32>
    %794 = tpu.matmul %793, %779, %cst_439 {dimension_numbers = #tpu.dot_dimension_numbers<[1], [0], [0], [1], [0, 0, 1, 1], [], []>} : vector<8x8xf32>, vector<8x32xf32>, vector<8x32xf32> -> vector<8x32xf32>
    %c1_440 = arith.constant 1 : index
    %c0_441 = arith.constant 0 : index
    %c0_442 = arith.constant 0 : index
    %795 = vector.load %arg17[%c1_440, %c0_441, %c0_442] : memref<6x32x32xf32, #tpu.memory_space<vmem>>, vector<1x32x32xf32>
    %796 = vector.shape_cast %795 : vector<1x32x32xf32> to vector<32x32xf32>
    %cst_443 = arith.constant dense<0.000000e+00> : vector<8x32xf32>
    %797 = tpu.matmul %794, %796, %cst_443 {dimension_numbers = #tpu.dot_dimension_numbers<[1], [0], [0], [1], [0, 0, 1, 1], [], []>} : vector<8x32xf32>, vector<32x32xf32>, vector<8x32xf32> -> vector<8x32xf32>
    %c1_444 = arith.constant 1 : index
    %c0_445 = arith.constant 0 : index
    %c0_446 = arith.constant 0 : index
    %798 = vector.load %arg18[%c1_444, %c0_445, %c0_446] : memref<6x1x32xf32, #tpu.memory_space<vmem>>, vector<1x1x32xf32>
    %799 = vector.shape_cast %798 : vector<1x1x32xf32> to vector<1x32xf32>
    %800 = vector.broadcast %799 : vector<1x32xf32> to vector<8x32xf32>
    %801 = arith.addf %797, %800 : vector<8x32xf32>
    %802 = arith.addf %769, %801 : vector<8x32xf32>
    %c1_447 = arith.constant 1 : index
    %c0_448 = arith.constant 0 : index
    %c0_449 = arith.constant 0 : index
    %803 = vector.load %arg19[%c1_447, %c0_448, %c0_449] : memref<6x1x32xf32, #tpu.memory_space<vmem>>, vector<1x1x32xf32>
    %804 = vector.shape_cast %803 : vector<1x1x32xf32> to vector<1x32xf32>
    %c1_450 = arith.constant 1 : index
    %c0_451 = arith.constant 0 : index
    %c0_452 = arith.constant 0 : index
    %805 = vector.load %arg20[%c1_450, %c0_451, %c0_452] : memref<6x1x32xf32, #tpu.memory_space<vmem>>, vector<1x1x32xf32>
    %806 = vector.shape_cast %805 : vector<1x1x32xf32> to vector<1x32xf32>
    %cst_453 = arith.constant dense<0.000000e+00> : vector<8xf32>
    %807 = vector.multi_reduction <add>, %802, %cst_453 [1] : vector<8x32xf32> to vector<8xf32>
    %808 = vector.shape_cast %807 : vector<8xf32> to vector<8x1xf32>
    %cst_454 = arith.constant 3.200000e+01 : f32
    %809 = vector.broadcast %cst_454 : f32 to vector<8x1xf32>
    %810 = arith.divf %808, %809 : vector<8x1xf32>
    %811 = vector.broadcast %810 : vector<8x1xf32> to vector<8x32xf32>
    %812 = arith.subf %802, %811 : vector<8x32xf32>
    %813 = arith.mulf %812, %812 : vector<8x32xf32>
    %cst_455 = arith.constant dense<0.000000e+00> : vector<8xf32>
    %814 = vector.multi_reduction <add>, %813, %cst_455 [1] : vector<8x32xf32> to vector<8xf32>
    %815 = vector.shape_cast %814 : vector<8xf32> to vector<8x1xf32>
    %cst_456 = arith.constant 3.200000e+01 : f32
    %816 = vector.broadcast %cst_456 : f32 to vector<8x1xf32>
    %817 = arith.divf %815, %816 : vector<8x1xf32>
    %818 = vector.broadcast %810 : vector<8x1xf32> to vector<8x32xf32>
    %819 = arith.subf %802, %818 : vector<8x32xf32>
    %cst_457 = arith.constant 9.99999974E-6 : f32
    %820 = vector.broadcast %cst_457 : f32 to vector<8x1xf32>
    %821 = arith.addf %817, %820 : vector<8x1xf32>
    %822 = math.rsqrt %821 : vector<8x1xf32>
    %823 = vector.broadcast %822 : vector<8x1xf32> to vector<8x32xf32>
    %824 = arith.mulf %819, %823 : vector<8x32xf32>
    %825 = vector.broadcast %804 : vector<1x32xf32> to vector<8x32xf32>
    %826 = arith.mulf %824, %825 : vector<8x32xf32>
    %827 = vector.broadcast %806 : vector<1x32xf32> to vector<8x32xf32>
    %828 = arith.addf %826, %827 : vector<8x32xf32>
    %c1_458 = arith.constant 1 : index
    %c0_459 = arith.constant 0 : index
    %c0_460 = arith.constant 0 : index
    %829 = vector.load %arg21[%c1_458, %c0_459, %c0_460] : memref<6x32x32xf32, #tpu.memory_space<vmem>>, vector<1x32x32xf32>
    %830 = vector.shape_cast %829 : vector<1x32x32xf32> to vector<32x32xf32>
    %cst_461 = arith.constant dense<0.000000e+00> : vector<8x32xf32>
    %831 = tpu.matmul %828, %830, %cst_461 {dimension_numbers = #tpu.dot_dimension_numbers<[1], [0], [0], [1], [0, 0, 1, 1], [], []>} : vector<8x32xf32>, vector<32x32xf32>, vector<8x32xf32> -> vector<8x32xf32>
    %c1_462 = arith.constant 1 : index
    %c0_463 = arith.constant 0 : index
    %c0_464 = arith.constant 0 : index
    %832 = vector.load %arg22[%c1_462, %c0_463, %c0_464] : memref<6x1x32xf32, #tpu.memory_space<vmem>>, vector<1x1x32xf32>
    %833 = vector.shape_cast %832 : vector<1x1x32xf32> to vector<1x32xf32>
    %834 = vector.broadcast %833 : vector<1x32xf32> to vector<8x32xf32>
    %835 = arith.addf %831, %834 : vector<8x32xf32>
    %c1_465 = arith.constant 1 : index
    %c0_466 = arith.constant 0 : index
    %c0_467 = arith.constant 0 : index
    %836 = vector.load %arg23[%c1_465, %c0_466, %c0_467] : memref<6x32x64xf32, #tpu.memory_space<vmem>>, vector<1x32x64xf32>
    %837 = vector.shape_cast %836 : vector<1x32x64xf32> to vector<32x64xf32>
    %cst_468 = arith.constant dense<0.000000e+00> : vector<8x64xf32>
    %838 = tpu.matmul %603, %837, %cst_468 {dimension_numbers = #tpu.dot_dimension_numbers<[1], [0], [0], [1], [0, 0, 1, 1], [], []>} : vector<8x32xf32>, vector<32x64xf32>, vector<8x64xf32> -> vector<8x64xf32>
    %c1_469 = arith.constant 1 : index
    %c0_470 = arith.constant 0 : index
    %c0_471 = arith.constant 0 : index
    %839 = vector.load %arg24[%c1_469, %c0_470, %c0_471] : memref<6x1x64xf32, #tpu.memory_space<vmem>>, vector<1x1x64xf32>
    %840 = vector.shape_cast %839 : vector<1x1x64xf32> to vector<1x64xf32>
    %841 = vector.broadcast %840 : vector<1x64xf32> to vector<8x64xf32>
    %842 = arith.addf %838, %841 : vector<8x64xf32>
    %843 = vector.extract_strided_slice %842 {offsets = [0, 0], sizes = [8, 32], strides = [1, 1]} : vector<8x64xf32> to vector<8x32xf32>
    %844 = vector.extract_strided_slice %842 {offsets = [0, 32], sizes = [8, 32], strides = [1, 1]} : vector<8x64xf32> to vector<8x32xf32>
    %cst_472 = arith.constant dense<0.000000e+00> : vector<8x8xf32>
    %845 = tpu.matmul %835, %843, %cst_472 {dimension_numbers = #tpu.dot_dimension_numbers<[1], [1], [0], [0], [0, 0, 1, 0], [], []>} : vector<8x32xf32>, vector<8x32xf32>, vector<8x8xf32> -> vector<8x8xf32>
    %cst_473 = arith.constant 0.176776692 : f32
    %846 = vector.broadcast %cst_473 : f32 to vector<8x8xf32>
    %847 = arith.mulf %845, %846 : vector<8x8xf32>
    %cst_474 = arith.constant dense<0xFF800000> : vector<8xf32>
    %848 = vector.multi_reduction <maximumf>, %847, %cst_474 [1] : vector<8x8xf32> to vector<8xf32>
    %849 = vector.shape_cast %848 : vector<8xf32> to vector<8x1xf32>
    %850 = vector.broadcast %849 : vector<8x1xf32> to vector<8x8xf32>
    %851 = arith.subf %847, %850 : vector<8x8xf32>
    %852 = math.exp %851 : vector<8x8xf32>
    %cst_475 = arith.constant dense<0.000000e+00> : vector<8xf32>
    %853 = vector.multi_reduction <add>, %852, %cst_475 [1] : vector<8x8xf32> to vector<8xf32>
    %854 = vector.shape_cast %853 : vector<8xf32> to vector<8x1xf32>
    %855 = vector.broadcast %854 : vector<8x1xf32> to vector<8x8xf32>
    %856 = arith.divf %852, %855 : vector<8x8xf32>
    %cst_476 = arith.constant dense<0.000000e+00> : vector<8x32xf32>
    %857 = tpu.matmul %856, %844, %cst_476 {dimension_numbers = #tpu.dot_dimension_numbers<[1], [0], [0], [1], [0, 0, 1, 1], [], []>} : vector<8x8xf32>, vector<8x32xf32>, vector<8x32xf32> -> vector<8x32xf32>
    %c1_477 = arith.constant 1 : index
    %c0_478 = arith.constant 0 : index
    %c0_479 = arith.constant 0 : index
    %858 = vector.load %arg25[%c1_477, %c0_478, %c0_479] : memref<6x32x32xf32, #tpu.memory_space<vmem>>, vector<1x32x32xf32>
    %859 = vector.shape_cast %858 : vector<1x32x32xf32> to vector<32x32xf32>
    %cst_480 = arith.constant dense<0.000000e+00> : vector<8x32xf32>
    %860 = tpu.matmul %857, %859, %cst_480 {dimension_numbers = #tpu.dot_dimension_numbers<[1], [0], [0], [1], [0, 0, 1, 1], [], []>} : vector<8x32xf32>, vector<32x32xf32>, vector<8x32xf32> -> vector<8x32xf32>
    %c1_481 = arith.constant 1 : index
    %c0_482 = arith.constant 0 : index
    %c0_483 = arith.constant 0 : index
    %861 = vector.load %arg26[%c1_481, %c0_482, %c0_483] : memref<6x1x32xf32, #tpu.memory_space<vmem>>, vector<1x1x32xf32>
    %862 = vector.shape_cast %861 : vector<1x1x32xf32> to vector<1x32xf32>
    %863 = vector.broadcast %862 : vector<1x32xf32> to vector<8x32xf32>
    %864 = arith.addf %860, %863 : vector<8x32xf32>
    %865 = arith.addf %828, %864 : vector<8x32xf32>
    %c1_484 = arith.constant 1 : index
    %c0_485 = arith.constant 0 : index
    %c0_486 = arith.constant 0 : index
    %866 = vector.load %arg27[%c1_484, %c0_485, %c0_486] : memref<6x1x32xf32, #tpu.memory_space<vmem>>, vector<1x1x32xf32>
    %867 = vector.shape_cast %866 : vector<1x1x32xf32> to vector<1x32xf32>
    %c1_487 = arith.constant 1 : index
    %c0_488 = arith.constant 0 : index
    %c0_489 = arith.constant 0 : index
    %868 = vector.load %arg28[%c1_487, %c0_488, %c0_489] : memref<6x1x32xf32, #tpu.memory_space<vmem>>, vector<1x1x32xf32>
    %869 = vector.shape_cast %868 : vector<1x1x32xf32> to vector<1x32xf32>
    %cst_490 = arith.constant dense<0.000000e+00> : vector<8xf32>
    %870 = vector.multi_reduction <add>, %865, %cst_490 [1] : vector<8x32xf32> to vector<8xf32>
    %871 = vector.shape_cast %870 : vector<8xf32> to vector<8x1xf32>
    %cst_491 = arith.constant 3.200000e+01 : f32
    %872 = vector.broadcast %cst_491 : f32 to vector<8x1xf32>
    %873 = arith.divf %871, %872 : vector<8x1xf32>
    %874 = vector.broadcast %873 : vector<8x1xf32> to vector<8x32xf32>
    %875 = arith.subf %865, %874 : vector<8x32xf32>
    %876 = arith.mulf %875, %875 : vector<8x32xf32>
    %cst_492 = arith.constant dense<0.000000e+00> : vector<8xf32>
    %877 = vector.multi_reduction <add>, %876, %cst_492 [1] : vector<8x32xf32> to vector<8xf32>
    %878 = vector.shape_cast %877 : vector<8xf32> to vector<8x1xf32>
    %cst_493 = arith.constant 3.200000e+01 : f32
    %879 = vector.broadcast %cst_493 : f32 to vector<8x1xf32>
    %880 = arith.divf %878, %879 : vector<8x1xf32>
    %881 = vector.broadcast %873 : vector<8x1xf32> to vector<8x32xf32>
    %882 = arith.subf %865, %881 : vector<8x32xf32>
    %cst_494 = arith.constant 9.99999974E-6 : f32
    %883 = vector.broadcast %cst_494 : f32 to vector<8x1xf32>
    %884 = arith.addf %880, %883 : vector<8x1xf32>
    %885 = math.rsqrt %884 : vector<8x1xf32>
    %886 = vector.broadcast %885 : vector<8x1xf32> to vector<8x32xf32>
    %887 = arith.mulf %882, %886 : vector<8x32xf32>
    %888 = vector.broadcast %867 : vector<1x32xf32> to vector<8x32xf32>
    %889 = arith.mulf %887, %888 : vector<8x32xf32>
    %890 = vector.broadcast %869 : vector<1x32xf32> to vector<8x32xf32>
    %891 = arith.addf %889, %890 : vector<8x32xf32>
    %c1_495 = arith.constant 1 : index
    %c0_496 = arith.constant 0 : index
    %c0_497 = arith.constant 0 : index
    %892 = vector.load %arg29[%c1_495, %c0_496, %c0_497] : memref<6x32x64xf32, #tpu.memory_space<vmem>>, vector<1x32x64xf32>
    %893 = vector.shape_cast %892 : vector<1x32x64xf32> to vector<32x64xf32>
    %cst_498 = arith.constant dense<0.000000e+00> : vector<8x64xf32>
    %894 = tpu.matmul %891, %893, %cst_498 {dimension_numbers = #tpu.dot_dimension_numbers<[1], [0], [0], [1], [0, 0, 1, 1], [], []>} : vector<8x32xf32>, vector<32x64xf32>, vector<8x64xf32> -> vector<8x64xf32>
    %c1_499 = arith.constant 1 : index
    %c0_500 = arith.constant 0 : index
    %c0_501 = arith.constant 0 : index
    %895 = vector.load %arg30[%c1_499, %c0_500, %c0_501] : memref<6x1x64xf32, #tpu.memory_space<vmem>>, vector<1x1x64xf32>
    %896 = vector.shape_cast %895 : vector<1x1x64xf32> to vector<1x64xf32>
    %897 = vector.broadcast %896 : vector<1x64xf32> to vector<8x64xf32>
    %898 = arith.addf %894, %897 : vector<8x64xf32>
    %cst_502 = arith.constant 0.000000e+00 : f32
    %899 = vector.broadcast %cst_502 : f32 to vector<8x64xf32>
    %900 = arith.maximumf %898, %899 : vector<8x64xf32>
    %c1_503 = arith.constant 1 : index
    %c0_504 = arith.constant 0 : index
    %c0_505 = arith.constant 0 : index
    %901 = vector.load %arg31[%c1_503, %c0_504, %c0_505] : memref<6x64x32xf32, #tpu.memory_space<vmem>>, vector<1x64x32xf32>
    %902 = vector.shape_cast %901 : vector<1x64x32xf32> to vector<64x32xf32>
    %cst_506 = arith.constant dense<0.000000e+00> : vector<8x32xf32>
    %903 = tpu.matmul %900, %902, %cst_506 {dimension_numbers = #tpu.dot_dimension_numbers<[1], [0], [0], [1], [0, 0, 1, 1], [], []>} : vector<8x64xf32>, vector<64x32xf32>, vector<8x32xf32> -> vector<8x32xf32>
    %c1_507 = arith.constant 1 : index
    %c0_508 = arith.constant 0 : index
    %c0_509 = arith.constant 0 : index
    %904 = vector.load %arg32[%c1_507, %c0_508, %c0_509] : memref<6x1x32xf32, #tpu.memory_space<vmem>>, vector<1x1x32xf32>
    %905 = vector.shape_cast %904 : vector<1x1x32xf32> to vector<1x32xf32>
    %906 = vector.broadcast %905 : vector<1x32xf32> to vector<8x32xf32>
    %907 = arith.addf %903, %906 : vector<8x32xf32>
    %908 = arith.addf %891, %907 : vector<8x32xf32>
    %c1_510 = arith.constant 1 : index
    %c0_511 = arith.constant 0 : index
    %c0_512 = arith.constant 0 : index
    %909 = vector.load %arg33[%c1_510, %c0_511, %c0_512] : memref<6x1x32xf32, #tpu.memory_space<vmem>>, vector<1x1x32xf32>
    %910 = vector.shape_cast %909 : vector<1x1x32xf32> to vector<1x32xf32>
    %c1_513 = arith.constant 1 : index
    %c0_514 = arith.constant 0 : index
    %c0_515 = arith.constant 0 : index
    %911 = vector.load %arg34[%c1_513, %c0_514, %c0_515] : memref<6x1x32xf32, #tpu.memory_space<vmem>>, vector<1x1x32xf32>
    %912 = vector.shape_cast %911 : vector<1x1x32xf32> to vector<1x32xf32>
    %cst_516 = arith.constant dense<0.000000e+00> : vector<8xf32>
    %913 = vector.multi_reduction <add>, %908, %cst_516 [1] : vector<8x32xf32> to vector<8xf32>
    %914 = vector.shape_cast %913 : vector<8xf32> to vector<8x1xf32>
    %cst_517 = arith.constant 3.200000e+01 : f32
    %915 = vector.broadcast %cst_517 : f32 to vector<8x1xf32>
    %916 = arith.divf %914, %915 : vector<8x1xf32>
    %917 = vector.broadcast %916 : vector<8x1xf32> to vector<8x32xf32>
    %918 = arith.subf %908, %917 : vector<8x32xf32>
    %919 = arith.mulf %918, %918 : vector<8x32xf32>
    %cst_518 = arith.constant dense<0.000000e+00> : vector<8xf32>
    %920 = vector.multi_reduction <add>, %919, %cst_518 [1] : vector<8x32xf32> to vector<8xf32>
    %921 = vector.shape_cast %920 : vector<8xf32> to vector<8x1xf32>
    %cst_519 = arith.constant 3.200000e+01 : f32
    %922 = vector.broadcast %cst_519 : f32 to vector<8x1xf32>
    %923 = arith.divf %921, %922 : vector<8x1xf32>
    %924 = vector.broadcast %916 : vector<8x1xf32> to vector<8x32xf32>
    %925 = arith.subf %908, %924 : vector<8x32xf32>
    %cst_520 = arith.constant 9.99999974E-6 : f32
    %926 = vector.broadcast %cst_520 : f32 to vector<8x1xf32>
    %927 = arith.addf %923, %926 : vector<8x1xf32>
    %928 = math.rsqrt %927 : vector<8x1xf32>
    %929 = vector.broadcast %928 : vector<8x1xf32> to vector<8x32xf32>
    %930 = arith.mulf %925, %929 : vector<8x32xf32>
    %931 = vector.broadcast %910 : vector<1x32xf32> to vector<8x32xf32>
    %932 = arith.mulf %930, %931 : vector<8x32xf32>
    %933 = vector.broadcast %912 : vector<1x32xf32> to vector<8x32xf32>
    %934 = arith.addf %932, %933 : vector<8x32xf32>
    %c2_521 = arith.constant 2 : index
    %c0_522 = arith.constant 0 : index
    %c0_523 = arith.constant 0 : index
    %935 = vector.load %arg15[%c2_521, %c0_522, %c0_523] : memref<6x32x96xf32, #tpu.memory_space<vmem>>, vector<1x32x96xf32>
    %936 = vector.shape_cast %935 : vector<1x32x96xf32> to vector<32x96xf32>
    %cst_524 = arith.constant dense<0.000000e+00> : vector<8x96xf32>
    %937 = tpu.matmul %934, %936, %cst_524 {dimension_numbers = #tpu.dot_dimension_numbers<[1], [0], [0], [1], [0, 0, 1, 1], [], []>} : vector<8x32xf32>, vector<32x96xf32>, vector<8x96xf32> -> vector<8x96xf32>
    %c2_525 = arith.constant 2 : index
    %c0_526 = arith.constant 0 : index
    %c0_527 = arith.constant 0 : index
    %938 = vector.load %arg16[%c2_525, %c0_526, %c0_527] : memref<6x1x96xf32, #tpu.memory_space<vmem>>, vector<1x1x96xf32>
    %939 = vector.shape_cast %938 : vector<1x1x96xf32> to vector<1x96xf32>
    %940 = vector.broadcast %939 : vector<1x96xf32> to vector<8x96xf32>
    %941 = arith.addf %937, %940 : vector<8x96xf32>
    %942 = vector.extract_strided_slice %941 {offsets = [0, 0], sizes = [8, 32], strides = [1, 1]} : vector<8x96xf32> to vector<8x32xf32>
    %943 = vector.extract_strided_slice %941 {offsets = [0, 32], sizes = [8, 32], strides = [1, 1]} : vector<8x96xf32> to vector<8x32xf32>
    %944 = vector.extract_strided_slice %941 {offsets = [0, 64], sizes = [8, 32], strides = [1, 1]} : vector<8x96xf32> to vector<8x32xf32>
    %cst_528 = arith.constant dense<0.000000e+00> : vector<8x8xf32>
    %945 = tpu.matmul %942, %943, %cst_528 {dimension_numbers = #tpu.dot_dimension_numbers<[1], [1], [0], [0], [0, 0, 1, 0], [], []>} : vector<8x32xf32>, vector<8x32xf32>, vector<8x8xf32> -> vector<8x8xf32>
    %cst_529 = arith.constant 0.176776692 : f32
    %946 = vector.broadcast %cst_529 : f32 to vector<8x8xf32>
    %947 = arith.mulf %945, %946 : vector<8x8xf32>
    %cst_530 = arith.constant -1.000000e+09 : f32
    %948 = vector.broadcast %cst_530 : f32 to vector<8x8xf32>
    %949 = arith.select %2, %947, %948 : vector<8x8xi1>, vector<8x8xf32>
    %cst_531 = arith.constant dense<0xFF800000> : vector<8xf32>
    %950 = vector.multi_reduction <maximumf>, %949, %cst_531 [1] : vector<8x8xf32> to vector<8xf32>
    %951 = vector.shape_cast %950 : vector<8xf32> to vector<8x1xf32>
    %952 = vector.broadcast %951 : vector<8x1xf32> to vector<8x8xf32>
    %953 = arith.subf %949, %952 : vector<8x8xf32>
    %954 = math.exp %953 : vector<8x8xf32>
    %cst_532 = arith.constant dense<0.000000e+00> : vector<8xf32>
    %955 = vector.multi_reduction <add>, %954, %cst_532 [1] : vector<8x8xf32> to vector<8xf32>
    %956 = vector.shape_cast %955 : vector<8xf32> to vector<8x1xf32>
    %957 = vector.broadcast %956 : vector<8x1xf32> to vector<8x8xf32>
    %958 = arith.divf %954, %957 : vector<8x8xf32>
    %cst_533 = arith.constant dense<0.000000e+00> : vector<8x32xf32>
    %959 = tpu.matmul %958, %944, %cst_533 {dimension_numbers = #tpu.dot_dimension_numbers<[1], [0], [0], [1], [0, 0, 1, 1], [], []>} : vector<8x8xf32>, vector<8x32xf32>, vector<8x32xf32> -> vector<8x32xf32>
    %c2_534 = arith.constant 2 : index
    %c0_535 = arith.constant 0 : index
    %c0_536 = arith.constant 0 : index
    %960 = vector.load %arg17[%c2_534, %c0_535, %c0_536] : memref<6x32x32xf32, #tpu.memory_space<vmem>>, vector<1x32x32xf32>
    %961 = vector.shape_cast %960 : vector<1x32x32xf32> to vector<32x32xf32>
    %cst_537 = arith.constant dense<0.000000e+00> : vector<8x32xf32>
    %962 = tpu.matmul %959, %961, %cst_537 {dimension_numbers = #tpu.dot_dimension_numbers<[1], [0], [0], [1], [0, 0, 1, 1], [], []>} : vector<8x32xf32>, vector<32x32xf32>, vector<8x32xf32> -> vector<8x32xf32>
    %c2_538 = arith.constant 2 : index
    %c0_539 = arith.constant 0 : index
    %c0_540 = arith.constant 0 : index
    %963 = vector.load %arg18[%c2_538, %c0_539, %c0_540] : memref<6x1x32xf32, #tpu.memory_space<vmem>>, vector<1x1x32xf32>
    %964 = vector.shape_cast %963 : vector<1x1x32xf32> to vector<1x32xf32>
    %965 = vector.broadcast %964 : vector<1x32xf32> to vector<8x32xf32>
    %966 = arith.addf %962, %965 : vector<8x32xf32>
    %967 = arith.addf %934, %966 : vector<8x32xf32>
    %c2_541 = arith.constant 2 : index
    %c0_542 = arith.constant 0 : index
    %c0_543 = arith.constant 0 : index
    %968 = vector.load %arg19[%c2_541, %c0_542, %c0_543] : memref<6x1x32xf32, #tpu.memory_space<vmem>>, vector<1x1x32xf32>
    %969 = vector.shape_cast %968 : vector<1x1x32xf32> to vector<1x32xf32>
    %c2_544 = arith.constant 2 : index
    %c0_545 = arith.constant 0 : index
    %c0_546 = arith.constant 0 : index
    %970 = vector.load %arg20[%c2_544, %c0_545, %c0_546] : memref<6x1x32xf32, #tpu.memory_space<vmem>>, vector<1x1x32xf32>
    %971 = vector.shape_cast %970 : vector<1x1x32xf32> to vector<1x32xf32>
    %cst_547 = arith.constant dense<0.000000e+00> : vector<8xf32>
    %972 = vector.multi_reduction <add>, %967, %cst_547 [1] : vector<8x32xf32> to vector<8xf32>
    %973 = vector.shape_cast %972 : vector<8xf32> to vector<8x1xf32>
    %cst_548 = arith.constant 3.200000e+01 : f32
    %974 = vector.broadcast %cst_548 : f32 to vector<8x1xf32>
    %975 = arith.divf %973, %974 : vector<8x1xf32>
    %976 = vector.broadcast %975 : vector<8x1xf32> to vector<8x32xf32>
    %977 = arith.subf %967, %976 : vector<8x32xf32>
    %978 = arith.mulf %977, %977 : vector<8x32xf32>
    %cst_549 = arith.constant dense<0.000000e+00> : vector<8xf32>
    %979 = vector.multi_reduction <add>, %978, %cst_549 [1] : vector<8x32xf32> to vector<8xf32>
    %980 = vector.shape_cast %979 : vector<8xf32> to vector<8x1xf32>
    %cst_550 = arith.constant 3.200000e+01 : f32
    %981 = vector.broadcast %cst_550 : f32 to vector<8x1xf32>
    %982 = arith.divf %980, %981 : vector<8x1xf32>
    %983 = vector.broadcast %975 : vector<8x1xf32> to vector<8x32xf32>
    %984 = arith.subf %967, %983 : vector<8x32xf32>
    %cst_551 = arith.constant 9.99999974E-6 : f32
    %985 = vector.broadcast %cst_551 : f32 to vector<8x1xf32>
    %986 = arith.addf %982, %985 : vector<8x1xf32>
    %987 = math.rsqrt %986 : vector<8x1xf32>
    %988 = vector.broadcast %987 : vector<8x1xf32> to vector<8x32xf32>
    %989 = arith.mulf %984, %988 : vector<8x32xf32>
    %990 = vector.broadcast %969 : vector<1x32xf32> to vector<8x32xf32>
    %991 = arith.mulf %989, %990 : vector<8x32xf32>
    %992 = vector.broadcast %971 : vector<1x32xf32> to vector<8x32xf32>
    %993 = arith.addf %991, %992 : vector<8x32xf32>
    %c2_552 = arith.constant 2 : index
    %c0_553 = arith.constant 0 : index
    %c0_554 = arith.constant 0 : index
    %994 = vector.load %arg21[%c2_552, %c0_553, %c0_554] : memref<6x32x32xf32, #tpu.memory_space<vmem>>, vector<1x32x32xf32>
    %995 = vector.shape_cast %994 : vector<1x32x32xf32> to vector<32x32xf32>
    %cst_555 = arith.constant dense<0.000000e+00> : vector<8x32xf32>
    %996 = tpu.matmul %993, %995, %cst_555 {dimension_numbers = #tpu.dot_dimension_numbers<[1], [0], [0], [1], [0, 0, 1, 1], [], []>} : vector<8x32xf32>, vector<32x32xf32>, vector<8x32xf32> -> vector<8x32xf32>
    %c2_556 = arith.constant 2 : index
    %c0_557 = arith.constant 0 : index
    %c0_558 = arith.constant 0 : index
    %997 = vector.load %arg22[%c2_556, %c0_557, %c0_558] : memref<6x1x32xf32, #tpu.memory_space<vmem>>, vector<1x1x32xf32>
    %998 = vector.shape_cast %997 : vector<1x1x32xf32> to vector<1x32xf32>
    %999 = vector.broadcast %998 : vector<1x32xf32> to vector<8x32xf32>
    %1000 = arith.addf %996, %999 : vector<8x32xf32>
    %c2_559 = arith.constant 2 : index
    %c0_560 = arith.constant 0 : index
    %c0_561 = arith.constant 0 : index
    %1001 = vector.load %arg23[%c2_559, %c0_560, %c0_561] : memref<6x32x64xf32, #tpu.memory_space<vmem>>, vector<1x32x64xf32>
    %1002 = vector.shape_cast %1001 : vector<1x32x64xf32> to vector<32x64xf32>
    %cst_562 = arith.constant dense<0.000000e+00> : vector<8x64xf32>
    %1003 = tpu.matmul %603, %1002, %cst_562 {dimension_numbers = #tpu.dot_dimension_numbers<[1], [0], [0], [1], [0, 0, 1, 1], [], []>} : vector<8x32xf32>, vector<32x64xf32>, vector<8x64xf32> -> vector<8x64xf32>
    %c2_563 = arith.constant 2 : index
    %c0_564 = arith.constant 0 : index
    %c0_565 = arith.constant 0 : index
    %1004 = vector.load %arg24[%c2_563, %c0_564, %c0_565] : memref<6x1x64xf32, #tpu.memory_space<vmem>>, vector<1x1x64xf32>
    %1005 = vector.shape_cast %1004 : vector<1x1x64xf32> to vector<1x64xf32>
    %1006 = vector.broadcast %1005 : vector<1x64xf32> to vector<8x64xf32>
    %1007 = arith.addf %1003, %1006 : vector<8x64xf32>
    %1008 = vector.extract_strided_slice %1007 {offsets = [0, 0], sizes = [8, 32], strides = [1, 1]} : vector<8x64xf32> to vector<8x32xf32>
    %1009 = vector.extract_strided_slice %1007 {offsets = [0, 32], sizes = [8, 32], strides = [1, 1]} : vector<8x64xf32> to vector<8x32xf32>
    %cst_566 = arith.constant dense<0.000000e+00> : vector<8x8xf32>
    %1010 = tpu.matmul %1000, %1008, %cst_566 {dimension_numbers = #tpu.dot_dimension_numbers<[1], [1], [0], [0], [0, 0, 1, 0], [], []>} : vector<8x32xf32>, vector<8x32xf32>, vector<8x8xf32> -> vector<8x8xf32>
    %cst_567 = arith.constant 0.176776692 : f32
    %1011 = vector.broadcast %cst_567 : f32 to vector<8x8xf32>
    %1012 = arith.mulf %1010, %1011 : vector<8x8xf32>
    %cst_568 = arith.constant dense<0xFF800000> : vector<8xf32>
    %1013 = vector.multi_reduction <maximumf>, %1012, %cst_568 [1] : vector<8x8xf32> to vector<8xf32>
    %1014 = vector.shape_cast %1013 : vector<8xf32> to vector<8x1xf32>
    %1015 = vector.broadcast %1014 : vector<8x1xf32> to vector<8x8xf32>
    %1016 = arith.subf %1012, %1015 : vector<8x8xf32>
    %1017 = math.exp %1016 : vector<8x8xf32>
    %cst_569 = arith.constant dense<0.000000e+00> : vector<8xf32>
    %1018 = vector.multi_reduction <add>, %1017, %cst_569 [1] : vector<8x8xf32> to vector<8xf32>
    %1019 = vector.shape_cast %1018 : vector<8xf32> to vector<8x1xf32>
    %1020 = vector.broadcast %1019 : vector<8x1xf32> to vector<8x8xf32>
    %1021 = arith.divf %1017, %1020 : vector<8x8xf32>
    %cst_570 = arith.constant dense<0.000000e+00> : vector<8x32xf32>
    %1022 = tpu.matmul %1021, %1009, %cst_570 {dimension_numbers = #tpu.dot_dimension_numbers<[1], [0], [0], [1], [0, 0, 1, 1], [], []>} : vector<8x8xf32>, vector<8x32xf32>, vector<8x32xf32> -> vector<8x32xf32>
    %c2_571 = arith.constant 2 : index
    %c0_572 = arith.constant 0 : index
    %c0_573 = arith.constant 0 : index
    %1023 = vector.load %arg25[%c2_571, %c0_572, %c0_573] : memref<6x32x32xf32, #tpu.memory_space<vmem>>, vector<1x32x32xf32>
    %1024 = vector.shape_cast %1023 : vector<1x32x32xf32> to vector<32x32xf32>
    %cst_574 = arith.constant dense<0.000000e+00> : vector<8x32xf32>
    %1025 = tpu.matmul %1022, %1024, %cst_574 {dimension_numbers = #tpu.dot_dimension_numbers<[1], [0], [0], [1], [0, 0, 1, 1], [], []>} : vector<8x32xf32>, vector<32x32xf32>, vector<8x32xf32> -> vector<8x32xf32>
    %c2_575 = arith.constant 2 : index
    %c0_576 = arith.constant 0 : index
    %c0_577 = arith.constant 0 : index
    %1026 = vector.load %arg26[%c2_575, %c0_576, %c0_577] : memref<6x1x32xf32, #tpu.memory_space<vmem>>, vector<1x1x32xf32>
    %1027 = vector.shape_cast %1026 : vector<1x1x32xf32> to vector<1x32xf32>
    %1028 = vector.broadcast %1027 : vector<1x32xf32> to vector<8x32xf32>
    %1029 = arith.addf %1025, %1028 : vector<8x32xf32>
    %1030 = arith.addf %993, %1029 : vector<8x32xf32>
    %c2_578 = arith.constant 2 : index
    %c0_579 = arith.constant 0 : index
    %c0_580 = arith.constant 0 : index
    %1031 = vector.load %arg27[%c2_578, %c0_579, %c0_580] : memref<6x1x32xf32, #tpu.memory_space<vmem>>, vector<1x1x32xf32>
    %1032 = vector.shape_cast %1031 : vector<1x1x32xf32> to vector<1x32xf32>
    %c2_581 = arith.constant 2 : index
    %c0_582 = arith.constant 0 : index
    %c0_583 = arith.constant 0 : index
    %1033 = vector.load %arg28[%c2_581, %c0_582, %c0_583] : memref<6x1x32xf32, #tpu.memory_space<vmem>>, vector<1x1x32xf32>
    %1034 = vector.shape_cast %1033 : vector<1x1x32xf32> to vector<1x32xf32>
    %cst_584 = arith.constant dense<0.000000e+00> : vector<8xf32>
    %1035 = vector.multi_reduction <add>, %1030, %cst_584 [1] : vector<8x32xf32> to vector<8xf32>
    %1036 = vector.shape_cast %1035 : vector<8xf32> to vector<8x1xf32>
    %cst_585 = arith.constant 3.200000e+01 : f32
    %1037 = vector.broadcast %cst_585 : f32 to vector<8x1xf32>
    %1038 = arith.divf %1036, %1037 : vector<8x1xf32>
    %1039 = vector.broadcast %1038 : vector<8x1xf32> to vector<8x32xf32>
    %1040 = arith.subf %1030, %1039 : vector<8x32xf32>
    %1041 = arith.mulf %1040, %1040 : vector<8x32xf32>
    %cst_586 = arith.constant dense<0.000000e+00> : vector<8xf32>
    %1042 = vector.multi_reduction <add>, %1041, %cst_586 [1] : vector<8x32xf32> to vector<8xf32>
    %1043 = vector.shape_cast %1042 : vector<8xf32> to vector<8x1xf32>
    %cst_587 = arith.constant 3.200000e+01 : f32
    %1044 = vector.broadcast %cst_587 : f32 to vector<8x1xf32>
    %1045 = arith.divf %1043, %1044 : vector<8x1xf32>
    %1046 = vector.broadcast %1038 : vector<8x1xf32> to vector<8x32xf32>
    %1047 = arith.subf %1030, %1046 : vector<8x32xf32>
    %cst_588 = arith.constant 9.99999974E-6 : f32
    %1048 = vector.broadcast %cst_588 : f32 to vector<8x1xf32>
    %1049 = arith.addf %1045, %1048 : vector<8x1xf32>
    %1050 = math.rsqrt %1049 : vector<8x1xf32>
    %1051 = vector.broadcast %1050 : vector<8x1xf32> to vector<8x32xf32>
    %1052 = arith.mulf %1047, %1051 : vector<8x32xf32>
    %1053 = vector.broadcast %1032 : vector<1x32xf32> to vector<8x32xf32>
    %1054 = arith.mulf %1052, %1053 : vector<8x32xf32>
    %1055 = vector.broadcast %1034 : vector<1x32xf32> to vector<8x32xf32>
    %1056 = arith.addf %1054, %1055 : vector<8x32xf32>
    %c2_589 = arith.constant 2 : index
    %c0_590 = arith.constant 0 : index
    %c0_591 = arith.constant 0 : index
    %1057 = vector.load %arg29[%c2_589, %c0_590, %c0_591] : memref<6x32x64xf32, #tpu.memory_space<vmem>>, vector<1x32x64xf32>
    %1058 = vector.shape_cast %1057 : vector<1x32x64xf32> to vector<32x64xf32>
    %cst_592 = arith.constant dense<0.000000e+00> : vector<8x64xf32>
    %1059 = tpu.matmul %1056, %1058, %cst_592 {dimension_numbers = #tpu.dot_dimension_numbers<[1], [0], [0], [1], [0, 0, 1, 1], [], []>} : vector<8x32xf32>, vector<32x64xf32>, vector<8x64xf32> -> vector<8x64xf32>
    %c2_593 = arith.constant 2 : index
    %c0_594 = arith.constant 0 : index
    %c0_595 = arith.constant 0 : index
    %1060 = vector.load %arg30[%c2_593, %c0_594, %c0_595] : memref<6x1x64xf32, #tpu.memory_space<vmem>>, vector<1x1x64xf32>
    %1061 = vector.shape_cast %1060 : vector<1x1x64xf32> to vector<1x64xf32>
    %1062 = vector.broadcast %1061 : vector<1x64xf32> to vector<8x64xf32>
    %1063 = arith.addf %1059, %1062 : vector<8x64xf32>
    %cst_596 = arith.constant 0.000000e+00 : f32
    %1064 = vector.broadcast %cst_596 : f32 to vector<8x64xf32>
    %1065 = arith.maximumf %1063, %1064 : vector<8x64xf32>
    %c2_597 = arith.constant 2 : index
    %c0_598 = arith.constant 0 : index
    %c0_599 = arith.constant 0 : index
    %1066 = vector.load %arg31[%c2_597, %c0_598, %c0_599] : memref<6x64x32xf32, #tpu.memory_space<vmem>>, vector<1x64x32xf32>
    %1067 = vector.shape_cast %1066 : vector<1x64x32xf32> to vector<64x32xf32>
    %cst_600 = arith.constant dense<0.000000e+00> : vector<8x32xf32>
    %1068 = tpu.matmul %1065, %1067, %cst_600 {dimension_numbers = #tpu.dot_dimension_numbers<[1], [0], [0], [1], [0, 0, 1, 1], [], []>} : vector<8x64xf32>, vector<64x32xf32>, vector<8x32xf32> -> vector<8x32xf32>
    %c2_601 = arith.constant 2 : index
    %c0_602 = arith.constant 0 : index
    %c0_603 = arith.constant 0 : index
    %1069 = vector.load %arg32[%c2_601, %c0_602, %c0_603] : memref<6x1x32xf32, #tpu.memory_space<vmem>>, vector<1x1x32xf32>
    %1070 = vector.shape_cast %1069 : vector<1x1x32xf32> to vector<1x32xf32>
    %1071 = vector.broadcast %1070 : vector<1x32xf32> to vector<8x32xf32>
    %1072 = arith.addf %1068, %1071 : vector<8x32xf32>
    %1073 = arith.addf %1056, %1072 : vector<8x32xf32>
    %c2_604 = arith.constant 2 : index
    %c0_605 = arith.constant 0 : index
    %c0_606 = arith.constant 0 : index
    %1074 = vector.load %arg33[%c2_604, %c0_605, %c0_606] : memref<6x1x32xf32, #tpu.memory_space<vmem>>, vector<1x1x32xf32>
    %1075 = vector.shape_cast %1074 : vector<1x1x32xf32> to vector<1x32xf32>
    %c2_607 = arith.constant 2 : index
    %c0_608 = arith.constant 0 : index
    %c0_609 = arith.constant 0 : index
    %1076 = vector.load %arg34[%c2_607, %c0_608, %c0_609] : memref<6x1x32xf32, #tpu.memory_space<vmem>>, vector<1x1x32xf32>
    %1077 = vector.shape_cast %1076 : vector<1x1x32xf32> to vector<1x32xf32>
    %cst_610 = arith.constant dense<0.000000e+00> : vector<8xf32>
    %1078 = vector.multi_reduction <add>, %1073, %cst_610 [1] : vector<8x32xf32> to vector<8xf32>
    %1079 = vector.shape_cast %1078 : vector<8xf32> to vector<8x1xf32>
    %cst_611 = arith.constant 3.200000e+01 : f32
    %1080 = vector.broadcast %cst_611 : f32 to vector<8x1xf32>
    %1081 = arith.divf %1079, %1080 : vector<8x1xf32>
    %1082 = vector.broadcast %1081 : vector<8x1xf32> to vector<8x32xf32>
    %1083 = arith.subf %1073, %1082 : vector<8x32xf32>
    %1084 = arith.mulf %1083, %1083 : vector<8x32xf32>
    %cst_612 = arith.constant dense<0.000000e+00> : vector<8xf32>
    %1085 = vector.multi_reduction <add>, %1084, %cst_612 [1] : vector<8x32xf32> to vector<8xf32>
    %1086 = vector.shape_cast %1085 : vector<8xf32> to vector<8x1xf32>
    %cst_613 = arith.constant 3.200000e+01 : f32
    %1087 = vector.broadcast %cst_613 : f32 to vector<8x1xf32>
    %1088 = arith.divf %1086, %1087 : vector<8x1xf32>
    %1089 = vector.broadcast %1081 : vector<8x1xf32> to vector<8x32xf32>
    %1090 = arith.subf %1073, %1089 : vector<8x32xf32>
    %cst_614 = arith.constant 9.99999974E-6 : f32
    %1091 = vector.broadcast %cst_614 : f32 to vector<8x1xf32>
    %1092 = arith.addf %1088, %1091 : vector<8x1xf32>
    %1093 = math.rsqrt %1092 : vector<8x1xf32>
    %1094 = vector.broadcast %1093 : vector<8x1xf32> to vector<8x32xf32>
    %1095 = arith.mulf %1090, %1094 : vector<8x32xf32>
    %1096 = vector.broadcast %1075 : vector<1x32xf32> to vector<8x32xf32>
    %1097 = arith.mulf %1095, %1096 : vector<8x32xf32>
    %1098 = vector.broadcast %1077 : vector<1x32xf32> to vector<8x32xf32>
    %1099 = arith.addf %1097, %1098 : vector<8x32xf32>
    %c3_615 = arith.constant 3 : index
    %c0_616 = arith.constant 0 : index
    %c0_617 = arith.constant 0 : index
    %1100 = vector.load %arg15[%c3_615, %c0_616, %c0_617] : memref<6x32x96xf32, #tpu.memory_space<vmem>>, vector<1x32x96xf32>
    %1101 = vector.shape_cast %1100 : vector<1x32x96xf32> to vector<32x96xf32>
    %cst_618 = arith.constant dense<0.000000e+00> : vector<8x96xf32>
    %1102 = tpu.matmul %1099, %1101, %cst_618 {dimension_numbers = #tpu.dot_dimension_numbers<[1], [0], [0], [1], [0, 0, 1, 1], [], []>} : vector<8x32xf32>, vector<32x96xf32>, vector<8x96xf32> -> vector<8x96xf32>
    %c3_619 = arith.constant 3 : index
    %c0_620 = arith.constant 0 : index
    %c0_621 = arith.constant 0 : index
    %1103 = vector.load %arg16[%c3_619, %c0_620, %c0_621] : memref<6x1x96xf32, #tpu.memory_space<vmem>>, vector<1x1x96xf32>
    %1104 = vector.shape_cast %1103 : vector<1x1x96xf32> to vector<1x96xf32>
    %1105 = vector.broadcast %1104 : vector<1x96xf32> to vector<8x96xf32>
    %1106 = arith.addf %1102, %1105 : vector<8x96xf32>
    %1107 = vector.extract_strided_slice %1106 {offsets = [0, 0], sizes = [8, 32], strides = [1, 1]} : vector<8x96xf32> to vector<8x32xf32>
    %1108 = vector.extract_strided_slice %1106 {offsets = [0, 32], sizes = [8, 32], strides = [1, 1]} : vector<8x96xf32> to vector<8x32xf32>
    %1109 = vector.extract_strided_slice %1106 {offsets = [0, 64], sizes = [8, 32], strides = [1, 1]} : vector<8x96xf32> to vector<8x32xf32>
    %cst_622 = arith.constant dense<0.000000e+00> : vector<8x8xf32>
    %1110 = tpu.matmul %1107, %1108, %cst_622 {dimension_numbers = #tpu.dot_dimension_numbers<[1], [1], [0], [0], [0, 0, 1, 0], [], []>} : vector<8x32xf32>, vector<8x32xf32>, vector<8x8xf32> -> vector<8x8xf32>
    %cst_623 = arith.constant 0.176776692 : f32
    %1111 = vector.broadcast %cst_623 : f32 to vector<8x8xf32>
    %1112 = arith.mulf %1110, %1111 : vector<8x8xf32>
    %cst_624 = arith.constant -1.000000e+09 : f32
    %1113 = vector.broadcast %cst_624 : f32 to vector<8x8xf32>
    %1114 = arith.select %2, %1112, %1113 : vector<8x8xi1>, vector<8x8xf32>
    %cst_625 = arith.constant dense<0xFF800000> : vector<8xf32>
    %1115 = vector.multi_reduction <maximumf>, %1114, %cst_625 [1] : vector<8x8xf32> to vector<8xf32>
    %1116 = vector.shape_cast %1115 : vector<8xf32> to vector<8x1xf32>
    %1117 = vector.broadcast %1116 : vector<8x1xf32> to vector<8x8xf32>
    %1118 = arith.subf %1114, %1117 : vector<8x8xf32>
    %1119 = math.exp %1118 : vector<8x8xf32>
    %cst_626 = arith.constant dense<0.000000e+00> : vector<8xf32>
    %1120 = vector.multi_reduction <add>, %1119, %cst_626 [1] : vector<8x8xf32> to vector<8xf32>
    %1121 = vector.shape_cast %1120 : vector<8xf32> to vector<8x1xf32>
    %1122 = vector.broadcast %1121 : vector<8x1xf32> to vector<8x8xf32>
    %1123 = arith.divf %1119, %1122 : vector<8x8xf32>
    %cst_627 = arith.constant dense<0.000000e+00> : vector<8x32xf32>
    %1124 = tpu.matmul %1123, %1109, %cst_627 {dimension_numbers = #tpu.dot_dimension_numbers<[1], [0], [0], [1], [0, 0, 1, 1], [], []>} : vector<8x8xf32>, vector<8x32xf32>, vector<8x32xf32> -> vector<8x32xf32>
    %c3_628 = arith.constant 3 : index
    %c0_629 = arith.constant 0 : index
    %c0_630 = arith.constant 0 : index
    %1125 = vector.load %arg17[%c3_628, %c0_629, %c0_630] : memref<6x32x32xf32, #tpu.memory_space<vmem>>, vector<1x32x32xf32>
    %1126 = vector.shape_cast %1125 : vector<1x32x32xf32> to vector<32x32xf32>
    %cst_631 = arith.constant dense<0.000000e+00> : vector<8x32xf32>
    %1127 = tpu.matmul %1124, %1126, %cst_631 {dimension_numbers = #tpu.dot_dimension_numbers<[1], [0], [0], [1], [0, 0, 1, 1], [], []>} : vector<8x32xf32>, vector<32x32xf32>, vector<8x32xf32> -> vector<8x32xf32>
    %c3_632 = arith.constant 3 : index
    %c0_633 = arith.constant 0 : index
    %c0_634 = arith.constant 0 : index
    %1128 = vector.load %arg18[%c3_632, %c0_633, %c0_634] : memref<6x1x32xf32, #tpu.memory_space<vmem>>, vector<1x1x32xf32>
    %1129 = vector.shape_cast %1128 : vector<1x1x32xf32> to vector<1x32xf32>
    %1130 = vector.broadcast %1129 : vector<1x32xf32> to vector<8x32xf32>
    %1131 = arith.addf %1127, %1130 : vector<8x32xf32>
    %1132 = arith.addf %1099, %1131 : vector<8x32xf32>
    %c3_635 = arith.constant 3 : index
    %c0_636 = arith.constant 0 : index
    %c0_637 = arith.constant 0 : index
    %1133 = vector.load %arg19[%c3_635, %c0_636, %c0_637] : memref<6x1x32xf32, #tpu.memory_space<vmem>>, vector<1x1x32xf32>
    %1134 = vector.shape_cast %1133 : vector<1x1x32xf32> to vector<1x32xf32>
    %c3_638 = arith.constant 3 : index
    %c0_639 = arith.constant 0 : index
    %c0_640 = arith.constant 0 : index
    %1135 = vector.load %arg20[%c3_638, %c0_639, %c0_640] : memref<6x1x32xf32, #tpu.memory_space<vmem>>, vector<1x1x32xf32>
    %1136 = vector.shape_cast %1135 : vector<1x1x32xf32> to vector<1x32xf32>
    %cst_641 = arith.constant dense<0.000000e+00> : vector<8xf32>
    %1137 = vector.multi_reduction <add>, %1132, %cst_641 [1] : vector<8x32xf32> to vector<8xf32>
    %1138 = vector.shape_cast %1137 : vector<8xf32> to vector<8x1xf32>
    %cst_642 = arith.constant 3.200000e+01 : f32
    %1139 = vector.broadcast %cst_642 : f32 to vector<8x1xf32>
    %1140 = arith.divf %1138, %1139 : vector<8x1xf32>
    %1141 = vector.broadcast %1140 : vector<8x1xf32> to vector<8x32xf32>
    %1142 = arith.subf %1132, %1141 : vector<8x32xf32>
    %1143 = arith.mulf %1142, %1142 : vector<8x32xf32>
    %cst_643 = arith.constant dense<0.000000e+00> : vector<8xf32>
    %1144 = vector.multi_reduction <add>, %1143, %cst_643 [1] : vector<8x32xf32> to vector<8xf32>
    %1145 = vector.shape_cast %1144 : vector<8xf32> to vector<8x1xf32>
    %cst_644 = arith.constant 3.200000e+01 : f32
    %1146 = vector.broadcast %cst_644 : f32 to vector<8x1xf32>
    %1147 = arith.divf %1145, %1146 : vector<8x1xf32>
    %1148 = vector.broadcast %1140 : vector<8x1xf32> to vector<8x32xf32>
    %1149 = arith.subf %1132, %1148 : vector<8x32xf32>
    %cst_645 = arith.constant 9.99999974E-6 : f32
    %1150 = vector.broadcast %cst_645 : f32 to vector<8x1xf32>
    %1151 = arith.addf %1147, %1150 : vector<8x1xf32>
    %1152 = math.rsqrt %1151 : vector<8x1xf32>
    %1153 = vector.broadcast %1152 : vector<8x1xf32> to vector<8x32xf32>
    %1154 = arith.mulf %1149, %1153 : vector<8x32xf32>
    %1155 = vector.broadcast %1134 : vector<1x32xf32> to vector<8x32xf32>
    %1156 = arith.mulf %1154, %1155 : vector<8x32xf32>
    %1157 = vector.broadcast %1136 : vector<1x32xf32> to vector<8x32xf32>
    %1158 = arith.addf %1156, %1157 : vector<8x32xf32>
    %c3_646 = arith.constant 3 : index
    %c0_647 = arith.constant 0 : index
    %c0_648 = arith.constant 0 : index
    %1159 = vector.load %arg21[%c3_646, %c0_647, %c0_648] : memref<6x32x32xf32, #tpu.memory_space<vmem>>, vector<1x32x32xf32>
    %1160 = vector.shape_cast %1159 : vector<1x32x32xf32> to vector<32x32xf32>
    %cst_649 = arith.constant dense<0.000000e+00> : vector<8x32xf32>
    %1161 = tpu.matmul %1158, %1160, %cst_649 {dimension_numbers = #tpu.dot_dimension_numbers<[1], [0], [0], [1], [0, 0, 1, 1], [], []>} : vector<8x32xf32>, vector<32x32xf32>, vector<8x32xf32> -> vector<8x32xf32>
    %c3_650 = arith.constant 3 : index
    %c0_651 = arith.constant 0 : index
    %c0_652 = arith.constant 0 : index
    %1162 = vector.load %arg22[%c3_650, %c0_651, %c0_652] : memref<6x1x32xf32, #tpu.memory_space<vmem>>, vector<1x1x32xf32>
    %1163 = vector.shape_cast %1162 : vector<1x1x32xf32> to vector<1x32xf32>
    %1164 = vector.broadcast %1163 : vector<1x32xf32> to vector<8x32xf32>
    %1165 = arith.addf %1161, %1164 : vector<8x32xf32>
    %c3_653 = arith.constant 3 : index
    %c0_654 = arith.constant 0 : index
    %c0_655 = arith.constant 0 : index
    %1166 = vector.load %arg23[%c3_653, %c0_654, %c0_655] : memref<6x32x64xf32, #tpu.memory_space<vmem>>, vector<1x32x64xf32>
    %1167 = vector.shape_cast %1166 : vector<1x32x64xf32> to vector<32x64xf32>
    %cst_656 = arith.constant dense<0.000000e+00> : vector<8x64xf32>
    %1168 = tpu.matmul %603, %1167, %cst_656 {dimension_numbers = #tpu.dot_dimension_numbers<[1], [0], [0], [1], [0, 0, 1, 1], [], []>} : vector<8x32xf32>, vector<32x64xf32>, vector<8x64xf32> -> vector<8x64xf32>
    %c3_657 = arith.constant 3 : index
    %c0_658 = arith.constant 0 : index
    %c0_659 = arith.constant 0 : index
    %1169 = vector.load %arg24[%c3_657, %c0_658, %c0_659] : memref<6x1x64xf32, #tpu.memory_space<vmem>>, vector<1x1x64xf32>
    %1170 = vector.shape_cast %1169 : vector<1x1x64xf32> to vector<1x64xf32>
    %1171 = vector.broadcast %1170 : vector<1x64xf32> to vector<8x64xf32>
    %1172 = arith.addf %1168, %1171 : vector<8x64xf32>
    %1173 = vector.extract_strided_slice %1172 {offsets = [0, 0], sizes = [8, 32], strides = [1, 1]} : vector<8x64xf32> to vector<8x32xf32>
    %1174 = vector.extract_strided_slice %1172 {offsets = [0, 32], sizes = [8, 32], strides = [1, 1]} : vector<8x64xf32> to vector<8x32xf32>
    %cst_660 = arith.constant dense<0.000000e+00> : vector<8x8xf32>
    %1175 = tpu.matmul %1165, %1173, %cst_660 {dimension_numbers = #tpu.dot_dimension_numbers<[1], [1], [0], [0], [0, 0, 1, 0], [], []>} : vector<8x32xf32>, vector<8x32xf32>, vector<8x8xf32> -> vector<8x8xf32>
    %cst_661 = arith.constant 0.176776692 : f32
    %1176 = vector.broadcast %cst_661 : f32 to vector<8x8xf32>
    %1177 = arith.mulf %1175, %1176 : vector<8x8xf32>
    %cst_662 = arith.constant dense<0xFF800000> : vector<8xf32>
    %1178 = vector.multi_reduction <maximumf>, %1177, %cst_662 [1] : vector<8x8xf32> to vector<8xf32>
    %1179 = vector.shape_cast %1178 : vector<8xf32> to vector<8x1xf32>
    %1180 = vector.broadcast %1179 : vector<8x1xf32> to vector<8x8xf32>
    %1181 = arith.subf %1177, %1180 : vector<8x8xf32>
    %1182 = math.exp %1181 : vector<8x8xf32>
    %cst_663 = arith.constant dense<0.000000e+00> : vector<8xf32>
    %1183 = vector.multi_reduction <add>, %1182, %cst_663 [1] : vector<8x8xf32> to vector<8xf32>
    %1184 = vector.shape_cast %1183 : vector<8xf32> to vector<8x1xf32>
    %1185 = vector.broadcast %1184 : vector<8x1xf32> to vector<8x8xf32>
    %1186 = arith.divf %1182, %1185 : vector<8x8xf32>
    %cst_664 = arith.constant dense<0.000000e+00> : vector<8x32xf32>
    %1187 = tpu.matmul %1186, %1174, %cst_664 {dimension_numbers = #tpu.dot_dimension_numbers<[1], [0], [0], [1], [0, 0, 1, 1], [], []>} : vector<8x8xf32>, vector<8x32xf32>, vector<8x32xf32> -> vector<8x32xf32>
    %c3_665 = arith.constant 3 : index
    %c0_666 = arith.constant 0 : index
    %c0_667 = arith.constant 0 : index
    %1188 = vector.load %arg25[%c3_665, %c0_666, %c0_667] : memref<6x32x32xf32, #tpu.memory_space<vmem>>, vector<1x32x32xf32>
    %1189 = vector.shape_cast %1188 : vector<1x32x32xf32> to vector<32x32xf32>
    %cst_668 = arith.constant dense<0.000000e+00> : vector<8x32xf32>
    %1190 = tpu.matmul %1187, %1189, %cst_668 {dimension_numbers = #tpu.dot_dimension_numbers<[1], [0], [0], [1], [0, 0, 1, 1], [], []>} : vector<8x32xf32>, vector<32x32xf32>, vector<8x32xf32> -> vector<8x32xf32>
    %c3_669 = arith.constant 3 : index
    %c0_670 = arith.constant 0 : index
    %c0_671 = arith.constant 0 : index
    %1191 = vector.load %arg26[%c3_669, %c0_670, %c0_671] : memref<6x1x32xf32, #tpu.memory_space<vmem>>, vector<1x1x32xf32>
    %1192 = vector.shape_cast %1191 : vector<1x1x32xf32> to vector<1x32xf32>
    %1193 = vector.broadcast %1192 : vector<1x32xf32> to vector<8x32xf32>
    %1194 = arith.addf %1190, %1193 : vector<8x32xf32>
    %1195 = arith.addf %1158, %1194 : vector<8x32xf32>
    %c3_672 = arith.constant 3 : index
    %c0_673 = arith.constant 0 : index
    %c0_674 = arith.constant 0 : index
    %1196 = vector.load %arg27[%c3_672, %c0_673, %c0_674] : memref<6x1x32xf32, #tpu.memory_space<vmem>>, vector<1x1x32xf32>
    %1197 = vector.shape_cast %1196 : vector<1x1x32xf32> to vector<1x32xf32>
    %c3_675 = arith.constant 3 : index
    %c0_676 = arith.constant 0 : index
    %c0_677 = arith.constant 0 : index
    %1198 = vector.load %arg28[%c3_675, %c0_676, %c0_677] : memref<6x1x32xf32, #tpu.memory_space<vmem>>, vector<1x1x32xf32>
    %1199 = vector.shape_cast %1198 : vector<1x1x32xf32> to vector<1x32xf32>
    %cst_678 = arith.constant dense<0.000000e+00> : vector<8xf32>
    %1200 = vector.multi_reduction <add>, %1195, %cst_678 [1] : vector<8x32xf32> to vector<8xf32>
    %1201 = vector.shape_cast %1200 : vector<8xf32> to vector<8x1xf32>
    %cst_679 = arith.constant 3.200000e+01 : f32
    %1202 = vector.broadcast %cst_679 : f32 to vector<8x1xf32>
    %1203 = arith.divf %1201, %1202 : vector<8x1xf32>
    %1204 = vector.broadcast %1203 : vector<8x1xf32> to vector<8x32xf32>
    %1205 = arith.subf %1195, %1204 : vector<8x32xf32>
    %1206 = arith.mulf %1205, %1205 : vector<8x32xf32>
    %cst_680 = arith.constant dense<0.000000e+00> : vector<8xf32>
    %1207 = vector.multi_reduction <add>, %1206, %cst_680 [1] : vector<8x32xf32> to vector<8xf32>
    %1208 = vector.shape_cast %1207 : vector<8xf32> to vector<8x1xf32>
    %cst_681 = arith.constant 3.200000e+01 : f32
    %1209 = vector.broadcast %cst_681 : f32 to vector<8x1xf32>
    %1210 = arith.divf %1208, %1209 : vector<8x1xf32>
    %1211 = vector.broadcast %1203 : vector<8x1xf32> to vector<8x32xf32>
    %1212 = arith.subf %1195, %1211 : vector<8x32xf32>
    %cst_682 = arith.constant 9.99999974E-6 : f32
    %1213 = vector.broadcast %cst_682 : f32 to vector<8x1xf32>
    %1214 = arith.addf %1210, %1213 : vector<8x1xf32>
    %1215 = math.rsqrt %1214 : vector<8x1xf32>
    %1216 = vector.broadcast %1215 : vector<8x1xf32> to vector<8x32xf32>
    %1217 = arith.mulf %1212, %1216 : vector<8x32xf32>
    %1218 = vector.broadcast %1197 : vector<1x32xf32> to vector<8x32xf32>
    %1219 = arith.mulf %1217, %1218 : vector<8x32xf32>
    %1220 = vector.broadcast %1199 : vector<1x32xf32> to vector<8x32xf32>
    %1221 = arith.addf %1219, %1220 : vector<8x32xf32>
    %c3_683 = arith.constant 3 : index
    %c0_684 = arith.constant 0 : index
    %c0_685 = arith.constant 0 : index
    %1222 = vector.load %arg29[%c3_683, %c0_684, %c0_685] : memref<6x32x64xf32, #tpu.memory_space<vmem>>, vector<1x32x64xf32>
    %1223 = vector.shape_cast %1222 : vector<1x32x64xf32> to vector<32x64xf32>
    %cst_686 = arith.constant dense<0.000000e+00> : vector<8x64xf32>
    %1224 = tpu.matmul %1221, %1223, %cst_686 {dimension_numbers = #tpu.dot_dimension_numbers<[1], [0], [0], [1], [0, 0, 1, 1], [], []>} : vector<8x32xf32>, vector<32x64xf32>, vector<8x64xf32> -> vector<8x64xf32>
    %c3_687 = arith.constant 3 : index
    %c0_688 = arith.constant 0 : index
    %c0_689 = arith.constant 0 : index
    %1225 = vector.load %arg30[%c3_687, %c0_688, %c0_689] : memref<6x1x64xf32, #tpu.memory_space<vmem>>, vector<1x1x64xf32>
    %1226 = vector.shape_cast %1225 : vector<1x1x64xf32> to vector<1x64xf32>
    %1227 = vector.broadcast %1226 : vector<1x64xf32> to vector<8x64xf32>
    %1228 = arith.addf %1224, %1227 : vector<8x64xf32>
    %cst_690 = arith.constant 0.000000e+00 : f32
    %1229 = vector.broadcast %cst_690 : f32 to vector<8x64xf32>
    %1230 = arith.maximumf %1228, %1229 : vector<8x64xf32>
    %c3_691 = arith.constant 3 : index
    %c0_692 = arith.constant 0 : index
    %c0_693 = arith.constant 0 : index
    %1231 = vector.load %arg31[%c3_691, %c0_692, %c0_693] : memref<6x64x32xf32, #tpu.memory_space<vmem>>, vector<1x64x32xf32>
    %1232 = vector.shape_cast %1231 : vector<1x64x32xf32> to vector<64x32xf32>
    %cst_694 = arith.constant dense<0.000000e+00> : vector<8x32xf32>
    %1233 = tpu.matmul %1230, %1232, %cst_694 {dimension_numbers = #tpu.dot_dimension_numbers<[1], [0], [0], [1], [0, 0, 1, 1], [], []>} : vector<8x64xf32>, vector<64x32xf32>, vector<8x32xf32> -> vector<8x32xf32>
    %c3_695 = arith.constant 3 : index
    %c0_696 = arith.constant 0 : index
    %c0_697 = arith.constant 0 : index
    %1234 = vector.load %arg32[%c3_695, %c0_696, %c0_697] : memref<6x1x32xf32, #tpu.memory_space<vmem>>, vector<1x1x32xf32>
    %1235 = vector.shape_cast %1234 : vector<1x1x32xf32> to vector<1x32xf32>
    %1236 = vector.broadcast %1235 : vector<1x32xf32> to vector<8x32xf32>
    %1237 = arith.addf %1233, %1236 : vector<8x32xf32>
    %1238 = arith.addf %1221, %1237 : vector<8x32xf32>
    %c3_698 = arith.constant 3 : index
    %c0_699 = arith.constant 0 : index
    %c0_700 = arith.constant 0 : index
    %1239 = vector.load %arg33[%c3_698, %c0_699, %c0_700] : memref<6x1x32xf32, #tpu.memory_space<vmem>>, vector<1x1x32xf32>
    %1240 = vector.shape_cast %1239 : vector<1x1x32xf32> to vector<1x32xf32>
    %c3_701 = arith.constant 3 : index
    %c0_702 = arith.constant 0 : index
    %c0_703 = arith.constant 0 : index
    %1241 = vector.load %arg34[%c3_701, %c0_702, %c0_703] : memref<6x1x32xf32, #tpu.memory_space<vmem>>, vector<1x1x32xf32>
    %1242 = vector.shape_cast %1241 : vector<1x1x32xf32> to vector<1x32xf32>
    %cst_704 = arith.constant dense<0.000000e+00> : vector<8xf32>
    %1243 = vector.multi_reduction <add>, %1238, %cst_704 [1] : vector<8x32xf32> to vector<8xf32>
    %1244 = vector.shape_cast %1243 : vector<8xf32> to vector<8x1xf32>
    %cst_705 = arith.constant 3.200000e+01 : f32
    %1245 = vector.broadcast %cst_705 : f32 to vector<8x1xf32>
    %1246 = arith.divf %1244, %1245 : vector<8x1xf32>
    %1247 = vector.broadcast %1246 : vector<8x1xf32> to vector<8x32xf32>
    %1248 = arith.subf %1238, %1247 : vector<8x32xf32>
    %1249 = arith.mulf %1248, %1248 : vector<8x32xf32>
    %cst_706 = arith.constant dense<0.000000e+00> : vector<8xf32>
    %1250 = vector.multi_reduction <add>, %1249, %cst_706 [1] : vector<8x32xf32> to vector<8xf32>
    %1251 = vector.shape_cast %1250 : vector<8xf32> to vector<8x1xf32>
    %cst_707 = arith.constant 3.200000e+01 : f32
    %1252 = vector.broadcast %cst_707 : f32 to vector<8x1xf32>
    %1253 = arith.divf %1251, %1252 : vector<8x1xf32>
    %1254 = vector.broadcast %1246 : vector<8x1xf32> to vector<8x32xf32>
    %1255 = arith.subf %1238, %1254 : vector<8x32xf32>
    %cst_708 = arith.constant 9.99999974E-6 : f32
    %1256 = vector.broadcast %cst_708 : f32 to vector<8x1xf32>
    %1257 = arith.addf %1253, %1256 : vector<8x1xf32>
    %1258 = math.rsqrt %1257 : vector<8x1xf32>
    %1259 = vector.broadcast %1258 : vector<8x1xf32> to vector<8x32xf32>
    %1260 = arith.mulf %1255, %1259 : vector<8x32xf32>
    %1261 = vector.broadcast %1240 : vector<1x32xf32> to vector<8x32xf32>
    %1262 = arith.mulf %1260, %1261 : vector<8x32xf32>
    %1263 = vector.broadcast %1242 : vector<1x32xf32> to vector<8x32xf32>
    %1264 = arith.addf %1262, %1263 : vector<8x32xf32>
    %c4_709 = arith.constant 4 : index
    %c0_710 = arith.constant 0 : index
    %c0_711 = arith.constant 0 : index
    %1265 = vector.load %arg15[%c4_709, %c0_710, %c0_711] : memref<6x32x96xf32, #tpu.memory_space<vmem>>, vector<1x32x96xf32>
    %1266 = vector.shape_cast %1265 : vector<1x32x96xf32> to vector<32x96xf32>
    %cst_712 = arith.constant dense<0.000000e+00> : vector<8x96xf32>
    %1267 = tpu.matmul %1264, %1266, %cst_712 {dimension_numbers = #tpu.dot_dimension_numbers<[1], [0], [0], [1], [0, 0, 1, 1], [], []>} : vector<8x32xf32>, vector<32x96xf32>, vector<8x96xf32> -> vector<8x96xf32>
    %c4_713 = arith.constant 4 : index
    %c0_714 = arith.constant 0 : index
    %c0_715 = arith.constant 0 : index
    %1268 = vector.load %arg16[%c4_713, %c0_714, %c0_715] : memref<6x1x96xf32, #tpu.memory_space<vmem>>, vector<1x1x96xf32>
    %1269 = vector.shape_cast %1268 : vector<1x1x96xf32> to vector<1x96xf32>
    %1270 = vector.broadcast %1269 : vector<1x96xf32> to vector<8x96xf32>
    %1271 = arith.addf %1267, %1270 : vector<8x96xf32>
    %1272 = vector.extract_strided_slice %1271 {offsets = [0, 0], sizes = [8, 32], strides = [1, 1]} : vector<8x96xf32> to vector<8x32xf32>
    %1273 = vector.extract_strided_slice %1271 {offsets = [0, 32], sizes = [8, 32], strides = [1, 1]} : vector<8x96xf32> to vector<8x32xf32>
    %1274 = vector.extract_strided_slice %1271 {offsets = [0, 64], sizes = [8, 32], strides = [1, 1]} : vector<8x96xf32> to vector<8x32xf32>
    %cst_716 = arith.constant dense<0.000000e+00> : vector<8x8xf32>
    %1275 = tpu.matmul %1272, %1273, %cst_716 {dimension_numbers = #tpu.dot_dimension_numbers<[1], [1], [0], [0], [0, 0, 1, 0], [], []>} : vector<8x32xf32>, vector<8x32xf32>, vector<8x8xf32> -> vector<8x8xf32>
    %cst_717 = arith.constant 0.176776692 : f32
    %1276 = vector.broadcast %cst_717 : f32 to vector<8x8xf32>
    %1277 = arith.mulf %1275, %1276 : vector<8x8xf32>
    %cst_718 = arith.constant -1.000000e+09 : f32
    %1278 = vector.broadcast %cst_718 : f32 to vector<8x8xf32>
    %1279 = arith.select %2, %1277, %1278 : vector<8x8xi1>, vector<8x8xf32>
    %cst_719 = arith.constant dense<0xFF800000> : vector<8xf32>
    %1280 = vector.multi_reduction <maximumf>, %1279, %cst_719 [1] : vector<8x8xf32> to vector<8xf32>
    %1281 = vector.shape_cast %1280 : vector<8xf32> to vector<8x1xf32>
    %1282 = vector.broadcast %1281 : vector<8x1xf32> to vector<8x8xf32>
    %1283 = arith.subf %1279, %1282 : vector<8x8xf32>
    %1284 = math.exp %1283 : vector<8x8xf32>
    %cst_720 = arith.constant dense<0.000000e+00> : vector<8xf32>
    %1285 = vector.multi_reduction <add>, %1284, %cst_720 [1] : vector<8x8xf32> to vector<8xf32>
    %1286 = vector.shape_cast %1285 : vector<8xf32> to vector<8x1xf32>
    %1287 = vector.broadcast %1286 : vector<8x1xf32> to vector<8x8xf32>
    %1288 = arith.divf %1284, %1287 : vector<8x8xf32>
    %cst_721 = arith.constant dense<0.000000e+00> : vector<8x32xf32>
    %1289 = tpu.matmul %1288, %1274, %cst_721 {dimension_numbers = #tpu.dot_dimension_numbers<[1], [0], [0], [1], [0, 0, 1, 1], [], []>} : vector<8x8xf32>, vector<8x32xf32>, vector<8x32xf32> -> vector<8x32xf32>
    %c4_722 = arith.constant 4 : index
    %c0_723 = arith.constant 0 : index
    %c0_724 = arith.constant 0 : index
    %1290 = vector.load %arg17[%c4_722, %c0_723, %c0_724] : memref<6x32x32xf32, #tpu.memory_space<vmem>>, vector<1x32x32xf32>
    %1291 = vector.shape_cast %1290 : vector<1x32x32xf32> to vector<32x32xf32>
    %cst_725 = arith.constant dense<0.000000e+00> : vector<8x32xf32>
    %1292 = tpu.matmul %1289, %1291, %cst_725 {dimension_numbers = #tpu.dot_dimension_numbers<[1], [0], [0], [1], [0, 0, 1, 1], [], []>} : vector<8x32xf32>, vector<32x32xf32>, vector<8x32xf32> -> vector<8x32xf32>
    %c4_726 = arith.constant 4 : index
    %c0_727 = arith.constant 0 : index
    %c0_728 = arith.constant 0 : index
    %1293 = vector.load %arg18[%c4_726, %c0_727, %c0_728] : memref<6x1x32xf32, #tpu.memory_space<vmem>>, vector<1x1x32xf32>
    %1294 = vector.shape_cast %1293 : vector<1x1x32xf32> to vector<1x32xf32>
    %1295 = vector.broadcast %1294 : vector<1x32xf32> to vector<8x32xf32>
    %1296 = arith.addf %1292, %1295 : vector<8x32xf32>
    %1297 = arith.addf %1264, %1296 : vector<8x32xf32>
    %c4_729 = arith.constant 4 : index
    %c0_730 = arith.constant 0 : index
    %c0_731 = arith.constant 0 : index
    %1298 = vector.load %arg19[%c4_729, %c0_730, %c0_731] : memref<6x1x32xf32, #tpu.memory_space<vmem>>, vector<1x1x32xf32>
    %1299 = vector.shape_cast %1298 : vector<1x1x32xf32> to vector<1x32xf32>
    %c4_732 = arith.constant 4 : index
    %c0_733 = arith.constant 0 : index
    %c0_734 = arith.constant 0 : index
    %1300 = vector.load %arg20[%c4_732, %c0_733, %c0_734] : memref<6x1x32xf32, #tpu.memory_space<vmem>>, vector<1x1x32xf32>
    %1301 = vector.shape_cast %1300 : vector<1x1x32xf32> to vector<1x32xf32>
    %cst_735 = arith.constant dense<0.000000e+00> : vector<8xf32>
    %1302 = vector.multi_reduction <add>, %1297, %cst_735 [1] : vector<8x32xf32> to vector<8xf32>
    %1303 = vector.shape_cast %1302 : vector<8xf32> to vector<8x1xf32>
    %cst_736 = arith.constant 3.200000e+01 : f32
    %1304 = vector.broadcast %cst_736 : f32 to vector<8x1xf32>
    %1305 = arith.divf %1303, %1304 : vector<8x1xf32>
    %1306 = vector.broadcast %1305 : vector<8x1xf32> to vector<8x32xf32>
    %1307 = arith.subf %1297, %1306 : vector<8x32xf32>
    %1308 = arith.mulf %1307, %1307 : vector<8x32xf32>
    %cst_737 = arith.constant dense<0.000000e+00> : vector<8xf32>
    %1309 = vector.multi_reduction <add>, %1308, %cst_737 [1] : vector<8x32xf32> to vector<8xf32>
    %1310 = vector.shape_cast %1309 : vector<8xf32> to vector<8x1xf32>
    %cst_738 = arith.constant 3.200000e+01 : f32
    %1311 = vector.broadcast %cst_738 : f32 to vector<8x1xf32>
    %1312 = arith.divf %1310, %1311 : vector<8x1xf32>
    %1313 = vector.broadcast %1305 : vector<8x1xf32> to vector<8x32xf32>
    %1314 = arith.subf %1297, %1313 : vector<8x32xf32>
    %cst_739 = arith.constant 9.99999974E-6 : f32
    %1315 = vector.broadcast %cst_739 : f32 to vector<8x1xf32>
    %1316 = arith.addf %1312, %1315 : vector<8x1xf32>
    %1317 = math.rsqrt %1316 : vector<8x1xf32>
    %1318 = vector.broadcast %1317 : vector<8x1xf32> to vector<8x32xf32>
    %1319 = arith.mulf %1314, %1318 : vector<8x32xf32>
    %1320 = vector.broadcast %1299 : vector<1x32xf32> to vector<8x32xf32>
    %1321 = arith.mulf %1319, %1320 : vector<8x32xf32>
    %1322 = vector.broadcast %1301 : vector<1x32xf32> to vector<8x32xf32>
    %1323 = arith.addf %1321, %1322 : vector<8x32xf32>
    %c4_740 = arith.constant 4 : index
    %c0_741 = arith.constant 0 : index
    %c0_742 = arith.constant 0 : index
    %1324 = vector.load %arg21[%c4_740, %c0_741, %c0_742] : memref<6x32x32xf32, #tpu.memory_space<vmem>>, vector<1x32x32xf32>
    %1325 = vector.shape_cast %1324 : vector<1x32x32xf32> to vector<32x32xf32>
    %cst_743 = arith.constant dense<0.000000e+00> : vector<8x32xf32>
    %1326 = tpu.matmul %1323, %1325, %cst_743 {dimension_numbers = #tpu.dot_dimension_numbers<[1], [0], [0], [1], [0, 0, 1, 1], [], []>} : vector<8x32xf32>, vector<32x32xf32>, vector<8x32xf32> -> vector<8x32xf32>
    %c4_744 = arith.constant 4 : index
    %c0_745 = arith.constant 0 : index
    %c0_746 = arith.constant 0 : index
    %1327 = vector.load %arg22[%c4_744, %c0_745, %c0_746] : memref<6x1x32xf32, #tpu.memory_space<vmem>>, vector<1x1x32xf32>
    %1328 = vector.shape_cast %1327 : vector<1x1x32xf32> to vector<1x32xf32>
    %1329 = vector.broadcast %1328 : vector<1x32xf32> to vector<8x32xf32>
    %1330 = arith.addf %1326, %1329 : vector<8x32xf32>
    %c4_747 = arith.constant 4 : index
    %c0_748 = arith.constant 0 : index
    %c0_749 = arith.constant 0 : index
    %1331 = vector.load %arg23[%c4_747, %c0_748, %c0_749] : memref<6x32x64xf32, #tpu.memory_space<vmem>>, vector<1x32x64xf32>
    %1332 = vector.shape_cast %1331 : vector<1x32x64xf32> to vector<32x64xf32>
    %cst_750 = arith.constant dense<0.000000e+00> : vector<8x64xf32>
    %1333 = tpu.matmul %603, %1332, %cst_750 {dimension_numbers = #tpu.dot_dimension_numbers<[1], [0], [0], [1], [0, 0, 1, 1], [], []>} : vector<8x32xf32>, vector<32x64xf32>, vector<8x64xf32> -> vector<8x64xf32>
    %c4_751 = arith.constant 4 : index
    %c0_752 = arith.constant 0 : index
    %c0_753 = arith.constant 0 : index
    %1334 = vector.load %arg24[%c4_751, %c0_752, %c0_753] : memref<6x1x64xf32, #tpu.memory_space<vmem>>, vector<1x1x64xf32>
    %1335 = vector.shape_cast %1334 : vector<1x1x64xf32> to vector<1x64xf32>
    %1336 = vector.broadcast %1335 : vector<1x64xf32> to vector<8x64xf32>
    %1337 = arith.addf %1333, %1336 : vector<8x64xf32>
    %1338 = vector.extract_strided_slice %1337 {offsets = [0, 0], sizes = [8, 32], strides = [1, 1]} : vector<8x64xf32> to vector<8x32xf32>
    %1339 = vector.extract_strided_slice %1337 {offsets = [0, 32], sizes = [8, 32], strides = [1, 1]} : vector<8x64xf32> to vector<8x32xf32>
    %cst_754 = arith.constant dense<0.000000e+00> : vector<8x8xf32>
    %1340 = tpu.matmul %1330, %1338, %cst_754 {dimension_numbers = #tpu.dot_dimension_numbers<[1], [1], [0], [0], [0, 0, 1, 0], [], []>} : vector<8x32xf32>, vector<8x32xf32>, vector<8x8xf32> -> vector<8x8xf32>
    %cst_755 = arith.constant 0.176776692 : f32
    %1341 = vector.broadcast %cst_755 : f32 to vector<8x8xf32>
    %1342 = arith.mulf %1340, %1341 : vector<8x8xf32>
    %cst_756 = arith.constant dense<0xFF800000> : vector<8xf32>
    %1343 = vector.multi_reduction <maximumf>, %1342, %cst_756 [1] : vector<8x8xf32> to vector<8xf32>
    %1344 = vector.shape_cast %1343 : vector<8xf32> to vector<8x1xf32>
    %1345 = vector.broadcast %1344 : vector<8x1xf32> to vector<8x8xf32>
    %1346 = arith.subf %1342, %1345 : vector<8x8xf32>
    %1347 = math.exp %1346 : vector<8x8xf32>
    %cst_757 = arith.constant dense<0.000000e+00> : vector<8xf32>
    %1348 = vector.multi_reduction <add>, %1347, %cst_757 [1] : vector<8x8xf32> to vector<8xf32>
    %1349 = vector.shape_cast %1348 : vector<8xf32> to vector<8x1xf32>
    %1350 = vector.broadcast %1349 : vector<8x1xf32> to vector<8x8xf32>
    %1351 = arith.divf %1347, %1350 : vector<8x8xf32>
    %cst_758 = arith.constant dense<0.000000e+00> : vector<8x32xf32>
    %1352 = tpu.matmul %1351, %1339, %cst_758 {dimension_numbers = #tpu.dot_dimension_numbers<[1], [0], [0], [1], [0, 0, 1, 1], [], []>} : vector<8x8xf32>, vector<8x32xf32>, vector<8x32xf32> -> vector<8x32xf32>
    %c4_759 = arith.constant 4 : index
    %c0_760 = arith.constant 0 : index
    %c0_761 = arith.constant 0 : index
    %1353 = vector.load %arg25[%c4_759, %c0_760, %c0_761] : memref<6x32x32xf32, #tpu.memory_space<vmem>>, vector<1x32x32xf32>
    %1354 = vector.shape_cast %1353 : vector<1x32x32xf32> to vector<32x32xf32>
    %cst_762 = arith.constant dense<0.000000e+00> : vector<8x32xf32>
    %1355 = tpu.matmul %1352, %1354, %cst_762 {dimension_numbers = #tpu.dot_dimension_numbers<[1], [0], [0], [1], [0, 0, 1, 1], [], []>} : vector<8x32xf32>, vector<32x32xf32>, vector<8x32xf32> -> vector<8x32xf32>
    %c4_763 = arith.constant 4 : index
    %c0_764 = arith.constant 0 : index
    %c0_765 = arith.constant 0 : index
    %1356 = vector.load %arg26[%c4_763, %c0_764, %c0_765] : memref<6x1x32xf32, #tpu.memory_space<vmem>>, vector<1x1x32xf32>
    %1357 = vector.shape_cast %1356 : vector<1x1x32xf32> to vector<1x32xf32>
    %1358 = vector.broadcast %1357 : vector<1x32xf32> to vector<8x32xf32>
    %1359 = arith.addf %1355, %1358 : vector<8x32xf32>
    %1360 = arith.addf %1323, %1359 : vector<8x32xf32>
    %c4_766 = arith.constant 4 : index
    %c0_767 = arith.constant 0 : index
    %c0_768 = arith.constant 0 : index
    %1361 = vector.load %arg27[%c4_766, %c0_767, %c0_768] : memref<6x1x32xf32, #tpu.memory_space<vmem>>, vector<1x1x32xf32>
    %1362 = vector.shape_cast %1361 : vector<1x1x32xf32> to vector<1x32xf32>
    %c4_769 = arith.constant 4 : index
    %c0_770 = arith.constant 0 : index
    %c0_771 = arith.constant 0 : index
    %1363 = vector.load %arg28[%c4_769, %c0_770, %c0_771] : memref<6x1x32xf32, #tpu.memory_space<vmem>>, vector<1x1x32xf32>
    %1364 = vector.shape_cast %1363 : vector<1x1x32xf32> to vector<1x32xf32>
    %cst_772 = arith.constant dense<0.000000e+00> : vector<8xf32>
    %1365 = vector.multi_reduction <add>, %1360, %cst_772 [1] : vector<8x32xf32> to vector<8xf32>
    %1366 = vector.shape_cast %1365 : vector<8xf32> to vector<8x1xf32>
    %cst_773 = arith.constant 3.200000e+01 : f32
    %1367 = vector.broadcast %cst_773 : f32 to vector<8x1xf32>
    %1368 = arith.divf %1366, %1367 : vector<8x1xf32>
    %1369 = vector.broadcast %1368 : vector<8x1xf32> to vector<8x32xf32>
    %1370 = arith.subf %1360, %1369 : vector<8x32xf32>
    %1371 = arith.mulf %1370, %1370 : vector<8x32xf32>
    %cst_774 = arith.constant dense<0.000000e+00> : vector<8xf32>
    %1372 = vector.multi_reduction <add>, %1371, %cst_774 [1] : vector<8x32xf32> to vector<8xf32>
    %1373 = vector.shape_cast %1372 : vector<8xf32> to vector<8x1xf32>
    %cst_775 = arith.constant 3.200000e+01 : f32
    %1374 = vector.broadcast %cst_775 : f32 to vector<8x1xf32>
    %1375 = arith.divf %1373, %1374 : vector<8x1xf32>
    %1376 = vector.broadcast %1368 : vector<8x1xf32> to vector<8x32xf32>
    %1377 = arith.subf %1360, %1376 : vector<8x32xf32>
    %cst_776 = arith.constant 9.99999974E-6 : f32
    %1378 = vector.broadcast %cst_776 : f32 to vector<8x1xf32>
    %1379 = arith.addf %1375, %1378 : vector<8x1xf32>
    %1380 = math.rsqrt %1379 : vector<8x1xf32>
    %1381 = vector.broadcast %1380 : vector<8x1xf32> to vector<8x32xf32>
    %1382 = arith.mulf %1377, %1381 : vector<8x32xf32>
    %1383 = vector.broadcast %1362 : vector<1x32xf32> to vector<8x32xf32>
    %1384 = arith.mulf %1382, %1383 : vector<8x32xf32>
    %1385 = vector.broadcast %1364 : vector<1x32xf32> to vector<8x32xf32>
    %1386 = arith.addf %1384, %1385 : vector<8x32xf32>
    %c4_777 = arith.constant 4 : index
    %c0_778 = arith.constant 0 : index
    %c0_779 = arith.constant 0 : index
    %1387 = vector.load %arg29[%c4_777, %c0_778, %c0_779] : memref<6x32x64xf32, #tpu.memory_space<vmem>>, vector<1x32x64xf32>
    %1388 = vector.shape_cast %1387 : vector<1x32x64xf32> to vector<32x64xf32>
    %cst_780 = arith.constant dense<0.000000e+00> : vector<8x64xf32>
    %1389 = tpu.matmul %1386, %1388, %cst_780 {dimension_numbers = #tpu.dot_dimension_numbers<[1], [0], [0], [1], [0, 0, 1, 1], [], []>} : vector<8x32xf32>, vector<32x64xf32>, vector<8x64xf32> -> vector<8x64xf32>
    %c4_781 = arith.constant 4 : index
    %c0_782 = arith.constant 0 : index
    %c0_783 = arith.constant 0 : index
    %1390 = vector.load %arg30[%c4_781, %c0_782, %c0_783] : memref<6x1x64xf32, #tpu.memory_space<vmem>>, vector<1x1x64xf32>
    %1391 = vector.shape_cast %1390 : vector<1x1x64xf32> to vector<1x64xf32>
    %1392 = vector.broadcast %1391 : vector<1x64xf32> to vector<8x64xf32>
    %1393 = arith.addf %1389, %1392 : vector<8x64xf32>
    %cst_784 = arith.constant 0.000000e+00 : f32
    %1394 = vector.broadcast %cst_784 : f32 to vector<8x64xf32>
    %1395 = arith.maximumf %1393, %1394 : vector<8x64xf32>
    %c4_785 = arith.constant 4 : index
    %c0_786 = arith.constant 0 : index
    %c0_787 = arith.constant 0 : index
    %1396 = vector.load %arg31[%c4_785, %c0_786, %c0_787] : memref<6x64x32xf32, #tpu.memory_space<vmem>>, vector<1x64x32xf32>
    %1397 = vector.shape_cast %1396 : vector<1x64x32xf32> to vector<64x32xf32>
    %cst_788 = arith.constant dense<0.000000e+00> : vector<8x32xf32>
    %1398 = tpu.matmul %1395, %1397, %cst_788 {dimension_numbers = #tpu.dot_dimension_numbers<[1], [0], [0], [1], [0, 0, 1, 1], [], []>} : vector<8x64xf32>, vector<64x32xf32>, vector<8x32xf32> -> vector<8x32xf32>
    %c4_789 = arith.constant 4 : index
    %c0_790 = arith.constant 0 : index
    %c0_791 = arith.constant 0 : index
    %1399 = vector.load %arg32[%c4_789, %c0_790, %c0_791] : memref<6x1x32xf32, #tpu.memory_space<vmem>>, vector<1x1x32xf32>
    %1400 = vector.shape_cast %1399 : vector<1x1x32xf32> to vector<1x32xf32>
    %1401 = vector.broadcast %1400 : vector<1x32xf32> to vector<8x32xf32>
    %1402 = arith.addf %1398, %1401 : vector<8x32xf32>
    %1403 = arith.addf %1386, %1402 : vector<8x32xf32>
    %c4_792 = arith.constant 4 : index
    %c0_793 = arith.constant 0 : index
    %c0_794 = arith.constant 0 : index
    %1404 = vector.load %arg33[%c4_792, %c0_793, %c0_794] : memref<6x1x32xf32, #tpu.memory_space<vmem>>, vector<1x1x32xf32>
    %1405 = vector.shape_cast %1404 : vector<1x1x32xf32> to vector<1x32xf32>
    %c4_795 = arith.constant 4 : index
    %c0_796 = arith.constant 0 : index
    %c0_797 = arith.constant 0 : index
    %1406 = vector.load %arg34[%c4_795, %c0_796, %c0_797] : memref<6x1x32xf32, #tpu.memory_space<vmem>>, vector<1x1x32xf32>
    %1407 = vector.shape_cast %1406 : vector<1x1x32xf32> to vector<1x32xf32>
    %cst_798 = arith.constant dense<0.000000e+00> : vector<8xf32>
    %1408 = vector.multi_reduction <add>, %1403, %cst_798 [1] : vector<8x32xf32> to vector<8xf32>
    %1409 = vector.shape_cast %1408 : vector<8xf32> to vector<8x1xf32>
    %cst_799 = arith.constant 3.200000e+01 : f32
    %1410 = vector.broadcast %cst_799 : f32 to vector<8x1xf32>
    %1411 = arith.divf %1409, %1410 : vector<8x1xf32>
    %1412 = vector.broadcast %1411 : vector<8x1xf32> to vector<8x32xf32>
    %1413 = arith.subf %1403, %1412 : vector<8x32xf32>
    %1414 = arith.mulf %1413, %1413 : vector<8x32xf32>
    %cst_800 = arith.constant dense<0.000000e+00> : vector<8xf32>
    %1415 = vector.multi_reduction <add>, %1414, %cst_800 [1] : vector<8x32xf32> to vector<8xf32>
    %1416 = vector.shape_cast %1415 : vector<8xf32> to vector<8x1xf32>
    %cst_801 = arith.constant 3.200000e+01 : f32
    %1417 = vector.broadcast %cst_801 : f32 to vector<8x1xf32>
    %1418 = arith.divf %1416, %1417 : vector<8x1xf32>
    %1419 = vector.broadcast %1411 : vector<8x1xf32> to vector<8x32xf32>
    %1420 = arith.subf %1403, %1419 : vector<8x32xf32>
    %cst_802 = arith.constant 9.99999974E-6 : f32
    %1421 = vector.broadcast %cst_802 : f32 to vector<8x1xf32>
    %1422 = arith.addf %1418, %1421 : vector<8x1xf32>
    %1423 = math.rsqrt %1422 : vector<8x1xf32>
    %1424 = vector.broadcast %1423 : vector<8x1xf32> to vector<8x32xf32>
    %1425 = arith.mulf %1420, %1424 : vector<8x32xf32>
    %1426 = vector.broadcast %1405 : vector<1x32xf32> to vector<8x32xf32>
    %1427 = arith.mulf %1425, %1426 : vector<8x32xf32>
    %1428 = vector.broadcast %1407 : vector<1x32xf32> to vector<8x32xf32>
    %1429 = arith.addf %1427, %1428 : vector<8x32xf32>
    %c5_803 = arith.constant 5 : index
    %c0_804 = arith.constant 0 : index
    %c0_805 = arith.constant 0 : index
    %1430 = vector.load %arg15[%c5_803, %c0_804, %c0_805] : memref<6x32x96xf32, #tpu.memory_space<vmem>>, vector<1x32x96xf32>
    %1431 = vector.shape_cast %1430 : vector<1x32x96xf32> to vector<32x96xf32>
    %cst_806 = arith.constant dense<0.000000e+00> : vector<8x96xf32>
    %1432 = tpu.matmul %1429, %1431, %cst_806 {dimension_numbers = #tpu.dot_dimension_numbers<[1], [0], [0], [1], [0, 0, 1, 1], [], []>} : vector<8x32xf32>, vector<32x96xf32>, vector<8x96xf32> -> vector<8x96xf32>
    %c5_807 = arith.constant 5 : index
    %c0_808 = arith.constant 0 : index
    %c0_809 = arith.constant 0 : index
    %1433 = vector.load %arg16[%c5_807, %c0_808, %c0_809] : memref<6x1x96xf32, #tpu.memory_space<vmem>>, vector<1x1x96xf32>
    %1434 = vector.shape_cast %1433 : vector<1x1x96xf32> to vector<1x96xf32>
    %1435 = vector.broadcast %1434 : vector<1x96xf32> to vector<8x96xf32>
    %1436 = arith.addf %1432, %1435 : vector<8x96xf32>
    %1437 = vector.extract_strided_slice %1436 {offsets = [0, 0], sizes = [8, 32], strides = [1, 1]} : vector<8x96xf32> to vector<8x32xf32>
    %1438 = vector.extract_strided_slice %1436 {offsets = [0, 32], sizes = [8, 32], strides = [1, 1]} : vector<8x96xf32> to vector<8x32xf32>
    %1439 = vector.extract_strided_slice %1436 {offsets = [0, 64], sizes = [8, 32], strides = [1, 1]} : vector<8x96xf32> to vector<8x32xf32>
    %cst_810 = arith.constant dense<0.000000e+00> : vector<8x8xf32>
    %1440 = tpu.matmul %1437, %1438, %cst_810 {dimension_numbers = #tpu.dot_dimension_numbers<[1], [1], [0], [0], [0, 0, 1, 0], [], []>} : vector<8x32xf32>, vector<8x32xf32>, vector<8x8xf32> -> vector<8x8xf32>
    %cst_811 = arith.constant 0.176776692 : f32
    %1441 = vector.broadcast %cst_811 : f32 to vector<8x8xf32>
    %1442 = arith.mulf %1440, %1441 : vector<8x8xf32>
    %cst_812 = arith.constant -1.000000e+09 : f32
    %1443 = vector.broadcast %cst_812 : f32 to vector<8x8xf32>
    %1444 = arith.select %2, %1442, %1443 : vector<8x8xi1>, vector<8x8xf32>
    %cst_813 = arith.constant dense<0xFF800000> : vector<8xf32>
    %1445 = vector.multi_reduction <maximumf>, %1444, %cst_813 [1] : vector<8x8xf32> to vector<8xf32>
    %1446 = vector.shape_cast %1445 : vector<8xf32> to vector<8x1xf32>
    %1447 = vector.broadcast %1446 : vector<8x1xf32> to vector<8x8xf32>
    %1448 = arith.subf %1444, %1447 : vector<8x8xf32>
    %1449 = math.exp %1448 : vector<8x8xf32>
    %cst_814 = arith.constant dense<0.000000e+00> : vector<8xf32>
    %1450 = vector.multi_reduction <add>, %1449, %cst_814 [1] : vector<8x8xf32> to vector<8xf32>
    %1451 = vector.shape_cast %1450 : vector<8xf32> to vector<8x1xf32>
    %1452 = vector.broadcast %1451 : vector<8x1xf32> to vector<8x8xf32>
    %1453 = arith.divf %1449, %1452 : vector<8x8xf32>
    %cst_815 = arith.constant dense<0.000000e+00> : vector<8x32xf32>
    %1454 = tpu.matmul %1453, %1439, %cst_815 {dimension_numbers = #tpu.dot_dimension_numbers<[1], [0], [0], [1], [0, 0, 1, 1], [], []>} : vector<8x8xf32>, vector<8x32xf32>, vector<8x32xf32> -> vector<8x32xf32>
    %c5_816 = arith.constant 5 : index
    %c0_817 = arith.constant 0 : index
    %c0_818 = arith.constant 0 : index
    %1455 = vector.load %arg17[%c5_816, %c0_817, %c0_818] : memref<6x32x32xf32, #tpu.memory_space<vmem>>, vector<1x32x32xf32>
    %1456 = vector.shape_cast %1455 : vector<1x32x32xf32> to vector<32x32xf32>
    %cst_819 = arith.constant dense<0.000000e+00> : vector<8x32xf32>
    %1457 = tpu.matmul %1454, %1456, %cst_819 {dimension_numbers = #tpu.dot_dimension_numbers<[1], [0], [0], [1], [0, 0, 1, 1], [], []>} : vector<8x32xf32>, vector<32x32xf32>, vector<8x32xf32> -> vector<8x32xf32>
    %c5_820 = arith.constant 5 : index
    %c0_821 = arith.constant 0 : index
    %c0_822 = arith.constant 0 : index
    %1458 = vector.load %arg18[%c5_820, %c0_821, %c0_822] : memref<6x1x32xf32, #tpu.memory_space<vmem>>, vector<1x1x32xf32>
    %1459 = vector.shape_cast %1458 : vector<1x1x32xf32> to vector<1x32xf32>
    %1460 = vector.broadcast %1459 : vector<1x32xf32> to vector<8x32xf32>
    %1461 = arith.addf %1457, %1460 : vector<8x32xf32>
    %1462 = arith.addf %1429, %1461 : vector<8x32xf32>
    %c5_823 = arith.constant 5 : index
    %c0_824 = arith.constant 0 : index
    %c0_825 = arith.constant 0 : index
    %1463 = vector.load %arg19[%c5_823, %c0_824, %c0_825] : memref<6x1x32xf32, #tpu.memory_space<vmem>>, vector<1x1x32xf32>
    %1464 = vector.shape_cast %1463 : vector<1x1x32xf32> to vector<1x32xf32>
    %c5_826 = arith.constant 5 : index
    %c0_827 = arith.constant 0 : index
    %c0_828 = arith.constant 0 : index
    %1465 = vector.load %arg20[%c5_826, %c0_827, %c0_828] : memref<6x1x32xf32, #tpu.memory_space<vmem>>, vector<1x1x32xf32>
    %1466 = vector.shape_cast %1465 : vector<1x1x32xf32> to vector<1x32xf32>
    %cst_829 = arith.constant dense<0.000000e+00> : vector<8xf32>
    %1467 = vector.multi_reduction <add>, %1462, %cst_829 [1] : vector<8x32xf32> to vector<8xf32>
    %1468 = vector.shape_cast %1467 : vector<8xf32> to vector<8x1xf32>
    %cst_830 = arith.constant 3.200000e+01 : f32
    %1469 = vector.broadcast %cst_830 : f32 to vector<8x1xf32>
    %1470 = arith.divf %1468, %1469 : vector<8x1xf32>
    %1471 = vector.broadcast %1470 : vector<8x1xf32> to vector<8x32xf32>
    %1472 = arith.subf %1462, %1471 : vector<8x32xf32>
    %1473 = arith.mulf %1472, %1472 : vector<8x32xf32>
    %cst_831 = arith.constant dense<0.000000e+00> : vector<8xf32>
    %1474 = vector.multi_reduction <add>, %1473, %cst_831 [1] : vector<8x32xf32> to vector<8xf32>
    %1475 = vector.shape_cast %1474 : vector<8xf32> to vector<8x1xf32>
    %cst_832 = arith.constant 3.200000e+01 : f32
    %1476 = vector.broadcast %cst_832 : f32 to vector<8x1xf32>
    %1477 = arith.divf %1475, %1476 : vector<8x1xf32>
    %1478 = vector.broadcast %1470 : vector<8x1xf32> to vector<8x32xf32>
    %1479 = arith.subf %1462, %1478 : vector<8x32xf32>
    %cst_833 = arith.constant 9.99999974E-6 : f32
    %1480 = vector.broadcast %cst_833 : f32 to vector<8x1xf32>
    %1481 = arith.addf %1477, %1480 : vector<8x1xf32>
    %1482 = math.rsqrt %1481 : vector<8x1xf32>
    %1483 = vector.broadcast %1482 : vector<8x1xf32> to vector<8x32xf32>
    %1484 = arith.mulf %1479, %1483 : vector<8x32xf32>
    %1485 = vector.broadcast %1464 : vector<1x32xf32> to vector<8x32xf32>
    %1486 = arith.mulf %1484, %1485 : vector<8x32xf32>
    %1487 = vector.broadcast %1466 : vector<1x32xf32> to vector<8x32xf32>
    %1488 = arith.addf %1486, %1487 : vector<8x32xf32>
    %c5_834 = arith.constant 5 : index
    %c0_835 = arith.constant 0 : index
    %c0_836 = arith.constant 0 : index
    %1489 = vector.load %arg21[%c5_834, %c0_835, %c0_836] : memref<6x32x32xf32, #tpu.memory_space<vmem>>, vector<1x32x32xf32>
    %1490 = vector.shape_cast %1489 : vector<1x32x32xf32> to vector<32x32xf32>
    %cst_837 = arith.constant dense<0.000000e+00> : vector<8x32xf32>
    %1491 = tpu.matmul %1488, %1490, %cst_837 {dimension_numbers = #tpu.dot_dimension_numbers<[1], [0], [0], [1], [0, 0, 1, 1], [], []>} : vector<8x32xf32>, vector<32x32xf32>, vector<8x32xf32> -> vector<8x32xf32>
    %c5_838 = arith.constant 5 : index
    %c0_839 = arith.constant 0 : index
    %c0_840 = arith.constant 0 : index
    %1492 = vector.load %arg22[%c5_838, %c0_839, %c0_840] : memref<6x1x32xf32, #tpu.memory_space<vmem>>, vector<1x1x32xf32>
    %1493 = vector.shape_cast %1492 : vector<1x1x32xf32> to vector<1x32xf32>
    %1494 = vector.broadcast %1493 : vector<1x32xf32> to vector<8x32xf32>
    %1495 = arith.addf %1491, %1494 : vector<8x32xf32>
    %c5_841 = arith.constant 5 : index
    %c0_842 = arith.constant 0 : index
    %c0_843 = arith.constant 0 : index
    %1496 = vector.load %arg23[%c5_841, %c0_842, %c0_843] : memref<6x32x64xf32, #tpu.memory_space<vmem>>, vector<1x32x64xf32>
    %1497 = vector.shape_cast %1496 : vector<1x32x64xf32> to vector<32x64xf32>
    %cst_844 = arith.constant dense<0.000000e+00> : vector<8x64xf32>
    %1498 = tpu.matmul %603, %1497, %cst_844 {dimension_numbers = #tpu.dot_dimension_numbers<[1], [0], [0], [1], [0, 0, 1, 1], [], []>} : vector<8x32xf32>, vector<32x64xf32>, vector<8x64xf32> -> vector<8x64xf32>
    %c5_845 = arith.constant 5 : index
    %c0_846 = arith.constant 0 : index
    %c0_847 = arith.constant 0 : index
    %1499 = vector.load %arg24[%c5_845, %c0_846, %c0_847] : memref<6x1x64xf32, #tpu.memory_space<vmem>>, vector<1x1x64xf32>
    %1500 = vector.shape_cast %1499 : vector<1x1x64xf32> to vector<1x64xf32>
    %1501 = vector.broadcast %1500 : vector<1x64xf32> to vector<8x64xf32>
    %1502 = arith.addf %1498, %1501 : vector<8x64xf32>
    %1503 = vector.extract_strided_slice %1502 {offsets = [0, 0], sizes = [8, 32], strides = [1, 1]} : vector<8x64xf32> to vector<8x32xf32>
    %1504 = vector.extract_strided_slice %1502 {offsets = [0, 32], sizes = [8, 32], strides = [1, 1]} : vector<8x64xf32> to vector<8x32xf32>
    %cst_848 = arith.constant dense<0.000000e+00> : vector<8x8xf32>
    %1505 = tpu.matmul %1495, %1503, %cst_848 {dimension_numbers = #tpu.dot_dimension_numbers<[1], [1], [0], [0], [0, 0, 1, 0], [], []>} : vector<8x32xf32>, vector<8x32xf32>, vector<8x8xf32> -> vector<8x8xf32>
    %cst_849 = arith.constant 0.176776692 : f32
    %1506 = vector.broadcast %cst_849 : f32 to vector<8x8xf32>
    %1507 = arith.mulf %1505, %1506 : vector<8x8xf32>
    %cst_850 = arith.constant dense<0xFF800000> : vector<8xf32>
    %1508 = vector.multi_reduction <maximumf>, %1507, %cst_850 [1] : vector<8x8xf32> to vector<8xf32>
    %1509 = vector.shape_cast %1508 : vector<8xf32> to vector<8x1xf32>
    %1510 = vector.broadcast %1509 : vector<8x1xf32> to vector<8x8xf32>
    %1511 = arith.subf %1507, %1510 : vector<8x8xf32>
    %1512 = math.exp %1511 : vector<8x8xf32>
    %cst_851 = arith.constant dense<0.000000e+00> : vector<8xf32>
    %1513 = vector.multi_reduction <add>, %1512, %cst_851 [1] : vector<8x8xf32> to vector<8xf32>
    %1514 = vector.shape_cast %1513 : vector<8xf32> to vector<8x1xf32>
    %1515 = vector.broadcast %1514 : vector<8x1xf32> to vector<8x8xf32>
    %1516 = arith.divf %1512, %1515 : vector<8x8xf32>
    %cst_852 = arith.constant dense<0.000000e+00> : vector<8x32xf32>
    %1517 = tpu.matmul %1516, %1504, %cst_852 {dimension_numbers = #tpu.dot_dimension_numbers<[1], [0], [0], [1], [0, 0, 1, 1], [], []>} : vector<8x8xf32>, vector<8x32xf32>, vector<8x32xf32> -> vector<8x32xf32>
    %c5_853 = arith.constant 5 : index
    %c0_854 = arith.constant 0 : index
    %c0_855 = arith.constant 0 : index
    %1518 = vector.load %arg25[%c5_853, %c0_854, %c0_855] : memref<6x32x32xf32, #tpu.memory_space<vmem>>, vector<1x32x32xf32>
    %1519 = vector.shape_cast %1518 : vector<1x32x32xf32> to vector<32x32xf32>
    %cst_856 = arith.constant dense<0.000000e+00> : vector<8x32xf32>
    %1520 = tpu.matmul %1517, %1519, %cst_856 {dimension_numbers = #tpu.dot_dimension_numbers<[1], [0], [0], [1], [0, 0, 1, 1], [], []>} : vector<8x32xf32>, vector<32x32xf32>, vector<8x32xf32> -> vector<8x32xf32>
    %c5_857 = arith.constant 5 : index
    %c0_858 = arith.constant 0 : index
    %c0_859 = arith.constant 0 : index
    %1521 = vector.load %arg26[%c5_857, %c0_858, %c0_859] : memref<6x1x32xf32, #tpu.memory_space<vmem>>, vector<1x1x32xf32>
    %1522 = vector.shape_cast %1521 : vector<1x1x32xf32> to vector<1x32xf32>
    %1523 = vector.broadcast %1522 : vector<1x32xf32> to vector<8x32xf32>
    %1524 = arith.addf %1520, %1523 : vector<8x32xf32>
    %1525 = arith.addf %1488, %1524 : vector<8x32xf32>
    %c5_860 = arith.constant 5 : index
    %c0_861 = arith.constant 0 : index
    %c0_862 = arith.constant 0 : index
    %1526 = vector.load %arg27[%c5_860, %c0_861, %c0_862] : memref<6x1x32xf32, #tpu.memory_space<vmem>>, vector<1x1x32xf32>
    %1527 = vector.shape_cast %1526 : vector<1x1x32xf32> to vector<1x32xf32>
    %c5_863 = arith.constant 5 : index
    %c0_864 = arith.constant 0 : index
    %c0_865 = arith.constant 0 : index
    %1528 = vector.load %arg28[%c5_863, %c0_864, %c0_865] : memref<6x1x32xf32, #tpu.memory_space<vmem>>, vector<1x1x32xf32>
    %1529 = vector.shape_cast %1528 : vector<1x1x32xf32> to vector<1x32xf32>
    %cst_866 = arith.constant dense<0.000000e+00> : vector<8xf32>
    %1530 = vector.multi_reduction <add>, %1525, %cst_866 [1] : vector<8x32xf32> to vector<8xf32>
    %1531 = vector.shape_cast %1530 : vector<8xf32> to vector<8x1xf32>
    %cst_867 = arith.constant 3.200000e+01 : f32
    %1532 = vector.broadcast %cst_867 : f32 to vector<8x1xf32>
    %1533 = arith.divf %1531, %1532 : vector<8x1xf32>
    %1534 = vector.broadcast %1533 : vector<8x1xf32> to vector<8x32xf32>
    %1535 = arith.subf %1525, %1534 : vector<8x32xf32>
    %1536 = arith.mulf %1535, %1535 : vector<8x32xf32>
    %cst_868 = arith.constant dense<0.000000e+00> : vector<8xf32>
    %1537 = vector.multi_reduction <add>, %1536, %cst_868 [1] : vector<8x32xf32> to vector<8xf32>
    %1538 = vector.shape_cast %1537 : vector<8xf32> to vector<8x1xf32>
    %cst_869 = arith.constant 3.200000e+01 : f32
    %1539 = vector.broadcast %cst_869 : f32 to vector<8x1xf32>
    %1540 = arith.divf %1538, %1539 : vector<8x1xf32>
    %1541 = vector.broadcast %1533 : vector<8x1xf32> to vector<8x32xf32>
    %1542 = arith.subf %1525, %1541 : vector<8x32xf32>
    %cst_870 = arith.constant 9.99999974E-6 : f32
    %1543 = vector.broadcast %cst_870 : f32 to vector<8x1xf32>
    %1544 = arith.addf %1540, %1543 : vector<8x1xf32>
    %1545 = math.rsqrt %1544 : vector<8x1xf32>
    %1546 = vector.broadcast %1545 : vector<8x1xf32> to vector<8x32xf32>
    %1547 = arith.mulf %1542, %1546 : vector<8x32xf32>
    %1548 = vector.broadcast %1527 : vector<1x32xf32> to vector<8x32xf32>
    %1549 = arith.mulf %1547, %1548 : vector<8x32xf32>
    %1550 = vector.broadcast %1529 : vector<1x32xf32> to vector<8x32xf32>
    %1551 = arith.addf %1549, %1550 : vector<8x32xf32>
    %c5_871 = arith.constant 5 : index
    %c0_872 = arith.constant 0 : index
    %c0_873 = arith.constant 0 : index
    %1552 = vector.load %arg29[%c5_871, %c0_872, %c0_873] : memref<6x32x64xf32, #tpu.memory_space<vmem>>, vector<1x32x64xf32>
    %1553 = vector.shape_cast %1552 : vector<1x32x64xf32> to vector<32x64xf32>
    %cst_874 = arith.constant dense<0.000000e+00> : vector<8x64xf32>
    %1554 = tpu.matmul %1551, %1553, %cst_874 {dimension_numbers = #tpu.dot_dimension_numbers<[1], [0], [0], [1], [0, 0, 1, 1], [], []>} : vector<8x32xf32>, vector<32x64xf32>, vector<8x64xf32> -> vector<8x64xf32>
    %c5_875 = arith.constant 5 : index
    %c0_876 = arith.constant 0 : index
    %c0_877 = arith.constant 0 : index
    %1555 = vector.load %arg30[%c5_875, %c0_876, %c0_877] : memref<6x1x64xf32, #tpu.memory_space<vmem>>, vector<1x1x64xf32>
    %1556 = vector.shape_cast %1555 : vector<1x1x64xf32> to vector<1x64xf32>
    %1557 = vector.broadcast %1556 : vector<1x64xf32> to vector<8x64xf32>
    %1558 = arith.addf %1554, %1557 : vector<8x64xf32>
    %cst_878 = arith.constant 0.000000e+00 : f32
    %1559 = vector.broadcast %cst_878 : f32 to vector<8x64xf32>
    %1560 = arith.maximumf %1558, %1559 : vector<8x64xf32>
    %c5_879 = arith.constant 5 : index
    %c0_880 = arith.constant 0 : index
    %c0_881 = arith.constant 0 : index
    %1561 = vector.load %arg31[%c5_879, %c0_880, %c0_881] : memref<6x64x32xf32, #tpu.memory_space<vmem>>, vector<1x64x32xf32>
    %1562 = vector.shape_cast %1561 : vector<1x64x32xf32> to vector<64x32xf32>
    %cst_882 = arith.constant dense<0.000000e+00> : vector<8x32xf32>
    %1563 = tpu.matmul %1560, %1562, %cst_882 {dimension_numbers = #tpu.dot_dimension_numbers<[1], [0], [0], [1], [0, 0, 1, 1], [], []>} : vector<8x64xf32>, vector<64x32xf32>, vector<8x32xf32> -> vector<8x32xf32>
    %c5_883 = arith.constant 5 : index
    %c0_884 = arith.constant 0 : index
    %c0_885 = arith.constant 0 : index
    %1564 = vector.load %arg32[%c5_883, %c0_884, %c0_885] : memref<6x1x32xf32, #tpu.memory_space<vmem>>, vector<1x1x32xf32>
    %1565 = vector.shape_cast %1564 : vector<1x1x32xf32> to vector<1x32xf32>
    %1566 = vector.broadcast %1565 : vector<1x32xf32> to vector<8x32xf32>
    %1567 = arith.addf %1563, %1566 : vector<8x32xf32>
    %1568 = arith.addf %1551, %1567 : vector<8x32xf32>
    %c5_886 = arith.constant 5 : index
    %c0_887 = arith.constant 0 : index
    %c0_888 = arith.constant 0 : index
    %1569 = vector.load %arg33[%c5_886, %c0_887, %c0_888] : memref<6x1x32xf32, #tpu.memory_space<vmem>>, vector<1x1x32xf32>
    %1570 = vector.shape_cast %1569 : vector<1x1x32xf32> to vector<1x32xf32>
    %c5_889 = arith.constant 5 : index
    %c0_890 = arith.constant 0 : index
    %c0_891 = arith.constant 0 : index
    %1571 = vector.load %arg34[%c5_889, %c0_890, %c0_891] : memref<6x1x32xf32, #tpu.memory_space<vmem>>, vector<1x1x32xf32>
    %1572 = vector.shape_cast %1571 : vector<1x1x32xf32> to vector<1x32xf32>
    %cst_892 = arith.constant dense<0.000000e+00> : vector<8xf32>
    %1573 = vector.multi_reduction <add>, %1568, %cst_892 [1] : vector<8x32xf32> to vector<8xf32>
    %1574 = vector.shape_cast %1573 : vector<8xf32> to vector<8x1xf32>
    %cst_893 = arith.constant 3.200000e+01 : f32
    %1575 = vector.broadcast %cst_893 : f32 to vector<8x1xf32>
    %1576 = arith.divf %1574, %1575 : vector<8x1xf32>
    %1577 = vector.broadcast %1576 : vector<8x1xf32> to vector<8x32xf32>
    %1578 = arith.subf %1568, %1577 : vector<8x32xf32>
    %1579 = arith.mulf %1578, %1578 : vector<8x32xf32>
    %cst_894 = arith.constant dense<0.000000e+00> : vector<8xf32>
    %1580 = vector.multi_reduction <add>, %1579, %cst_894 [1] : vector<8x32xf32> to vector<8xf32>
    %1581 = vector.shape_cast %1580 : vector<8xf32> to vector<8x1xf32>
    %cst_895 = arith.constant 3.200000e+01 : f32
    %1582 = vector.broadcast %cst_895 : f32 to vector<8x1xf32>
    %1583 = arith.divf %1581, %1582 : vector<8x1xf32>
    %1584 = vector.broadcast %1576 : vector<8x1xf32> to vector<8x32xf32>
    %1585 = arith.subf %1568, %1584 : vector<8x32xf32>
    %cst_896 = arith.constant 9.99999974E-6 : f32
    %1586 = vector.broadcast %cst_896 : f32 to vector<8x1xf32>
    %1587 = arith.addf %1583, %1586 : vector<8x1xf32>
    %1588 = math.rsqrt %1587 : vector<8x1xf32>
    %1589 = vector.broadcast %1588 : vector<8x1xf32> to vector<8x32xf32>
    %1590 = arith.mulf %1585, %1589 : vector<8x32xf32>
    %1591 = vector.broadcast %1570 : vector<1x32xf32> to vector<8x32xf32>
    %1592 = arith.mulf %1590, %1591 : vector<8x32xf32>
    %1593 = vector.broadcast %1572 : vector<1x32xf32> to vector<8x32xf32>
    %1594 = arith.addf %1592, %1593 : vector<8x32xf32>
    %c0_897 = arith.constant 0 : index
    %c0_898 = arith.constant 0 : index
    %1595 = vector.load %arg35[%c0_897, %c0_898] : memref<32x128xf32, #tpu.memory_space<vmem>>, vector<32x128xf32>
    %cst_899 = arith.constant dense<0.000000e+00> : vector<8x128xf32>
    %1596 = tpu.matmul %1594, %1595, %cst_899 {dimension_numbers = #tpu.dot_dimension_numbers<[1], [0], [0], [1], [0, 0, 1, 1], [], []>} : vector<8x32xf32>, vector<32x128xf32>, vector<8x128xf32> -> vector<8x128xf32>
    %c0_900 = arith.constant 0 : index
    %c0_901 = arith.constant 0 : index
    %1597 = vector.load %arg36[%c0_900, %c0_901] : memref<1x128xf32, #tpu.memory_space<vmem>>, vector<1x128xf32>
    %1598 = vector.broadcast %1597 : vector<1x128xf32> to vector<8x128xf32>
    %1599 = arith.addf %1596, %1598 : vector<8x128xf32>
    %cst_902 = arith.constant dense<0xFF800000> : vector<8xf32>
    %1600 = vector.multi_reduction <maximumf>, %1599, %cst_902 [1] : vector<8x128xf32> to vector<8xf32>
    %1601 = vector.shape_cast %1600 : vector<8xf32> to vector<8x1xf32>
    %1602 = vector.broadcast %1601 : vector<8x1xf32> to vector<8x128xf32>
    %1603 = arith.subf %1599, %1602 : vector<8x128xf32>
    %1604 = math.exp %1603 : vector<8x128xf32>
    %cst_903 = arith.constant dense<0.000000e+00> : vector<8xf32>
    %1605 = vector.multi_reduction <add>, %1604, %cst_903 [1] : vector<8x128xf32> to vector<8xf32>
    %1606 = vector.shape_cast %1605 : vector<8xf32> to vector<8x1xf32>
    %1607 = vector.broadcast %1606 : vector<8x1xf32> to vector<8x128xf32>
    %1608 = arith.divf %1604, %1607 : vector<8x128xf32>
    %c0_904 = arith.constant 0 : index
    %c0_905 = arith.constant 0 : index
    %1609 = vector.load %arg37[%c0_904, %c0_905] : memref<8x128xf32, #tpu.memory_space<vmem>>, vector<8x128xf32>
    tpu.vector_store %arg37[%c0_904, %c0_905], %1608 {strides = array<i32>} : memref<8x128xf32, #tpu.memory_space<vmem>>, vector<8x128xf32>,
    return
  }
  func.func @transform_0(%arg0: i32) -> (i32, i32) {
    %c0_i32 = arith.constant 0 : i32
    %c0_i32_0 = arith.constant 0 : i32
    return %arg0, %c0_i32 : i32, i32
  }
  func.func @transform_1(%arg0: i32) -> (i32, i32) {
    %c0_i32 = arith.constant 0 : i32
    %c0_i32_0 = arith.constant 0 : i32
    return %arg0, %c0_i32 : i32, i32
  }
  func.func @transform_2(%arg0: i32) -> (i32, i32, i32) {
    %c0_i32 = arith.constant 0 : i32
    %c0_i32_0 = arith.constant 0 : i32
    %c0_i32_1 = arith.constant 0 : i32
    %c0_i32_2 = arith.constant 0 : i32
    return %c0_i32, %c0_i32_0, %c0_i32_1 : i32, i32, i32
  }
  func.func @transform_3(%arg0: i32) -> (i32, i32, i32) {
    %c0_i32 = arith.constant 0 : i32
    %c0_i32_0 = arith.constant 0 : i32
    %c0_i32_1 = arith.constant 0 : i32
    %c0_i32_2 = arith.constant 0 : i32
    return %c0_i32, %c0_i32_0, %c0_i32_1 : i32, i32, i32
  }
  func.func @transform_4(%arg0: i32) -> (i32, i32, i32) {
    %c0_i32 = arith.constant 0 : i32
    %c0_i32_0 = arith.constant 0 : i32
    %c0_i32_1 = arith.constant 0 : i32
    %c0_i32_2 = arith.constant 0 : i32
    return %c0_i32, %c0_i32_0, %c0_i32_1 : i32, i32, i32
  }
  func.func @transform_5(%arg0: i32) -> (i32, i32, i32) {
    %c0_i32 = arith.constant 0 : i32
    %c0_i32_0 = arith.constant 0 : i32
    %c0_i32_1 = arith.constant 0 : i32
    %c0_i32_2 = arith.constant 0 : i32
    return %c0_i32, %c0_i32_0, %c0_i32_1 : i32, i32, i32
  }
  func.func @transform_6(%arg0: i32) -> (i32, i32, i32) {
    %c0_i32 = arith.constant 0 : i32
    %c0_i32_0 = arith.constant 0 : i32
    %c0_i32_1 = arith.constant 0 : i32
    %c0_i32_2 = arith.constant 0 : i32
    return %c0_i32, %c0_i32_0, %c0_i32_1 : i32, i32, i32
  }
  func.func @transform_7(%arg0: i32) -> (i32, i32, i32) {
    %c0_i32 = arith.constant 0 : i32
    %c0_i32_0 = arith.constant 0 : i32
    %c0_i32_1 = arith.constant 0 : i32
    %c0_i32_2 = arith.constant 0 : i32
    return %c0_i32, %c0_i32_0, %c0_i32_1 : i32, i32, i32
  }
  func.func @transform_8(%arg0: i32) -> (i32, i32, i32) {
    %c0_i32 = arith.constant 0 : i32
    %c0_i32_0 = arith.constant 0 : i32
    %c0_i32_1 = arith.constant 0 : i32
    %c0_i32_2 = arith.constant 0 : i32
    return %c0_i32, %c0_i32_0, %c0_i32_1 : i32, i32, i32
  }
  func.func @transform_9(%arg0: i32) -> (i32, i32, i32) {
    %c0_i32 = arith.constant 0 : i32
    %c0_i32_0 = arith.constant 0 : i32
    %c0_i32_1 = arith.constant 0 : i32
    %c0_i32_2 = arith.constant 0 : i32
    return %c0_i32, %c0_i32_0, %c0_i32_1 : i32, i32, i32
  }
  func.func @transform_10(%arg0: i32) -> (i32, i32, i32) {
    %c0_i32 = arith.constant 0 : i32
    %c0_i32_0 = arith.constant 0 : i32
    %c0_i32_1 = arith.constant 0 : i32
    %c0_i32_2 = arith.constant 0 : i32
    return %c0_i32, %c0_i32_0, %c0_i32_1 : i32, i32, i32
  }
  func.func @transform_11(%arg0: i32) -> (i32, i32, i32) {
    %c0_i32 = arith.constant 0 : i32
    %c0_i32_0 = arith.constant 0 : i32
    %c0_i32_1 = arith.constant 0 : i32
    %c0_i32_2 = arith.constant 0 : i32
    return %c0_i32, %c0_i32_0, %c0_i32_1 : i32, i32, i32
  }
  func.func @transform_12(%arg0: i32) -> (i32, i32, i32) {
    %c0_i32 = arith.constant 0 : i32
    %c0_i32_0 = arith.constant 0 : i32
    %c0_i32_1 = arith.constant 0 : i32
    %c0_i32_2 = arith.constant 0 : i32
    return %c0_i32, %c0_i32_0, %c0_i32_1 : i32, i32, i32
  }
  func.func @transform_13(%arg0: i32) -> (i32, i32, i32) {
    %c0_i32 = arith.constant 0 : i32
    %c0_i32_0 = arith.constant 0 : i32
    %c0_i32_1 = arith.constant 0 : i32
    %c0_i32_2 = arith.constant 0 : i32
    return %c0_i32, %c0_i32_0, %c0_i32_1 : i32, i32, i32
  }
  func.func @transform_14(%arg0: i32) -> (i32, i32, i32) {
    %c0_i32 = arith.constant 0 : i32
    %c0_i32_0 = arith.constant 0 : i32
    %c0_i32_1 = arith.constant 0 : i32
    %c0_i32_2 = arith.constant 0 : i32
    return %c0_i32, %c0_i32_0, %c0_i32_1 : i32, i32, i32
  }
  func.func @transform_15(%arg0: i32) -> (i32, i32, i32) {
    %c0_i32 = arith.constant 0 : i32
    %c0_i32_0 = arith.constant 0 : i32
    %c0_i32_1 = arith.constant 0 : i32
    %c0_i32_2 = arith.constant 0 : i32
    return %c0_i32, %c0_i32_0, %c0_i32_1 : i32, i32, i32
  }
  func.func @transform_16(%arg0: i32) -> (i32, i32, i32) {
    %c0_i32 = arith.constant 0 : i32
    %c0_i32_0 = arith.constant 0 : i32
    %c0_i32_1 = arith.constant 0 : i32
    %c0_i32_2 = arith.constant 0 : i32
    return %c0_i32, %c0_i32_0, %c0_i32_1 : i32, i32, i32
  }
  func.func @transform_17(%arg0: i32) -> (i32, i32, i32) {
    %c0_i32 = arith.constant 0 : i32
    %c0_i32_0 = arith.constant 0 : i32
    %c0_i32_1 = arith.constant 0 : i32
    %c0_i32_2 = arith.constant 0 : i32
    return %c0_i32, %c0_i32_0, %c0_i32_1 : i32, i32, i32
  }
  func.func @transform_18(%arg0: i32) -> (i32, i32, i32) {
    %c0_i32 = arith.constant 0 : i32
    %c0_i32_0 = arith.constant 0 : i32
    %c0_i32_1 = arith.constant 0 : i32
    %c0_i32_2 = arith.constant 0 : i32
    return %c0_i32, %c0_i32_0, %c0_i32_1 : i32, i32, i32
  }
  func.func @transform_19(%arg0: i32) -> (i32, i32, i32) {
    %c0_i32 = arith.constant 0 : i32
    %c0_i32_0 = arith.constant 0 : i32
    %c0_i32_1 = arith.constant 0 : i32
    %c0_i32_2 = arith.constant 0 : i32
    return %c0_i32, %c0_i32_0, %c0_i32_1 : i32, i32, i32
  }
  func.func @transform_20(%arg0: i32) -> (i32, i32, i32) {
    %c0_i32 = arith.constant 0 : i32
    %c0_i32_0 = arith.constant 0 : i32
    %c0_i32_1 = arith.constant 0 : i32
    %c0_i32_2 = arith.constant 0 : i32
    return %c0_i32, %c0_i32_0, %c0_i32_1 : i32, i32, i32
  }
  func.func @transform_21(%arg0: i32) -> (i32, i32, i32) {
    %c0_i32 = arith.constant 0 : i32
    %c0_i32_0 = arith.constant 0 : i32
    %c0_i32_1 = arith.constant 0 : i32
    %c0_i32_2 = arith.constant 0 : i32
    return %c0_i32, %c0_i32_0, %c0_i32_1 : i32, i32, i32
  }
  func.func @transform_22(%arg0: i32) -> (i32, i32, i32) {
    %c0_i32 = arith.constant 0 : i32
    %c0_i32_0 = arith.constant 0 : i32
    %c0_i32_1 = arith.constant 0 : i32
    %c0_i32_2 = arith.constant 0 : i32
    return %c0_i32, %c0_i32_0, %c0_i32_1 : i32, i32, i32
  }
  func.func @transform_23(%arg0: i32) -> (i32, i32, i32) {
    %c0_i32 = arith.constant 0 : i32
    %c0_i32_0 = arith.constant 0 : i32
    %c0_i32_1 = arith.constant 0 : i32
    %c0_i32_2 = arith.constant 0 : i32
    return %c0_i32, %c0_i32_0, %c0_i32_1 : i32, i32, i32
  }
  func.func @transform_24(%arg0: i32) -> (i32, i32, i32) {
    %c0_i32 = arith.constant 0 : i32
    %c0_i32_0 = arith.constant 0 : i32
    %c0_i32_1 = arith.constant 0 : i32
    %c0_i32_2 = arith.constant 0 : i32
    return %c0_i32, %c0_i32_0, %c0_i32_1 : i32, i32, i32
  }
  func.func @transform_25(%arg0: i32) -> (i32, i32, i32) {
    %c0_i32 = arith.constant 0 : i32
    %c0_i32_0 = arith.constant 0 : i32
    %c0_i32_1 = arith.constant 0 : i32
    %c0_i32_2 = arith.constant 0 : i32
    return %c0_i32, %c0_i32_0, %c0_i32_1 : i32, i32, i32
  }
  func.func @transform_26(%arg0: i32) -> (i32, i32, i32) {
    %c0_i32 = arith.constant 0 : i32
    %c0_i32_0 = arith.constant 0 : i32
    %c0_i32_1 = arith.constant 0 : i32
    %c0_i32_2 = arith.constant 0 : i32
    return %c0_i32, %c0_i32_0, %c0_i32_1 : i32, i32, i32
  }
  func.func @transform_27(%arg0: i32) -> (i32, i32, i32) {
    %c0_i32 = arith.constant 0 : i32
    %c0_i32_0 = arith.constant 0 : i32
    %c0_i32_1 = arith.constant 0 : i32
    %c0_i32_2 = arith.constant 0 : i32
    return %c0_i32, %c0_i32_0, %c0_i32_1 : i32, i32, i32
  }
  func.func @transform_28(%arg0: i32) -> (i32, i32, i32) {
    %c0_i32 = arith.constant 0 : i32
    %c0_i32_0 = arith.constant 0 : i32
    %c0_i32_1 = arith.constant 0 : i32
    %c0_i32_2 = arith.constant 0 : i32
    return %c0_i32, %c0_i32_0, %c0_i32_1 : i32, i32, i32
  }
  func.func @transform_29(%arg0: i32) -> (i32, i32, i32) {
    %c0_i32 = arith.constant 0 : i32
    %c0_i32_0 = arith.constant 0 : i32
    %c0_i32_1 = arith.constant 0 : i32
    %c0_i32_2 = arith.constant 0 : i32
    return %c0_i32, %c0_i32_0, %c0_i32_1 : i32, i32, i32
  }
  func.func @transform_30(%arg0: i32) -> (i32, i32, i32) {
    %c0_i32 = arith.constant 0 : i32
    %c0_i32_0 = arith.constant 0 : i32
    %c0_i32_1 = arith.constant 0 : i32
    %c0_i32_2 = arith.constant 0 : i32
    return %c0_i32, %c0_i32_0, %c0_i32_1 : i32, i32, i32
  }
  func.func @transform_31(%arg0: i32) -> (i32, i32, i32) {
    %c0_i32 = arith.constant 0 : i32
    %c0_i32_0 = arith.constant 0 : i32
    %c0_i32_1 = arith.constant 0 : i32
    %c0_i32_2 = arith.constant 0 : i32
    return %c0_i32, %c0_i32_0, %c0_i32_1 : i32, i32, i32
  }
  func.func @transform_32(%arg0: i32) -> (i32, i32, i32) {
    %c0_i32 = arith.constant 0 : i32
    %c0_i32_0 = arith.constant 0 : i32
    %c0_i32_1 = arith.constant 0 : i32
    %c0_i32_2 = arith.constant 0 : i32
    return %c0_i32, %c0_i32_0, %c0_i32_1 : i32, i32, i32
  }
  func.func @transform_33(%arg0: i32) -> (i32, i32, i32) {
    %c0_i32 = arith.constant 0 : i32
    %c0_i32_0 = arith.constant 0 : i32
    %c0_i32_1 = arith.constant 0 : i32
    %c0_i32_2 = arith.constant 0 : i32
    return %c0_i32, %c0_i32_0, %c0_i32_1 : i32, i32, i32
  }
  func.func @transform_34(%arg0: i32) -> (i32, i32) {
    %c0_i32 = arith.constant 0 : i32
    %c0_i32_0 = arith.constant 0 : i32
    %c0_i32_1 = arith.constant 0 : i32
    return %c0_i32, %c0_i32_0 : i32, i32
  }
  func.func @transform_35(%arg0: i32) -> (i32, i32) {
    %c0_i32 = arith.constant 0 : i32
    %c0_i32_0 = arith.constant 0 : i32
    %c0_i32_1 = arith.constant 0 : i32
    return %c0_i32, %c0_i32_0 : i32, i32
  }
  func.func @transform_36(%arg0: i32) -> (i32, i32) {
    %c0_i32 = arith.constant 0 : i32
    %c0_i32_0 = arith.constant 0 : i32
    return %arg0, %c0_i32 : i32, i32
  }
}

</mosaic_0001>

<bundles_post_ra>
// kernel: transformer_forward.1
= control target key start
LH: loop header
LB: loop body
LE: loop exit
PB: predicated region body
PF: predicated region fallthrough
CT: control target
= control target key end

     0   :  { %s13718_s6 = smov 1   ;;  %s13719_s10 = smov 2   ;;  %s15352_s0 = inlined_call_operand.smem [shape: u32[37], index: -1, kind: input, shape index: {}] }
   0x1   :  { %s13778_s5 = sld [smem:[%s15352_s0]]   ;;  %s13720_s14 = smov 3  }
   0x2   :  { %s13783_s9 = sld [smem:[%s15352_s0 + %s13718_s6]]   ;;  %s13721_s18 = smov 4  }
   0x3   :  { %s13788_s13 = sld [smem:[%s15352_s0 + %s13719_s10]]   ;;  %s13722_s22 = smov 5  }
   0x4   :  { %s13793_s17 = sld [smem:[%s15352_s0 + %s13720_s14]]   ;;  %s13723_s26 = smov 6  }
   0x5   :  { %s13798_s21 = sld [smem:[%s15352_s0 + %s13721_s18]]   ;;  %s13724_s30 = smov 7  }
   0x6   :  { %s13803_s25 = sld [smem:[%s15352_s0 + %s13722_s22]]   ;;  %s13725_s4 = smov 8  }
   0x7   :  { %15402 = sst [smem:[#allocation20_spill]] %s13778_s5  ;;  %s13726_s10 = smov 9  }
   0x8   :  { %15403 = sst [smem:[#allocation21_spill]] %s13783_s9  ;;  %s13727_s15 = smov 10  }
   0x9   :  { %15404 = sst [smem:[#allocation22_spill]] %s13788_s13  ;;  %s13728_s20 = smov 11  }
   0xa   :  { %15405 = sst [smem:[#allocation23_spill]] %s13793_s17  ;;  %s13730_s1 = smov 13  }
   0xb   :  { %s13808_s29 = sld [smem:[%s15352_s0 + %s13723_s26]]   ;;  %s13729_s26 = smov 12  }
   0xc   :  { %s13813_s3 = sld [smem:[%s15352_s0 + %s13724_s30]]   ;;  %s13731_s7 = smov 14  }
   0xd   :  { %s13818_s8 = sld [smem:[%s15352_s0 + %s13725_s4]]   ;;  %s13733_s22 = smov 16  }
   0xe   :  { %s13823_s14 = sld [smem:[%s15352_s0 + %s13726_s10]]   ;;  %s13734_s28 = smov 17  }
   0xf   :  { %s13828_s19 = sld [smem:[%s15352_s0 + %s13727_s15]]   ;;  %s13732_s15 = smov 15  }
  0x10   :  { %s13833_s24 = sld [smem:[%s15352_s0 + %s13728_s20]]  }
  0x11   :  { %s13838_s30 = sld [smem:[%s15352_s0 + %s13729_s26]]  }
  0x12   :  { %15406 = sst [smem:[#allocation24_spill]] %s13813_s3 }
  0x13   :  { %15407 = sst [smem:[#allocation25_spill]] %s13818_s8 }
  0x14   :  { %15408 = sst [smem:[#allocation26_spill]] %s13823_s14 }
  0x15   :  { %s13843_s6 = sld [smem:[%s15352_s0 + %s13730_s1]]  }
  0x16   :  { %15409 = sst [smem:[#allocation27_spill]] %s13833_s24 }
  0x17   :  { %15410 = sst [smem:[#allocation28_spill]] %s13838_s30 }
  0x18   :  { %s13848_s12 = sld [smem:[%s15352_s0 + %s13731_s7]]   ;;  %s13735_s7 = smov 18  }
  0x19   :  { %s13853_s20 = sld [smem:[%s15352_s0 + %s13732_s15]]   ;;  %s13736_s15 = smov 19  }
  0x1a   :  { %s13858_s27 = sld [smem:[%s15352_s0 + %s13733_s22]]   ;;  %s13737_s22 = smov 20  }
  0x1b   :  { %15411 = sst [smem:[#allocation29_spill]] %s13843_s6 }
  0x1c   :  { %s13863_s4 = sld [smem:[%s15352_s0 + %s13734_s28]]   ;;  %s13738_s28 = smov 21  }
  0x1d   :  { %s13868_s9 = sld [smem:[%s15352_s0 + %s13735_s7]]   ;;  %s13739_s7 = smov 22  }
  0x1e   :  { %15412 = sst [smem:[#allocation30_spill]] %s13848_s12 }
  0x1f   :  { %15413 = sst [smem:[#allocation31_spill]] %s13853_s20 }
  0x20   :  { %15414 = sst [smem:[#allocation32_spill]] %s13858_s27 }
  0x21   :  { %s13873_s20 = sld [smem:[%s15352_s0 + %s13736_s15]]   ;;  %s13740_s15 = smov 23  }
  0x22   :  { %15415 = sst [smem:[#allocation33_spill]] %s13863_s4 }
  0x23   :  { %15416 = sst [smem:[#allocation34_spill]] %s13868_s9 }
  0x24   :  { %s13878_s27 = sld [smem:[%s15352_s0 + %s13737_s22]]   ;;  %s13741_s22 = smov 24  }
  0x25   :  { %s13883_s4 = sld [smem:[%s15352_s0 + %s13738_s28]]   ;;  %s13742_s28 = smov 25  }
  0x26   :  { %s13888_s9 = sld [smem:[%s15352_s0 + %s13739_s7]]   ;;  %s13743_s7 = smov 26  }
  0x27   :  { %15417 = sst [smem:[#allocation35_spill]] %s13873_s20 }
  0x28   :  { %s13893_s20 = sld [smem:[%s15352_s0 + %s13740_s15]]   ;;  %s13744_s15 = smov 27  }
  0x2a   :  { %15418 = sst [smem:[#allocation36_spill]] %s13878_s27 }
  0x2b   :  { %15419 = sst [smem:[#allocation37_spill]] %s13883_s4 }
  0x2c   :  { %15420 = sst [smem:[#allocation38_spill]] %s13888_s9 }
  0x2d   :  { %s13898_s27 = sld [smem:[%s15352_s0 + %s13741_s22]]   ;;  %s13745_s22 = smov 28  }
  0x2e   :  { %15421 = sst [smem:[#allocation39_spill]] %s13893_s20 }
  0x2f   :  { %s13903_s4 = sld [smem:[%s15352_s0 + %s13742_s28]]   ;;  %s13746_s28 = smov 29  }
  0x30   :  { %s13908_s9 = sld [smem:[%s15352_s0 + %s13743_s7]]   ;;  %s13747_s7 = smov 30  }
  0x31   :  { %s13913_s20 = sld [smem:[%s15352_s0 + %s13744_s15]]   ;;  %s13748_s15 = smov 31  }
  0x32   :  { %s13918_s12 = sld [smem:[%s15352_s0 + %s13745_s22]]   ;;  %s13749_s22 = smov 32  }
  0x33   :  { %s13933_s6 = sld [smem:[%s15352_s0 + %s13748_s15]]   ;;  %s13752_s15 = smov 35  }
  0x34   :  { %s13938_s30 = sld [smem:[%s15352_s0 + %s13749_s22]]   ;;  %s13753_s22 = smov 36  }
  0x35   :  { %15422 = sst [smem:[#allocation40_spill]] %s13903_s4 }
  0x36   :  { %15423 = sst [smem:[#allocation41_spill]] %s13908_s9 }
  0x37   :  { %15424 = sst [smem:[#allocation42_spill]] %s13913_s20 }
  0x38   :  { %15425 = sst [smem:[#allocation43_spill]] %s13918_s12 }
  0x39   :  { %s13923_s4 = sld [smem:[%s15352_s0 + %s13746_s28]]   ;;  %s13750_s28 = smov 33  }
  0x3a   :  { %s13928_s9 = sld [smem:[%s15352_s0 + %s13747_s7]]   ;;  %s13751_s7 = smov 34  }
  0x3b   :  { %15428 = sst [smem:[#allocation46_spill]] %s13933_s6 }
  0x3c   :  { %s13943_s24 = sld [smem:[%s15352_s0 + %s13750_s28]]  }
  0x3d   :  { %s13953_s14 = sld [smem:[%s15352_s0 + %s13752_s15]]  }
  0x3e   :  { %s13958_s3 = sld [smem:[%s15352_s0 + %s13753_s22]]  }
  0x3f   :  { %15426 = sst [smem:[#allocation44_spill]] %s13923_s4 }
  0x40   :  { %15427 = sst [smem:[#allocation45_spill]] %s13928_s9 }
  0x41   :  { %s13948_s9 = sld [smem:[%s15352_s0 + %s13751_s7]]  }
  0x47   :  { %15429 = sst [smem:[#allocation47_spill]] %s13948_s9 }
  0x48   :  { %78 = vsyncpa [#allocation3], 0 }
  0x49   :  { %79 = vsyncpa [#allocation6], 0 }
  0x4a   :  { %80 = vsyncpa [#allocation9], 0 }
  0x4b   :  { %81 = vsyncpa [#allocation12], 0 }
  0x4c   :  { %82 = vsyncpa [#allocation4], 0 }
  0x4d   :  { %84 = vsyncpa [#allocation4 + $0x1], 0  ;;  %s13960_s28 = smov 0   ;;  %s13962_s1 = smov 0  }
  0x4e   :  { %s13964_s2 = smov 0   ;;  %s13966_s7 = smov 0  }
  0x4f LB: > { %s15430_s9 = sld [smem:[#allocation47_spill]]  ;;  %s13981_s0 = sadd.s32 4294967295, %s13716_s7   ;;  %s13716_s7 = sphi %s13966_s7, %s15502_s7   ;;  %s13712_s2 = sphi %s13964_s2, %s15507_s2   ;;  %s13708_s1 = sphi %s13962_s1, %s15506_s1   ;;  %s13704_s28 = sphi %s13960_s28, %s15505_s28  }
  0x50   : > { %s15431_s17 = sld [smem:[#allocation23_spill]]  ;;  %s11127_s10 = sadd.s32 4294967294, %s13716_s7  }
  0x51   : > { %s15432_s13 = sld [smem:[#allocation22_spill]]  ;;  %s13985_s11 = sadd.s32 1, %s13716_s7  }
  0x52   : > { %s15433_s8 = sld [smem:[#allocation25_spill]]  ;;  %s863_s15 = sadd.s32 1, %s13712_s2 }
  0x53   : > { %15434 = sst [smem:[#allocation48_spill]] %s13704_s28  ;;  %s860_s16 = ssub.s32 %s13716_s7, %s13985_s11 }
  0x54   : > { %15435 = sst [smem:[#allocation49_spill]] %s13712_s2  ;;  %p873_p0 = scmp.ne.s32.totalorder %s13712_s2, %s13708_s1 }
  0x55   : > { %15436 = sst [smem:[#allocation50_spill]] %s13716_s7  ;;  %p861_p1 = scmp.eq.s32.totalorder %s860_s16, 0 }
  0x56   : > { %15437 = sst [smem:[#allocation51_spill]] %s13985_s11  ;;  %p874_p2 = scmp.eq.s32.totalorder %s13981_s0, 1 }
  0x57   : > { %p879_p3 = scmp.ne.s32.totalorder %s13708_s1, %s13704_s28  ;;  %p880_p4 = scmp.eq.s32.totalorder %s11127_s10, 1 }
  0x58   : > { %s13996_s18 = scalar_select %p861_p1, %s13712_s2, %s863_s15  }
  0x59   : > { %p13998_p5 = por %p874_p2, %p873_p0  ;;  %p14002_p6 = por %p880_p4, %p879_p3 }
  0x5a   : > { %15438 = sst [smem:[#allocation52_spill]] %s13996_s18  ;;  %p11128_p7 = scmp.ge.s32.totalorder %s13716_s7, 1 }
  0x5b   : > { %s15439_s22 = scalar_select %p13998_p5, 1, 0 }
  0x5c   : > { %s15440_s23 = scalar_select %p14002_p6, 1, 0 }
  0x5d   : > { %p887_p8 = scmp.lt.s32.totalorder %s13716_s7, 3  ;;  %p15377_p9 = scmp.eq.s32.totalorder %s13981_s0, 0 }
  0x5e   : > { %15441 = sst [smem:[#allocation53_spill]] %s15440_s23  ;;  %s13754_s16 = smov [#allocation5]  }
  0x5f   : > { %p14009_p10 = pnand %p11128_p7, %p887_p8  ;;  %s984_s10 = sshll.u32 %s13754_s16, 4  ;;  %s985_s10 = int_to_ptr.vmem [resolvable:$true] %s984_s10 }
  0x60   : > { %s13755_s18 = smov [#allocation8]   ;;  %s13756_s11 = smov [#allocation11]  }
  0x61   : > { %s15442_s26 = scalar_select %p14009_p10, 1, 0 }
  0x62   : > { %p13198_p11 = pneg %p14009_p10  ;;  %s1010_s2 = sshll.u32 %s13755_s18, 4  ;;  %s1011_s2 = int_to_ptr.vmem [resolvable:$true] %s1010_s2 }
  0x63   : > { %s1039_s23 = sshll.u32 %s13756_s11, 4  ;;  %s13469_s16 = scalar_lea.vmem %s985_s10, 96  ;;  %s1040_s23 = int_to_ptr.vmem [resolvable:$true] %s1039_s23 }
  0x64   : > { %p14017_p12 = pnand %p15377_p9, %p13198_p11  ;;  %p13470_p0 = scmp.ne.s32.totalorder %s985_s10, %s13469_s16 }
  0x65   : > { %p13477_p3 = scmp.lt.s32.totalorder %s985_s10, %s985_s10  ;;  %p13478_p4 = scmp.lt.s32.totalorder %s13469_s16, %s13469_s16 }
  0x66   : > { %p14023_p13 = pneg %p14017_p12 }
  0x67   : > { %p13479_p7 = por %p13478_p4, %p13477_p3 }
  0x68   : > { %p13472_p1 = pnand %p13470_p0, %p14023_p13 }
  0x6a   : > { %p13473_p2 = pneg %p13472_p1 }
  0x6c   : > { %p13480_p8 = pnand %p13479_p7, %p13473_p2 }
  0x6e   : > { %13483 = shalt.err (!%p13480_p8)
}
  0x6f   : > { %s15379_s18 = smov 16   ;;  %s15445_s20 = sld [smem:[#allocation42_spill]] }
  0x70   : > { %s15381_s11 = smov 1   ;;  %s13495_s7 = scalar_lea.vmem %s1011_s2, 96 }
  0x71   : > { %p13496_p11 = scmp.ne.s32.totalorder %s1011_s2, %s13495_s7  ;;  %p13503_p9 = scmp.lt.s32.totalorder %s1011_s2, %s1011_s2 }
  0x72   : > { %p13504_p6 = scmp.lt.s32.totalorder %s13495_s7, %s13495_s7 }
  0x73   : > { %p13498_p0 = pnand %p13496_p11, %p14023_p13 }
  0x74   : > { %p13505_p3 = por %p13504_p6, %p13503_p9 }
  0x75   : > { %13204 = dma.hbm_to_vmem [thread:$0]  (!%p14017_p12), %s15445_s20, 96, %s985_s10, [#allocation6], %s15379_s18, %s15379_s18, %s15381_s11  }
  0x76   : > { %p13499_p1 = pneg %p13498_p0 }
  0x78   : > { %p13506_p2 = pnand %p13505_p3, %p13499_p1 }
  0x7a   : > { %13509 = shalt.err (!%p13506_p2)
}
  0x7b   : > { %s15446_s4 = sld [smem:[#allocation44_spill]]  ;;  %s13521_s10 = scalar_lea.vmem %s1040_s23, 96 }
  0x7c   : > { %p13522_p4 = scmp.ne.s32.totalorder %s1040_s23, %s13521_s10  ;;  %p13529_p11 = scmp.lt.s32.totalorder %s1040_s23, %s1040_s23 }
  0x7d   : > { %p13530_p0 = scmp.lt.s32.totalorder %s13521_s10, %s13521_s10 }
  0x7e   : > { %p13524_p7 = pnand %p13522_p4, %p14023_p13 }
  0x7f   : > { %p13531_p5 = por %p13530_p0, %p13529_p11 }
  0x80   : > { %p13525_p8 = pneg %p13524_p7 }
  0x81   : > { %13210 = dma.hbm_to_vmem [thread:$0]  (!%p14017_p12), %s15446_s4, 96, %s1011_s2, [#allocation9], %s15379_s18, %s15379_s18, %s15381_s11  }
  0x82   : > { %p13532_p6 = pnand %p13531_p5, %p13525_p8 }
  0x84   : > { %13535 = shalt.err (!%p13532_p6)
}
  0x85   : > { %13216 = dma.hbm_to_vmem [thread:$0]  (!%p14017_p12), %s13938_s30, 96, %s1040_s23, [#allocation12], %s15379_s18, %s15379_s18, %s15381_s11  }
  0x86   : > { %s13759_s2 = smov [#allocation2]  }
  0x87   : > { %s965_s7 = sshll.u32 %s13759_s2, 4  ;;  %s966_s7 = int_to_ptr.vmem [resolvable:$true] %s965_s7 }
  0x88   : > { %s13547_s16 = scalar_lea.vmem %s966_s7, 3072  ;;  %p13555_p2 = scmp.lt.s32.totalorder %s966_s7, %s966_s7 }
  0x89   : > { %p13548_p9 = scmp.ne.s32.totalorder %s966_s7, %s13547_s16  ;;  %p13556_p4 = scmp.lt.s32.totalorder %s13547_s16, %s13547_s16 }
  0x8b   : > { %p13550_p1 = pnand %p13548_p9, %p14023_p13  ;;  %p13557_p5 = por %p13556_p4, %p13555_p2 }
  0x8d   : > { %p13551_p3 = pneg %p13550_p1 }
  0x8f   : > { %p13558_p7 = pnand %p13557_p5, %p13551_p3 }
  0x91   : > { %13561 = shalt.err (!%p13558_p7)
}
  0x92   : > { %s13760_s10 = smov 128   ;;  %s13761_s4 = smov 8  }
  0x93   : > { %13201 = dma.hbm_to_vmem [thread:$0]  (!%p14017_p12), %s13898_s27, 3072, %s966_s7, [#allocation3], %s13760_s10, %s13760_s10, %s13761_s4  }
  0x94   : > { %s13762_s23 = smov [#allocation7]   ;;  %s13763_s18 = smov [#allocation10]  }
  0x95   : > { %s997_s2 = sshll.u32 %s13762_s23, 4  ;;  %s1026_s11 = sshll.u32 %s13763_s18, 4  ;;  %s998_s2 = int_to_ptr.vmem [resolvable:$true] %s997_s2  ;;  %s1027_s11 = int_to_ptr.vmem [resolvable:$true] %s1026_s11 }
  0x96   : > { %s13573_s20 = scalar_lea.vmem %s998_s2, 3072  ;;  %p13581_p6 = scmp.lt.s32.totalorder %s998_s2, %s998_s2 }
  0x97   : > { %p13574_p8 = scmp.ne.s32.totalorder %s998_s2, %s13573_s20  ;;  %p13582_p9 = scmp.lt.s32.totalorder %s13573_s20, %s13573_s20 }
  0x99   : > { %p13576_p11 = pnand %p13574_p8, %p14023_p13  ;;  %p13583_p1 = por %p13582_p9, %p13581_p6 }
  0x9b   : > { %p13577_p0 = pneg %p13576_p11 }
  0x9d   : > { %p13584_p3 = pnand %p13583_p1, %p13577_p0 }
  0x9f   : > { %13587 = shalt.err (!%p13584_p3)
}
  0xa0   : > { %s15447_s12 = sld [smem:[#allocation43_spill]]  ;;  %s13599_s7 = scalar_lea.vmem %s1027_s11, 96 }
  0xa1   : > { %p13600_p2 = scmp.ne.s32.totalorder %s1027_s11, %s13599_s7  ;;  %p13607_p7 = scmp.lt.s32.totalorder %s1027_s11, %s1027_s11 }
  0xa2   : > { %p13608_p10 = scmp.lt.s32.totalorder %s13599_s7, %s13599_s7 }
  0xa3   : > { %p13602_p4 = pnand %p13600_p2, %p14023_p13 }
  0xa4   : > { %p13609_p8 = por %p13608_p10, %p13607_p7 }
  0xa5   : > { %p13603_p5 = pneg %p13602_p4 }
  0xa6   : > { %13207 = dma.hbm_to_vmem [thread:$0]  (!%p14017_p12), %s15447_s12, 3072, %s998_s2, [#allocation6], %s13760_s10, %s13760_s10, %s13761_s4  }
  0xa7   : > { %p13610_p11 = pnand %p13609_p8, %p13603_p5 }
  0xa9   : > { %13613 = shalt.err (!%p13610_p11)
}
  0xaa   : > { %s15448_s20 = smov 1   ;;  %s15449_s18 = smov 16  }
  0xab   : > { %s15450_s6 = sld [smem:[#allocation46_spill]]  ;;  %s13764_s16 = smov [#allocation13]  }
  0xac   : > { %s1052_s4 = sshll.u32 %s13764_s16, 4  ;;  %s1053_s4 = int_to_ptr.vmem [resolvable:$true] %s1052_s4 }
  0xad   : > { %s13625_s10 = scalar_lea.vmem %s1053_s4, 96  ;;  %p13633_p1 = scmp.lt.s32.totalorder %s1053_s4, %s1053_s4 }
  0xae   : > { %p13626_p0 = scmp.ne.s32.totalorder %s1053_s4, %s13625_s10  ;;  %p13634_p10 = scmp.lt.s32.totalorder %s13625_s10, %s13625_s10 }
  0xb0   : > { %p13628_p6 = pnand %p13626_p0, %p14023_p13  ;;  %p13635_p3 = por %p13634_p10, %p13633_p1 }
  0xb1   : > { %13213 = dma.hbm_to_vmem [thread:$0]  (!%p14017_p12), %s15450_s6, 96, %s1027_s11, [#allocation9], %s15449_s18, %s15449_s18, %s15448_s20  }
  0xb2   : > { %p13629_p9 = pneg %p13628_p6 }
  0xb4   : > { %p13636_p2 = pnand %p13635_p3, %p13629_p9 }
  0xb6   : > { %13639 = shalt.err (!%p13636_p2)
}
  0xb7   : > { %13219 = dma.hbm_to_vmem [thread:$0]  (!%p14017_p12), %s13943_s24, 96, %s1053_s4, [#allocation12], %s15449_s18, %s15449_s18, %s15448_s20  }
  0xb8   : > { %p15451_p4 = scmp.ne.s32.totalorder %s15442_s26, 0 }
  0xb9   : > { %p15452_p5 = scmp.eq.s32.totalorder (!%p15451_p4), %s13981_s0, 0 }
  0xba   : > { %1088 = sbr.rel (%p15451_p4) target bundleno = 35081 (0x8909), region = 164 }
  0xbf   : > { %13683 = dma.done.wait (%p15452_p5), [#allocation3], 3072   ;;  %p15453_p13 = pmov %p15452_p5 }
  0xc0   : > { %p15454_p7 = pmov %p15452_p5 }
  0xc1   : > { %13685 = vsyncadd (%p15453_p13), [#allocation3], 4294964224 }
  0xc2   : > { %13687 = dma.done.wait (%p15454_p7), [#allocation6], 3168   ;;  %p15455_p8 = pmov %p15452_p5 }
  0xc3   : > { %p15456_p11 = pmov %p15452_p5 }
  0xc4   : > { %13689 = vsyncadd (%p15455_p8), [#allocation6], 4294964128 }
  0xc5   : > { %13691 = dma.done.wait (%p15456_p11), [#allocation9], 192   ;;  %p15457_p12 = pmov %p15452_p5 }
  0xc6   : > { %p15458_p0 = pmov %p15452_p5 }
  0xc7   : > { %13693 = vsyncadd (%p15457_p12), [#allocation9], 4294967104 }
  0xc8   : > { %13695 = dma.done.wait (%p15458_p0), [#allocation12], 192   ;;  %p15459_p6 = pmov %p15458_p0 }
  0xc9   : > { %s15460_s5 = sld [smem:[#allocation20_spill]]  ;;  %p1205_p9 = scmp.lt.s32.totalorder %s13981_s0, 1  ;;  %v13765_v0 = vmov 0.0   ;;  %vm13766_vm0 = vmmov 0   ;;  %v1222_v1 = vld [vmem:[%s15432_s13 + $0x18] sm:$0xff]  ;;  %v1221_v2 = vld [vmem:[%s15432_s13 + $0x10] sm:$0xff] }
  0xca   : > { %13697 = vsyncadd (%p15459_p6), [#allocation12], 4294967104  ;;  %12155 = vmatprep.subr.mxu0 %v13765_v0  ;;  %12163 = vmatprep.mubr.msk.f32.mxu0 %vm13766_vm0, %v13765_v0  ;;  %v1220_v3 = vld [vmem:[%s15432_s13 + $0x8] sm:$0xff]  ;;  %v1219_v4 = vld [vmem:[%s15432_s13] sm:$0xff]  ;;  %vm1230_vm1 = vcmask 261120   ;;  %s15384_s11 = smov 96  }
  0xcb   : > { %s14100_s28 = scalar_select %p1205_p9, %s13981_s0, 1  ;;  %12166 = vmatprep.subr.mxu1 %v13765_v0  ;;  %12168 = vmatprep.mubr.msk.f32.mxu1 %vm13766_vm0, %v13765_v0  ;;  %v11148_v6 = vld [vmem:[%s15431_s17] ss:$0 sm:$0xff]  ;;  %vm1382_vm2 = vcmask 64512   ;;  %v1473_v20 = vld [vmem:[%s13798_s21 + $0x18] sm:$0xff]  ;;  %v1472_v21 = vld [vmem:[%s13798_s21 + $0x10] sm:$0xff] }
  0xcc   : > { %12156 = vmatpush3.msra.mxu0 %v1222_v1  ;;  %s15386_s23 = smov 64   ;;  %v1471_v22 = vld [vmem:[%s13798_s21 + $0x8] sm:$0xff]  ;;  %v1470_v27 = vld [vmem:[%s13798_s21] sm:$0xff]  ;;  %v1588_v41 = vld [vmem:[%s15433_s8 + $0x18] sm:$0xff]  ;;  %s15461_s2 = sld [smem:[#allocation24_spill]]  ;;  %vm1685_vm3 = vcmask 523264  }
  0xcd   : > { %s11146_s26 = sshll.u32 %s14100_s28, 3  ;;  %12157 = vmatprep.subr.mxu0 %v13765_v0  ;;  %v11153_v30 = vld [vmem:[%s13803_s25] ss:$0 sm:$0xff]  ;;  %v1587_v42 = vld [vmem:[%s15433_s8 + $0x10] sm:$0xff]  ;;  %v1586_v43 = vld [vmem:[%s15433_s8 + $0x8] sm:$0xff]  ;;  %s15463_s7 = sld [smem:[#allocation26_spill]] }
  0xce   : > { %12158 = vmatpush3.msra.mxu0 %v1221_v2  ;;  %v1585_v44 = vld [vmem:[%s15433_s8] sm:$0xff]  ;;  %v1677_v45 = vld [vmem:[%s13828_s19 + $0x38] sm:$0xff]  ;;  %v1676_v46 = vld [vmem:[%s13828_s19 + $0x30] sm:$0xff]  ;;  %s15465_s16 = sld [smem:[#allocation27_spill]]  ;;  %p15497_p10 = scmp.ne.s32.totalorder %s15439_s22, 0 }
  0xcf   : > { %s1208_s15 = scalar_lea.vmem %s15460_s5, %s11146_s26  ;;  %12159 = vmatprep.subr.mxu0 %v13765_v0  ;;  %v1675_v47 = vld [vmem:[%s13828_s19 + $0x28] sm:$0xff]  ;;  %v1674_v48 = vld [vmem:[%s13828_s19 + $0x20] sm:$0xff]  ;;  %v1673_v49 = vld [vmem:[%s13828_s19 + $0x18] sm:$0xff]  ;;  %s15466_s4 = sld [smem:[#allocation28_spill]] }
  0xd0   : > { %12160 = vmatpush3.msra.mxu0 %v1220_v3  ;;  %v1218_v5 = vld [vmem:[%s1208_s15] sm:$0xff]  ;;  %v1672_v59 = vld [vmem:[%s13828_s19 + $0x10] sm:$0xff]  ;;  %v1671_v60 = vld [vmem:[%s13828_s19 + $0x8] sm:$0xff]  ;;  %s15467_s10 = sld [smem:[#allocation29_spill]] }
  0xd1   : > { %12161 = vmatprep.subr.mxu0 %v13765_v0  ;;  %v11155_v54 = vld [vmem:[%s13808_s29] ss:$0 sm:$0xff]  ;;  %s15468_s15 = sld [smem:[#allocation30_spill]] }
  0xd2   : > { %12162 = vmatpush3.msra.mxu0 %v1219_v4  ;;  %s15462_s20 = smov %s15461_s2  ;;  %v11156_v56 = vld [vmem:[%s15461_s2] ss:$0 sm:$0xff]  ;;  %s15469_s2 = sld [smem:[#allocation21_spill]] }
  0xd3   : > { %12164 = vmatmul.mubr.msk.f32.vlgmr.msra.gmra.mxu0 %vm1230_vm1, %v1218_v5  ;;  %12176 = vmatprep.subr.mxu0 %v13765_v0  ;;  %s15464_s18 = smov %s15463_s7  ;;  %v1670_v61 = vld [vmem:[%s13828_s19] sm:$0xff]  ;;  %s15470_s28 = sld [smem:[#allocation31_spill]] }
  0xd4   : > { %12184 = vmatprep.mubr.msk.f32.mxu0 %vm13766_vm0, %v13765_v0  ;;  %12177 = vmatpush3.msra.mxu0 %v1473_v20  ;;  %v11157_v62 = vld [vmem:[%s15463_s7] ss:$0 sm:$0xff] }
  0xd5   : > { %12178 = vmatprep.subr.mxu0 %v13765_v0  ;;  %v11159_v4 = vld [vmem:[%s15465_s16] ss:$0 sm:$0xff] }
  0xd6   : > { %12179 = vmatpush3.msra.mxu0 %v1472_v21 }
  0xd7   : > { %12180 = vmatprep.subr.mxu0 %v13765_v0 }
  0xd8   : > { %12181 = vmatpush3.msra.mxu0 %v1471_v22  ;;  %s1212_s7 = scalar_lea.vmem %s15469_s2, %s11146_s26  ;;  %s15474_s2 = sld [smem:[#allocation32_spill]] }
  0xd9   : > { %12182 = vmatprep.subr.mxu0 %v13765_v0  ;;  %s15471_s26 = smov %s15470_s28 }
  0xda   : > { %12183 = vmatpush3.msra.mxu0 %v1470_v27 }
  0xdb   : > { %12198 = vmatprep.subr.mxu0 %v13765_v0 }
 0x193   : > { %v1300_v7 = vpop.f32.mrf.mxu0 }
 0x194   : > { %v1301_v8 = vadd.f32 %v11148_v6, %v1300_v7 }
 0x195   : > { %v12165_v9 = vpop.f32.mrf.mxu0 }
 0x196   : > { %1305 = vrot.lane.b32.xlu0 %v1301_v8, %s15384_s11 }
 0x208   : > { %v1306_v10 = vpop.permute.xlu0 %1305 }
 0x209   : > { %12167 = vmatpush3.xpose.msk.msra.mxu1 %vm1230_vm1, %v1306_v10 }
 0x20a   : > { %12171 = vmatprep.subr.mxu1 %v13765_v0 }
 0x20c   : > { %12169 = vmatmul.mubr.msk.f32.vlgmr.msra.gmra.mxu1 %vm1230_vm1, %v1301_v8 }
 0x20d   : > { %12173 = vmatprep.mubr.msk.f32.mxu1 %vm13766_vm0, %v13765_v0 }
 0x2cc   : > { %v1377_v11 = vpop.f32.mrf.mxu1 }
 0x2cd   : > { %v1381_v12 = vmul.f32 0.17677669, %v1377_v11 }
 0x2ce   : > { %v12170_v13 = vpop.f32.mrf.mxu1 }
 0x2cf   : > { %v1383_v14 = vsel %vm1382_vm2, %v1381_v12, -inf }
 0x2d0   : > { %1384 = vmax.xlane.f32.xlu0 %v1383_v14 }
 0x359   : > { %v1385_v15 = vpop.xlane.xlu0 %1384 }
 0x35a   : > { %v1386_v16 = vsub.f32 %v1381_v12, %v1385_v15  ;;  %v11166_v15 = vld [vmem:[%s15432_s13 + $0x38] sm:$0xff] }
 0x35c   : > { %v1387_v17 = vmul.f32 1.442695, %v1386_v16  ;;  %v11165_v16 = vld [vmem:[%s15432_s13 + $0x30] sm:$0xff] }
 0x35e   : > { %13322 = vpow2.f32 %v1387_v17  ;;  %v11164_v17 = vld [vmem:[%s15432_s13 + $0x28] sm:$0xff] }
 0x36b   : > { %v13323_v18 = vpop.eup %13322 }
 0x36c   : > { %v1389_v19 = vsel %vm1382_vm2, %v13323_v18, 0.0 }
 0x36d   : > { %1390 = vadd.xlane.f32.xlu1 %v1389_v19 }
 0x37e   : > { %1394 = vrot.lane.b32.xlu1 %v1301_v8, %s15386_s23 }
 0x3f6   : > { %v1391_v23 = vpop.xlane.xlu1 %1390 }
 0x3f7   : > { %13324 = vrcp.f32 %v1391_v23  ;;  %v11161_v23 = vld [vmem:[%s15466_s4] ss:$0 sm:$0xff] }
 0x3fa   : > { %v1395_v24 = vpop.permute.xlu1 %1394 }
 0x3fb   : > { %12172 = vmatpush3.msra.mxu1 %v1395_v24 }
 0x3fc   : > { %12187 = vmatprep.subr.mxu1 %v13765_v0 }
 0x404   : > { %v13325_v25 = vpop.eup %13324 }
 0x405   : > { %v1393_v26 = vmul.f32 %v13325_v25, %v13323_v18  ;;  %v11163_v18 = vld [vmem:[%s15432_s13 + $0x20] sm:$0xff] }
 0x406   : > { %v11162_v25 = vld [vmem:[%s15467_s10] ss:$0 sm:$0xff] }
 0x407   : > { %12174 = vmatmul.mubr.msk.f32.vlgmr.msra.gmra.mxu1 %vm1382_vm2, %v1393_v26 }
 0x408   : > { %12195 = vmatprep.mubr.msk.f32.mxu1 %vm13766_vm0, %v13765_v0  ;;  %12188 = vmatpush3.msra.mxu1 %v1588_v41 }
 0x409   : > { %12189 = vmatprep.subr.mxu1 %v13765_v0 }
 0x40a   : > { %12190 = vmatpush3.msra.mxu1 %v1587_v42  ;;  %v11176_v42 = vld [vmem:[%s13798_s21 + $0x38] sm:$0xff] }
 0x40b   : > { %12191 = vmatprep.subr.mxu1 %v13765_v0 }
 0x40c   : > { %12192 = vmatpush3.msra.mxu1 %v1586_v43  ;;  %v11175_v43 = vld [vmem:[%s13798_s21 + $0x30] sm:$0xff] }
 0x40d   : > { %12193 = vmatprep.subr.mxu1 %v13765_v0 }
 0x40e   : > { %12194 = vmatpush3.msra.mxu1 %v1585_v44  ;;  %v11174_v44 = vld [vmem:[%s13798_s21 + $0x28] sm:$0xff] }
 0x40f   : > { %12217 = vmatprep.subr.mxu1 %v13765_v0 }
 0x4c7   : > { %v1466_v28 = vpop.f32.mrf.mxu1 }
 0x4c8   : > { %12185 = vmatmul.mubr.msk.f32.vlgmr.msra.gmra.mxu0 %vm1230_vm1, %v1466_v28  ;;  %v11168_v28 = vld [vmem:[%s15431_s17 + $0x1] ss:$0 sm:$0xff] }
 0x4c9   : > { %v12175_v29 = vpop.f32.mrf.mxu1  ;;  %12214 = vmatprep.mubr.msk.f32.mxu0 %vm13766_vm0, %v13765_v0  ;;  %12199 = vmatpush3.msra.mxu0 %v1677_v45 }
 0x4ca   : > { %12200 = vmatprep.subr.mxu0 %v13765_v0 }
 0x4cb   : > { %12201 = vmatpush3.msra.mxu0 %v1676_v46 }
 0x4cc   : > { %12202 = vmatprep.subr.mxu0 %v13765_v0 }
 0x4cd   : > { %12203 = vmatpush3.msra.mxu0 %v1675_v47 }
 0x4ce   : > { %12204 = vmatprep.subr.mxu0 %v13765_v0 }
 0x4cf   : > { %12205 = vmatpush3.msra.mxu0 %v1674_v48 }
 0x4d0   : > { %12206 = vmatprep.subr.mxu0 %v13765_v0 }
 0x4d1   : > { %12207 = vmatpush3.msra.mxu0 %v1673_v49  ;;  %v11173_v49 = vld [vmem:[%s13798_s21 + $0x20] sm:$0xff] }
 0x4d2   : > { %12208 = vmatprep.subr.mxu0 %v13765_v0 }
 0x4d3   : > { %12209 = vmatpush3.msra.mxu0 %v1672_v59 }
 0x4d4   : > { %12210 = vmatprep.subr.mxu0 %v13765_v0 }
 0x4d5   : > { %12211 = vmatpush3.msra.mxu0 %v1671_v60 }
 0x4d6   : > { %12212 = vmatprep.subr.mxu0 %v13765_v0 }
 0x4d7   : > { %12213 = vmatpush3.msra.mxu0 %v1670_v61 }
 0x4d8   : > { %12238 = vmatprep.subr.mxu0 %v13765_v0 }
 0x588   : > { %v1550_v31 = vpop.f32.mrf.mxu0 }
 0x589   : > { %v1551_v32 = vadd.f32 %v11153_v30, %v1550_v31 }
 0x58a   : > { %v12186_v33 = vpop.f32.mrf.mxu0 }
 0x58b   : > { %v1554_v34 = vadd.f32 %v1551_v32, %v1218_v5 }
 0x58d   : > { %v1557_v35 = vsel %vm1230_vm1, %v1554_v34, 0.0 }
 0x58e   : > { %1558 = vadd.xlane.f32.xlu1 %v1557_v35 }
 0x617   : > { %v1559_v36 = vpop.xlane.xlu1 %1558 }
 0x618   : > { %v1561_v37 = vmul.f32 0.03125, %v1559_v36 }
 0x61a   : > { %v1562_v38 = vsub.f32 %v1554_v34, %v1561_v37 }
 0x61c   : > { %v1563_v39 = vmul.f32 %v1562_v38, %v1562_v38 }
 0x61e   : > { %v1564_v40 = vsel %vm1230_vm1, %v1563_v39, 0.0 }
 0x61f   : > { %1565 = vadd.xlane.f32.xlu0 %v1564_v40 }
 0x6a8   : > { %v1566_v50 = vpop.xlane.xlu0 %1565 }
 0x6a9   : > { %v1567_v51 = vmul.f32 0.03125, %v1566_v50 }
 0x6ab   : > { %v1568_v52 = vadd.f32 1e-05, %v1567_v51 }
 0x6ad   : > { %13326 = vrsqrt.f32 %v1568_v52  ;;  %v11178_v52 = vld [vmem:[%s13803_s25 + $0x1] ss:$0 sm:$0xff] }
 0x6ba   : > { %v13327_v53 = vpop.eup %13326 }
 0x6bb   : > { %v1570_v55 = vmul.f32 %v13327_v53, %v1562_v38 }
 0x6bd   : > { %v1577_v57 = vmul.f32 %v11155_v54, %v1570_v55 }
 0x6bf   : > { %v1584_v58 = vadd.f32 %v11156_v56, %v1577_v57 }
 0x6c1   : > { %12196 = vmatmul.mubr.msk.f32.vlgmr.msra.gmra.mxu1 %vm1230_vm1, %v1584_v58 }
 0x6c2   : > { %12225 = vmatprep.mubr.msk.f32.mxu1 %vm13766_vm0, %v13765_v0  ;;  %12218 = vmatpush3.msra.mxu1 %v11166_v15  ;;  %v11183_v15 = vld [vmem:[%s15462_s20 + $0x1] ss:$0 sm:$0xff] }
 0x6c3   : > { %12219 = vmatprep.subr.mxu1 %v13765_v0 }
 0x6c4   : > { %12220 = vmatpush3.msra.mxu1 %v11165_v16 }
 0x6c5   : > { %12221 = vmatprep.subr.mxu1 %v13765_v0 }
 0x6c6   : > { %12222 = vmatpush3.msra.mxu1 %v11164_v17 }
 0x6c7   : > { %12223 = vmatprep.subr.mxu1 %v13765_v0 }
 0x6c8   : > { %12224 = vmatpush3.msra.mxu1 %v11163_v18  ;;  %v11193_v18 = vld [vmem:[%s13828_s19 + $0x50] sm:$0xff] }
 0x6c9   : > { %12228 = vmatprep.subr.mxu1 %v13765_v0 }
 0x781   : > { %v1665_v63 = vpop.f32.mrf.mxu1 }
 0x782   : > { %v1666_v1 = vadd.f32 %v11157_v62, %v1665_v63  ;;  %v11187_v63 = vld [vmem:[%s15433_s8 + $0x38] sm:$0xff] }
 0x783   : > { %v12197_v2 = vpop.f32.mrf.mxu1 }
 0x784   : > { %v1669_v3 = vmax.f32 %v1666_v1, 0.0  ;;  %v11186_v1 = vld [vmem:[%s15433_s8 + $0x30] sm:$0xff]  ;;  %v11185_v2 = vld [vmem:[%s15433_s8 + $0x28] sm:$0xff] }
 0x786   : > { %12215 = vmatmul.mubr.msk.f32.vlgmr.msra.gmra.mxu0 %vm1685_vm3, %v1669_v3  ;;  %v11184_v3 = vld [vmem:[%s15433_s8 + $0x20] sm:$0xff] }
 0x787   : > { %12246 = vmatprep.mubr.msk.f32.mxu0 %vm13766_vm0, %v13765_v0  ;;  %12239 = vmatpush3.msra.mxu0 %v11176_v42 }
 0x788   : > { %12240 = vmatprep.subr.mxu0 %v13765_v0 }
 0x789   : > { %12241 = vmatpush3.msra.mxu0 %v11175_v43 }
 0x78a   : > { %12242 = vmatprep.subr.mxu0 %v13765_v0 }
 0x78b   : > { %12243 = vmatpush3.msra.mxu0 %v11174_v44 }
 0x78c   : > { %12244 = vmatprep.subr.mxu0 %v13765_v0 }
 0x78d   : > { %12245 = vmatpush3.msra.mxu0 %v11173_v49 }
 0x78e   : > { %12260 = vmatprep.subr.mxu0 %v13765_v0 }
 0x846   : > { %v1755_v5 = vpop.f32.mrf.mxu0 }
 0x847   : > { %v1756_v6 = vadd.f32 %v11159_v4, %v1755_v5  ;;  %v11198_v4 = vld [vmem:[%s13828_s19 + $0x78] sm:$0xff]  ;;  %v11197_v5 = vld [vmem:[%s13828_s19 + $0x70] sm:$0xff] }
 0x848   : > { %v12216_v7 = vpop.f32.mrf.mxu0 }
 0x849   : > { %v1759_v8 = vadd.f32 %v1756_v6, %v1584_v58  ;;  %v11196_v6 = vld [vmem:[%s13828_s19 + $0x68] sm:$0xff]  ;;  %v11195_v7 = vld [vmem:[%s13828_s19 + $0x60] sm:$0xff] }
 0x84b   : > { %v1762_v9 = vsel %vm1230_vm1, %v1759_v8, 0.0 }
 0x84c   : > { %1763 = vadd.xlane.f32.xlu0 %v1762_v9 }
 0x8d5   : > { %v1764_v10 = vpop.xlane.xlu0 %1763 }
 0x8d6   : > { %v1765_v11 = vmul.f32 0.03125, %v1764_v10 }
 0x8d8   : > { %v1766_v12 = vsub.f32 %v1759_v8, %v1765_v11  ;;  %v11194_v8 = vld [vmem:[%s13828_s19 + $0x58] sm:$0xff] }
 0x8da   : > { %v1767_v13 = vmul.f32 %v1766_v12, %v1766_v12 }
 0x8dc   : > { %v1768_v14 = vsel %vm1230_vm1, %v1767_v13, 0.0  ;;  %v11182_v13 = vld [vmem:[%s13808_s29 + $0x1] ss:$0 sm:$0xff] }
 0x8dd   : > { %1769 = vadd.xlane.f32.xlu0 %v1768_v14 }
 0x966   : > { %v1770_v19 = vpop.xlane.xlu0 %1769 }
 0x967   : > { %v1771_v20 = vmul.f32 0.03125, %v1770_v19  ;;  %v11192_v19 = vld [vmem:[%s13828_s19 + $0x48] sm:$0xff] }
 0x969   : > { %v1772_v21 = vadd.f32 1e-05, %v1771_v20  ;;  %v11191_v20 = vld [vmem:[%s13828_s19 + $0x40] sm:$0xff] }
 0x96b   : > { %13328 = vrsqrt.f32 %v1772_v21  ;;  %v11189_v21 = vld [vmem:[%s15464_s18 + $0x1] ss:$0 sm:$0xff] }
 0x978   : > { %v13329_v22 = vpop.eup %13328 }
 0x979   : > { %v1774_v24 = vmul.f32 %v13329_v22, %v1766_v12 }
 0x97b   : > { %v1781_v26 = vmul.f32 %v11161_v23, %v1774_v24 }
 0x97d   : > { %v1788_v27 = vadd.f32 %v11162_v25, %v1781_v26  ;;  %v11200_v26 = vld [vmem:[%s15465_s16 + $0x1] ss:$0 sm:$0xff] }
 0x97f   : > { %12226 = vmatmul.mubr.msk.f32.vlgmr.msra.gmra.mxu1 %vm1230_vm1, %v1788_v27 }
 0x980   : > { %12230 = vmatprep.mubr.msk.f32.mxu1 %vm13766_vm0, %v13765_v0 }
 0xa3f   : > { %v1871_v29 = vpop.f32.mrf.mxu1 }
 0xa40   : > { %v1872_v30 = vadd.f32 %v11168_v28, %v1871_v29 }
 0xa41   : > { %v12227_v31 = vpop.f32.mrf.mxu1 }
 0xa42   : > { %1876 = vrot.lane.b32.xlu0 %v1872_v30, %s15384_s11 }
 0xab4   : > { %v1877_v32 = vpop.permute.xlu0 %1876 }
 0xab5   : > { %12229 = vmatpush3.xpose.msk.msra.mxu1 %vm1230_vm1, %v1877_v32 }
 0xab6   : > { %12233 = vmatprep.subr.mxu1 %v13765_v0 }
 0xab8   : > { %12231 = vmatmul.mubr.msk.f32.vlgmr.msra.gmra.mxu1 %vm1230_vm1, %v1872_v30 }
 0xab9   : > { %12235 = vmatprep.mubr.msk.f32.mxu1 %vm13766_vm0, %v13765_v0 }
 0xb78   : > { %v1948_v33 = vpop.f32.mrf.mxu1 }
 0xb79   : > { %v1952_v34 = vmul.f32 0.17677669, %v1948_v33 }
 0xb7a   : > { %v12232_v35 = vpop.f32.mrf.mxu1 }
 0xb7b   : > { %v1953_v36 = vsel %vm1382_vm2, %v1952_v34, -inf }
 0xb7c   : > { %1954 = vmax.xlane.f32.xlu1 %v1953_v36 }
 0xc05   : > { %v1955_v37 = vpop.xlane.xlu1 %1954 }
 0xc06   : > { %v1956_v38 = vsub.f32 %v1952_v34, %v1955_v37  ;;  %v11209_v37 = vld [vmem:[%s15432_s13 + $0x58] sm:$0xff] }
 0xc08   : > { %v1957_v39 = vmul.f32 1.442695, %v1956_v38  ;;  %v11208_v38 = vld [vmem:[%s15432_s13 + $0x50] sm:$0xff] }
 0xc0a   : > { %13330 = vpow2.f32 %v1957_v39  ;;  %v11207_v39 = vld [vmem:[%s15432_s13 + $0x48] sm:$0xff] }
 0xc17   : > { %v13331_v40 = vpop.eup %13330 }
 0xc18   : > { %v1959_v41 = vsel %vm1382_vm2, %v13331_v40, 0.0 }
 0xc19   : > { %1960 = vadd.xlane.f32.xlu1 %v1959_v41 }
 0xc2a   : > { %1964 = vrot.lane.b32.xlu1 %v1872_v30, %s15386_s23 }
 0xca2   : > { %v1961_v45 = vpop.xlane.xlu1 %1960 }
 0xca3   : > { %13332 = vrcp.f32 %v1961_v45  ;;  %v11204_v45 = vld [vmem:[%s15466_s4 + $0x1] ss:$0 sm:$0xff] }
 0xca6   : > { %v1965_v46 = vpop.permute.xlu1 %1964 }
 0xca7   : > { %12234 = vmatpush3.msra.mxu1 %v1965_v46 }
 0xca8   : > { %12249 = vmatprep.subr.mxu1 %v13765_v0 }
 0xcb0   : > { %v13333_v47 = vpop.eup %13332 }
 0xcb1   : > { %v1963_v48 = vmul.f32 %v13333_v47, %v13331_v40  ;;  %v11206_v40 = vld [vmem:[%s15432_s13 + $0x40] sm:$0xff] }
 0xcb2   : > { %v11205_v47 = vld [vmem:[%s15467_s10 + $0x1] ss:$0 sm:$0xff] }
 0xcb3   : > { %12236 = vmatmul.mubr.msk.f32.vlgmr.msra.gmra.mxu1 %vm1382_vm2, %v1963_v48 }
 0xcb4   : > { %12257 = vmatprep.mubr.msk.f32.mxu1 %vm13766_vm0, %v13765_v0  ;;  %12250 = vmatpush3.msra.mxu1 %v11187_v63 }
 0xcb5   : > { %12251 = vmatprep.subr.mxu1 %v13765_v0 }
 0xcb6   : > { %12252 = vmatpush3.msra.mxu1 %v11186_v1  ;;  %v11219_v1 = vld [vmem:[%s13798_s21 + $0x58] sm:$0xff] }
 0xcb7   : > { %12253 = vmatprep.subr.mxu1 %v13765_v0 }
 0xcb8   : > { %12254 = vmatpush3.msra.mxu1 %v11185_v2  ;;  %v11218_v2 = vld [vmem:[%s13798_s21 + $0x50] sm:$0xff] }
 0xcb9   : > { %12255 = vmatprep.subr.mxu1 %v13765_v0 }
 0xcba   : > { %12256 = vmatpush3.msra.mxu1 %v11184_v3  ;;  %v11217_v3 = vld [vmem:[%s13798_s21 + $0x48] sm:$0xff] }
 0xcbb   : > { %12279 = vmatprep.subr.mxu1 %v13765_v0 }
 0xd73   : > { %v2036_v50 = vpop.f32.mrf.mxu1 }
 0xd74   : > { %12247 = vmatmul.mubr.msk.f32.vlgmr.msra.gmra.mxu0 %vm1230_vm1, %v2036_v50  ;;  %v11211_v50 = vld [vmem:[%s15431_s17 + $0x2] ss:$0 sm:$0xff] }
 0xd75   : > { %v12237_v51 = vpop.f32.mrf.mxu1  ;;  %12276 = vmatprep.mubr.msk.f32.mxu0 %vm13766_vm0, %v13765_v0  ;;  %12261 = vmatpush3.msra.mxu0 %v11198_v4 }
 0xd76   : > { %12262 = vmatprep.subr.mxu0 %v13765_v0 }
 0xd77   : > { %12263 = vmatpush3.msra.mxu0 %v11197_v5 }
 0xd78   : > { %12264 = vmatprep.subr.mxu0 %v13765_v0 }
 0xd79   : > { %12265 = vmatpush3.msra.mxu0 %v11196_v6 }
 0xd7a   : > { %12266 = vmatprep.subr.mxu0 %v13765_v0 }
 0xd7b   : > { %12267 = vmatpush3.msra.mxu0 %v11195_v7 }
 0xd7c   : > { %12268 = vmatprep.subr.mxu0 %v13765_v0 }
 0xd7d   : > { %12269 = vmatpush3.msra.mxu0 %v11194_v8  ;;  %v11216_v8 = vld [vmem:[%s13798_s21 + $0x40] sm:$0xff] }
 0xd7e   : > { %12270 = vmatprep.subr.mxu0 %v13765_v0 }
 0xd7f   : > { %12271 = vmatpush3.msra.mxu0 %v11193_v18 }
 0xd80   : > { %12272 = vmatprep.subr.mxu0 %v13765_v0 }
 0xd81   : > { %12273 = vmatpush3.msra.mxu0 %v11192_v19 }
 0xd82   : > { %12274 = vmatprep.subr.mxu0 %v13765_v0 }
 0xd83   : > { %12275 = vmatpush3.msra.mxu0 %v11191_v20 }
 0xd84   : > { %12300 = vmatprep.subr.mxu0 %v13765_v0 }
 0xe34   : > { %v2122_v53 = vpop.f32.mrf.mxu0 }
 0xe35   : > { %v2123_v54 = vadd.f32 %v11178_v52, %v2122_v53 }
 0xe36   : > { %v12248_v55 = vpop.f32.mrf.mxu0 }
 0xe37   : > { %v2126_v56 = vadd.f32 %v2123_v54, %v1788_v27 }
 0xe39   : > { %v2131_v57 = vsel %vm1230_vm1, %v2126_v56, 0.0 }
 0xe3a   : > { %2132 = vadd.xlane.f32.xlu0 %v2131_v57 }
 0xec3   : > { %v2133_v58 = vpop.xlane.xlu0 %2132 }
 0xec4   : > { %v2134_v59 = vmul.f32 0.03125, %v2133_v58 }
 0xec6   : > { %v2135_v60 = vsub.f32 %v2126_v56, %v2134_v59 }
 0xec8   : > { %v2136_v61 = vmul.f32 %v2135_v60, %v2135_v60 }
 0xeca   : > { %v2137_v62 = vsel %vm1230_vm1, %v2136_v61, 0.0 }
 0xecb   : > { %2138 = vadd.xlane.f32.xlu1 %v2137_v62 }
 0xf54   : > { %v2139_v9 = vpop.xlane.xlu1 %2138 }
 0xf55   : > { %v2140_v10 = vmul.f32 0.03125, %v2139_v9 }
 0xf57   : > { %v2141_v11 = vadd.f32 1e-05, %v2140_v10 }
 0xf59   : > { %13334 = vrsqrt.f32 %v2141_v11  ;;  %v11221_v11 = vld [vmem:[%s13803_s25 + $0x2] ss:$0 sm:$0xff] }
 0xf66   : > { %v13335_v12 = vpop.eup %13334 }
 0xf67   : > { %v2143_v14 = vmul.f32 %v13335_v12, %v2135_v60 }
 0xf69   : > { %v2150_v16 = vmul.f32 %v11182_v13, %v2143_v14 }
 0xf6b   : > { %v2157_v17 = vadd.f32 %v11183_v15, %v2150_v16 }
 0xf6d   : > { %12258 = vmatmul.mubr.msk.f32.vlgmr.msra.gmra.mxu1 %vm1230_vm1, %v2157_v17 }
 0xf6e   : > { %12287 = vmatprep.mubr.msk.f32.mxu1 %vm13766_vm0, %v13765_v0  ;;  %12280 = vmatpush3.msra.mxu1 %v11209_v37  ;;  %v11226_v37 = vld [vmem:[%s15462_s20 + $0x2] ss:$0 sm:$0xff] }
 0xf6f   : > { %12281 = vmatprep.subr.mxu1 %v13765_v0 }
 0xf70   : > { %12282 = vmatpush3.msra.mxu1 %v11208_v38 }
 0xf71   : > { %12283 = vmatprep.subr.mxu1 %v13765_v0 }
 0xf72   : > { %12284 = vmatpush3.msra.mxu1 %v11207_v39 }
 0xf73   : > { %12285 = vmatprep.subr.mxu1 %v13765_v0 }
 0xf74   : > { %12286 = vmatpush3.msra.mxu1 %v11206_v40  ;;  %v11236_v40 = vld [vmem:[%s13828_s19 + $0x90] sm:$0xff] }
 0xf75   : > { %12290 = vmatprep.subr.mxu1 %v13765_v0 }
0x102d   : > { %v2240_v22 = vpop.f32.mrf.mxu1 }
0x102e   : > { %v2241_v23 = vadd.f32 %v11189_v21, %v2240_v22  ;;  %v11230_v22 = vld [vmem:[%s15433_s8 + $0x58] sm:$0xff] }
0x102f   : > { %v12259_v24 = vpop.f32.mrf.mxu1 }
0x1030   : > { %v2244_v25 = vmax.f32 %v2241_v23, 0.0  ;;  %v11229_v23 = vld [vmem:[%s15433_s8 + $0x50] sm:$0xff]  ;;  %v11228_v24 = vld [vmem:[%s15433_s8 + $0x48] sm:$0xff] }
0x1032   : > { %12277 = vmatmul.mubr.msk.f32.vlgmr.msra.gmra.mxu0 %vm1685_vm3, %v2244_v25  ;;  %v11227_v25 = vld [vmem:[%s15433_s8 + $0x40] sm:$0xff] }
0x1033   : > { %12308 = vmatprep.mubr.msk.f32.mxu0 %vm13766_vm0, %v13765_v0  ;;  %12301 = vmatpush3.msra.mxu0 %v11219_v1 }
0x1034   : > { %12302 = vmatprep.subr.mxu0 %v13765_v0 }
0x1035   : > { %12303 = vmatpush3.msra.mxu0 %v11218_v2 }
0x1036   : > { %12304 = vmatprep.subr.mxu0 %v13765_v0 }
0x1037   : > { %12305 = vmatpush3.msra.mxu0 %v11217_v3 }
0x1038   : > { %12306 = vmatprep.subr.mxu0 %v13765_v0 }
0x1039   : > { %12307 = vmatpush3.msra.mxu0 %v11216_v8 }
0x103a   : > { %12322 = vmatprep.subr.mxu0 %v13765_v0 }
0x10f2   : > { %v2331_v27 = vpop.f32.mrf.mxu0 }
0x10f3   : > { %v2332_v28 = vadd.f32 %v11200_v26, %v2331_v27  ;;  %v11241_v26 = vld [vmem:[%s13828_s19 + $0xb8] sm:$0xff]  ;;  %v11240_v27 = vld [vmem:[%s13828_s19 + $0xb0] sm:$0xff] }
0x10f4   : > { %v12278_v29 = vpop.f32.mrf.mxu0 }
0x10f5   : > { %v2335_v30 = vadd.f32 %v2332_v28, %v2157_v17  ;;  %v11239_v28 = vld [vmem:[%s13828_s19 + $0xa8] sm:$0xff]  ;;  %v11238_v29 = vld [vmem:[%s13828_s19 + $0xa0] sm:$0xff] }
0x10f7   : > { %v2340_v31 = vsel %vm1230_vm1, %v2335_v30, 0.0 }
0x10f8   : > { %2341 = vadd.xlane.f32.xlu0 %v2340_v31 }
0x1181   : > { %v2342_v32 = vpop.xlane.xlu0 %2341 }
0x1182   : > { %v2343_v33 = vmul.f32 0.03125, %v2342_v32 }
0x1184   : > { %v2344_v34 = vsub.f32 %v2335_v30, %v2343_v33  ;;  %v11237_v30 = vld [vmem:[%s13828_s19 + $0x98] sm:$0xff] }
0x1186   : > { %v2345_v35 = vmul.f32 %v2344_v34, %v2344_v34 }
0x1188   : > { %v2346_v36 = vsel %vm1230_vm1, %v2345_v35, 0.0  ;;  %v11225_v35 = vld [vmem:[%s13808_s29 + $0x2] ss:$0 sm:$0xff] }
0x1189   : > { %2347 = vadd.xlane.f32.xlu0 %v2346_v36 }
0x1212   : > { %v2348_v41 = vpop.xlane.xlu0 %2347 }
0x1213   : > { %v2349_v42 = vmul.f32 0.03125, %v2348_v41  ;;  %v11235_v41 = vld [vmem:[%s13828_s19 + $0x88] sm:$0xff] }
0x1215   : > { %v2350_v43 = vadd.f32 1e-05, %v2349_v42  ;;  %v11234_v42 = vld [vmem:[%s13828_s19 + $0x80] sm:$0xff] }
0x1217   : > { %13336 = vrsqrt.f32 %v2350_v43  ;;  %v11232_v43 = vld [vmem:[%s15464_s18 + $0x2] ss:$0 sm:$0xff] }
0x1224   : > { %v13337_v44 = vpop.eup %13336 }
0x1225   : > { %v2352_v46 = vmul.f32 %v13337_v44, %v2344_v34 }
0x1227   : > { %v2359_v48 = vmul.f32 %v11204_v45, %v2352_v46 }
0x1229   : > { %v2366_v49 = vadd.f32 %v11205_v47, %v2359_v48  ;;  %v11243_v48 = vld [vmem:[%s15465_s16 + $0x2] ss:$0 sm:$0xff] }
0x122b   : > { %12288 = vmatmul.mubr.msk.f32.vlgmr.msra.gmra.mxu1 %vm1230_vm1, %v2366_v49 }
0x122c   : > { %12292 = vmatprep.mubr.msk.f32.mxu1 %vm13766_vm0, %v13765_v0 }
0x12eb   : > { %v2449_v51 = vpop.f32.mrf.mxu1 }
0x12ec   : > { %v2450_v52 = vadd.f32 %v11211_v50, %v2449_v51 }
0x12ed   : > { %v12289_v53 = vpop.f32.mrf.mxu1 }
0x12ee   : > { %2454 = vrot.lane.b32.xlu0 %v2450_v52, %s15384_s11 }
0x1360   : > { %v2455_v54 = vpop.permute.xlu0 %2454 }
0x1361   : > { %12291 = vmatpush3.xpose.msk.msra.mxu1 %vm1230_vm1, %v2455_v54 }
0x1362   : > { %12295 = vmatprep.subr.mxu1 %v13765_v0 }
0x1364   : > { %12293 = vmatmul.mubr.msk.f32.vlgmr.msra.gmra.mxu1 %vm1230_vm1, %v2450_v52 }
0x1365   : > { %12297 = vmatprep.mubr.msk.f32.mxu1 %vm13766_vm0, %v13765_v0 }
0x1424   : > { %v2526_v55 = vpop.f32.mrf.mxu1 }
0x1425   : > { %v2530_v56 = vmul.f32 0.17677669, %v2526_v55 }
0x1426   : > { %v12294_v57 = vpop.f32.mrf.mxu1 }
0x1427   : > { %v2531_v58 = vsel %vm1382_vm2, %v2530_v56, -inf }
0x1428   : > { %2532 = vmax.xlane.f32.xlu1 %v2531_v58 }
0x14b1   : > { %v2533_v59 = vpop.xlane.xlu1 %2532 }
0x14b2   : > { %v2534_v60 = vsub.f32 %v2530_v56, %v2533_v59  ;;  %v11252_v59 = vld [vmem:[%s15432_s13 + $0x78] sm:$0xff] }
0x14b4   : > { %v2535_v61 = vmul.f32 1.442695, %v2534_v60  ;;  %v11251_v60 = vld [vmem:[%s15432_s13 + $0x70] sm:$0xff] }
0x14b6   : > { %13338 = vpow2.f32 %v2535_v61  ;;  %v11250_v61 = vld [vmem:[%s15432_s13 + $0x68] sm:$0xff] }
0x14c3   : > { %v13339_v62 = vpop.eup %13338 }
0x14c4   : > { %v2537_v63 = vsel %vm1382_vm2, %v13339_v62, 0.0 }
0x14c5   : > { %2538 = vadd.xlane.f32.xlu1 %v2537_v63 }
0x14d6   : > { %2542 = vrot.lane.b32.xlu1 %v2450_v52, %s15386_s23 }
0x154e   : > { %v2539_v4 = vpop.xlane.xlu1 %2538 }
0x154f   : > { %13340 = vrcp.f32 %v2539_v4  ;;  %v11247_v4 = vld [vmem:[%s15466_s4 + $0x2] ss:$0 sm:$0xff] }
0x1552   : > { %v2543_v5 = vpop.permute.xlu1 %2542 }
0x1553   : > { %12296 = vmatpush3.msra.mxu1 %v2543_v5 }
0x1554   : > { %12311 = vmatprep.subr.mxu1 %v13765_v0 }
0x155c   : > { %v13341_v6 = vpop.eup %13340 }
0x155d   : > { %v2541_v7 = vmul.f32 %v13341_v6, %v13339_v62  ;;  %v11249_v62 = vld [vmem:[%s15432_s13 + $0x60] sm:$0xff] }
0x155e   : > { %v11248_v6 = vld [vmem:[%s15467_s10 + $0x2] ss:$0 sm:$0xff] }
0x155f   : > { %12298 = vmatmul.mubr.msk.f32.vlgmr.msra.gmra.mxu1 %vm1382_vm2, %v2541_v7 }
0x1560   : > { %12319 = vmatprep.mubr.msk.f32.mxu1 %vm13766_vm0, %v13765_v0  ;;  %12312 = vmatpush3.msra.mxu1 %v11230_v22 }
0x1561   : > { %12313 = vmatprep.subr.mxu1 %v13765_v0 }
0x1562   : > { %12314 = vmatpush3.msra.mxu1 %v11229_v23  ;;  %v11262_v23 = vld [vmem:[%s13798_s21 + $0x78] sm:$0xff] }
0x1563   : > { %12315 = vmatprep.subr.mxu1 %v13765_v0 }
0x1564   : > { %12316 = vmatpush3.msra.mxu1 %v11228_v24  ;;  %v11261_v24 = vld [vmem:[%s13798_s21 + $0x70] sm:$0xff] }
0x1565   : > { %12317 = vmatprep.subr.mxu1 %v13765_v0 }
0x1566   : > { %12318 = vmatpush3.msra.mxu1 %v11227_v25  ;;  %v11260_v25 = vld [vmem:[%s13798_s21 + $0x68] sm:$0xff] }
0x1567   : > { %12341 = vmatprep.subr.mxu1 %v13765_v0 }
0x161f   : > { %v2614_v9 = vpop.f32.mrf.mxu1 }
0x1620   : > { %12309 = vmatmul.mubr.msk.f32.vlgmr.msra.gmra.mxu0 %vm1230_vm1, %v2614_v9  ;;  %v11254_v9 = vld [vmem:[%s15431_s17 + $0x3] ss:$0 sm:$0xff] }
0x1621   : > { %v12299_v10 = vpop.f32.mrf.mxu1  ;;  %12338 = vmatprep.mubr.msk.f32.mxu0 %vm13766_vm0, %v13765_v0  ;;  %12323 = vmatpush3.msra.mxu0 %v11241_v26 }
0x1622   : > { %12324 = vmatprep.subr.mxu0 %v13765_v0 }
0x1623   : > { %12325 = vmatpush3.msra.mxu0 %v11240_v27 }
0x1624   : > { %12326 = vmatprep.subr.mxu0 %v13765_v0 }
0x1625   : > { %12327 = vmatpush3.msra.mxu0 %v11239_v28 }
0x1626   : > { %12328 = vmatprep.subr.mxu0 %v13765_v0 }
0x1627   : > { %12329 = vmatpush3.msra.mxu0 %v11238_v29 }
0x1628   : > { %12330 = vmatprep.subr.mxu0 %v13765_v0 }
0x1629   : > { %12331 = vmatpush3.msra.mxu0 %v11237_v30  ;;  %v11259_v30 = vld [vmem:[%s13798_s21 + $0x60] sm:$0xff] }
0x162a   : > { %12332 = vmatprep.subr.mxu0 %v13765_v0 }
0x162b   : > { %12333 = vmatpush3.msra.mxu0 %v11236_v40 }
0x162c   : > { %12334 = vmatprep.subr.mxu0 %v13765_v0 }
0x162d   : > { %12335 = vmatpush3.msra.mxu0 %v11235_v41 }
0x162e   : > { %12336 = vmatprep.subr.mxu0 %v13765_v0 }
0x162f   : > { %12337 = vmatpush3.msra.mxu0 %v11234_v42 }
0x1630   : > { %12362 = vmatprep.subr.mxu0 %v13765_v0 }
0x16e0   : > { %v2700_v12 = vpop.f32.mrf.mxu0 }
0x16e1   : > { %v2701_v13 = vadd.f32 %v11221_v11, %v2700_v12 }
0x16e2   : > { %v12310_v14 = vpop.f32.mrf.mxu0 }
0x16e3   : > { %v2704_v15 = vadd.f32 %v2701_v13, %v2366_v49 }
0x16e5   : > { %v2709_v16 = vsel %vm1230_vm1, %v2704_v15, 0.0 }
0x16e6   : > { %2710 = vadd.xlane.f32.xlu0 %v2709_v16 }
0x176f   : > { %v2711_v17 = vpop.xlane.xlu0 %2710 }
0x1770   : > { %v2712_v18 = vmul.f32 0.03125, %v2711_v17 }
0x1772   : > { %v2713_v19 = vsub.f32 %v2704_v15, %v2712_v18 }
0x1774   : > { %v2714_v20 = vmul.f32 %v2713_v19, %v2713_v19 }
0x1776   : > { %v2715_v21 = vsel %vm1230_vm1, %v2714_v20, 0.0 }
0x1777   : > { %2716 = vadd.xlane.f32.xlu1 %v2715_v21 }
0x1800   : > { %v2717_v31 = vpop.xlane.xlu1 %2716 }
0x1801   : > { %v2718_v32 = vmul.f32 0.03125, %v2717_v31 }
0x1803   : > { %v2719_v33 = vadd.f32 1e-05, %v2718_v32 }
0x1805   : > { %13342 = vrsqrt.f32 %v2719_v33  ;;  %v11264_v33 = vld [vmem:[%s13803_s25 + $0x3] ss:$0 sm:$0xff] }
0x1812   : > { %v13343_v34 = vpop.eup %13342 }
0x1813   : > { %v2721_v36 = vmul.f32 %v13343_v34, %v2713_v19 }
0x1815   : > { %v2728_v38 = vmul.f32 %v11225_v35, %v2721_v36 }
0x1817   : > { %v2735_v39 = vadd.f32 %v11226_v37, %v2728_v38 }
0x1819   : > { %12320 = vmatmul.mubr.msk.f32.vlgmr.msra.gmra.mxu1 %vm1230_vm1, %v2735_v39 }
0x181a   : > { %12349 = vmatprep.mubr.msk.f32.mxu1 %vm13766_vm0, %v13765_v0  ;;  %12342 = vmatpush3.msra.mxu1 %v11252_v59  ;;  %v11269_v59 = vld [vmem:[%s15462_s20 + $0x3] ss:$0 sm:$0xff] }
0x181b   : > { %12343 = vmatprep.subr.mxu1 %v13765_v0 }
0x181c   : > { %12344 = vmatpush3.msra.mxu1 %v11251_v60 }
0x181d   : > { %12345 = vmatprep.subr.mxu1 %v13765_v0 }
0x181e   : > { %12346 = vmatpush3.msra.mxu1 %v11250_v61 }
0x181f   : > { %12347 = vmatprep.subr.mxu1 %v13765_v0 }
0x1820   : > { %12348 = vmatpush3.msra.mxu1 %v11249_v62  ;;  %v11279_v62 = vld [vmem:[%s13828_s19 + $0xd0] sm:$0xff] }
0x1821   : > { %12352 = vmatprep.subr.mxu1 %v13765_v0 }
0x18d9   : > { %v2818_v44 = vpop.f32.mrf.mxu1 }
0x18da   : > { %v2819_v45 = vadd.f32 %v11232_v43, %v2818_v44  ;;  %v11273_v44 = vld [vmem:[%s15433_s8 + $0x78] sm:$0xff] }
0x18db   : > { %v12321_v46 = vpop.f32.mrf.mxu1 }
0x18dc   : > { %v2822_v47 = vmax.f32 %v2819_v45, 0.0  ;;  %v11272_v45 = vld [vmem:[%s15433_s8 + $0x70] sm:$0xff]  ;;  %v11271_v46 = vld [vmem:[%s15433_s8 + $0x68] sm:$0xff] }
0x18de   : > { %12339 = vmatmul.mubr.msk.f32.vlgmr.msra.gmra.mxu0 %vm1685_vm3, %v2822_v47  ;;  %v11270_v47 = vld [vmem:[%s15433_s8 + $0x60] sm:$0xff] }
0x18df   : > { %12370 = vmatprep.mubr.msk.f32.mxu0 %vm13766_vm0, %v13765_v0  ;;  %12363 = vmatpush3.msra.mxu0 %v11262_v23 }
0x18e0   : > { %12364 = vmatprep.subr.mxu0 %v13765_v0 }
0x18e1   : > { %12365 = vmatpush3.msra.mxu0 %v11261_v24 }
0x18e2   : > { %12366 = vmatprep.subr.mxu0 %v13765_v0 }
0x18e3   : > { %12367 = vmatpush3.msra.mxu0 %v11260_v25 }
0x18e4   : > { %12368 = vmatprep.subr.mxu0 %v13765_v0 }
0x18e5   : > { %12369 = vmatpush3.msra.mxu0 %v11259_v30 }
0x18e6   : > { %12384 = vmatprep.subr.mxu0 %v13765_v0 }
0x199e   : > { %v2909_v49 = vpop.f32.mrf.mxu0 }
0x199f   : > { %v2910_v50 = vadd.f32 %v11243_v48, %v2909_v49  ;;  %v11284_v48 = vld [vmem:[%s13828_s19 + $0xf8] sm:$0xff]  ;;  %v11283_v49 = vld [vmem:[%s13828_s19 + $0xf0] sm:$0xff] }
0x19a0   : > { %v12340_v51 = vpop.f32.mrf.mxu0 }
0x19a1   : > { %v2913_v52 = vadd.f32 %v2910_v50, %v2735_v39  ;;  %v11282_v50 = vld [vmem:[%s13828_s19 + $0xe8] sm:$0xff]  ;;  %v11281_v51 = vld [vmem:[%s13828_s19 + $0xe0] sm:$0xff] }
0x19a3   : > { %v2918_v53 = vsel %vm1230_vm1, %v2913_v52, 0.0 }
0x19a4   : > { %2919 = vadd.xlane.f32.xlu0 %v2918_v53 }
0x1a2d   : > { %v2920_v54 = vpop.xlane.xlu0 %2919 }
0x1a2e   : > { %v2921_v55 = vmul.f32 0.03125, %v2920_v54 }
0x1a30   : > { %v2922_v56 = vsub.f32 %v2913_v52, %v2921_v55  ;;  %v11280_v52 = vld [vmem:[%s13828_s19 + $0xd8] sm:$0xff] }
0x1a32   : > { %v2923_v57 = vmul.f32 %v2922_v56, %v2922_v56 }
0x1a34   : > { %v2924_v58 = vsel %vm1230_vm1, %v2923_v57, 0.0  ;;  %v11268_v57 = vld [vmem:[%s13808_s29 + $0x3] ss:$0 sm:$0xff] }
0x1a35   : > { %2925 = vadd.xlane.f32.xlu0 %v2924_v58 }
0x1abe   : > { %v2926_v63 = vpop.xlane.xlu0 %2925 }
0x1abf   : > { %v2927_v1 = vmul.f32 0.03125, %v2926_v63  ;;  %v11278_v63 = vld [vmem:[%s13828_s19 + $0xc8] sm:$0xff] }
0x1ac1   : > { %v2928_v2 = vadd.f32 1e-05, %v2927_v1  ;;  %v11277_v1 = vld [vmem:[%s13828_s19 + $0xc0] sm:$0xff] }
0x1ac3   : > { %13344 = vrsqrt.f32 %v2928_v2  ;;  %v11275_v2 = vld [vmem:[%s15464_s18 + $0x3] ss:$0 sm:$0xff] }
0x1ad0   : > { %v13345_v3 = vpop.eup %13344 }
0x1ad1   : > { %v2930_v5 = vmul.f32 %v13345_v3, %v2922_v56 }
0x1ad3   : > { %v2937_v7 = vmul.f32 %v11247_v4, %v2930_v5 }
0x1ad5   : > { %v2944_v8 = vadd.f32 %v11248_v6, %v2937_v7  ;;  %v11286_v7 = vld [vmem:[%s15465_s16 + $0x3] ss:$0 sm:$0xff] }
0x1ad7   : > { %12350 = vmatmul.mubr.msk.f32.vlgmr.msra.gmra.mxu1 %vm1230_vm1, %v2944_v8 }
0x1ad8   : > { %12354 = vmatprep.mubr.msk.f32.mxu1 %vm13766_vm0, %v13765_v0 }
0x1b97   : > { %v3027_v10 = vpop.f32.mrf.mxu1 }
0x1b98   : > { %v3028_v11 = vadd.f32 %v11254_v9, %v3027_v10 }
0x1b99   : > { %v12351_v12 = vpop.f32.mrf.mxu1 }
0x1b9a   : > { %3032 = vrot.lane.b32.xlu0 %v3028_v11, %s15384_s11 }
0x1c0c   : > { %v3033_v13 = vpop.permute.xlu0 %3032 }
0x1c0d   : > { %12353 = vmatpush3.xpose.msk.msra.mxu1 %vm1230_vm1, %v3033_v13 }
0x1c0e   : > { %12357 = vmatprep.subr.mxu1 %v13765_v0 }
0x1c10   : > { %12355 = vmatmul.mubr.msk.f32.vlgmr.msra.gmra.mxu1 %vm1230_vm1, %v3028_v11 }
0x1c11   : > { %12359 = vmatprep.mubr.msk.f32.mxu1 %vm13766_vm0, %v13765_v0 }
0x1cd0   : > { %v3104_v14 = vpop.f32.mrf.mxu1 }
0x1cd1   : > { %v3108_v15 = vmul.f32 0.17677669, %v3104_v14 }
0x1cd2   : > { %v12356_v16 = vpop.f32.mrf.mxu1 }
0x1cd3   : > { %v3109_v17 = vsel %vm1382_vm2, %v3108_v15, -inf }
0x1cd4   : > { %3110 = vmax.xlane.f32.xlu1 %v3109_v17 }
0x1d5d   : > { %v3111_v18 = vpop.xlane.xlu1 %3110 }
0x1d5e   : > { %v3112_v19 = vsub.f32 %v3108_v15, %v3111_v18  ;;  %v11295_v18 = vld [vmem:[%s15432_s13 + $0x98] sm:$0xff] }
0x1d60   : > { %v3113_v20 = vmul.f32 1.442695, %v3112_v19  ;;  %v11294_v19 = vld [vmem:[%s15432_s13 + $0x90] sm:$0xff] }
0x1d62   : > { %13346 = vpow2.f32 %v3113_v20  ;;  %v11293_v20 = vld [vmem:[%s15432_s13 + $0x88] sm:$0xff] }
0x1d6f   : > { %v13347_v21 = vpop.eup %13346 }
0x1d70   : > { %v3115_v22 = vsel %vm1382_vm2, %v13347_v21, 0.0 }
0x1d71   : > { %3116 = vadd.xlane.f32.xlu1 %v3115_v22 }
0x1d82   : > { %3120 = vrot.lane.b32.xlu1 %v3028_v11, %s15386_s23 }
0x1dfa   : > { %v3117_v26 = vpop.xlane.xlu1 %3116 }
0x1dfb   : > { %13348 = vrcp.f32 %v3117_v26  ;;  %v11290_v26 = vld [vmem:[%s15466_s4 + $0x3] ss:$0 sm:$0xff] }
0x1dfe   : > { %v3121_v27 = vpop.permute.xlu1 %3120 }
0x1dff   : > { %12358 = vmatpush3.msra.mxu1 %v3121_v27 }
0x1e00   : > { %12373 = vmatprep.subr.mxu1 %v13765_v0 }
0x1e08   : > { %v13349_v28 = vpop.eup %13348 }
0x1e09   : > { %v3119_v29 = vmul.f32 %v13349_v28, %v13347_v21  ;;  %v11292_v21 = vld [vmem:[%s15432_s13 + $0x80] sm:$0xff] }
0x1e0a   : > { %v11291_v28 = vld [vmem:[%s15467_s10 + $0x3] ss:$0 sm:$0xff] }
0x1e0b   : > { %12360 = vmatmul.mubr.msk.f32.vlgmr.msra.gmra.mxu1 %vm1382_vm2, %v3119_v29 }
0x1e0c   : > { %12381 = vmatprep.mubr.msk.f32.mxu1 %vm13766_vm0, %v13765_v0  ;;  %12374 = vmatpush3.msra.mxu1 %v11273_v44 }
0x1e0d   : > { %12375 = vmatprep.subr.mxu1 %v13765_v0 }
0x1e0e   : > { %12376 = vmatpush3.msra.mxu1 %v11272_v45  ;;  %v11305_v45 = vld [vmem:[%s13798_s21 + $0x98] sm:$0xff] }
0x1e0f   : > { %12377 = vmatprep.subr.mxu1 %v13765_v0 }
0x1e10   : > { %12378 = vmatpush3.msra.mxu1 %v11271_v46  ;;  %v11304_v46 = vld [vmem:[%s13798_s21 + $0x90] sm:$0xff] }
0x1e11   : > { %12379 = vmatprep.subr.mxu1 %v13765_v0 }
0x1e12   : > { %12380 = vmatpush3.msra.mxu1 %v11270_v47  ;;  %v11303_v47 = vld [vmem:[%s13798_s21 + $0x88] sm:$0xff] }
0x1e13   : > { %12403 = vmatprep.subr.mxu1 %v13765_v0 }
0x1ecb   : > { %v3192_v31 = vpop.f32.mrf.mxu1 }
0x1ecc   : > { %12371 = vmatmul.mubr.msk.f32.vlgmr.msra.gmra.mxu0 %vm1230_vm1, %v3192_v31  ;;  %v11297_v31 = vld [vmem:[%s15431_s17 + $0x4] ss:$0 sm:$0xff] }
0x1ecd   : > { %v12361_v32 = vpop.f32.mrf.mxu1  ;;  %12400 = vmatprep.mubr.msk.f32.mxu0 %vm13766_vm0, %v13765_v0  ;;  %12385 = vmatpush3.msra.mxu0 %v11284_v48 }
0x1ece   : > { %12386 = vmatprep.subr.mxu0 %v13765_v0 }
0x1ecf   : > { %12387 = vmatpush3.msra.mxu0 %v11283_v49 }
0x1ed0   : > { %12388 = vmatprep.subr.mxu0 %v13765_v0 }
0x1ed1   : > { %12389 = vmatpush3.msra.mxu0 %v11282_v50 }
0x1ed2   : > { %12390 = vmatprep.subr.mxu0 %v13765_v0 }
0x1ed3   : > { %12391 = vmatpush3.msra.mxu0 %v11281_v51 }
0x1ed4   : > { %12392 = vmatprep.subr.mxu0 %v13765_v0 }
0x1ed5   : > { %12393 = vmatpush3.msra.mxu0 %v11280_v52  ;;  %v11302_v52 = vld [vmem:[%s13798_s21 + $0x80] sm:$0xff] }
0x1ed6   : > { %12394 = vmatprep.subr.mxu0 %v13765_v0 }
0x1ed7   : > { %12395 = vmatpush3.msra.mxu0 %v11279_v62 }
0x1ed8   : > { %12396 = vmatprep.subr.mxu0 %v13765_v0 }
0x1ed9   : > { %12397 = vmatpush3.msra.mxu0 %v11278_v63 }
0x1eda   : > { %12398 = vmatprep.subr.mxu0 %v13765_v0 }
0x1edb   : > { %12399 = vmatpush3.msra.mxu0 %v11277_v1 }
0x1edc   : > { %12424 = vmatprep.subr.mxu0 %v13765_v0 }
0x1f8c   : > { %v3278_v34 = vpop.f32.mrf.mxu0 }
0x1f8d   : > { %v3279_v35 = vadd.f32 %v11264_v33, %v3278_v34 }
0x1f8e   : > { %v12372_v36 = vpop.f32.mrf.mxu0 }
0x1f8f   : > { %v3282_v37 = vadd.f32 %v3279_v35, %v2944_v8 }
0x1f91   : > { %v3287_v38 = vsel %vm1230_vm1, %v3282_v37, 0.0 }
0x1f92   : > { %3288 = vadd.xlane.f32.xlu0 %v3287_v38 }
0x201b   : > { %v3289_v39 = vpop.xlane.xlu0 %3288 }
0x201c   : > { %v3290_v40 = vmul.f32 0.03125, %v3289_v39 }
0x201e   : > { %v3291_v41 = vsub.f32 %v3282_v37, %v3290_v40 }
0x2020   : > { %v3292_v42 = vmul.f32 %v3291_v41, %v3291_v41 }
0x2022   : > { %v3293_v43 = vsel %vm1230_vm1, %v3292_v42, 0.0 }
0x2023   : > { %3294 = vadd.xlane.f32.xlu1 %v3293_v43 }
0x20ac   : > { %v3295_v53 = vpop.xlane.xlu1 %3294 }
0x20ad   : > { %v3296_v54 = vmul.f32 0.03125, %v3295_v53 }
0x20af   : > { %v3297_v55 = vadd.f32 1e-05, %v3296_v54 }
0x20b1   : > { %13350 = vrsqrt.f32 %v3297_v55  ;;  %v11307_v55 = vld [vmem:[%s13803_s25 + $0x4] ss:$0 sm:$0xff] }
0x20be   : > { %v13351_v56 = vpop.eup %13350 }
0x20bf   : > { %v3299_v58 = vmul.f32 %v13351_v56, %v3291_v41 }
0x20c1   : > { %v3306_v60 = vmul.f32 %v11268_v57, %v3299_v58 }
0x20c3   : > { %v3313_v61 = vadd.f32 %v11269_v59, %v3306_v60 }
0x20c5   : > { %12382 = vmatmul.mubr.msk.f32.vlgmr.msra.gmra.mxu1 %vm1230_vm1, %v3313_v61 }
0x20c6   : > { %12411 = vmatprep.mubr.msk.f32.mxu1 %vm13766_vm0, %v13765_v0  ;;  %12404 = vmatpush3.msra.mxu1 %v11295_v18  ;;  %v11312_v18 = vld [vmem:[%s15462_s20 + $0x4] ss:$0 sm:$0xff] }
0x20c7   : > { %12405 = vmatprep.subr.mxu1 %v13765_v0 }
0x20c8   : > { %12406 = vmatpush3.msra.mxu1 %v11294_v19 }
0x20c9   : > { %12407 = vmatprep.subr.mxu1 %v13765_v0 }
0x20ca   : > { %12408 = vmatpush3.msra.mxu1 %v11293_v20 }
0x20cb   : > { %12409 = vmatprep.subr.mxu1 %v13765_v0 }
0x20cc   : > { %12410 = vmatpush3.msra.mxu1 %v11292_v21  ;;  %v11322_v21 = vld [vmem:[%s13828_s19 + $0x110] sm:$0xff] }
0x20cd   : > { %12414 = vmatprep.subr.mxu1 %v13765_v0 }
0x2185   : > { %v3396_v3 = vpop.f32.mrf.mxu1 }
0x2186   : > { %v3397_v4 = vadd.f32 %v11275_v2, %v3396_v3  ;;  %v11316_v3 = vld [vmem:[%s15433_s8 + $0x98] sm:$0xff] }
0x2187   : > { %v12383_v5 = vpop.f32.mrf.mxu1 }
0x2188   : > { %v3400_v6 = vmax.f32 %v3397_v4, 0.0  ;;  %v11315_v4 = vld [vmem:[%s15433_s8 + $0x90] sm:$0xff]  ;;  %v11314_v5 = vld [vmem:[%s15433_s8 + $0x88] sm:$0xff] }
0x218a   : > { %12401 = vmatmul.mubr.msk.f32.vlgmr.msra.gmra.mxu0 %vm1685_vm3, %v3400_v6  ;;  %v11313_v6 = vld [vmem:[%s15433_s8 + $0x80] sm:$0xff] }
0x218b   : > { %12432 = vmatprep.mubr.msk.f32.mxu0 %vm13766_vm0, %v13765_v0  ;;  %12425 = vmatpush3.msra.mxu0 %v11305_v45 }
0x218c   : > { %12426 = vmatprep.subr.mxu0 %v13765_v0 }
0x218d   : > { %12427 = vmatpush3.msra.mxu0 %v11304_v46 }
0x218e   : > { %12428 = vmatprep.subr.mxu0 %v13765_v0 }
0x218f   : > { %12429 = vmatpush3.msra.mxu0 %v11303_v47 }
0x2190   : > { %12430 = vmatprep.subr.mxu0 %v13765_v0 }
0x2191   : > { %12431 = vmatpush3.msra.mxu0 %v11302_v52 }
0x2192   : > { %12446 = vmatprep.subr.mxu0 %v13765_v0 }
0x224a   : > { %v3487_v8 = vpop.f32.mrf.mxu0 }
0x224b   : > { %v3488_v9 = vadd.f32 %v11286_v7, %v3487_v8  ;;  %v11327_v7 = vld [vmem:[%s13828_s19 + $0x138] sm:$0xff]  ;;  %v11326_v8 = vld [vmem:[%s13828_s19 + $0x130] sm:$0xff] }
0x224c   : > { %v12402_v10 = vpop.f32.mrf.mxu0 }
0x224d   : > { %v3491_v11 = vadd.f32 %v3488_v9, %v3313_v61  ;;  %v11325_v9 = vld [vmem:[%s13828_s19 + $0x128] sm:$0xff]  ;;  %v11324_v10 = vld [vmem:[%s13828_s19 + $0x120] sm:$0xff] }
0x224f   : > { %v3496_v12 = vsel %vm1230_vm1, %v3491_v11, 0.0 }
0x2250   : > { %3497 = vadd.xlane.f32.xlu0 %v3496_v12 }
0x22d9   : > { %v3498_v13 = vpop.xlane.xlu0 %3497 }
0x22da   : > { %v3499_v14 = vmul.f32 0.03125, %v3498_v13 }
0x22dc   : > { %v3500_v15 = vsub.f32 %v3491_v11, %v3499_v14  ;;  %v11323_v11 = vld [vmem:[%s13828_s19 + $0x118] sm:$0xff] }
0x22de   : > { %v3501_v16 = vmul.f32 %v3500_v15, %v3500_v15 }
0x22e0   : > { %v3502_v17 = vsel %vm1230_vm1, %v3501_v16, 0.0  ;;  %v11311_v16 = vld [vmem:[%s13808_s29 + $0x4] ss:$0 sm:$0xff] }
0x22e1   : > { %3503 = vadd.xlane.f32.xlu0 %v3502_v17 }
0x236a   : > { %v3504_v22 = vpop.xlane.xlu0 %3503 }
0x236b   : > { %v3505_v23 = vmul.f32 0.03125, %v3504_v22  ;;  %v11321_v22 = vld [vmem:[%s13828_s19 + $0x108] sm:$0xff] }
0x236d   : > { %v3506_v24 = vadd.f32 1e-05, %v3505_v23  ;;  %v11320_v23 = vld [vmem:[%s13828_s19 + $0x100] sm:$0xff] }
0x236f   : > { %13352 = vrsqrt.f32 %v3506_v24  ;;  %v11318_v24 = vld [vmem:[%s15464_s18 + $0x4] ss:$0 sm:$0xff] }
0x237c   : > { %v13353_v25 = vpop.eup %13352 }
0x237d   : > { %v3508_v27 = vmul.f32 %v13353_v25, %v3500_v15 }
0x237f   : > { %v3515_v29 = vmul.f32 %v11290_v26, %v3508_v27 }
0x2381   : > { %v3522_v30 = vadd.f32 %v11291_v28, %v3515_v29  ;;  %v11329_v29 = vld [vmem:[%s15465_s16 + $0x4] ss:$0 sm:$0xff] }
0x2383   : > { %12412 = vmatmul.mubr.msk.f32.vlgmr.msra.gmra.mxu1 %vm1230_vm1, %v3522_v30 }
0x2384   : > { %12416 = vmatprep.mubr.msk.f32.mxu1 %vm13766_vm0, %v13765_v0 }
0x2443   : > { %v3605_v32 = vpop.f32.mrf.mxu1 }
0x2444   : > { %v3606_v33 = vadd.f32 %v11297_v31, %v3605_v32 }
0x2445   : > { %v12413_v34 = vpop.f32.mrf.mxu1 }
0x2446   : > { %3610 = vrot.lane.b32.xlu0 %v3606_v33, %s15384_s11 }
0x24b8   : > { %v3611_v35 = vpop.permute.xlu0 %3610 }
0x24b9   : > { %12415 = vmatpush3.xpose.msk.msra.mxu1 %vm1230_vm1, %v3611_v35 }
0x24ba   : > { %12419 = vmatprep.subr.mxu1 %v13765_v0 }
0x24bc   : > { %12417 = vmatmul.mubr.msk.f32.vlgmr.msra.gmra.mxu1 %vm1230_vm1, %v3606_v33 }
0x24bd   : > { %12421 = vmatprep.mubr.msk.f32.mxu1 %vm13766_vm0, %v13765_v0 }
0x257c   : > { %v3682_v36 = vpop.f32.mrf.mxu1 }
0x257d   : > { %v3686_v37 = vmul.f32 0.17677669, %v3682_v36 }
0x257e   : > { %v12418_v38 = vpop.f32.mrf.mxu1 }
0x257f   : > { %v3687_v39 = vsel %vm1382_vm2, %v3686_v37, -inf }
0x2580   : > { %3688 = vmax.xlane.f32.xlu1 %v3687_v39 }
0x2609   : > { %v3689_v40 = vpop.xlane.xlu1 %3688 }
0x260a   : > { %v3690_v41 = vsub.f32 %v3686_v37, %v3689_v40  ;;  %v11338_v40 = vld [vmem:[%s15432_s13 + $0xb8] sm:$0xff] }
0x260c   : > { %v3691_v42 = vmul.f32 1.442695, %v3690_v41  ;;  %v11337_v41 = vld [vmem:[%s15432_s13 + $0xb0] sm:$0xff] }
0x260e   : > { %13354 = vpow2.f32 %v3691_v42  ;;  %v11336_v42 = vld [vmem:[%s15432_s13 + $0xa8] sm:$0xff] }
0x261b   : > { %v13355_v43 = vpop.eup %13354 }
0x261c   : > { %v3693_v44 = vsel %vm1382_vm2, %v13355_v43, 0.0 }
0x261d   : > { %3694 = vadd.xlane.f32.xlu1 %v3693_v44 }
0x262e   : > { %3698 = vrot.lane.b32.xlu1 %v3606_v33, %s15386_s23 }
0x26a6   : > { %v3695_v48 = vpop.xlane.xlu1 %3694 }
0x26a7   : > { %13356 = vrcp.f32 %v3695_v48  ;;  %v11333_v48 = vld [vmem:[%s15466_s4 + $0x4] ss:$0 sm:$0xff] }
0x26aa   : > { %v3699_v49 = vpop.permute.xlu1 %3698 }
0x26ab   : > { %12420 = vmatpush3.msra.mxu1 %v3699_v49 }
0x26ac   : > { %12435 = vmatprep.subr.mxu1 %v13765_v0 }
0x26b4   : > { %v13357_v50 = vpop.eup %13356 }
0x26b5   : > { %v3697_v51 = vmul.f32 %v13357_v50, %v13355_v43  ;;  %v11335_v43 = vld [vmem:[%s15432_s13 + $0xa0] sm:$0xff] }
0x26b6   : > { %v11334_v50 = vld [vmem:[%s15467_s10 + $0x4] ss:$0 sm:$0xff] }
0x26b7   : > { %12422 = vmatmul.mubr.msk.f32.vlgmr.msra.gmra.mxu1 %vm1382_vm2, %v3697_v51 }
0x26b8   : > { %12443 = vmatprep.mubr.msk.f32.mxu1 %vm13766_vm0, %v13765_v0  ;;  %12436 = vmatpush3.msra.mxu1 %v11316_v3 }
0x26b9   : > { %12437 = vmatprep.subr.mxu1 %v13765_v0 }
0x26ba   : > { %12438 = vmatpush3.msra.mxu1 %v11315_v4  ;;  %v11348_v4 = vld [vmem:[%s13798_s21 + $0xb8] sm:$0xff] }
0x26bb   : > { %12439 = vmatprep.subr.mxu1 %v13765_v0 }
0x26bc   : > { %12440 = vmatpush3.msra.mxu1 %v11314_v5  ;;  %v11347_v5 = vld [vmem:[%s13798_s21 + $0xb0] sm:$0xff] }
0x26bd   : > { %12441 = vmatprep.subr.mxu1 %v13765_v0 }
0x26be   : > { %12442 = vmatpush3.msra.mxu1 %v11313_v6  ;;  %v11346_v6 = vld [vmem:[%s13798_s21 + $0xa8] sm:$0xff] }
0x26bf   : > { %12465 = vmatprep.subr.mxu1 %v13765_v0 }
0x2777   : > { %v3770_v53 = vpop.f32.mrf.mxu1 }
0x2778   : > { %12433 = vmatmul.mubr.msk.f32.vlgmr.msra.gmra.mxu0 %vm1230_vm1, %v3770_v53  ;;  %v11340_v53 = vld [vmem:[%s15431_s17 + $0x5] ss:$0 sm:$0xff] }
0x2779   : > { %v12423_v54 = vpop.f32.mrf.mxu1  ;;  %12462 = vmatprep.mubr.msk.f32.mxu0 %vm13766_vm0, %v13765_v0  ;;  %12447 = vmatpush3.msra.mxu0 %v11327_v7 }
0x277a   : > { %12448 = vmatprep.subr.mxu0 %v13765_v0 }
0x277b   : > { %12449 = vmatpush3.msra.mxu0 %v11326_v8 }
0x277c   : > { %12450 = vmatprep.subr.mxu0 %v13765_v0 }
0x277d   : > { %12451 = vmatpush3.msra.mxu0 %v11325_v9 }
0x277e   : > { %12452 = vmatprep.subr.mxu0 %v13765_v0 }
0x277f   : > { %12453 = vmatpush3.msra.mxu0 %v11324_v10 }
0x2780   : > { %12454 = vmatprep.subr.mxu0 %v13765_v0 }
0x2781   : > { %12455 = vmatpush3.msra.mxu0 %v11323_v11  ;;  %v11345_v11 = vld [vmem:[%s13798_s21 + $0xa0] sm:$0xff] }
0x2782   : > { %12456 = vmatprep.subr.mxu0 %v13765_v0 }
0x2783   : > { %12457 = vmatpush3.msra.mxu0 %v11322_v21 }
0x2784   : > { %12458 = vmatprep.subr.mxu0 %v13765_v0 }
0x2785   : > { %12459 = vmatpush3.msra.mxu0 %v11321_v22 }
0x2786   : > { %12460 = vmatprep.subr.mxu0 %v13765_v0 }
0x2787   : > { %12461 = vmatpush3.msra.mxu0 %v11320_v23 }
0x2788   : > { %12486 = vmatprep.subr.mxu0 %v13765_v0 }
0x2838   : > { %v3856_v56 = vpop.f32.mrf.mxu0 }
0x2839   : > { %v3857_v57 = vadd.f32 %v11307_v55, %v3856_v56 }
0x283a   : > { %v12434_v58 = vpop.f32.mrf.mxu0 }
0x283b   : > { %v3860_v59 = vadd.f32 %v3857_v57, %v3522_v30 }
0x283d   : > { %v3865_v60 = vsel %vm1230_vm1, %v3860_v59, 0.0 }
0x283e   : > { %3866 = vadd.xlane.f32.xlu0 %v3865_v60 }
0x28c7   : > { %v3867_v61 = vpop.xlane.xlu0 %3866 }
0x28c8   : > { %v3868_v62 = vmul.f32 0.03125, %v3867_v61 }
0x28ca   : > { %v3869_v63 = vsub.f32 %v3860_v59, %v3868_v62 }
0x28cc   : > { %v3870_v1 = vmul.f32 %v3869_v63, %v3869_v63 }
0x28ce   : > { %v3871_v2 = vsel %vm1230_vm1, %v3870_v1, 0.0 }
0x28cf   : > { %3872 = vadd.xlane.f32.xlu1 %v3871_v2 }
0x2958   : > { %v3873_v12 = vpop.xlane.xlu1 %3872 }
0x2959   : > { %v3874_v13 = vmul.f32 0.03125, %v3873_v12 }
0x295b   : > { %v3875_v14 = vadd.f32 1e-05, %v3874_v13 }
0x295d   : > { %13358 = vrsqrt.f32 %v3875_v14  ;;  %v11350_v14 = vld [vmem:[%s13803_s25 + $0x5] ss:$0 sm:$0xff] }
0x296a   : > { %v13359_v15 = vpop.eup %13358 }
0x296b   : > { %v3877_v17 = vmul.f32 %v13359_v15, %v3869_v63 }
0x296d   : > { %v3884_v19 = vmul.f32 %v11311_v16, %v3877_v17 }
0x296f   : > { %v3891_v20 = vadd.f32 %v11312_v18, %v3884_v19 }
0x2971   : > { %12444 = vmatmul.mubr.msk.f32.vlgmr.msra.gmra.mxu1 %vm1230_vm1, %v3891_v20 }
0x2972   : > { %12473 = vmatprep.mubr.msk.f32.mxu1 %vm13766_vm0, %v13765_v0  ;;  %12466 = vmatpush3.msra.mxu1 %v11338_v40  ;;  %v11355_v40 = vld [vmem:[%s15462_s20 + $0x5] ss:$0 sm:$0xff] }
0x2973   : > { %12467 = vmatprep.subr.mxu1 %v13765_v0 }
0x2974   : > { %12468 = vmatpush3.msra.mxu1 %v11337_v41 }
0x2975   : > { %12469 = vmatprep.subr.mxu1 %v13765_v0 }
0x2976   : > { %12470 = vmatpush3.msra.mxu1 %v11336_v42 }
0x2977   : > { %12471 = vmatprep.subr.mxu1 %v13765_v0 }
0x2978   : > { %12472 = vmatpush3.msra.mxu1 %v11335_v43  ;;  %v4683_v43 = vld [vmem:[%s15468_s15 + $0x18] sm:$0xff] }
0x2979   : > { %12476 = vmatprep.subr.mxu1 %v13765_v0 }
0x2a31   : > { %v3974_v25 = vpop.f32.mrf.mxu1 }
0x2a32   : > { %v3975_v26 = vadd.f32 %v11318_v24, %v3974_v25  ;;  %v11359_v25 = vld [vmem:[%s15433_s8 + $0xb8] sm:$0xff] }
0x2a33   : > { %v12445_v27 = vpop.f32.mrf.mxu1 }
0x2a34   : > { %v3978_v28 = vmax.f32 %v3975_v26, 0.0  ;;  %v11358_v26 = vld [vmem:[%s15433_s8 + $0xb0] sm:$0xff]  ;;  %v11357_v27 = vld [vmem:[%s15433_s8 + $0xa8] sm:$0xff] }
0x2a36   : > { %12463 = vmatmul.mubr.msk.f32.vlgmr.msra.gmra.mxu0 %vm1685_vm3, %v3978_v28  ;;  %v11356_v28 = vld [vmem:[%s15433_s8 + $0xa0] sm:$0xff] }
0x2a37   : > { %12494 = vmatprep.mubr.msk.f32.mxu0 %vm13766_vm0, %v13765_v0  ;;  %12487 = vmatpush3.msra.mxu0 %v11348_v4 }
0x2a38   : > { %12488 = vmatprep.subr.mxu0 %v13765_v0 }
0x2a39   : > { %12489 = vmatpush3.msra.mxu0 %v11347_v5 }
0x2a3a   : > { %12490 = vmatprep.subr.mxu0 %v13765_v0 }
0x2a3b   : > { %12491 = vmatpush3.msra.mxu0 %v11346_v6 }
0x2a3c   : > { %12492 = vmatprep.subr.mxu0 %v13765_v0 }
0x2a3d   : > { %12493 = vmatpush3.msra.mxu0 %v11345_v11 }
0x2a3e   : > { %12508 = vmatprep.subr.mxu0 %v13765_v0 }
0x2af6   : > { %v4065_v30 = vpop.f32.mrf.mxu0 }
0x2af7   : > { %v4066_v31 = vadd.f32 %v11329_v29, %v4065_v30  ;;  %v11370_v29 = vld [vmem:[%s13828_s19 + $0x178] sm:$0xff]  ;;  %v11369_v30 = vld [vmem:[%s13828_s19 + $0x170] sm:$0xff] }
0x2af8   : > { %v12464_v32 = vpop.f32.mrf.mxu0 }
0x2af9   : > { %v4069_v33 = vadd.f32 %v4066_v31, %v3891_v20  ;;  %v11368_v31 = vld [vmem:[%s13828_s19 + $0x168] sm:$0xff]  ;;  %v11367_v32 = vld [vmem:[%s13828_s19 + $0x160] sm:$0xff] }
0x2afb   : > { %v4074_v34 = vsel %vm1230_vm1, %v4069_v33, 0.0 }
0x2afc   : > { %4075 = vadd.xlane.f32.xlu0 %v4074_v34 }
0x2b85   : > { %v4076_v35 = vpop.xlane.xlu0 %4075 }
0x2b86   : > { %v4077_v36 = vmul.f32 0.03125, %v4076_v35 }
0x2b88   : > { %v4078_v37 = vsub.f32 %v4069_v33, %v4077_v36  ;;  %v11366_v33 = vld [vmem:[%s13828_s19 + $0x158] sm:$0xff] }
0x2b8a   : > { %v4079_v38 = vmul.f32 %v4078_v37, %v4078_v37 }
0x2b8c   : > { %v4080_v39 = vsel %vm1230_vm1, %v4079_v38, 0.0  ;;  %v11354_v38 = vld [vmem:[%s13808_s29 + $0x5] ss:$0 sm:$0xff] }
0x2b8d   : > { %4081 = vadd.xlane.f32.xlu0 %v4080_v39 }
0x2c16   : > { %v4082_v44 = vpop.xlane.xlu0 %4081 }
0x2c17   : > { %v4083_v45 = vmul.f32 0.03125, %v4082_v44  ;;  %v4682_v44 = vld [vmem:[%s15468_s15 + $0x10] sm:$0xff] }
0x2c19   : > { %v4084_v46 = vadd.f32 1e-05, %v4083_v45  ;;  %v4681_v45 = vld [vmem:[%s15468_s15 + $0x8] sm:$0xff] }
0x2c1b   : > { %13360 = vrsqrt.f32 %v4084_v46  ;;  %v4680_v46 = vld [vmem:[%s15468_s15] sm:$0xff] }
0x2c28   : > { %v13361_v47 = vpop.eup %13360 }
0x2c29   : > { %v4086_v49 = vmul.f32 %v13361_v47, %v4078_v37  ;;  %v14565_v47 = vld [vmem:[%s1212_s7] sm:$0xff]  ;;  %s15476_s7 = sld [smem:[#allocation33_spill]] }
0x2c2b   : > { %v4093_v51 = vmul.f32 %v11333_v48, %v4086_v49  ;;  %v11365_v48 = vld [vmem:[%s13828_s19 + $0x150] sm:$0xff]  ;;  %v11364_v49 = vld [vmem:[%s13828_s19 + $0x148] sm:$0xff] }
0x2c2d   : > { %v4100_v52 = vadd.f32 %v11334_v50, %v4093_v51  ;;  %v11363_v50 = vld [vmem:[%s13828_s19 + $0x140] sm:$0xff] }
0x2c2e   : > { %v11361_v51 = vld [vmem:[%s15464_s18 + $0x5] ss:$0 sm:$0xff] }
0x2c2f   : > { %12474 = vmatmul.mubr.msk.f32.vlgmr.msra.gmra.mxu1 %vm1230_vm1, %v4100_v52 }
0x2c30   : > { %12478 = vmatprep.mubr.msk.f32.mxu1 %vm13766_vm0, %v13765_v0 }
0x2cef   : > { %v4183_v54 = vpop.f32.mrf.mxu1 }
0x2cf0   : > { %v4184_v55 = vadd.f32 %v11340_v53, %v4183_v54 }
0x2cf1   : > { %v12475_v56 = vpop.f32.mrf.mxu1 }
0x2cf2   : > { %4188 = vrot.lane.b32.xlu0 %v4184_v55, %s15384_s11  ;;  %v11378_v56 = vld [vmem:[%s15470_s28] ss:$0 sm:$0xff]  ;;  %s15478_s28 = sld [smem:[#allocation38_spill]] }
0x2cf8   : > { %s15479_s5 = smov %s15478_s28 }
0x2d64   : > { %v4189_v57 = vpop.permute.xlu0 %4188 }
0x2d65   : > { %12477 = vmatpush3.xpose.msk.msra.mxu1 %vm1230_vm1, %v4189_v57 }
0x2d66   : > { %12481 = vmatprep.subr.mxu1 %v13765_v0 }
0x2d68   : > { %12479 = vmatmul.mubr.msk.f32.vlgmr.msra.gmra.mxu1 %vm1230_vm1, %v4184_v55 }
0x2d69   : > { %12483 = vmatprep.mubr.msk.f32.mxu1 %vm13766_vm0, %v13765_v0 }
0x2e28   : > { %v4260_v58 = vpop.f32.mrf.mxu1 }
0x2e29   : > { %v4264_v59 = vmul.f32 0.17677669, %v4260_v58 }
0x2e2a   : > { %v12480_v60 = vpop.f32.mrf.mxu1 }
0x2e2b   : > { %v4265_v61 = vsel %vm1382_vm2, %v4264_v59, -inf }
0x2e2c   : > { %4266 = vmax.xlane.f32.xlu1 %v4265_v61 }
0x2eb5   : > { %v4267_v62 = vpop.xlane.xlu1 %4266 }
0x2eb6   : > { %v4268_v63 = vsub.f32 %v4264_v59, %v4267_v62 }
0x2eb8   : > { %v4269_v1 = vmul.f32 1.442695, %v4268_v63  ;;  %v1213_v63 = vlaneseq }
0x2eba   : > { %13362 = vpow2.f32 %v4269_v1  ;;  %v1214_v1 = vshrl.u32 %v1213_v63, 7 }
0x2ec7   : > { %v13363_v2 = vpop.eup %13362 }
0x2ec8   : > { %v4271_v3 = vsel %vm1382_vm2, %v13363_v2, 0.0 }
0x2ec9   : > { %4272 = vadd.xlane.f32.xlu1 %v4271_v3 }
0x2eda   : > { %4276 = vrot.lane.b32.xlu1 %v4184_v55, %s15386_s23 }
0x2f52   : > { %v4273_v7 = vpop.xlane.xlu1 %4272 }
0x2f53   : > { %13364 = vrcp.f32 %v4273_v7 }
0x2f56   : > { %v4277_v8 = vpop.permute.xlu1 %4276 }
0x2f57   : > { %12482 = vmatpush3.msra.mxu1 %v4277_v8 }
0x2f58   : > { %12497 = vmatprep.subr.mxu1 %v13765_v0 }
0x2f60   : > { %v13365_v9 = vpop.eup %13364 }
0x2f61   : > { %v4275_v10 = vmul.f32 %v13365_v9, %v13363_v2  ;;  %v1216_v2 = vand.u32 127, %v1213_v63  ;;  %v11372_v9 = vld [vmem:[%s15465_s16 + $0x5] ss:$0 sm:$0xff] }
0x2f63   : > { %12484 = vmatmul.mubr.msk.f32.vlgmr.msra.gmra.mxu1 %vm1382_vm2, %v4275_v10  ;;  %vm14590_vm4 = vcmp.le.s32.totalorder %v1216_v2, %v1214_v1 }
0x2f64   : > { %12505 = vmatprep.mubr.msk.f32.mxu1 %vm13766_vm0, %v13765_v0  ;;  %12498 = vmatpush3.msra.mxu1 %v11359_v25 }
0x2f65   : > { %12499 = vmatprep.subr.mxu1 %v13765_v0 }
0x2f66   : > { %12500 = vmatpush3.msra.mxu1 %v11358_v26 }
0x2f67   : > { %12501 = vmatprep.subr.mxu1 %v13765_v0 }
0x2f68   : > { %12502 = vmatpush3.msra.mxu1 %v11357_v27 }
0x2f69   : > { %12503 = vmatprep.subr.mxu1 %v13765_v0 }
0x2f6a   : > { %12504 = vmatpush3.msra.mxu1 %v11356_v28 }
0x2f6b   : > { %12527 = vmatprep.subr.mxu1 %v13765_v0 }
0x3023   : > { %v4348_v12 = vpop.f32.mrf.mxu1 }
0x3024   : > { %12495 = vmatmul.mubr.msk.f32.vlgmr.msra.gmra.mxu0 %vm1230_vm1, %v4348_v12 }
0x3025   : > { %v12485_v13 = vpop.f32.mrf.mxu1  ;;  %12524 = vmatprep.mubr.msk.f32.mxu0 %vm13766_vm0, %v13765_v0  ;;  %12509 = vmatpush3.msra.mxu0 %v11370_v29 }
0x3026   : > { %12510 = vmatprep.subr.mxu0 %v13765_v0 }
0x3027   : > { %12511 = vmatpush3.msra.mxu0 %v11369_v30  ;;  %v11383_v30 = vld [vmem:[%s15476_s7] ss:$0 sm:$0xff] }
0x3028   : > { %12512 = vmatprep.subr.mxu0 %v13765_v0 }
0x3029   : > { %12513 = vmatpush3.msra.mxu0 %v11368_v31 }
0x302a   : > { %12514 = vmatprep.subr.mxu0 %v13765_v0 }
0x302b   : > { %12515 = vmatpush3.msra.mxu0 %v11367_v32 }
0x302c   : > { %12516 = vmatprep.subr.mxu0 %v13765_v0 }
0x302d   : > { %12517 = vmatpush3.msra.mxu0 %v11366_v33 }
0x302e   : > { %12518 = vmatprep.subr.mxu0 %v13765_v0 }
0x302f   : > { %12519 = vmatpush3.msra.mxu0 %v11365_v48 }
0x3030   : > { %12520 = vmatprep.subr.mxu0 %v13765_v0 }
0x3031   : > { %12521 = vmatpush3.msra.mxu0 %v11364_v49 }
0x3032   : > { %12522 = vmatprep.subr.mxu0 %v13765_v0 }
0x3033   : > { %12523 = vmatpush3.msra.mxu0 %v11363_v50 }
0x3034   : > { %12548 = vmatprep.subr.mxu0 %v13765_v0 }
0x30e4   : > { %v4434_v15 = vpop.f32.mrf.mxu0 }
0x30e5   : > { %v4435_v16 = vadd.f32 %v11350_v14, %v4434_v15 }
0x30e6   : > { %v12496_v17 = vpop.f32.mrf.mxu0 }
0x30e7   : > { %v4438_v18 = vadd.f32 %v4435_v16, %v4100_v52 }
0x30e9   : > { %v4443_v19 = vsel %vm1230_vm1, %v4438_v18, 0.0 }
0x30ea   : > { %4444 = vadd.xlane.f32.xlu0 %v4443_v19  ;;  %v4933_v19 = vld [vmem:[%s15474_s2 + $0x18] sm:$0xff] }
0x3173   : > { %v4445_v20 = vpop.xlane.xlu0 %4444 }
0x3174   : > { %v4446_v21 = vmul.f32 0.03125, %v4445_v20 }
0x3176   : > { %v4447_v22 = vsub.f32 %v4438_v18, %v4446_v21 }
0x3178   : > { %v4448_v23 = vmul.f32 %v4447_v22, %v4447_v22 }
0x317a   : > { %v4449_v24 = vsel %vm1230_vm1, %v4448_v23, 0.0 }
0x317b   : > { %4450 = vadd.xlane.f32.xlu1 %v4449_v24 }
0x3204   : > { %v4451_v34 = vpop.xlane.xlu1 %4450 }
0x3205   : > { %v4452_v35 = vmul.f32 0.03125, %v4451_v34 }
0x3207   : > { %v4453_v36 = vadd.f32 1e-05, %v4452_v35 }
0x3209   : > { %13366 = vrsqrt.f32 %v4453_v36 }
0x3216   : > { %v13367_v37 = vpop.eup %13366 }
0x3217   : > { %v4455_v39 = vmul.f32 %v13367_v37, %v4447_v22 }
0x3219   : > { %v4462_v41 = vmul.f32 %v11354_v38, %v4455_v39  ;;  %v5131_v39 = vld [vmem:[%s15478_s28 + $0x18] sm:$0xff]  ;;  %s15484_s28 = sld [smem:[#allocation35_spill]] }
0x321b   : > { %v4469_v42 = vadd.f32 %v11355_v40, %v4462_v41  ;;  %v5130_v40 = vld [vmem:[%s15479_s5 + $0x10] sm:$0xff]  ;;  %v5129_v41 = vld [vmem:[%s15479_s5 + $0x8] sm:$0xff] }
0x321d   : > { %12506 = vmatmul.mubr.msk.f32.vlgmr.msra.gmra.mxu1 %vm1230_vm1, %v4469_v42 }
0x321e   : > { %12528 = vmatpush3.msra.mxu1 %v4683_v43  ;;  %12535 = vmatprep.mubr.msk.f32.mxu1 %vm13766_vm0, %v13765_v0 }
0x321f   : > { %12529 = vmatprep.subr.mxu1 %v13765_v0  ;;  %s15485_s12 = smov %s15484_s28 }
0x3220   : > { %12530 = vmatpush3.msra.mxu1 %v4682_v44 }
0x3221   : > { %12531 = vmatprep.subr.mxu1 %v13765_v0 }
0x3222   : > { %12532 = vmatpush3.msra.mxu1 %v4681_v45 }
0x3223   : > { %12533 = vmatprep.subr.mxu1 %v13765_v0 }
0x3224   : > { %12534 = vmatpush3.msra.mxu1 %v4680_v46 }
0x3225   : > { %12536 = vmatmul.mubr.msk.f32.vlgmr.msra.gmra.mxu1 %vm1230_vm1, %v14565_v47  ;;  %12538 = vmatprep.subr.mxu1 %v13765_v0 }
0x3226   : > { %12540 = vmatprep.mubr.msk.f32.mxu1 %vm13766_vm0, %v13765_v0 }
0x32dd   : > { %v4552_v52 = vpop.f32.mrf.mxu1 }
0x32de   : > { %v4553_v53 = vadd.f32 %v11361_v51, %v4552_v52  ;;  %v11376_v52 = vld [vmem:[%s15466_s4 + $0x5] ss:$0 sm:$0xff]  ;;  %s15486_s4 = sld [smem:[#allocation39_spill]] }
0x32df   : > { %v12507_v54 = vpop.f32.mrf.mxu1 }
0x32e0   : > { %v4556_v55 = vmax.f32 %v4553_v53, 0.0  ;;  %v11377_v54 = vld [vmem:[%s15467_s10 + $0x5] ss:$0 sm:$0xff] }
0x32e2   : > { %12525 = vmatmul.mubr.msk.f32.vlgmr.msra.gmra.mxu0 %vm1685_vm3, %v4556_v55 }
0x32e3   : > { %12556 = vmatprep.mubr.msk.f32.mxu0 %vm13766_vm0, %v13765_v0  ;;  %12549 = vmatpush3.msra.mxu0 %v4933_v19 }
0x32e4   : > { %12550 = vmatprep.subr.mxu0 %v13765_v0 }
0x32e5   : > { %v4760_v57 = vpop.f32.mrf.mxu1 }
0x32e6   : > { %v4761_v58 = vadd.f32 %v11378_v56, %v4760_v57 }
0x32e7   : > { %v12537_v59 = vpop.f32.mrf.mxu1 }
0x32e8   : > { %4765 = vrot.lane.b32.xlu0 %v4761_v58, %s15384_s11  ;;  %s15475_s11 = smov %s15474_s2  ;;  %s15480_s2 = sld [smem:[#allocation36_spill]] }
0x32e9   : > { %v4932_v20 = vld [vmem:[%s15475_s11 + $0x10] sm:$0xff]  ;;  %v4931_v21 = vld [vmem:[%s15475_s11 + $0x8] sm:$0xff]  ;;  %v4930_v25 = vld [vmem:[%s15475_s11] sm:$0xff] }
0x32ea   : > { %12551 = vmatpush3.msra.mxu0 %v4932_v20  ;;  %v11647_v4 = vld [vmem:[%s15475_s11 + $0xa8] sm:$0xff] }
0x32eb   : > { %12552 = vmatprep.subr.mxu0 %v13765_v0 }
0x32ec   : > { %12553 = vmatpush3.msra.mxu0 %v4931_v21 }
0x32ed   : > { %12554 = vmatprep.subr.mxu0 %v13765_v0 }
0x32ee   : > { %12555 = vmatpush3.msra.mxu0 %v4930_v25  ;;  %s15481_s6 = smov %s15480_s2  ;;  %v5047_v57 = vld [vmem:[%s15480_s2 + $0x18] sm:$0xff]  ;;  %s15487_s2 = sld [smem:[#allocation37_spill]] }
0x32ef   : > { %12570 = vmatprep.subr.mxu0 %v13765_v0  ;;  %v5045_v59 = vld [vmem:[%s15481_s6 + $0x8] sm:$0xff]  ;;  %v5379_v25 = vld [vmem:[#allocation2 + $0x18] sm:$0xff] }
0x32f4   : > { %s15488_s10 = smov %s15487_s2 }
0x335a   : > { %v4766_v60 = vpop.permute.xlu0 %4765 }
0x335b   : > { %12539 = vmatpush3.xpose.msk.msra.mxu1 %vm1230_vm1, %v4766_v60  ;;  %v5044_v60 = vld [vmem:[%s15481_s6] sm:$0xff] }
0x335c   : > { %12543 = vmatprep.subr.mxu1 %v13765_v0 }
0x335e   : > { %12541 = vmatmul.mubr.msk.f32.vlgmr.msra.gmra.mxu1 %vm1230_vm1, %v4761_v58 }
0x335f   : > { %12545 = vmatprep.mubr.msk.f32.mxu1 %vm13766_vm0, %v13765_v0 }
0x33a2   : > { %v4643_v61 = vpop.f32.mrf.mxu0 }
0x33a3   : > { %v4644_v10 = vadd.f32 %v11372_v9, %v4643_v61 }
0x33a4   : > { %v12526_v62 = vpop.f32.mrf.mxu0 }
0x33a5   : > { %v4647_v11 = vadd.f32 %v4644_v10, %v4469_v42  ;;  %v5128_v42 = vld [vmem:[%s15479_s5] sm:$0xff] }
0x33a7   : > { %v4652_v12 = vsel %vm1230_vm1, %v4647_v11, 0.0 }
0x341e   : > { %v4837_v3 = vpop.f32.mrf.mxu1 }
0x341f   : > { %v4841_v5 = vmul.f32 0.17677669, %v4837_v3 }
0x3420   : > { %v12542_v6 = vpop.f32.mrf.mxu1 }
0x3421   : > { %v4842_v7 = vsel %vm14590_vm4, %v4841_v5, -1e+09  ;;  %v11386_v5 = vld [vmem:[%s15484_s28] ss:$0 sm:$0xff]  ;;  %s15490_s28 = sld [smem:[#allocation40_spill]] }
0x3422   : > { %v4843_v8 = vsel %vm1382_vm2, %v4842_v7, -inf }
0x3423   : > { %4844 = vmax.xlane.f32.xlu1 %v4843_v8  ;;  %v11389_v8 = vld [vmem:[%s15486_s4] ss:$0 sm:$0xff] }
0x3427   : > { %s15491_s13 = smov %s15490_s28 }
0x3434   : > { %4854 = vrot.lane.b32.xlu1 %v4761_v58, %s15386_s23  ;;  %s15477_s23 = smov %s15476_s7  ;;  %s15482_s7 = sld [smem:[#allocation34_spill]]  ;;  %v5046_v58 = vld [vmem:[%s15481_s6 + $0x10] sm:$0xff] }
0x343a   : > { %s15483_s8 = smov %s15482_s7  ;;  %v11385_v2 = vld [vmem:[%s15482_s7] ss:$0 sm:$0xff]  ;;  %s15489_s7 = smov 96  }
0x3458   : > { %4653 = vadd.xlane.f32.xlu1 %v4652_v12  ;;  %v11387_v12 = vld [vmem:[%s15487_s2] ss:$0 sm:$0xff]  ;;  %s15492_s2 = sld [smem:[#allocation45_spill]] }
0x345e   : > { %s15493_s16 = smov %s15492_s2 }
0x34ac   : > { %v4845_v13 = vpop.xlane.xlu1 %4844 }
0x34ad   : > { %v4846_v14 = vsub.f32 %v4842_v7, %v4845_v13 }
0x34af   : > { %v4847_v15 = vmul.f32 1.442695, %v4846_v14 }
0x34b0   : > { %v4855_v16 = vpop.permute.xlu1 %4854 }
0x34b1   : > { %13368 = vpow2.f32 %v4847_v15  ;;  %12544 = vmatpush3.msra.mxu1 %v4855_v16 }
0x34b2   : > { %12559 = vmatprep.subr.mxu1 %v13765_v0 }
0x34be   : > { %v13369_v17 = vpop.eup %13368 }
0x34bf   : > { %v4849_v18 = vsel %vm1382_vm2, %v13369_v17, 0.0 }
0x34c0   : > { %4850 = vadd.xlane.f32.xlu0 %v4849_v18 }
0x34e1   : > { %v4654_v28 = vpop.xlane.xlu1 %4653 }
0x34e2   : > { %v4655_v29 = vmul.f32 0.03125, %v4654_v28 }
0x34e4   : > { %v4656_v32 = vsub.f32 %v4647_v11, %v4655_v29 }
0x34e6   : > { %v4657_v37 = vmul.f32 %v4656_v32, %v4656_v32 }
0x34e8   : > { %v4658_v38 = vsel %vm1230_vm1, %v4657_v37, 0.0 }
0x3549   : > { %v4851_v22 = vpop.xlane.xlu0 %4850 }
0x354a   : > { %13370 = vrcp.f32 %v4851_v22 }
0x3557   : > { %v13371_v23 = vpop.eup %13370 }
0x3558   : > { %v4853_v24 = vmul.f32 %v13371_v23, %v13369_v17 }
0x355a   : > { %12546 = vmatmul.mubr.msk.f32.vlgmr.msra.gmra.mxu1 %vm1382_vm2, %v4853_v24 }
0x355b   : > { %12567 = vmatprep.mubr.msk.f32.mxu1 %vm13766_vm0, %v13765_v0  ;;  %12560 = vmatpush3.msra.mxu1 %v5047_v57 }
0x355c   : > { %12561 = vmatprep.subr.mxu1 %v13765_v0 }
0x355d   : > { %12562 = vmatpush3.msra.mxu1 %v5046_v58 }
0x355e   : > { %12563 = vmatprep.subr.mxu1 %v13765_v0 }
0x355f   : > { %12564 = vmatpush3.msra.mxu1 %v5045_v59 }
0x3560   : > { %12565 = vmatprep.subr.mxu1 %v13765_v0 }
0x3561   : > { %12566 = vmatpush3.msra.mxu1 %v5044_v60 }
0x3562   : > { %12581 = vmatprep.subr.mxu1 %v13765_v0 }
0x361a   : > { %v4926_v26 = vpop.f32.mrf.mxu1 }
0x361b   : > { %12557 = vmatmul.mubr.msk.f32.vlgmr.msra.gmra.mxu0 %vm1230_vm1, %v4926_v26  ;;  %v5378_v26 = vld [vmem:[#allocation2 + $0x10] sm:$0xff] }
0x361c   : > { %v12547_v27 = vpop.f32.mrf.mxu1  ;;  %12578 = vmatprep.mubr.msk.f32.mxu0 %vm13766_vm0, %v13765_v0  ;;  %12571 = vmatpush3.msra.mxu0 %v5131_v39 }
0x361d   : > { %12572 = vmatprep.subr.mxu0 %v13765_v0  ;;  %v5377_v27 = vld [vmem:[#allocation2 + $0x8] sm:$0xff] }
0x361e   : > { %12573 = vmatpush3.msra.mxu0 %v5130_v40 }
0x361f   : > { %12574 = vmatprep.subr.mxu0 %v13765_v0 }
0x3620   : > { %12575 = vmatpush3.msra.mxu0 %v5129_v41 }
0x3621   : > { %12576 = vmatprep.subr.mxu0 %v13765_v0 }
0x3622   : > { %12577 = vmatpush3.msra.mxu0 %v5128_v42 }
0x3623   : > { %12591 = vmatprep.subr.mxu0 %v13765_v0 }
0x36db   : > { %v5010_v31 = vpop.f32.mrf.mxu0 }
0x36dc   : > { %v5011_v33 = vadd.f32 %v11383_v30, %v5010_v31 }
0x36dd   : > { %v12558_v34 = vpop.f32.mrf.mxu0 }
0x36de   : > { %v5014_v35 = vadd.f32 %v5011_v33, %v14565_v47 }
0x36e0   : > { %v5017_v36 = vsel %vm1230_vm1, %v5014_v35, 0.0 }
0x36e1   : > { %5018 = vadd.xlane.f32.xlu0 %v5017_v36 }
0x36e5   : > { %4659 = vadd.xlane.f32.xlu0 %v4658_v38 }
0x376a   : > { %v5019_v43 = vpop.xlane.xlu0 %5018 }
0x376b   : > { %v5020_v44 = vmul.f32 0.03125, %v5019_v43 }
0x376d   : > { %v5021_v45 = vsub.f32 %v5014_v35, %v5020_v44  ;;  %v11394_v35 = vld [vmem:[%s15490_s28] ss:$0 sm:$0xff]  ;;  %s15494_s28 = sld [smem:[#allocation41_spill]] }
0x376e   : > { %v4660_v46 = vpop.xlane.xlu0 %4659 }
0x376f   : > { %v4661_v47 = vmul.f32 0.03125, %v4660_v46  ;;  %v5022_v48 = vmul.f32 %v5021_v45, %v5021_v45  ;;  %v5493_v46 = vld [vmem:[#allocation7 + $0x18] sm:$0xff] }
0x3771   : > { %v4662_v49 = vadd.f32 1e-05, %v4661_v47  ;;  %v5023_v50 = vsel %vm1230_vm1, %v5022_v48, 0.0  ;;  %v5492_v47 = vld [vmem:[#allocation7 + $0x10] sm:$0xff]  ;;  %v5491_v48 = vld [vmem:[#allocation7 + $0x8] sm:$0xff] }
0x3772   : > { %5024 = vadd.xlane.f32.xlu0 %v5023_v50  ;;  %v5582_v50 = vld [vmem:[%s15492_s2 + $0x38] sm:$0xff]  ;;  %s15496_s2 = smov 64  }
0x3773   : > { %13372 = vrsqrt.f32 %v4662_v49  ;;  %v5490_v49 = vld [vmem:[#allocation7] sm:$0xff]  ;;  %s15495_s17 = smov %s15494_s28  ;;  %v11396_v60 = vld [vmem:[%s15494_s28] ss:$0 sm:$0xff] }
0x3780   : > { %v13373_v51 = vpop.eup %13372 }
0x3781   : > { %v4664_v53 = vmul.f32 %v13373_v51, %v4656_v32  ;;  %v5376_v32 = vld [vmem:[#allocation2] sm:$0xff]  ;;  %v5581_v51 = vld [vmem:[%s15493_s16 + $0x30] sm:$0xff] }
0x3783   : > { %v4671_v55 = vmul.f32 %v11376_v52, %v4664_v53  ;;  %v5580_v52 = vld [vmem:[%s15493_s16 + $0x28] sm:$0xff]  ;;  %v5579_v53 = vld [vmem:[%s15493_s16 + $0x20] sm:$0xff] }
0x3785   : > { %v14631_v56 = vadd.f32 %v11377_v54, %v4671_v55  ;;  %v5578_v54 = vld [vmem:[%s15493_s16 + $0x18] sm:$0xff] }
0x3787   : > { %12579 = vmatmul.mubr.msk.f32.vlgmr.msra.gmra.mxu0 %vm1230_vm1, %v14631_v56 }
0x3788   : > { %12599 = vmatprep.mubr.msk.f32.mxu0 %vm13766_vm0, %v13765_v0  ;;  %12592 = vmatpush3.msra.mxu0 %v5379_v25  ;;  %v11404_v25 = vld [vmem:[%s15468_s15 + $0x20] sm:$0xff] }
0x3789   : > { %12593 = vmatprep.subr.mxu0 %v13765_v0 }
0x378a   : > { %12594 = vmatpush3.msra.mxu0 %v5378_v26 }
0x378b   : > { %12595 = vmatprep.subr.mxu0 %v13765_v0 }
0x378c   : > { %12596 = vmatpush3.msra.mxu0 %v5377_v27 }
0x378d   : > { %12597 = vmatprep.subr.mxu0 %v13765_v0 }
0x378e   : > { %12598 = vmatpush3.msra.mxu0 %v5376_v32  ;;  %v11403_v32 = vld [vmem:[#allocation13] ss:$0 sm:$0xff] }
0x378f   : > { %12613 = vmatprep.subr.mxu0 %v13765_v0 }
0x37fb   : > { %v5025_v61 = vpop.xlane.xlu0 %5024 }
0x37fc   : > { %v5026_v62 = vmul.f32 0.03125, %v5025_v61 }
0x37fe   : > { %v5027_v63 = vadd.f32 1e-05, %v5026_v62  ;;  %v11397_v62 = vld [vmem:[#allocation5] ss:$0 sm:$0xff] }
0x3800   : > { %13374 = vrsqrt.f32 %v5027_v63 }
0x380d   : > { %v13375_v1 = vpop.eup %13374 }
0x380e   : > { %v5029_v3 = vmul.f32 %v13375_v1, %v5021_v45 }
0x3810   : > { %v5036_v6 = vmul.f32 %v11385_v2, %v5029_v3  ;;  %v5577_v2 = vld [vmem:[%s15493_s16 + $0x10] sm:$0xff]  ;;  %v5576_v3 = vld [vmem:[%s15493_s16 + $0x8] sm:$0xff] }
0x3812   : > { %v5043_v7 = vadd.f32 %v11386_v5, %v5036_v6  ;;  %v5575_v5 = vld [vmem:[%s15493_s16] sm:$0xff] }
0x3813   : > { %v11398_v6 = vld [vmem:[#allocation8] ss:$0 sm:$0xff] }
0x3814   : > { %12568 = vmatmul.mubr.msk.f32.vlgmr.msra.gmra.mxu1 %vm1230_vm1, %v5043_v7 }
0x3815   : > { %12583 = vmatprep.mubr.msk.f32.mxu1 %vm13766_vm0, %v13765_v0 }
0x3847   : > { %v5208_v9 = vpop.f32.mrf.mxu0 }
0x3848   : > { %v5209_v10 = vadd.f32 %v11389_v8, %v5208_v9 }
0x3849   : > { %v12580_v11 = vpop.f32.mrf.mxu0 }
0x384a   : > { %12582 = vmatpush3.xpose.msk.msra.mxu1 %vm1230_vm1, %v5209_v10  ;;  %v11400_v11 = vld [vmem:[#allocation10] ss:$0 sm:$0xff] }
0x384b   : > { %12586 = vmatprep.subr.mxu1 %v13765_v0 }
0x38d4   : > { %v5124_v13 = vpop.f32.mrf.mxu1 }
0x38d5   : > { %v5125_v14 = vadd.f32 %v11387_v12, %v5124_v13 }
0x38d6   : > { %v12569_v15 = vpop.f32.mrf.mxu1 }
0x38d7   : > { %12584 = vmatmul.mubr.msk.f32.vlgmr.msra.gmra.mxu1 %vm1230_vm1, %v5125_v14 }
0x38d8   : > { %12588 = vmatprep.mubr.msk.f32.mxu1 %vm13766_vm0, %v13765_v0 }
0x3997   : > { %v5284_v16 = vpop.f32.mrf.mxu1 }
0x3998   : > { %v5288_v17 = vmul.f32 0.17677669, %v5284_v16 }
0x3999   : > { %v12585_v18 = vpop.f32.mrf.mxu1 }
0x399a   : > { %v5289_v19 = vsel %vm1382_vm2, %v5288_v17, -inf }
0x399b   : > { %5290 = vmax.xlane.f32.xlu0 %v5289_v19 }
0x3a24   : > { %v5291_v20 = vpop.xlane.xlu0 %5290 }
0x3a25   : > { %v5292_v21 = vsub.f32 %v5288_v17, %v5291_v20 }
0x3a27   : > { %v5293_v22 = vmul.f32 1.442695, %v5292_v21 }
0x3a29   : > { %13376 = vpow2.f32 %v5293_v22  ;;  %v11407_v22 = vld [vmem:[%s15468_s15 + $0x38] sm:$0xff] }
0x3a36   : > { %v13377_v23 = vpop.eup %13376 }
0x3a37   : > { %v5295_v24 = vsel %vm1382_vm2, %v13377_v23, 0.0 }
0x3a38   : > { %5296 = vadd.xlane.f32.xlu0 %v5295_v24  ;;  %v11405_v24 = vld [vmem:[%s15468_s15 + $0x28] sm:$0xff] }
0x3a4e   : > { %5300 = vrot.lane.b32.xlu0 %v5209_v10, %s15489_s7 }
0x3ac1   : > { %v5297_v28 = vpop.xlane.xlu0 %5296 }
0x3ac2   : > { %13378 = vrcp.f32 %v5297_v28 }
0x3ac5   : > { %v5301_v29 = vpop.permute.xlu0 %5300 }
0x3ac6   : > { %12587 = vmatpush3.msra.mxu1 %v5301_v29 }
0x3ac7   : > { %12602 = vmatprep.subr.mxu1 %v13765_v0 }
0x3acf   : > { %v13379_v30 = vpop.eup %13378 }
0x3ad0   : > { %v5299_v31 = vmul.f32 %v13379_v30, %v13377_v23  ;;  %v11406_v23 = vld [vmem:[%s15468_s15 + $0x30] sm:$0xff] }
0x3ad1   : > { %v11402_v30 = vld [vmem:[#allocation11] ss:$0 sm:$0xff] }
0x3ad2   : > { %12589 = vmatmul.mubr.msk.f32.vlgmr.msra.gmra.mxu1 %vm1382_vm2, %v5299_v31 }
0x3ad3   : > { %12610 = vmatprep.mubr.msk.f32.mxu1 %vm13766_vm0, %v13765_v0  ;;  %12603 = vmatpush3.msra.mxu1 %v5493_v46 }
0x3ad4   : > { %12604 = vmatprep.subr.mxu1 %v13765_v0 }
0x3ad5   : > { %12605 = vmatpush3.msra.mxu1 %v5492_v47 }
0x3ad6   : > { %12606 = vmatprep.subr.mxu1 %v13765_v0 }
0x3ad7   : > { %12607 = vmatpush3.msra.mxu1 %v5491_v48 }
0x3ad8   : > { %12608 = vmatprep.subr.mxu1 %v13765_v0 }
0x3ad9   : > { %12609 = vmatpush3.msra.mxu1 %v5490_v49 }
0x3ada   : > { %12632 = vmatprep.subr.mxu1 %v13765_v0 }
0x3b92   : > { %v5372_v33 = vpop.f32.mrf.mxu1 }
0x3b93   : > { %12600 = vmatmul.mubr.msk.f32.vlgmr.msra.gmra.mxu0 %vm1230_vm1, %v5372_v33 }
0x3b94   : > { %v12590_v34 = vpop.f32.mrf.mxu1  ;;  %12629 = vmatprep.mubr.msk.f32.mxu0 %vm13766_vm0, %v13765_v0  ;;  %12614 = vmatpush3.msra.mxu0 %v5582_v50 }
0x3b95   : > { %12615 = vmatprep.subr.mxu0 %v13765_v0 }
0x3b96   : > { %12616 = vmatpush3.msra.mxu0 %v5581_v51  ;;  %v11417_v51 = vld [vmem:[%s15475_s11 + $0x38] sm:$0xff] }
0x3b97   : > { %12617 = vmatprep.subr.mxu0 %v13765_v0 }
0x3b98   : > { %12618 = vmatpush3.msra.mxu0 %v5580_v52  ;;  %v11416_v52 = vld [vmem:[%s15475_s11 + $0x30] sm:$0xff] }
0x3b99   : > { %12619 = vmatprep.subr.mxu0 %v13765_v0 }
0x3b9a   : > { %12620 = vmatpush3.msra.mxu0 %v5579_v53  ;;  %v11415_v53 = vld [vmem:[%s15475_s11 + $0x28] sm:$0xff] }
0x3b9b   : > { %12621 = vmatprep.subr.mxu0 %v13765_v0 }
0x3b9c   : > { %12622 = vmatpush3.msra.mxu0 %v5578_v54  ;;  %v11414_v54 = vld [vmem:[%s15475_s11 + $0x20] sm:$0xff] }
0x3b9d   : > { %12623 = vmatprep.subr.mxu0 %v13765_v0 }
0x3b9e   : > { %12624 = vmatpush3.msra.mxu0 %v5577_v2  ;;  %v11419_v2 = vld [vmem:[%s15477_s23 + $0x1] ss:$0 sm:$0xff] }
0x3b9f   : > { %12625 = vmatprep.subr.mxu0 %v13765_v0 }
0x3ba0   : > { %12626 = vmatpush3.msra.mxu0 %v5576_v3 }
0x3ba1   : > { %12627 = vmatprep.subr.mxu0 %v13765_v0 }
0x3ba2   : > { %12628 = vmatpush3.msra.mxu0 %v5575_v5 }
0x3ba3   : > { %12653 = vmatprep.subr.mxu0 %v13765_v0 }
0x3c53   : > { %v5456_v36 = vpop.f32.mrf.mxu0 }
0x3c54   : > { %v5457_v37 = vadd.f32 %v11394_v35, %v5456_v36  ;;  %v11409_v35 = vld [vmem:[%s15471_s26 + $0x1] ss:$0 sm:$0xff] }
0x3c55   : > { %v12601_v38 = vpop.f32.mrf.mxu0 }
0x3c56   : > { %v5460_v39 = vadd.f32 %v5457_v37, %v5043_v7 }
0x3c58   : > { %v5463_v40 = vsel %vm1230_vm1, %v5460_v39, 0.0 }
0x3c59   : > { %5464 = vadd.xlane.f32.xlu1 %v5463_v40 }
0x3ce2   : > { %v5465_v41 = vpop.xlane.xlu1 %5464 }
0x3ce3   : > { %v5466_v42 = vmul.f32 0.03125, %v5465_v41 }
0x3ce5   : > { %v5467_v43 = vsub.f32 %v5460_v39, %v5466_v42 }
0x3ce7   : > { %v5468_v44 = vmul.f32 %v5467_v43, %v5467_v43 }
0x3ce9   : > { %v5469_v45 = vsel %vm1230_vm1, %v5468_v44, 0.0 }
0x3cea   : > { %5470 = vadd.xlane.f32.xlu1 %v5469_v45 }
0x3d73   : > { %v5471_v55 = vpop.xlane.xlu1 %5470 }
0x3d74   : > { %v5472_v57 = vmul.f32 0.03125, %v5471_v55 }
0x3d76   : > { %v5473_v58 = vadd.f32 1e-05, %v5472_v57 }
0x3d78   : > { %13380 = vrsqrt.f32 %v5473_v58 }
0x3d85   : > { %v13381_v59 = vpop.eup %13380 }
0x3d86   : > { %v5475_v61 = vmul.f32 %v13381_v59, %v5467_v43  ;;  %v11435_v59 = vld [vmem:[%s15479_s5 + $0x38] sm:$0xff] }
0x3d88   : > { %v5482_v63 = vmul.f32 %v11396_v60, %v5475_v61  ;;  %v11434_v61 = vld [vmem:[%s15479_s5 + $0x30] sm:$0xff] }
0x3d8a   : > { %v5489_v1 = vadd.f32 %v11397_v62, %v5482_v63  ;;  %v11433_v63 = vld [vmem:[%s15479_s5 + $0x28] sm:$0xff] }
0x3d8c   : > { %12611 = vmatmul.mubr.msk.f32.vlgmr.msra.gmra.mxu1 %vm1230_vm1, %v5489_v1 }
0x3d8d   : > { %12640 = vmatprep.mubr.msk.f32.mxu1 %vm13766_vm0, %v13765_v0  ;;  %12633 = vmatpush3.msra.mxu1 %v11407_v22 }
0x3d8e   : > { %12634 = vmatprep.subr.mxu1 %v13765_v0 }
0x3d8f   : > { %12635 = vmatpush3.msra.mxu1 %v11406_v23 }
0x3d90   : > { %12636 = vmatprep.subr.mxu1 %v13765_v0 }
0x3d91   : > { %12637 = vmatpush3.msra.mxu1 %v11405_v24  ;;  %v11423_v24 = vld [vmem:[%s15483_s8 + $0x1] ss:$0 sm:$0xff] }
0x3d92   : > { %12638 = vmatprep.subr.mxu1 %v13765_v0 }
0x3d93   : > { %12639 = vmatpush3.msra.mxu1 %v11404_v25 }
0x3d94   : > { %12643 = vmatprep.subr.mxu1 %v13765_v0 }
0x3e4c   : > { %v5570_v7 = vpop.f32.mrf.mxu1 }
0x3e4d   : > { %v5571_v8 = vadd.f32 %v11398_v6, %v5570_v7 }
0x3e4e   : > { %v12612_v9 = vpop.f32.mrf.mxu1 }
0x3e4f   : > { %v5574_v10 = vmax.f32 %v5571_v8, 0.0 }
0x3e51   : > { %12630 = vmatmul.mubr.msk.f32.vlgmr.msra.gmra.mxu0 %vm1685_vm3, %v5574_v10 }
0x3e52   : > { %12661 = vmatprep.mubr.msk.f32.mxu0 %vm13766_vm0, %v13765_v0  ;;  %12654 = vmatpush3.msra.mxu0 %v11417_v51  ;;  %v6397_v51 = vld [vmem:[#allocation2 + $0x20] sm:$0xff] }
0x3e53   : > { %12655 = vmatprep.subr.mxu0 %v13765_v0 }
0x3e54   : > { %12656 = vmatpush3.msra.mxu0 %v11416_v52 }
0x3e55   : > { %12657 = vmatprep.subr.mxu0 %v13765_v0 }
0x3e56   : > { %12658 = vmatpush3.msra.mxu0 %v11415_v53 }
0x3e57   : > { %12659 = vmatprep.subr.mxu0 %v13765_v0 }
0x3e58   : > { %12660 = vmatpush3.msra.mxu0 %v11414_v54  ;;  %v11443_v54 = vld [vmem:[%s15491_s13 + $0x1] ss:$0 sm:$0xff] }
0x3e59   : > { %12675 = vmatprep.subr.mxu0 %v13765_v0 }
0x3f11   : > { %v5659_v12 = vpop.f32.mrf.mxu0 }
0x3f12   : > { %v5660_v13 = vadd.f32 %v11400_v11, %v5659_v12 }
0x3f13   : > { %v12631_v14 = vpop.f32.mrf.mxu0 }
0x3f14   : > { %v5663_v15 = vadd.f32 %v5660_v13, %v5489_v1  ;;  %v11432_v1 = vld [vmem:[%s15479_s5 + $0x20] sm:$0xff] }
0x3f16   : > { %v5666_v16 = vsel %vm1230_vm1, %v5663_v15, 0.0 }
0x3f17   : > { %5667 = vadd.xlane.f32.xlu1 %v5666_v16  ;;  %v11428_v16 = vld [vmem:[%s15481_s6 + $0x38] sm:$0xff] }
0x3fa0   : > { %v5668_v17 = vpop.xlane.xlu1 %5667 }
0x3fa1   : > { %v5669_v18 = vmul.f32 0.03125, %v5668_v17  ;;  %v11427_v17 = vld [vmem:[%s15481_s6 + $0x30] sm:$0xff] }
0x3fa3   : > { %v5670_v19 = vsub.f32 %v5663_v15, %v5669_v18  ;;  %v11426_v18 = vld [vmem:[%s15481_s6 + $0x28] sm:$0xff] }
0x3fa5   : > { %v5671_v20 = vmul.f32 %v5670_v19, %v5670_v19 }
0x3fa7   : > { %v5672_v21 = vsel %vm1230_vm1, %v5671_v20, 0.0 }
0x3fa8   : > { %5673 = vadd.xlane.f32.xlu1 %v5672_v21 }
0x4031   : > { %v5674_v26 = vpop.xlane.xlu1 %5673 }
0x4032   : > { %v5675_v27 = vmul.f32 0.03125, %v5674_v26  ;;  %v11424_v26 = vld [vmem:[%s15485_s12 + $0x1] ss:$0 sm:$0xff] }
0x4034   : > { %v5676_v28 = vadd.f32 1e-05, %v5675_v27  ;;  %v11437_v27 = vld [vmem:[%s15486_s4 + $0x1] ss:$0 sm:$0xff] }
0x4036   : > { %13382 = vrsqrt.f32 %v5676_v28 }
0x4043   : > { %v13383_v29 = vpop.eup %13382 }
0x4044   : > { %v5678_v31 = vmul.f32 %v13383_v29, %v5670_v19  ;;  %v11425_v19 = vld [vmem:[%s15481_s6 + $0x20] sm:$0xff] }
0x4046   : > { %v5685_v33 = vmul.f32 %v11402_v30, %v5678_v31  ;;  %v11430_v31 = vld [vmem:[%s15488_s10 + $0x1] ss:$0 sm:$0xff] }
0x4048   : > { %v14711_v34 = vadd.f32 %v11403_v32, %v5685_v33 }
0x404a   : > { %12641 = vmatmul.mubr.msk.f32.vlgmr.msra.gmra.mxu1 %vm1230_vm1, %v14711_v34 }
0x404b   : > { %12645 = vmatprep.mubr.msk.f32.mxu1 %vm13766_vm0, %v13765_v0 }
0x410a   : > { %v5775_v36 = vpop.f32.mrf.mxu1 }
0x410b   : > { %v5776_v37 = vadd.f32 %v11409_v35, %v5775_v36 }
0x410c   : > { %v12642_v38 = vpop.f32.mrf.mxu1 }
0x410d   : > { %5780 = vrot.lane.b32.xlu1 %v5776_v37, %s15489_s7 }
0x417f   : > { %v5781_v39 = vpop.permute.xlu1 %5780 }
0x4180   : > { %12644 = vmatpush3.xpose.msk.msra.mxu1 %vm1230_vm1, %v5781_v39 }
0x4181   : > { %12648 = vmatprep.subr.mxu1 %v13765_v0 }
0x4183   : > { %12646 = vmatmul.mubr.msk.f32.vlgmr.msra.gmra.mxu1 %vm1230_vm1, %v5776_v37 }
0x4184   : > { %12650 = vmatprep.mubr.msk.f32.mxu1 %vm13766_vm0, %v13765_v0 }
0x4243   : > { %v5852_v40 = vpop.f32.mrf.mxu1 }
0x4244   : > { %v5856_v41 = vmul.f32 0.17677669, %v5852_v40 }
0x4245   : > { %v12647_v42 = vpop.f32.mrf.mxu1 }
0x4246   : > { %v5857_v43 = vsel %vm14590_vm4, %v5856_v41, -1e+09 }
0x4247   : > { %v5858_v44 = vsel %vm1382_vm2, %v5857_v43, -inf }
0x4248   : > { %5859 = vmax.xlane.f32.xlu0 %v5858_v44  ;;  %v6400_v44 = vld [vmem:[#allocation2 + $0x38] sm:$0xff] }
0x425e   : > { %5869 = vrot.lane.b32.xlu0 %v5776_v37, %s15496_s2 }
0x42d1   : > { %v5860_v45 = vpop.xlane.xlu0 %5859 }
0x42d2   : > { %v5861_v46 = vsub.f32 %v5857_v43, %v5860_v45  ;;  %v6399_v45 = vld [vmem:[#allocation2 + $0x30] sm:$0xff] }
0x42d4   : > { %v5862_v47 = vmul.f32 1.442695, %v5861_v46  ;;  %v6398_v46 = vld [vmem:[#allocation2 + $0x28] sm:$0xff] }
0x42d5   : > { %v5870_v48 = vpop.permute.xlu0 %5869 }
0x42d6   : > { %13384 = vpow2.f32 %v5862_v47  ;;  %12649 = vmatpush3.msra.mxu1 %v5870_v48 }
0x42d7   : > { %12664 = vmatprep.subr.mxu1 %v13765_v0 }
0x42e3   : > { %v13385_v49 = vpop.eup %13384 }
0x42e4   : > { %v5864_v50 = vsel %vm1382_vm2, %v13385_v49, 0.0 }
0x42e5   : > { %5865 = vadd.xlane.f32.xlu1 %v5864_v50 }
0x436e   : > { %v5866_v55 = vpop.xlane.xlu1 %5865 }
0x436f   : > { %13386 = vrcp.f32 %v5866_v55 }
0x437c   : > { %v13387_v57 = vpop.eup %13386 }
0x437d   : > { %v5868_v58 = vmul.f32 %v13387_v57, %v13385_v49 }
0x437f   : > { %12651 = vmatmul.mubr.msk.f32.vlgmr.msra.gmra.mxu1 %vm1382_vm2, %v5868_v58 }
0x4380   : > { %12672 = vmatprep.mubr.msk.f32.mxu1 %vm13766_vm0, %v13765_v0  ;;  %12665 = vmatpush3.msra.mxu1 %v11428_v16 }
0x4381   : > { %12666 = vmatprep.subr.mxu1 %v13765_v0 }
0x4382   : > { %12667 = vmatpush3.msra.mxu1 %v11427_v17  ;;  %v11446_v17 = vld [vmem:[%s15495_s17 + $0x1] ss:$0 sm:$0xff] }
0x4383   : > { %12668 = vmatprep.subr.mxu1 %v13765_v0 }
0x4384   : > { %12669 = vmatpush3.msra.mxu1 %v11426_v18 }
0x4385   : > { %12670 = vmatprep.subr.mxu1 %v13765_v0 }
0x4386   : > { %12671 = vmatpush3.msra.mxu1 %v11425_v19  ;;  %v11447_v19 = vld [vmem:[#allocation5 + $0x1] ss:$0 sm:$0xff] }
0x4387   : > { %12686 = vmatprep.subr.mxu1 %v13765_v0 }
0x443f   : > { %v5941_v60 = vpop.f32.mrf.mxu1 }
0x4440   : > { %12662 = vmatmul.mubr.msk.f32.vlgmr.msra.gmra.mxu0 %vm1230_vm1, %v5941_v60 }
0x4441   : > { %12676 = vmatpush3.msra.mxu0 %v11435_v59  ;;  %v12652_v62 = vpop.f32.mrf.mxu1  ;;  %12683 = vmatprep.mubr.msk.f32.mxu0 %vm13766_vm0, %v13765_v0 }
0x4442   : > { %12677 = vmatprep.subr.mxu0 %v13765_v0 }
0x4443   : > { %12678 = vmatpush3.msra.mxu0 %v11434_v61 }
0x4444   : > { %12679 = vmatprep.subr.mxu0 %v13765_v0 }
0x4445   : > { %12680 = vmatpush3.msra.mxu0 %v11433_v63 }
0x4446   : > { %12681 = vmatprep.subr.mxu0 %v13765_v0 }
0x4447   : > { %12682 = vmatpush3.msra.mxu0 %v11432_v1 }
0x4448   : > { %12684 = vmatmul.mubr.msk.f32.vlgmr.msra.gmra.mxu0 %vm1230_vm1, %v14631_v56  ;;  %12696 = vmatprep.subr.mxu0 %v13765_v0 }
0x4449   : > { %12704 = vmatprep.mubr.msk.f32.mxu0 %vm13766_vm0, %v13765_v0  ;;  %12697 = vmatpush3.msra.mxu0 %v6400_v44  ;;  %v11462_v44 = vld [vmem:[%s15468_s15 + $0x40] sm:$0xff] }
0x444a   : > { %12698 = vmatprep.subr.mxu0 %v13765_v0 }
0x444b   : > { %12699 = vmatpush3.msra.mxu0 %v6399_v45 }
0x444c   : > { %12700 = vmatprep.subr.mxu0 %v13765_v0 }
0x444d   : > { %12701 = vmatpush3.msra.mxu0 %v6398_v46 }
0x444e   : > { %12702 = vmatprep.subr.mxu0 %v13765_v0 }
0x444f   : > { %12703 = vmatpush3.msra.mxu0 %v6397_v51  ;;  %v11461_v51 = vld [vmem:[#allocation13 + $0x1] ss:$0 sm:$0xff] }
0x4450   : > { %12718 = vmatprep.subr.mxu0 %v13765_v0 }
0x4500   : > { %v6027_v3 = vpop.f32.mrf.mxu0 }
0x4501   : > { %v6028_v5 = vadd.f32 %v11419_v2, %v6027_v3  ;;  %v6518_v3 = vld [vmem:[#allocation7 + $0x38] sm:$0xff] }
0x4502   : > { %v12663_v6 = vpop.f32.mrf.mxu0 }
0x4503   : > { %v6031_v7 = vadd.f32 %v6028_v5, %v14711_v34  ;;  %v6517_v5 = vld [vmem:[#allocation7 + $0x30] sm:$0xff]  ;;  %v6516_v6 = vld [vmem:[#allocation7 + $0x28] sm:$0xff] }
0x4505   : > { %v6036_v8 = vsel %vm1230_vm1, %v6031_v7, 0.0 }
0x4506   : > { %6037 = vadd.xlane.f32.xlu1 %v6036_v8  ;;  %v11457_v8 = vld [vmem:[%s15493_s16 + $0x78] sm:$0xff] }
0x4508   : > { %v6228_v9 = vpop.f32.mrf.mxu0 }
0x4509   : > { %v6229_v30 = vadd.f32 %v11437_v27, %v6228_v9  ;;  %v11456_v9 = vld [vmem:[%s15493_s16 + $0x70] sm:$0xff] }
0x450a   : > { %v12685_v10 = vpop.f32.mrf.mxu0 }
0x450b   : > { %v11455_v10 = vld [vmem:[%s15493_s16 + $0x68] sm:$0xff] }
0x458f   : > { %v6038_v11 = vpop.xlane.xlu1 %6037 }
0x4590   : > { %v6039_v12 = vmul.f32 0.03125, %v6038_v11  ;;  %v11454_v11 = vld [vmem:[%s15493_s16 + $0x60] sm:$0xff] }
0x4592   : > { %v6040_v13 = vsub.f32 %v6031_v7, %v6039_v12  ;;  %v6515_v7 = vld [vmem:[#allocation7 + $0x20] sm:$0xff]  ;;  %v11453_v12 = vld [vmem:[%s15493_s16 + $0x58] sm:$0xff] }
0x4594   : > { %v6041_v14 = vmul.f32 %v6040_v13, %v6040_v13 }
0x4596   : > { %v6042_v15 = vsel %vm1230_vm1, %v6041_v14, 0.0 }
0x4597   : > { %6043 = vadd.xlane.f32.xlu0 %v6042_v15 }
0x4620   : > { %v6044_v20 = vpop.xlane.xlu0 %6043 }
0x4621   : > { %v6045_v21 = vmul.f32 0.03125, %v6044_v20 }
0x4623   : > { %v6046_v22 = vadd.f32 1e-05, %v6045_v21 }
0x4625   : > { %13388 = vrsqrt.f32 %v6046_v22  ;;  %v11452_v22 = vld [vmem:[%s15493_s16 + $0x50] sm:$0xff] }
0x4632   : > { %v13389_v23 = vpop.eup %13388 }
0x4633   : > { %v6048_v25 = vmul.f32 %v13389_v23, %v6040_v13  ;;  %v11451_v23 = vld [vmem:[%s15493_s16 + $0x48] sm:$0xff] }
0x4635   : > { %v6055_v28 = vmul.f32 %v11423_v24, %v6048_v25  ;;  %v11450_v24 = vld [vmem:[%s15493_s16 + $0x40] sm:$0xff] }
0x4636   : > { %v11448_v25 = vld [vmem:[#allocation8 + $0x1] ss:$0 sm:$0xff] }
0x4637   : > { %v6062_v29 = vadd.f32 %v11424_v26, %v6055_v28 }
0x4639   : > { %12673 = vmatmul.mubr.msk.f32.vlgmr.msra.gmra.mxu1 %vm1230_vm1, %v6062_v29 }
0x463a   : > { %12687 = vmatpush3.xpose.msk.msra.mxu1 %vm1230_vm1, %v6229_v30  ;;  %12688 = vmatprep.mubr.msk.f32.mxu1 %vm13766_vm0, %v13765_v0 }
0x463b   : > { %12691 = vmatprep.subr.mxu1 %v13765_v0 }
0x46f9   : > { %v6145_v32 = vpop.f32.mrf.mxu1 }
0x46fa   : > { %v6146_v33 = vadd.f32 %v11430_v31, %v6145_v32 }
0x46fb   : > { %v12674_v34 = vpop.f32.mrf.mxu1 }
0x46fc   : > { %12689 = vmatmul.mubr.msk.f32.vlgmr.msra.gmra.mxu1 %vm1230_vm1, %v6146_v33 }
0x46fd   : > { %12693 = vmatprep.mubr.msk.f32.mxu1 %vm13766_vm0, %v13765_v0 }
0x47bc   : > { %v6304_v35 = vpop.f32.mrf.mxu1 }
0x47bd   : > { %v6308_v36 = vmul.f32 0.17677669, %v6304_v35 }
0x47be   : > { %v12690_v37 = vpop.f32.mrf.mxu1 }
0x47bf   : > { %v6309_v38 = vsel %vm1382_vm2, %v6308_v36, -inf }
0x47c0   : > { %6310 = vmax.xlane.f32.xlu1 %v6309_v38 }
0x4849   : > { %v6311_v39 = vpop.xlane.xlu1 %6310 }
0x484a   : > { %v6312_v40 = vsub.f32 %v6308_v36, %v6311_v39 }
0x484c   : > { %v6313_v41 = vmul.f32 1.442695, %v6312_v40 }
0x484e   : > { %13390 = vpow2.f32 %v6313_v41  ;;  %v11465_v41 = vld [vmem:[%s15468_s15 + $0x58] sm:$0xff] }
0x485b   : > { %v13391_v42 = vpop.eup %13390 }
0x485c   : > { %v6315_v43 = vsel %vm1382_vm2, %v13391_v42, 0.0 }
0x485d   : > { %6316 = vadd.xlane.f32.xlu1 %v6315_v43  ;;  %v11463_v43 = vld [vmem:[%s15468_s15 + $0x48] sm:$0xff] }
0x486e   : > { %6320 = vrot.lane.b32.xlu1 %v6229_v30, %s15489_s7  ;;  %v11458_v30 = vld [vmem:[#allocation10 + $0x1] ss:$0 sm:$0xff] }
0x48e6   : > { %v6317_v47 = vpop.xlane.xlu1 %6316 }
0x48e7   : > { %13392 = vrcp.f32 %v6317_v47 }
0x48ea   : > { %v6321_v48 = vpop.permute.xlu1 %6320 }
0x48eb   : > { %12692 = vmatpush3.msra.mxu1 %v6321_v48 }
0x48ec   : > { %12707 = vmatprep.subr.mxu1 %v13765_v0 }
0x48f4   : > { %v13393_v49 = vpop.eup %13392 }
0x48f5   : > { %v6319_v50 = vmul.f32 %v13393_v49, %v13391_v42  ;;  %v11464_v42 = vld [vmem:[%s15468_s15 + $0x50] sm:$0xff] }
0x48f6   : > { %v11460_v49 = vld [vmem:[#allocation11 + $0x1] ss:$0 sm:$0xff] }
0x48f7   : > { %12694 = vmatmul.mubr.msk.f32.vlgmr.msra.gmra.mxu1 %vm1382_vm2, %v6319_v50 }
0x48f8   : > { %12715 = vmatprep.mubr.msk.f32.mxu1 %vm13766_vm0, %v13765_v0  ;;  %12708 = vmatpush3.msra.mxu1 %v6518_v3 }
0x48f9   : > { %12709 = vmatprep.subr.mxu1 %v13765_v0 }
0x48fa   : > { %12710 = vmatpush3.msra.mxu1 %v6517_v5 }
0x48fb   : > { %12711 = vmatprep.subr.mxu1 %v13765_v0 }
0x48fc   : > { %12712 = vmatpush3.msra.mxu1 %v6516_v6 }
0x48fd   : > { %12713 = vmatprep.subr.mxu1 %v13765_v0 }
0x48fe   : > { %12714 = vmatpush3.msra.mxu1 %v6515_v7 }
0x48ff   : > { %12737 = vmatprep.subr.mxu1 %v13765_v0 }
0x49b7   : > { %v6392_v52 = vpop.f32.mrf.mxu1 }
0x49b8   : > { %12705 = vmatmul.mubr.msk.f32.vlgmr.msra.gmra.mxu0 %vm1230_vm1, %v6392_v52 }
0x49b9   : > { %v12695_v53 = vpop.f32.mrf.mxu1  ;;  %12734 = vmatprep.mubr.msk.f32.mxu0 %vm13766_vm0, %v13765_v0  ;;  %12719 = vmatpush3.msra.mxu0 %v11457_v8 }
0x49ba   : > { %12720 = vmatprep.subr.mxu0 %v13765_v0 }
0x49bb   : > { %12721 = vmatpush3.msra.mxu0 %v11456_v9  ;;  %v11475_v9 = vld [vmem:[%s15475_s11 + $0x58] sm:$0xff] }
0x49bc   : > { %12722 = vmatprep.subr.mxu0 %v13765_v0 }
0x49bd   : > { %12723 = vmatpush3.msra.mxu0 %v11455_v10  ;;  %v11474_v10 = vld [vmem:[%s15475_s11 + $0x50] sm:$0xff] }
0x49be   : > { %12724 = vmatprep.subr.mxu0 %v13765_v0 }
0x49bf   : > { %12725 = vmatpush3.msra.mxu0 %v11454_v11  ;;  %v11473_v11 = vld [vmem:[%s15475_s11 + $0x48] sm:$0xff] }
0x49c0   : > { %12726 = vmatprep.subr.mxu0 %v13765_v0 }
0x49c1   : > { %12727 = vmatpush3.msra.mxu0 %v11453_v12  ;;  %v11472_v12 = vld [vmem:[%s15475_s11 + $0x40] sm:$0xff] }
0x49c2   : > { %12728 = vmatprep.subr.mxu0 %v13765_v0 }
0x49c3   : > { %12729 = vmatpush3.msra.mxu0 %v11452_v22  ;;  %v11477_v22 = vld [vmem:[%s15477_s23 + $0x2] ss:$0 sm:$0xff] }
0x49c4   : > { %12730 = vmatprep.subr.mxu0 %v13765_v0 }
0x49c5   : > { %12731 = vmatpush3.msra.mxu0 %v11451_v23 }
0x49c6   : > { %12732 = vmatprep.subr.mxu0 %v13765_v0 }
0x49c7   : > { %12733 = vmatpush3.msra.mxu0 %v11450_v24 }
0x49c8   : > { %12758 = vmatprep.subr.mxu0 %v13765_v0 }
0x4a78   : > { %v6478_v55 = vpop.f32.mrf.mxu0 }
0x4a79   : > { %v6479_v57 = vadd.f32 %v11443_v54, %v6478_v55  ;;  %v11467_v54 = vld [vmem:[%s15471_s26 + $0x2] ss:$0 sm:$0xff] }
0x4a7a   : > { %v12706_v58 = vpop.f32.mrf.mxu0 }
0x4a7b   : > { %v6482_v59 = vadd.f32 %v6479_v57, %v6062_v29 }
0x4a7d   : > { %v6487_v60 = vsel %vm1230_vm1, %v6482_v59, 0.0 }
0x4a7e   : > { %6488 = vadd.xlane.f32.xlu1 %v6487_v60 }
0x4b07   : > { %v6489_v61 = vpop.xlane.xlu1 %6488 }
0x4b08   : > { %v6490_v62 = vmul.f32 0.03125, %v6489_v61 }
0x4b0a   : > { %v6491_v63 = vsub.f32 %v6482_v59, %v6490_v62 }
0x4b0c   : > { %v6492_v1 = vmul.f32 %v6491_v63, %v6491_v63 }
0x4b0e   : > { %v6493_v2 = vsel %vm1230_vm1, %v6492_v1, 0.0 }
0x4b0f   : > { %6494 = vadd.xlane.f32.xlu0 %v6493_v2 }
0x4b98   : > { %v6495_v13 = vpop.xlane.xlu0 %6494 }
0x4b99   : > { %v6496_v14 = vmul.f32 0.03125, %v6495_v13 }
0x4b9b   : > { %v6497_v15 = vadd.f32 1e-05, %v6496_v14 }
0x4b9d   : > { %13394 = vrsqrt.f32 %v6497_v15 }
0x4baa   : > { %v13395_v16 = vpop.eup %13394 }
0x4bab   : > { %v6499_v18 = vmul.f32 %v13395_v16, %v6491_v63  ;;  %v11493_v16 = vld [vmem:[%s15479_s5 + $0x58] sm:$0xff] }
0x4bad   : > { %v6506_v20 = vmul.f32 %v11446_v17, %v6499_v18  ;;  %v11492_v18 = vld [vmem:[%s15479_s5 + $0x50] sm:$0xff] }
0x4baf   : > { %v6513_v21 = vadd.f32 %v11447_v19, %v6506_v20  ;;  %v11491_v20 = vld [vmem:[%s15479_s5 + $0x48] sm:$0xff] }
0x4bb1   : > { %12716 = vmatmul.mubr.msk.f32.vlgmr.msra.gmra.mxu1 %vm1230_vm1, %v6513_v21 }
0x4bb2   : > { %12745 = vmatprep.mubr.msk.f32.mxu1 %vm13766_vm0, %v13765_v0  ;;  %12738 = vmatpush3.msra.mxu1 %v11465_v41 }
0x4bb3   : > { %12739 = vmatprep.subr.mxu1 %v13765_v0 }
0x4bb4   : > { %12740 = vmatpush3.msra.mxu1 %v11464_v42 }
0x4bb5   : > { %12741 = vmatprep.subr.mxu1 %v13765_v0 }
0x4bb6   : > { %12742 = vmatpush3.msra.mxu1 %v11463_v43  ;;  %v11481_v43 = vld [vmem:[%s15483_s8 + $0x2] ss:$0 sm:$0xff] }
0x4bb7   : > { %12743 = vmatprep.subr.mxu1 %v13765_v0 }
0x4bb8   : > { %12744 = vmatpush3.msra.mxu1 %v11462_v44 }
0x4bb9   : > { %12748 = vmatprep.subr.mxu1 %v13765_v0 }
0x4c71   : > { %v6596_v26 = vpop.f32.mrf.mxu1 }
0x4c72   : > { %v6597_v27 = vadd.f32 %v11448_v25, %v6596_v26 }
0x4c73   : > { %v12717_v28 = vpop.f32.mrf.mxu1 }
0x4c74   : > { %v6600_v29 = vmax.f32 %v6597_v27, 0.0 }
0x4c76   : > { %12735 = vmatmul.mubr.msk.f32.vlgmr.msra.gmra.mxu0 %vm1685_vm3, %v6600_v29 }
0x4c77   : > { %12766 = vmatprep.mubr.msk.f32.mxu0 %vm13766_vm0, %v13765_v0  ;;  %12759 = vmatpush3.msra.mxu0 %v11475_v9  ;;  %v7427_v9 = vld [vmem:[#allocation2 + $0x40] sm:$0xff] }
0x4c78   : > { %12760 = vmatprep.subr.mxu0 %v13765_v0 }
0x4c79   : > { %12761 = vmatpush3.msra.mxu0 %v11474_v10 }
0x4c7a   : > { %12762 = vmatprep.subr.mxu0 %v13765_v0 }
0x4c7b   : > { %12763 = vmatpush3.msra.mxu0 %v11473_v11 }
0x4c7c   : > { %12764 = vmatprep.subr.mxu0 %v13765_v0 }
0x4c7d   : > { %12765 = vmatpush3.msra.mxu0 %v11472_v12  ;;  %v11501_v12 = vld [vmem:[%s15491_s13 + $0x2] ss:$0 sm:$0xff] }
0x4c7e   : > { %12780 = vmatprep.subr.mxu0 %v13765_v0 }
0x4d36   : > { %v6687_v31 = vpop.f32.mrf.mxu0 }
0x4d37   : > { %v6688_v32 = vadd.f32 %v11458_v30, %v6687_v31 }
0x4d38   : > { %v12736_v33 = vpop.f32.mrf.mxu0 }
0x4d39   : > { %v6691_v34 = vadd.f32 %v6688_v32, %v6513_v21  ;;  %v11490_v21 = vld [vmem:[%s15479_s5 + $0x40] sm:$0xff] }
0x4d3b   : > { %v6696_v35 = vsel %vm1230_vm1, %v6691_v34, 0.0 }
0x4d3c   : > { %6697 = vadd.xlane.f32.xlu0 %v6696_v35  ;;  %v11486_v35 = vld [vmem:[%s15481_s6 + $0x58] sm:$0xff] }
0x4dc5   : > { %v6698_v36 = vpop.xlane.xlu0 %6697 }
0x4dc6   : > { %v6699_v37 = vmul.f32 0.03125, %v6698_v36  ;;  %v11485_v36 = vld [vmem:[%s15481_s6 + $0x50] sm:$0xff] }
0x4dc8   : > { %v6700_v38 = vsub.f32 %v6691_v34, %v6699_v37  ;;  %v11484_v37 = vld [vmem:[%s15481_s6 + $0x48] sm:$0xff] }
0x4dca   : > { %v6701_v39 = vmul.f32 %v6700_v38, %v6700_v38 }
0x4dcc   : > { %v6702_v40 = vsel %vm1230_vm1, %v6701_v39, 0.0 }
0x4dcd   : > { %6703 = vadd.xlane.f32.xlu0 %v6702_v40 }
0x4e56   : > { %v6704_v45 = vpop.xlane.xlu0 %6703 }
0x4e57   : > { %v6705_v46 = vmul.f32 0.03125, %v6704_v45  ;;  %v11482_v45 = vld [vmem:[%s15485_s12 + $0x2] ss:$0 sm:$0xff] }
0x4e59   : > { %v6706_v47 = vadd.f32 1e-05, %v6705_v46  ;;  %v11495_v46 = vld [vmem:[%s15486_s4 + $0x2] ss:$0 sm:$0xff] }
0x4e5b   : > { %13396 = vrsqrt.f32 %v6706_v47 }
0x4e68   : > { %v13397_v48 = vpop.eup %13396 }
0x4e69   : > { %v6708_v50 = vmul.f32 %v13397_v48, %v6700_v38  ;;  %v11483_v38 = vld [vmem:[%s15481_s6 + $0x40] sm:$0xff] }
0x4e6b   : > { %v6715_v52 = vmul.f32 %v11460_v49, %v6708_v50  ;;  %v11488_v50 = vld [vmem:[%s15488_s10 + $0x2] ss:$0 sm:$0xff] }
0x4e6d   : > { %v14834_v53 = vadd.f32 %v11461_v51, %v6715_v52 }
0x4e6f   : > { %12746 = vmatmul.mubr.msk.f32.vlgmr.msra.gmra.mxu1 %vm1230_vm1, %v14834_v53 }
0x4e70   : > { %12750 = vmatprep.mubr.msk.f32.mxu1 %vm13766_vm0, %v13765_v0 }
0x4f2f   : > { %v6805_v55 = vpop.f32.mrf.mxu1 }
0x4f30   : > { %v6806_v57 = vadd.f32 %v11467_v54, %v6805_v55 }
0x4f31   : > { %v12747_v58 = vpop.f32.mrf.mxu1 }
0x4f32   : > { %6810 = vrot.lane.b32.xlu0 %v6806_v57, %s15489_s7 }
0x4fa4   : > { %v6811_v59 = vpop.permute.xlu0 %6810 }
0x4fa5   : > { %12749 = vmatpush3.xpose.msk.msra.mxu1 %vm1230_vm1, %v6811_v59 }
0x4fa6   : > { %12753 = vmatprep.subr.mxu1 %v13765_v0 }
0x4fa8   : > { %12751 = vmatmul.mubr.msk.f32.vlgmr.msra.gmra.mxu1 %vm1230_vm1, %v6806_v57 }
0x4fa9   : > { %12755 = vmatprep.mubr.msk.f32.mxu1 %vm13766_vm0, %v13765_v0 }
0x5068   : > { %v6882_v60 = vpop.f32.mrf.mxu1 }
0x5069   : > { %v6886_v61 = vmul.f32 0.17677669, %v6882_v60 }
0x506a   : > { %v12752_v62 = vpop.f32.mrf.mxu1 }
0x506b   : > { %v6887_v63 = vsel %vm14590_vm4, %v6886_v61, -1e+09 }
0x506c   : > { %v6888_v1 = vsel %vm1382_vm2, %v6887_v63, -inf }
0x506d   : > { %6889 = vmax.xlane.f32.xlu1 %v6888_v1  ;;  %v7430_v1 = vld [vmem:[#allocation2 + $0x58] sm:$0xff] }
0x507e   : > { %6899 = vrot.lane.b32.xlu1 %v6806_v57, %s15496_s2 }
0x50f6   : > { %v6890_v2 = vpop.xlane.xlu1 %6889 }
0x50f7   : > { %v6891_v3 = vsub.f32 %v6887_v63, %v6890_v2  ;;  %v7429_v2 = vld [vmem:[#allocation2 + $0x50] sm:$0xff] }
0x50f9   : > { %v6892_v5 = vmul.f32 1.442695, %v6891_v3  ;;  %v7428_v3 = vld [vmem:[#allocation2 + $0x48] sm:$0xff] }
0x50fa   : > { %v6900_v6 = vpop.permute.xlu1 %6899 }
0x50fb   : > { %13398 = vpow2.f32 %v6892_v5  ;;  %12754 = vmatpush3.msra.mxu1 %v6900_v6 }
0x50fc   : > { %12769 = vmatprep.subr.mxu1 %v13765_v0 }
0x5108   : > { %v13399_v7 = vpop.eup %13398 }
0x5109   : > { %v6894_v8 = vsel %vm1382_vm2, %v13399_v7, 0.0 }
0x510a   : > { %6895 = vadd.xlane.f32.xlu0 %v6894_v8 }
0x5193   : > { %v6896_v13 = vpop.xlane.xlu0 %6895 }
0x5194   : > { %13400 = vrcp.f32 %v6896_v13 }
0x51a1   : > { %v13401_v14 = vpop.eup %13400 }
0x51a2   : > { %v6898_v15 = vmul.f32 %v13401_v14, %v13399_v7 }
0x51a4   : > { %12756 = vmatmul.mubr.msk.f32.vlgmr.msra.gmra.mxu1 %vm1382_vm2, %v6898_v15 }
0x51a5   : > { %12777 = vmatprep.mubr.msk.f32.mxu1 %vm13766_vm0, %v13765_v0  ;;  %12770 = vmatpush3.msra.mxu1 %v11486_v35 }
0x51a6   : > { %12771 = vmatprep.subr.mxu1 %v13765_v0 }
0x51a7   : > { %12772 = vmatpush3.msra.mxu1 %v11485_v36  ;;  %v11504_v36 = vld [vmem:[%s15495_s17 + $0x2] ss:$0 sm:$0xff] }
0x51a8   : > { %12773 = vmatprep.subr.mxu1 %v13765_v0 }
0x51a9   : > { %12774 = vmatpush3.msra.mxu1 %v11484_v37 }
0x51aa   : > { %12775 = vmatprep.subr.mxu1 %v13765_v0 }
0x51ab   : > { %12776 = vmatpush3.msra.mxu1 %v11483_v38  ;;  %v11505_v38 = vld [vmem:[#allocation5 + $0x2] ss:$0 sm:$0xff] }
0x51ac   : > { %12791 = vmatprep.subr.mxu1 %v13765_v0 }
0x5264   : > { %v6971_v17 = vpop.f32.mrf.mxu1 }
0x5265   : > { %12767 = vmatmul.mubr.msk.f32.vlgmr.msra.gmra.mxu0 %vm1230_vm1, %v6971_v17 }
0x5266   : > { %12781 = vmatpush3.msra.mxu0 %v11493_v16  ;;  %v12757_v19 = vpop.f32.mrf.mxu1  ;;  %12788 = vmatprep.mubr.msk.f32.mxu0 %vm13766_vm0, %v13765_v0 }
0x5267   : > { %12782 = vmatprep.subr.mxu0 %v13765_v0 }
0x5268   : > { %12783 = vmatpush3.msra.mxu0 %v11492_v18 }
0x5269   : > { %12784 = vmatprep.subr.mxu0 %v13765_v0 }
0x526a   : > { %12785 = vmatpush3.msra.mxu0 %v11491_v20 }
0x526b   : > { %12786 = vmatprep.subr.mxu0 %v13765_v0 }
0x526c   : > { %12787 = vmatpush3.msra.mxu0 %v11490_v21 }
0x526d   : > { %12789 = vmatmul.mubr.msk.f32.vlgmr.msra.gmra.mxu0 %vm1230_vm1, %v14631_v56  ;;  %12801 = vmatprep.subr.mxu0 %v13765_v0 }
0x526e   : > { %12809 = vmatprep.mubr.msk.f32.mxu0 %vm13766_vm0, %v13765_v0  ;;  %12802 = vmatpush3.msra.mxu0 %v7430_v1  ;;  %v11520_v1 = vld [vmem:[%s15468_s15 + $0x60] sm:$0xff] }
0x526f   : > { %12803 = vmatprep.subr.mxu0 %v13765_v0 }
0x5270   : > { %12804 = vmatpush3.msra.mxu0 %v7429_v2 }
0x5271   : > { %12805 = vmatprep.subr.mxu0 %v13765_v0 }
0x5272   : > { %12806 = vmatpush3.msra.mxu0 %v7428_v3 }
0x5273   : > { %12807 = vmatprep.subr.mxu0 %v13765_v0 }
0x5274   : > { %12808 = vmatpush3.msra.mxu0 %v7427_v9  ;;  %v11519_v9 = vld [vmem:[#allocation13 + $0x2] ss:$0 sm:$0xff] }
0x5275   : > { %12823 = vmatprep.subr.mxu0 %v13765_v0 }
0x5325   : > { %v7057_v23 = vpop.f32.mrf.mxu0 }
0x5326   : > { %v7058_v24 = vadd.f32 %v11477_v22, %v7057_v23  ;;  %v7548_v23 = vld [vmem:[#allocation7 + $0x58] sm:$0xff] }
0x5327   : > { %v12768_v25 = vpop.f32.mrf.mxu0 }
0x5328   : > { %v7061_v26 = vadd.f32 %v7058_v24, %v14834_v53  ;;  %v7547_v24 = vld [vmem:[#allocation7 + $0x50] sm:$0xff]  ;;  %v7546_v25 = vld [vmem:[#allocation7 + $0x48] sm:$0xff] }
0x532a   : > { %v7066_v27 = vsel %vm1230_vm1, %v7061_v26, 0.0 }
0x532b   : > { %7067 = vadd.xlane.f32.xlu1 %v7066_v27  ;;  %v11515_v27 = vld [vmem:[%s15493_s16 + $0xb8] sm:$0xff] }
0x532d   : > { %v7258_v28 = vpop.f32.mrf.mxu0 }
0x532e   : > { %v7259_v49 = vadd.f32 %v11495_v46, %v7258_v28  ;;  %v11514_v28 = vld [vmem:[%s15493_s16 + $0xb0] sm:$0xff] }
0x532f   : > { %v12790_v29 = vpop.f32.mrf.mxu0 }
0x5330   : > { %v11513_v29 = vld [vmem:[%s15493_s16 + $0xa8] sm:$0xff] }
0x53b4   : > { %v7068_v30 = vpop.xlane.xlu1 %7067 }
0x53b5   : > { %v7069_v31 = vmul.f32 0.03125, %v7068_v30  ;;  %v11512_v30 = vld [vmem:[%s15493_s16 + $0xa0] sm:$0xff] }
0x53b7   : > { %v7070_v32 = vsub.f32 %v7061_v26, %v7069_v31  ;;  %v7545_v26 = vld [vmem:[#allocation7 + $0x40] sm:$0xff]  ;;  %v11511_v31 = vld [vmem:[%s15493_s16 + $0x98] sm:$0xff] }
0x53b9   : > { %v7071_v33 = vmul.f32 %v7070_v32, %v7070_v32 }
0x53bb   : > { %v7072_v34 = vsel %vm1230_vm1, %v7071_v33, 0.0 }
0x53bc   : > { %7073 = vadd.xlane.f32.xlu0 %v7072_v34 }
0x5445   : > { %v7074_v39 = vpop.xlane.xlu0 %7073 }
0x5446   : > { %v7075_v40 = vmul.f32 0.03125, %v7074_v39 }
0x5448   : > { %v7076_v41 = vadd.f32 1e-05, %v7075_v40 }
0x544a   : > { %13402 = vrsqrt.f32 %v7076_v41  ;;  %v11510_v41 = vld [vmem:[%s15493_s16 + $0x90] sm:$0xff] }
0x5457   : > { %v13403_v42 = vpop.eup %13402 }
0x5458   : > { %v7078_v44 = vmul.f32 %v13403_v42, %v7070_v32  ;;  %v11509_v42 = vld [vmem:[%s15493_s16 + $0x88] sm:$0xff] }
0x545a   : > { %v7085_v47 = vmul.f32 %v11481_v43, %v7078_v44  ;;  %v11508_v43 = vld [vmem:[%s15493_s16 + $0x80] sm:$0xff]  ;;  %v11506_v44 = vld [vmem:[#allocation8 + $0x2] ss:$0 sm:$0xff] }
0x545c   : > { %v7092_v48 = vadd.f32 %v11482_v45, %v7085_v47 }
0x545e   : > { %12778 = vmatmul.mubr.msk.f32.vlgmr.msra.gmra.mxu1 %vm1230_vm1, %v7092_v48 }
0x545f   : > { %12792 = vmatpush3.xpose.msk.msra.mxu1 %vm1230_vm1, %v7259_v49  ;;  %12793 = vmatprep.mubr.msk.f32.mxu1 %vm13766_vm0, %v13765_v0 }
0x5460   : > { %12796 = vmatprep.subr.mxu1 %v13765_v0 }
0x551e   : > { %v7175_v51 = vpop.f32.mrf.mxu1 }
0x551f   : > { %v7176_v52 = vadd.f32 %v11488_v50, %v7175_v51 }
0x5520   : > { %v12779_v53 = vpop.f32.mrf.mxu1 }
0x5521   : > { %12794 = vmatmul.mubr.msk.f32.vlgmr.msra.gmra.mxu1 %vm1230_vm1, %v7176_v52 }
0x5522   : > { %12798 = vmatprep.mubr.msk.f32.mxu1 %vm13766_vm0, %v13765_v0 }
0x55e1   : > { %v7334_v54 = vpop.f32.mrf.mxu1 }
0x55e2   : > { %v7338_v55 = vmul.f32 0.17677669, %v7334_v54 }
0x55e3   : > { %v12795_v57 = vpop.f32.mrf.mxu1 }
0x55e4   : > { %v7339_v58 = vsel %vm1382_vm2, %v7338_v55, -inf }
0x55e5   : > { %7340 = vmax.xlane.f32.xlu0 %v7339_v58 }
0x566e   : > { %v7341_v59 = vpop.xlane.xlu0 %7340 }
0x566f   : > { %v7342_v60 = vsub.f32 %v7338_v55, %v7341_v59 }
0x5671   : > { %v7343_v61 = vmul.f32 1.442695, %v7342_v60 }
0x5673   : > { %13404 = vpow2.f32 %v7343_v61  ;;  %v11523_v61 = vld [vmem:[%s15468_s15 + $0x78] sm:$0xff] }
0x5680   : > { %v13405_v62 = vpop.eup %13404 }
0x5681   : > { %v7345_v63 = vsel %vm1382_vm2, %v13405_v62, 0.0 }
0x5682   : > { %7346 = vadd.xlane.f32.xlu0 %v7345_v63  ;;  %v11521_v63 = vld [vmem:[%s15468_s15 + $0x68] sm:$0xff] }
0x5698   : > { %7350 = vrot.lane.b32.xlu0 %v7259_v49, %s15489_s7  ;;  %v11516_v49 = vld [vmem:[#allocation10 + $0x2] ss:$0 sm:$0xff] }
0x570b   : > { %v7347_v5 = vpop.xlane.xlu0 %7346 }
0x570c   : > { %13406 = vrcp.f32 %v7347_v5 }
0x570f   : > { %v7351_v6 = vpop.permute.xlu0 %7350 }
0x5710   : > { %12797 = vmatpush3.msra.mxu1 %v7351_v6 }
0x5711   : > { %12812 = vmatprep.subr.mxu1 %v13765_v0 }
0x5719   : > { %v13407_v7 = vpop.eup %13406 }
0x571a   : > { %v7349_v8 = vmul.f32 %v13407_v7, %v13405_v62  ;;  %v11522_v62 = vld [vmem:[%s15468_s15 + $0x70] sm:$0xff] }
0x571b   : > { %v11518_v7 = vld [vmem:[#allocation11 + $0x2] ss:$0 sm:$0xff] }
0x571c   : > { %12799 = vmatmul.mubr.msk.f32.vlgmr.msra.gmra.mxu1 %vm1382_vm2, %v7349_v8 }
0x571d   : > { %12820 = vmatprep.mubr.msk.f32.mxu1 %vm13766_vm0, %v13765_v0  ;;  %12813 = vmatpush3.msra.mxu1 %v7548_v23 }
0x571e   : > { %12814 = vmatprep.subr.mxu1 %v13765_v0 }
0x571f   : > { %12815 = vmatpush3.msra.mxu1 %v7547_v24 }
0x5720   : > { %12816 = vmatprep.subr.mxu1 %v13765_v0 }
0x5721   : > { %12817 = vmatpush3.msra.mxu1 %v7546_v25 }
0x5722   : > { %12818 = vmatprep.subr.mxu1 %v13765_v0 }
0x5723   : > { %12819 = vmatpush3.msra.mxu1 %v7545_v26 }
0x5724   : > { %12842 = vmatprep.subr.mxu1 %v13765_v0 }
0x57dc   : > { %v7422_v10 = vpop.f32.mrf.mxu1 }
0x57dd   : > { %12810 = vmatmul.mubr.msk.f32.vlgmr.msra.gmra.mxu0 %vm1230_vm1, %v7422_v10 }
0x57de   : > { %v12800_v11 = vpop.f32.mrf.mxu1  ;;  %12839 = vmatprep.mubr.msk.f32.mxu0 %vm13766_vm0, %v13765_v0  ;;  %12824 = vmatpush3.msra.mxu0 %v11515_v27  ;;  %v11533_v27 = vld [vmem:[%s15475_s11 + $0x78] sm:$0xff] }
0x57df   : > { %12825 = vmatprep.subr.mxu0 %v13765_v0 }
0x57e0   : > { %12826 = vmatpush3.msra.mxu0 %v11514_v28  ;;  %v11532_v28 = vld [vmem:[%s15475_s11 + $0x70] sm:$0xff] }
0x57e1   : > { %12827 = vmatprep.subr.mxu0 %v13765_v0 }
0x57e2   : > { %12828 = vmatpush3.msra.mxu0 %v11513_v29  ;;  %v11531_v29 = vld [vmem:[%s15475_s11 + $0x68] sm:$0xff] }
0x57e3   : > { %12829 = vmatprep.subr.mxu0 %v13765_v0 }
0x57e4   : > { %12830 = vmatpush3.msra.mxu0 %v11512_v30  ;;  %v11530_v30 = vld [vmem:[%s15475_s11 + $0x60] sm:$0xff] }
0x57e5   : > { %12831 = vmatprep.subr.mxu0 %v13765_v0 }
0x57e6   : > { %12832 = vmatpush3.msra.mxu0 %v11511_v31 }
0x57e7   : > { %12833 = vmatprep.subr.mxu0 %v13765_v0 }
0x57e8   : > { %12834 = vmatpush3.msra.mxu0 %v11510_v41  ;;  %v11535_v41 = vld [vmem:[%s15477_s23 + $0x3] ss:$0 sm:$0xff] }
0x57e9   : > { %12835 = vmatprep.subr.mxu0 %v13765_v0 }
0x57ea   : > { %12836 = vmatpush3.msra.mxu0 %v11509_v42 }
0x57eb   : > { %12837 = vmatprep.subr.mxu0 %v13765_v0 }
0x57ec   : > { %12838 = vmatpush3.msra.mxu0 %v11508_v43 }
0x57ed   : > { %12863 = vmatprep.subr.mxu0 %v13765_v0 }
0x589d   : > { %v7508_v13 = vpop.f32.mrf.mxu0 }
0x589e   : > { %v7509_v14 = vadd.f32 %v11501_v12, %v7508_v13  ;;  %v11525_v12 = vld [vmem:[%s15471_s26 + $0x3] ss:$0 sm:$0xff] }
0x589f   : > { %v12811_v15 = vpop.f32.mrf.mxu0 }
0x58a0   : > { %v7512_v16 = vadd.f32 %v7509_v14, %v7092_v48 }
0x58a2   : > { %v7517_v17 = vsel %vm1230_vm1, %v7512_v16, 0.0 }
0x58a3   : > { %7518 = vadd.xlane.f32.xlu1 %v7517_v17 }
0x592c   : > { %v7519_v18 = vpop.xlane.xlu1 %7518 }
0x592d   : > { %v7520_v19 = vmul.f32 0.03125, %v7519_v18 }
0x592f   : > { %v7521_v20 = vsub.f32 %v7512_v16, %v7520_v19 }
0x5931   : > { %v7522_v21 = vmul.f32 %v7521_v20, %v7521_v20 }
0x5933   : > { %v7523_v22 = vsel %vm1230_vm1, %v7522_v21, 0.0 }
0x5934   : > { %7524 = vadd.xlane.f32.xlu1 %v7523_v22 }
0x59bd   : > { %v7525_v32 = vpop.xlane.xlu1 %7524 }
0x59be   : > { %v7526_v33 = vmul.f32 0.03125, %v7525_v32 }
0x59c0   : > { %v7527_v34 = vadd.f32 1e-05, %v7526_v33 }
0x59c2   : > { %13408 = vrsqrt.f32 %v7527_v34 }
0x59cf   : > { %v13409_v35 = vpop.eup %13408 }
0x59d0   : > { %v7529_v37 = vmul.f32 %v13409_v35, %v7521_v20  ;;  %v11551_v35 = vld [vmem:[%s15479_s5 + $0x78] sm:$0xff] }
0x59d2   : > { %v7536_v39 = vmul.f32 %v11504_v36, %v7529_v37  ;;  %v11550_v37 = vld [vmem:[%s15479_s5 + $0x70] sm:$0xff] }
0x59d4   : > { %v7543_v40 = vadd.f32 %v11505_v38, %v7536_v39  ;;  %v11549_v39 = vld [vmem:[%s15479_s5 + $0x68] sm:$0xff] }
0x59d6   : > { %12821 = vmatmul.mubr.msk.f32.vlgmr.msra.gmra.mxu1 %vm1230_vm1, %v7543_v40 }
0x59d7   : > { %12850 = vmatprep.mubr.msk.f32.mxu1 %vm13766_vm0, %v13765_v0  ;;  %12843 = vmatpush3.msra.mxu1 %v11523_v61 }
0x59d8   : > { %12844 = vmatprep.subr.mxu1 %v13765_v0 }
0x59d9   : > { %12845 = vmatpush3.msra.mxu1 %v11522_v62 }
0x59da   : > { %12846 = vmatprep.subr.mxu1 %v13765_v0 }
0x59db   : > { %12847 = vmatpush3.msra.mxu1 %v11521_v63  ;;  %v11539_v63 = vld [vmem:[%s15483_s8 + $0x3] ss:$0 sm:$0xff] }
0x59dc   : > { %12848 = vmatprep.subr.mxu1 %v13765_v0 }
0x59dd   : > { %12849 = vmatpush3.msra.mxu1 %v11520_v1 }
0x59de   : > { %12853 = vmatprep.subr.mxu1 %v13765_v0 }
0x5a96   : > { %v7626_v45 = vpop.f32.mrf.mxu1 }
0x5a97   : > { %v7627_v46 = vadd.f32 %v11506_v44, %v7626_v45 }
0x5a98   : > { %v12822_v47 = vpop.f32.mrf.mxu1 }
0x5a99   : > { %v7630_v48 = vmax.f32 %v7627_v46, 0.0 }
0x5a9b   : > { %12840 = vmatmul.mubr.msk.f32.vlgmr.msra.gmra.mxu0 %vm1685_vm3, %v7630_v48 }
0x5a9c   : > { %12871 = vmatprep.mubr.msk.f32.mxu0 %vm13766_vm0, %v13765_v0  ;;  %12864 = vmatpush3.msra.mxu0 %v11533_v27 }
0x5a9d   : > { %12865 = vmatprep.subr.mxu0 %v13765_v0 }
0x5a9e   : > { %12866 = vmatpush3.msra.mxu0 %v11532_v28  ;;  %v8457_v28 = vld [vmem:[#allocation2 + $0x60] sm:$0xff] }
0x5a9f   : > { %12867 = vmatprep.subr.mxu0 %v13765_v0 }
0x5aa0   : > { %12868 = vmatpush3.msra.mxu0 %v11531_v29 }
0x5aa1   : > { %12869 = vmatprep.subr.mxu0 %v13765_v0 }
0x5aa2   : > { %12870 = vmatpush3.msra.mxu0 %v11530_v30 }
0x5aa3   : > { %12885 = vmatprep.subr.mxu0 %v13765_v0 }
0x5b5b   : > { %v7717_v50 = vpop.f32.mrf.mxu0 }
0x5b5c   : > { %v7718_v51 = vadd.f32 %v11516_v49, %v7717_v50 }
0x5b5d   : > { %v12841_v52 = vpop.f32.mrf.mxu0 }
0x5b5e   : > { %v7721_v53 = vadd.f32 %v7718_v51, %v7543_v40  ;;  %v11548_v40 = vld [vmem:[%s15479_s5 + $0x60] sm:$0xff] }
0x5b60   : > { %v7726_v54 = vsel %vm1230_vm1, %v7721_v53, 0.0 }
0x5b61   : > { %7727 = vadd.xlane.f32.xlu1 %v7726_v54  ;;  %v11544_v54 = vld [vmem:[%s15481_s6 + $0x78] sm:$0xff] }
0x5bea   : > { %v7728_v55 = vpop.xlane.xlu1 %7727 }
0x5beb   : > { %v7729_v57 = vmul.f32 0.03125, %v7728_v55  ;;  %v11543_v55 = vld [vmem:[%s15481_s6 + $0x70] sm:$0xff] }
0x5bed   : > { %v7730_v58 = vsub.f32 %v7721_v53, %v7729_v57  ;;  %v11542_v57 = vld [vmem:[%s15481_s6 + $0x68] sm:$0xff] }
0x5bef   : > { %v7731_v59 = vmul.f32 %v7730_v58, %v7730_v58 }
0x5bf1   : > { %v7732_v60 = vsel %vm1230_vm1, %v7731_v59, 0.0 }
0x5bf2   : > { %7733 = vadd.xlane.f32.xlu0 %v7732_v60 }
0x5c7b   : > { %v7734_v2 = vpop.xlane.xlu0 %7733 }
0x5c7c   : > { %v7735_v3 = vmul.f32 0.03125, %v7734_v2  ;;  %v11540_v2 = vld [vmem:[%s15485_s12 + $0x3] ss:$0 sm:$0xff] }
0x5c7e   : > { %v7736_v5 = vadd.f32 1e-05, %v7735_v3  ;;  %v11553_v3 = vld [vmem:[%s15486_s4 + $0x3] ss:$0 sm:$0xff] }
0x5c80   : > { %13410 = vrsqrt.f32 %v7736_v5 }
0x5c8d   : > { %v13411_v6 = vpop.eup %13410 }
0x5c8e   : > { %v7738_v8 = vmul.f32 %v13411_v6, %v7730_v58  ;;  %v11541_v58 = vld [vmem:[%s15481_s6 + $0x60] sm:$0xff] }
0x5c90   : > { %v7745_v10 = vmul.f32 %v11518_v7, %v7738_v8  ;;  %v11546_v8 = vld [vmem:[%s15488_s10 + $0x3] ss:$0 sm:$0xff] }
0x5c92   : > { %v14957_v11 = vadd.f32 %v11519_v9, %v7745_v10 }
0x5c94   : > { %12851 = vmatmul.mubr.msk.f32.vlgmr.msra.gmra.mxu1 %vm1230_vm1, %v14957_v11 }
0x5c95   : > { %12855 = vmatprep.mubr.msk.f32.mxu1 %vm13766_vm0, %v13765_v0 }
0x5d54   : > { %v7835_v13 = vpop.f32.mrf.mxu1 }
0x5d55   : > { %v7836_v14 = vadd.f32 %v11525_v12, %v7835_v13 }
0x5d56   : > { %v12852_v15 = vpop.f32.mrf.mxu1 }
0x5d57   : > { %7840 = vrot.lane.b32.xlu1 %v7836_v14, %s15489_s7 }
0x5dc9   : > { %v7841_v16 = vpop.permute.xlu1 %7840 }
0x5dca   : > { %12854 = vmatpush3.xpose.msk.msra.mxu1 %vm1230_vm1, %v7841_v16 }
0x5dcb   : > { %12858 = vmatprep.subr.mxu1 %v13765_v0 }
0x5dcd   : > { %12856 = vmatmul.mubr.msk.f32.vlgmr.msra.gmra.mxu1 %vm1230_vm1, %v7836_v14 }
0x5dce   : > { %12860 = vmatprep.mubr.msk.f32.mxu1 %vm13766_vm0, %v13765_v0 }
0x5e8d   : > { %v7912_v17 = vpop.f32.mrf.mxu1 }
0x5e8e   : > { %v7916_v18 = vmul.f32 0.17677669, %v7912_v17 }
0x5e8f   : > { %v12857_v19 = vpop.f32.mrf.mxu1 }
0x5e90   : > { %v7917_v20 = vsel %vm14590_vm4, %v7916_v18, -1e+09 }
0x5e91   : > { %v7918_v21 = vsel %vm1382_vm2, %v7917_v20, -inf }
0x5e92   : > { %7919 = vmax.xlane.f32.xlu1 %v7918_v21  ;;  %v8460_v21 = vld [vmem:[#allocation2 + $0x78] sm:$0xff] }
0x5f1b   : > { %v7920_v22 = vpop.xlane.xlu1 %7919 }
0x5f1c   : > { %v7921_v23 = vsub.f32 %v7917_v20, %v7920_v22  ;;  %v8459_v22 = vld [vmem:[#allocation2 + $0x70] sm:$0xff] }
0x5f1e   : > { %v7922_v24 = vmul.f32 1.442695, %v7921_v23  ;;  %v8458_v23 = vld [vmem:[#allocation2 + $0x68] sm:$0xff] }
0x5f20   : > { %13412 = vpow2.f32 %v7922_v24 }
0x5f2d   : > { %v13413_v25 = vpop.eup %13412 }
0x5f2e   : > { %v7924_v26 = vsel %vm1382_vm2, %v13413_v25, 0.0 }
0x5f2f   : > { %7925 = vadd.xlane.f32.xlu0 %v7924_v26 }
0x5f45   : > { %7929 = vrot.lane.b32.xlu0 %v7836_v14, %s15496_s2 }
0x5fb8   : > { %v7926_v31 = vpop.xlane.xlu0 %7925 }
0x5fb9   : > { %13414 = vrcp.f32 %v7926_v31  ;;  %v11559_v31 = vld [vmem:[%s15491_s13 + $0x3] ss:$0 sm:$0xff] }
0x5fbc   : > { %v7930_v32 = vpop.permute.xlu0 %7929 }
0x5fbd   : > { %12859 = vmatpush3.msra.mxu1 %v7930_v32 }
0x5fbe   : > { %12874 = vmatprep.subr.mxu1 %v13765_v0 }
0x5fc6   : > { %v13415_v33 = vpop.eup %13414 }
0x5fc7   : > { %v7928_v34 = vmul.f32 %v13415_v33, %v13413_v25 }
0x5fc9   : > { %12861 = vmatmul.mubr.msk.f32.vlgmr.msra.gmra.mxu1 %vm1382_vm2, %v7928_v34 }
0x5fca   : > { %12882 = vmatprep.mubr.msk.f32.mxu1 %vm13766_vm0, %v13765_v0  ;;  %12875 = vmatpush3.msra.mxu1 %v11544_v54 }
0x5fcb   : > { %12876 = vmatprep.subr.mxu1 %v13765_v0 }
0x5fcc   : > { %12877 = vmatpush3.msra.mxu1 %v11543_v55  ;;  %v11562_v55 = vld [vmem:[%s15495_s17 + $0x3] ss:$0 sm:$0xff] }
0x5fcd   : > { %12878 = vmatprep.subr.mxu1 %v13765_v0 }
0x5fce   : > { %12879 = vmatpush3.msra.mxu1 %v11542_v57 }
0x5fcf   : > { %12880 = vmatprep.subr.mxu1 %v13765_v0 }
0x5fd0   : > { %12881 = vmatpush3.msra.mxu1 %v11541_v58  ;;  %v11563_v58 = vld [vmem:[#allocation5 + $0x3] ss:$0 sm:$0xff] }
0x5fd1   : > { %12896 = vmatprep.subr.mxu1 %v13765_v0 }
0x6089   : > { %v8001_v36 = vpop.f32.mrf.mxu1 }
0x608a   : > { %12872 = vmatmul.mubr.msk.f32.vlgmr.msra.gmra.mxu0 %vm1230_vm1, %v8001_v36 }
0x608b   : > { %12886 = vmatpush3.msra.mxu0 %v11551_v35  ;;  %v12862_v38 = vpop.f32.mrf.mxu1  ;;  %12893 = vmatprep.mubr.msk.f32.mxu0 %vm13766_vm0, %v13765_v0 }
0x608c   : > { %12887 = vmatprep.subr.mxu0 %v13765_v0 }
0x608d   : > { %12888 = vmatpush3.msra.mxu0 %v11550_v37 }
0x608e   : > { %12889 = vmatprep.subr.mxu0 %v13765_v0 }
0x608f   : > { %12890 = vmatpush3.msra.mxu0 %v11549_v39 }
0x6090   : > { %12891 = vmatprep.subr.mxu0 %v13765_v0 }
0x6091   : > { %12892 = vmatpush3.msra.mxu0 %v11548_v40 }
0x6092   : > { %12894 = vmatmul.mubr.msk.f32.vlgmr.msra.gmra.mxu0 %vm1230_vm1, %v14631_v56  ;;  %12906 = vmatprep.subr.mxu0 %v13765_v0 }
0x6093   : > { %12914 = vmatprep.mubr.msk.f32.mxu0 %vm13766_vm0, %v13765_v0  ;;  %12907 = vmatpush3.msra.mxu0 %v8460_v21  ;;  %v11578_v21 = vld [vmem:[%s15468_s15 + $0x80] sm:$0xff] }
0x6094   : > { %12908 = vmatprep.subr.mxu0 %v13765_v0 }
0x6095   : > { %12909 = vmatpush3.msra.mxu0 %v8459_v22 }
0x6096   : > { %12910 = vmatprep.subr.mxu0 %v13765_v0 }
0x6097   : > { %12911 = vmatpush3.msra.mxu0 %v8458_v23 }
0x6098   : > { %12912 = vmatprep.subr.mxu0 %v13765_v0 }
0x6099   : > { %12913 = vmatpush3.msra.mxu0 %v8457_v28  ;;  %v11577_v28 = vld [vmem:[#allocation13 + $0x3] ss:$0 sm:$0xff] }
0x609a   : > { %12928 = vmatprep.subr.mxu0 %v13765_v0 }
0x614a   : > { %v8087_v42 = vpop.f32.mrf.mxu0 }
0x614b   : > { %v8088_v43 = vadd.f32 %v11535_v41, %v8087_v42  ;;  %v8578_v42 = vld [vmem:[#allocation7 + $0x78] sm:$0xff] }
0x614c   : > { %v12873_v44 = vpop.f32.mrf.mxu0 }
0x614d   : > { %v8091_v45 = vadd.f32 %v8088_v43, %v14957_v11  ;;  %v8577_v43 = vld [vmem:[#allocation7 + $0x70] sm:$0xff]  ;;  %v8576_v44 = vld [vmem:[#allocation7 + $0x68] sm:$0xff] }
0x614f   : > { %v8096_v46 = vsel %vm1230_vm1, %v8091_v45, 0.0 }
0x6150   : > { %8097 = vadd.xlane.f32.xlu1 %v8096_v46  ;;  %v11573_v46 = vld [vmem:[%s15493_s16 + $0xf8] sm:$0xff] }
0x6152   : > { %v8288_v47 = vpop.f32.mrf.mxu0 }
0x6153   : > { %v8289_v7 = vadd.f32 %v11553_v3, %v8288_v47  ;;  %v11572_v47 = vld [vmem:[%s15493_s16 + $0xf0] sm:$0xff] }
0x6154   : > { %v12895_v48 = vpop.f32.mrf.mxu0 }
0x6155   : > { %v11571_v48 = vld [vmem:[%s15493_s16 + $0xe8] sm:$0xff] }
0x61d9   : > { %v8098_v49 = vpop.xlane.xlu1 %8097 }
0x61da   : > { %v8099_v50 = vmul.f32 0.03125, %v8098_v49  ;;  %v11570_v49 = vld [vmem:[%s15493_s16 + $0xe0] sm:$0xff] }
0x61dc   : > { %v8100_v51 = vsub.f32 %v8091_v45, %v8099_v50  ;;  %v8575_v45 = vld [vmem:[#allocation7 + $0x60] sm:$0xff]  ;;  %v11569_v50 = vld [vmem:[%s15493_s16 + $0xd8] sm:$0xff] }
0x61de   : > { %v8101_v52 = vmul.f32 %v8100_v51, %v8100_v51 }
0x61e0   : > { %v8102_v53 = vsel %vm1230_vm1, %v8101_v52, 0.0 }
0x61e1   : > { %8103 = vadd.xlane.f32.xlu0 %v8102_v53 }
0x626a   : > { %v8104_v59 = vpop.xlane.xlu0 %8103 }
0x626b   : > { %v8105_v60 = vmul.f32 0.03125, %v8104_v59 }
0x626d   : > { %v8106_v61 = vadd.f32 1e-05, %v8105_v60 }
0x626f   : > { %13416 = vrsqrt.f32 %v8106_v61  ;;  %v11568_v61 = vld [vmem:[%s15493_s16 + $0xd0] sm:$0xff] }
0x627c   : > { %v13417_v62 = vpop.eup %13416 }
0x627d   : > { %v8108_v1 = vmul.f32 %v13417_v62, %v8100_v51  ;;  %v11567_v62 = vld [vmem:[%s15493_s16 + $0xc8] sm:$0xff] }
0x627f   : > { %v8115_v5 = vmul.f32 %v11539_v63, %v8108_v1  ;;  %v11566_v63 = vld [vmem:[%s15493_s16 + $0xc0] sm:$0xff]  ;;  %v11564_v1 = vld [vmem:[#allocation8 + $0x3] ss:$0 sm:$0xff] }
0x6281   : > { %v8122_v6 = vadd.f32 %v11540_v2, %v8115_v5 }
0x6283   : > { %12883 = vmatmul.mubr.msk.f32.vlgmr.msra.gmra.mxu1 %vm1230_vm1, %v8122_v6 }
0x6284   : > { %12897 = vmatpush3.xpose.msk.msra.mxu1 %vm1230_vm1, %v8289_v7  ;;  %12898 = vmatprep.mubr.msk.f32.mxu1 %vm13766_vm0, %v13765_v0 }
0x6285   : > { %12901 = vmatprep.subr.mxu1 %v13765_v0 }
0x6343   : > { %v8205_v9 = vpop.f32.mrf.mxu1 }
0x6344   : > { %v8206_v10 = vadd.f32 %v11546_v8, %v8205_v9 }
0x6345   : > { %v12884_v11 = vpop.f32.mrf.mxu1 }
0x6346   : > { %12899 = vmatmul.mubr.msk.f32.vlgmr.msra.gmra.mxu1 %vm1230_vm1, %v8206_v10 }
0x6347   : > { %12903 = vmatprep.mubr.msk.f32.mxu1 %vm13766_vm0, %v13765_v0 }
0x6406   : > { %v8364_v12 = vpop.f32.mrf.mxu1 }
0x6407   : > { %v8368_v13 = vmul.f32 0.17677669, %v8364_v12 }
0x6408   : > { %v12900_v14 = vpop.f32.mrf.mxu1 }
0x6409   : > { %v8369_v15 = vsel %vm1382_vm2, %v8368_v13, -inf }
0x640a   : > { %8370 = vmax.xlane.f32.xlu1 %v8369_v15 }
0x6493   : > { %v8371_v16 = vpop.xlane.xlu1 %8370 }
0x6494   : > { %v8372_v17 = vsub.f32 %v8368_v13, %v8371_v16 }
0x6496   : > { %v8373_v18 = vmul.f32 1.442695, %v8372_v17 }
0x6498   : > { %13418 = vpow2.f32 %v8373_v18  ;;  %v11581_v18 = vld [vmem:[%s15468_s15 + $0x98] sm:$0xff] }
0x64a5   : > { %v13419_v19 = vpop.eup %13418 }
0x64a6   : > { %v8375_v20 = vsel %vm1382_vm2, %v13419_v19, 0.0 }
0x64a7   : > { %8376 = vadd.xlane.f32.xlu1 %v8375_v20  ;;  %v11579_v20 = vld [vmem:[%s15468_s15 + $0x88] sm:$0xff] }
0x64b8   : > { %8380 = vrot.lane.b32.xlu1 %v8289_v7, %s15489_s7  ;;  %v11574_v7 = vld [vmem:[#allocation10 + $0x3] ss:$0 sm:$0xff] }
0x6530   : > { %v8377_v24 = vpop.xlane.xlu1 %8376 }
0x6531   : > { %13420 = vrcp.f32 %v8377_v24 }
0x6534   : > { %v8381_v25 = vpop.permute.xlu1 %8380 }
0x6535   : > { %12902 = vmatpush3.msra.mxu1 %v8381_v25 }
0x6536   : > { %12917 = vmatprep.subr.mxu1 %v13765_v0 }
0x653e   : > { %v13421_v26 = vpop.eup %13420 }
0x653f   : > { %v8379_v27 = vmul.f32 %v13421_v26, %v13419_v19  ;;  %v11580_v19 = vld [vmem:[%s15468_s15 + $0x90] sm:$0xff] }
0x6540   : > { %v11576_v26 = vld [vmem:[#allocation11 + $0x3] ss:$0 sm:$0xff] }
0x6541   : > { %12904 = vmatmul.mubr.msk.f32.vlgmr.msra.gmra.mxu1 %vm1382_vm2, %v8379_v27 }
0x6542   : > { %12925 = vmatprep.mubr.msk.f32.mxu1 %vm13766_vm0, %v13765_v0  ;;  %12918 = vmatpush3.msra.mxu1 %v8578_v42 }
0x6543   : > { %12919 = vmatprep.subr.mxu1 %v13765_v0 }
0x6544   : > { %12920 = vmatpush3.msra.mxu1 %v8577_v43 }
0x6545   : > { %12921 = vmatprep.subr.mxu1 %v13765_v0 }
0x6546   : > { %12922 = vmatpush3.msra.mxu1 %v8576_v44 }
0x6547   : > { %12923 = vmatprep.subr.mxu1 %v13765_v0 }
0x6548   : > { %12924 = vmatpush3.msra.mxu1 %v8575_v45 }
0x6549   : > { %12947 = vmatprep.subr.mxu1 %v13765_v0 }
0x6601   : > { %v8452_v29 = vpop.f32.mrf.mxu1 }
0x6602   : > { %12915 = vmatmul.mubr.msk.f32.vlgmr.msra.gmra.mxu0 %vm1230_vm1, %v8452_v29 }
0x6603   : > { %v12905_v30 = vpop.f32.mrf.mxu1  ;;  %12944 = vmatprep.mubr.msk.f32.mxu0 %vm13766_vm0, %v13765_v0  ;;  %12929 = vmatpush3.msra.mxu0 %v11573_v46 }
0x6604   : > { %12930 = vmatprep.subr.mxu0 %v13765_v0 }
0x6605   : > { %12931 = vmatpush3.msra.mxu0 %v11572_v47  ;;  %v11591_v47 = vld [vmem:[%s15475_s11 + $0x98] sm:$0xff] }
0x6606   : > { %12932 = vmatprep.subr.mxu0 %v13765_v0 }
0x6607   : > { %12933 = vmatpush3.msra.mxu0 %v11571_v48  ;;  %v11590_v48 = vld [vmem:[%s15475_s11 + $0x90] sm:$0xff] }
0x6608   : > { %12934 = vmatprep.subr.mxu0 %v13765_v0 }
0x6609   : > { %12935 = vmatpush3.msra.mxu0 %v11570_v49  ;;  %v11589_v49 = vld [vmem:[%s15475_s11 + $0x88] sm:$0xff] }
0x660a   : > { %12936 = vmatprep.subr.mxu0 %v13765_v0 }
0x660b   : > { %12937 = vmatpush3.msra.mxu0 %v11569_v50  ;;  %v11588_v50 = vld [vmem:[%s15475_s11 + $0x80] sm:$0xff] }
0x660c   : > { %12938 = vmatprep.subr.mxu0 %v13765_v0 }
0x660d   : > { %12939 = vmatpush3.msra.mxu0 %v11568_v61  ;;  %v11593_v61 = vld [vmem:[%s15477_s23 + $0x4] ss:$0 sm:$0xff] }
0x660e   : > { %12940 = vmatprep.subr.mxu0 %v13765_v0 }
0x660f   : > { %12941 = vmatpush3.msra.mxu0 %v11567_v62 }
0x6610   : > { %12942 = vmatprep.subr.mxu0 %v13765_v0 }
0x6611   : > { %12943 = vmatpush3.msra.mxu0 %v11566_v63 }
0x6612   : > { %12968 = vmatprep.subr.mxu0 %v13765_v0 }
0x66c2   : > { %v8538_v32 = vpop.f32.mrf.mxu0 }
0x66c3   : > { %v8539_v33 = vadd.f32 %v11559_v31, %v8538_v32  ;;  %v11583_v31 = vld [vmem:[%s15471_s26 + $0x4] ss:$0 sm:$0xff] }
0x66c4   : > { %v12916_v34 = vpop.f32.mrf.mxu0 }
0x66c5   : > { %v8542_v35 = vadd.f32 %v8539_v33, %v8122_v6 }
0x66c7   : > { %v8547_v36 = vsel %vm1230_vm1, %v8542_v35, 0.0 }
0x66c8   : > { %8548 = vadd.xlane.f32.xlu1 %v8547_v36 }
0x6751   : > { %v8549_v37 = vpop.xlane.xlu1 %8548 }
0x6752   : > { %v8550_v38 = vmul.f32 0.03125, %v8549_v37 }
0x6754   : > { %v8551_v39 = vsub.f32 %v8542_v35, %v8550_v38 }
0x6756   : > { %v8552_v40 = vmul.f32 %v8551_v39, %v8551_v39 }
0x6758   : > { %v8553_v41 = vsel %vm1230_vm1, %v8552_v40, 0.0 }
0x6759   : > { %8554 = vadd.xlane.f32.xlu0 %v8553_v41 }
0x67e2   : > { %v8555_v51 = vpop.xlane.xlu0 %8554 }
0x67e3   : > { %v8556_v52 = vmul.f32 0.03125, %v8555_v51 }
0x67e5   : > { %v8557_v53 = vadd.f32 1e-05, %v8556_v52 }
0x67e7   : > { %13422 = vrsqrt.f32 %v8557_v53 }
0x67f4   : > { %v13423_v54 = vpop.eup %13422 }
0x67f5   : > { %v8559_v57 = vmul.f32 %v13423_v54, %v8551_v39  ;;  %v11609_v54 = vld [vmem:[%s15479_s5 + $0x98] sm:$0xff] }
0x67f7   : > { %v8566_v59 = vmul.f32 %v11562_v55, %v8559_v57  ;;  %v11608_v57 = vld [vmem:[%s15479_s5 + $0x90] sm:$0xff] }
0x67f9   : > { %v8573_v60 = vadd.f32 %v11563_v58, %v8566_v59  ;;  %v11607_v59 = vld [vmem:[%s15479_s5 + $0x88] sm:$0xff] }
0x67fb   : > { %12926 = vmatmul.mubr.msk.f32.vlgmr.msra.gmra.mxu1 %vm1230_vm1, %v8573_v60 }
0x67fc   : > { %12955 = vmatprep.mubr.msk.f32.mxu1 %vm13766_vm0, %v13765_v0  ;;  %12948 = vmatpush3.msra.mxu1 %v11581_v18 }
0x67fd   : > { %12949 = vmatprep.subr.mxu1 %v13765_v0 }
0x67fe   : > { %12950 = vmatpush3.msra.mxu1 %v11580_v19 }
0x67ff   : > { %12951 = vmatprep.subr.mxu1 %v13765_v0 }
0x6800   : > { %12952 = vmatpush3.msra.mxu1 %v11579_v20  ;;  %v11597_v20 = vld [vmem:[%s15483_s8 + $0x4] ss:$0 sm:$0xff] }
0x6801   : > { %12953 = vmatprep.subr.mxu1 %v13765_v0 }
0x6802   : > { %12954 = vmatpush3.msra.mxu1 %v11578_v21 }
0x6803   : > { %12958 = vmatprep.subr.mxu1 %v13765_v0 }
0x68bb   : > { %v8656_v2 = vpop.f32.mrf.mxu1 }
0x68bc   : > { %v8657_v3 = vadd.f32 %v11564_v1, %v8656_v2 }
0x68bd   : > { %v12927_v5 = vpop.f32.mrf.mxu1 }
0x68be   : > { %v8660_v6 = vmax.f32 %v8657_v3, 0.0 }
0x68c0   : > { %12945 = vmatmul.mubr.msk.f32.vlgmr.msra.gmra.mxu0 %vm1685_vm3, %v8660_v6 }
0x68c1   : > { %12976 = vmatprep.mubr.msk.f32.mxu0 %vm13766_vm0, %v13765_v0  ;;  %12969 = vmatpush3.msra.mxu0 %v11591_v47  ;;  %v9487_v47 = vld [vmem:[#allocation2 + $0x80] sm:$0xff] }
0x68c2   : > { %12970 = vmatprep.subr.mxu0 %v13765_v0 }
0x68c3   : > { %12971 = vmatpush3.msra.mxu0 %v11590_v48 }
0x68c4   : > { %12972 = vmatprep.subr.mxu0 %v13765_v0 }
0x68c5   : > { %12973 = vmatpush3.msra.mxu0 %v11589_v49 }
0x68c6   : > { %12974 = vmatprep.subr.mxu0 %v13765_v0 }
0x68c7   : > { %12975 = vmatpush3.msra.mxu0 %v11588_v50  ;;  %v11617_v50 = vld [vmem:[%s15491_s13 + $0x4] ss:$0 sm:$0xff] }
0x68c8   : > { %12990 = vmatprep.subr.mxu0 %v13765_v0 }
0x6980   : > { %v8747_v8 = vpop.f32.mrf.mxu0 }
0x6981   : > { %v8748_v9 = vadd.f32 %v11574_v7, %v8747_v8 }
0x6982   : > { %v12946_v10 = vpop.f32.mrf.mxu0 }
0x6983   : > { %v8751_v11 = vadd.f32 %v8748_v9, %v8573_v60  ;;  %v11606_v60 = vld [vmem:[%s15479_s5 + $0x80] sm:$0xff] }
0x6985   : > { %v8756_v12 = vsel %vm1230_vm1, %v8751_v11, 0.0 }
0x6986   : > { %8757 = vadd.xlane.f32.xlu0 %v8756_v12  ;;  %v11602_v12 = vld [vmem:[%s15481_s6 + $0x98] sm:$0xff] }
0x6a0f   : > { %v8758_v13 = vpop.xlane.xlu0 %8757 }
0x6a10   : > { %v8759_v14 = vmul.f32 0.03125, %v8758_v13  ;;  %v11601_v13 = vld [vmem:[%s15481_s6 + $0x90] sm:$0xff] }
0x6a12   : > { %v8760_v15 = vsub.f32 %v8751_v11, %v8759_v14  ;;  %v11600_v14 = vld [vmem:[%s15481_s6 + $0x88] sm:$0xff] }
0x6a14   : > { %v8761_v16 = vmul.f32 %v8760_v15, %v8760_v15 }
0x6a16   : > { %v8762_v17 = vsel %vm1230_vm1, %v8761_v16, 0.0 }
0x6a17   : > { %8763 = vadd.xlane.f32.xlu0 %v8762_v17 }
0x6aa0   : > { %v8764_v22 = vpop.xlane.xlu0 %8763 }
0x6aa1   : > { %v8765_v23 = vmul.f32 0.03125, %v8764_v22  ;;  %v11598_v22 = vld [vmem:[%s15485_s12 + $0x4] ss:$0 sm:$0xff] }
0x6aa3   : > { %v8766_v24 = vadd.f32 1e-05, %v8765_v23  ;;  %v11611_v23 = vld [vmem:[%s15486_s4 + $0x4] ss:$0 sm:$0xff] }
0x6aa5   : > { %13424 = vrsqrt.f32 %v8766_v24 }
0x6ab2   : > { %v13425_v25 = vpop.eup %13424 }
0x6ab3   : > { %v8768_v27 = vmul.f32 %v13425_v25, %v8760_v15  ;;  %v11599_v15 = vld [vmem:[%s15481_s6 + $0x80] sm:$0xff] }
0x6ab5   : > { %v8775_v29 = vmul.f32 %v11576_v26, %v8768_v27  ;;  %v11604_v27 = vld [vmem:[%s15488_s10 + $0x4] ss:$0 sm:$0xff] }
0x6ab7   : > { %v15080_v30 = vadd.f32 %v11577_v28, %v8775_v29 }
0x6ab9   : > { %12956 = vmatmul.mubr.msk.f32.vlgmr.msra.gmra.mxu1 %vm1230_vm1, %v15080_v30 }
0x6aba   : > { %12960 = vmatprep.mubr.msk.f32.mxu1 %vm13766_vm0, %v13765_v0 }
0x6b79   : > { %v8865_v32 = vpop.f32.mrf.mxu1 }
0x6b7a   : > { %v8866_v33 = vadd.f32 %v11583_v31, %v8865_v32 }
0x6b7b   : > { %v12957_v34 = vpop.f32.mrf.mxu1 }
0x6b7c   : > { %8870 = vrot.lane.b32.xlu0 %v8866_v33, %s15489_s7 }
0x6bee   : > { %v8871_v35 = vpop.permute.xlu0 %8870 }
0x6bef   : > { %12959 = vmatpush3.xpose.msk.msra.mxu1 %vm1230_vm1, %v8871_v35 }
0x6bf0   : > { %12963 = vmatprep.subr.mxu1 %v13765_v0 }
0x6bf2   : > { %12961 = vmatmul.mubr.msk.f32.vlgmr.msra.gmra.mxu1 %vm1230_vm1, %v8866_v33 }
0x6bf3   : > { %12965 = vmatprep.mubr.msk.f32.mxu1 %vm13766_vm0, %v13765_v0 }
0x6cb2   : > { %v8942_v36 = vpop.f32.mrf.mxu1 }
0x6cb3   : > { %v8946_v37 = vmul.f32 0.17677669, %v8942_v36 }
0x6cb4   : > { %v12962_v38 = vpop.f32.mrf.mxu1 }
0x6cb5   : > { %v8947_v39 = vsel %vm14590_vm4, %v8946_v37, -1e+09 }
0x6cb6   : > { %v8948_v40 = vsel %vm1382_vm2, %v8947_v39, -inf }
0x6cb7   : > { %8949 = vmax.xlane.f32.xlu1 %v8948_v40  ;;  %v9490_v40 = vld [vmem:[#allocation2 + $0x98] sm:$0xff] }
0x6cc8   : > { %8959 = vrot.lane.b32.xlu1 %v8866_v33, %s15496_s2 }
0x6d40   : > { %v8950_v41 = vpop.xlane.xlu1 %8949 }
0x6d41   : > { %v8951_v42 = vsub.f32 %v8947_v39, %v8950_v41  ;;  %v9489_v41 = vld [vmem:[#allocation2 + $0x90] sm:$0xff] }
0x6d43   : > { %v8952_v43 = vmul.f32 1.442695, %v8951_v42  ;;  %v9488_v42 = vld [vmem:[#allocation2 + $0x88] sm:$0xff] }
0x6d44   : > { %v8960_v44 = vpop.permute.xlu1 %8959 }
0x6d45   : > { %13426 = vpow2.f32 %v8952_v43  ;;  %12964 = vmatpush3.msra.mxu1 %v8960_v44 }
0x6d46   : > { %12979 = vmatprep.subr.mxu1 %v13765_v0 }
0x6d52   : > { %v13427_v45 = vpop.eup %13426 }
0x6d53   : > { %v8954_v46 = vsel %vm1382_vm2, %v13427_v45, 0.0 }
0x6d54   : > { %8955 = vadd.xlane.f32.xlu0 %v8954_v46 }
0x6ddd   : > { %v8956_v51 = vpop.xlane.xlu0 %8955 }
0x6dde   : > { %13428 = vrcp.f32 %v8956_v51 }
0x6deb   : > { %v13429_v52 = vpop.eup %13428 }
0x6dec   : > { %v8958_v53 = vmul.f32 %v13429_v52, %v13427_v45 }
0x6dee   : > { %12966 = vmatmul.mubr.msk.f32.vlgmr.msra.gmra.mxu1 %vm1382_vm2, %v8958_v53 }
0x6def   : > { %12987 = vmatprep.mubr.msk.f32.mxu1 %vm13766_vm0, %v13765_v0  ;;  %12980 = vmatpush3.msra.mxu1 %v11602_v12 }
0x6df0   : > { %12981 = vmatprep.subr.mxu1 %v13765_v0 }
0x6df1   : > { %12982 = vmatpush3.msra.mxu1 %v11601_v13  ;;  %v11620_v13 = vld [vmem:[%s15495_s17 + $0x4] ss:$0 sm:$0xff] }
0x6df2   : > { %12983 = vmatprep.subr.mxu1 %v13765_v0 }
0x6df3   : > { %12984 = vmatpush3.msra.mxu1 %v11600_v14 }
0x6df4   : > { %12985 = vmatprep.subr.mxu1 %v13765_v0 }
0x6df5   : > { %12986 = vmatpush3.msra.mxu1 %v11599_v15  ;;  %v11621_v15 = vld [vmem:[#allocation5 + $0x4] ss:$0 sm:$0xff] }
0x6df6   : > { %13001 = vmatprep.subr.mxu1 %v13765_v0 }
0x6eae   : > { %v9031_v55 = vpop.f32.mrf.mxu1 }
0x6eaf   : > { %12977 = vmatmul.mubr.msk.f32.vlgmr.msra.gmra.mxu0 %vm1230_vm1, %v9031_v55 }
0x6eb0   : > { %12991 = vmatpush3.msra.mxu0 %v11609_v54  ;;  %v12967_v58 = vpop.f32.mrf.mxu1  ;;  %12998 = vmatprep.mubr.msk.f32.mxu0 %vm13766_vm0, %v13765_v0 }
0x6eb1   : > { %12992 = vmatprep.subr.mxu0 %v13765_v0 }
0x6eb2   : > { %12993 = vmatpush3.msra.mxu0 %v11608_v57 }
0x6eb3   : > { %12994 = vmatprep.subr.mxu0 %v13765_v0 }
0x6eb4   : > { %12995 = vmatpush3.msra.mxu0 %v11607_v59 }
0x6eb5   : > { %12996 = vmatprep.subr.mxu0 %v13765_v0 }
0x6eb6   : > { %12997 = vmatpush3.msra.mxu0 %v11606_v60 }
0x6eb7   : > { %12999 = vmatmul.mubr.msk.f32.vlgmr.msra.gmra.mxu0 %vm1230_vm1, %v14631_v56  ;;  %13011 = vmatprep.subr.mxu0 %v13765_v0 }
0x6eb8   : > { %13019 = vmatprep.mubr.msk.f32.mxu0 %vm13766_vm0, %v13765_v0  ;;  %13012 = vmatpush3.msra.mxu0 %v9490_v40  ;;  %v11636_v40 = vld [vmem:[%s15468_s15 + $0xa0] sm:$0xff] }
0x6eb9   : > { %13013 = vmatprep.subr.mxu0 %v13765_v0 }
0x6eba   : > { %13014 = vmatpush3.msra.mxu0 %v9489_v41 }
0x6ebb   : > { %13015 = vmatprep.subr.mxu0 %v13765_v0 }
0x6ebc   : > { %13016 = vmatpush3.msra.mxu0 %v9488_v42 }
0x6ebd   : > { %13017 = vmatprep.subr.mxu0 %v13765_v0 }
0x6ebe   : > { %13018 = vmatpush3.msra.mxu0 %v9487_v47  ;;  %v11635_v47 = vld [vmem:[#allocation13 + $0x4] ss:$0 sm:$0xff] }
0x6ebf   : > { %13033 = vmatprep.subr.mxu0 %v13765_v0 }
0x6f6f   : > { %v9117_v62 = vpop.f32.mrf.mxu0 }
0x6f70   : > { %v9118_v63 = vadd.f32 %v11593_v61, %v9117_v62  ;;  %v9608_v62 = vld [vmem:[#allocation7 + $0x98] sm:$0xff] }
0x6f71   : > { %v12978_v1 = vpop.f32.mrf.mxu0 }
0x6f72   : > { %v9121_v2 = vadd.f32 %v9118_v63, %v15080_v30  ;;  %v9607_v63 = vld [vmem:[#allocation7 + $0x90] sm:$0xff]  ;;  %v9606_v1 = vld [vmem:[#allocation7 + $0x88] sm:$0xff] }
0x6f74   : > { %v9126_v3 = vsel %vm1230_vm1, %v9121_v2, 0.0 }
0x6f75   : > { %9127 = vadd.xlane.f32.xlu1 %v9126_v3  ;;  %v11631_v3 = vld [vmem:[%s15493_s16 + $0x138] sm:$0xff] }
0x6f77   : > { %v9318_v5 = vpop.f32.mrf.mxu0 }
0x6f78   : > { %v9319_v26 = vadd.f32 %v11611_v23, %v9318_v5  ;;  %v11630_v5 = vld [vmem:[%s15493_s16 + $0x130] sm:$0xff] }
0x6f79   : > { %v13000_v6 = vpop.f32.mrf.mxu0 }
0x6f7a   : > { %v11629_v6 = vld [vmem:[%s15493_s16 + $0x128] sm:$0xff] }
0x6ffe   : > { %v9128_v7 = vpop.xlane.xlu1 %9127 }
0x6fff   : > { %v9129_v8 = vmul.f32 0.03125, %v9128_v7  ;;  %v11628_v7 = vld [vmem:[%s15493_s16 + $0x120] sm:$0xff] }
0x7001   : > { %v9130_v9 = vsub.f32 %v9121_v2, %v9129_v8  ;;  %v9605_v2 = vld [vmem:[#allocation7 + $0x80] sm:$0xff]  ;;  %v11627_v8 = vld [vmem:[%s15493_s16 + $0x118] sm:$0xff] }
0x7003   : > { %v9131_v10 = vmul.f32 %v9130_v9, %v9130_v9 }
0x7005   : > { %v9132_v11 = vsel %vm1230_vm1, %v9131_v10, 0.0 }
0x7006   : > { %9133 = vadd.xlane.f32.xlu0 %v9132_v11 }
0x708f   : > { %v9134_v16 = vpop.xlane.xlu0 %9133 }
0x7090   : > { %v9135_v17 = vmul.f32 0.03125, %v9134_v16 }
0x7092   : > { %v9136_v18 = vadd.f32 1e-05, %v9135_v17 }
0x7094   : > { %13430 = vrsqrt.f32 %v9136_v18  ;;  %v11626_v18 = vld [vmem:[%s15493_s16 + $0x110] sm:$0xff] }
0x70a1   : > { %v13431_v19 = vpop.eup %13430 }
0x70a2   : > { %v9138_v21 = vmul.f32 %v13431_v19, %v9130_v9  ;;  %v11625_v19 = vld [vmem:[%s15493_s16 + $0x108] sm:$0xff] }
0x70a4   : > { %v9145_v24 = vmul.f32 %v11597_v20, %v9138_v21  ;;  %v11624_v20 = vld [vmem:[%s15493_s16 + $0x100] sm:$0xff]  ;;  %v11622_v21 = vld [vmem:[#allocation8 + $0x4] ss:$0 sm:$0xff] }
0x70a6   : > { %v9152_v25 = vadd.f32 %v11598_v22, %v9145_v24 }
0x70a8   : > { %12988 = vmatmul.mubr.msk.f32.vlgmr.msra.gmra.mxu1 %vm1230_vm1, %v9152_v25 }
0x70a9   : > { %13002 = vmatpush3.xpose.msk.msra.mxu1 %vm1230_vm1, %v9319_v26  ;;  %13003 = vmatprep.mubr.msk.f32.mxu1 %vm13766_vm0, %v13765_v0 }
0x70aa   : > { %13006 = vmatprep.subr.mxu1 %v13765_v0 }
0x7168   : > { %v9235_v28 = vpop.f32.mrf.mxu1 }
0x7169   : > { %v9236_v29 = vadd.f32 %v11604_v27, %v9235_v28 }
0x716a   : > { %v12989_v30 = vpop.f32.mrf.mxu1 }
0x716b   : > { %13004 = vmatmul.mubr.msk.f32.vlgmr.msra.gmra.mxu1 %vm1230_vm1, %v9236_v29 }
0x716c   : > { %13008 = vmatprep.mubr.msk.f32.mxu1 %vm13766_vm0, %v13765_v0 }
0x722b   : > { %v9394_v31 = vpop.f32.mrf.mxu1 }
0x722c   : > { %v9398_v32 = vmul.f32 0.17677669, %v9394_v31 }
0x722d   : > { %v13005_v33 = vpop.f32.mrf.mxu1 }
0x722e   : > { %v9399_v34 = vsel %vm1382_vm2, %v9398_v32, -inf }
0x722f   : > { %9400 = vmax.xlane.f32.xlu0 %v9399_v34 }
0x72b8   : > { %v9401_v35 = vpop.xlane.xlu0 %9400 }
0x72b9   : > { %v9402_v36 = vsub.f32 %v9398_v32, %v9401_v35 }
0x72bb   : > { %v9403_v37 = vmul.f32 1.442695, %v9402_v36 }
0x72bd   : > { %13432 = vpow2.f32 %v9403_v37  ;;  %v11639_v37 = vld [vmem:[%s15468_s15 + $0xb8] sm:$0xff] }
0x72ca   : > { %v13433_v38 = vpop.eup %13432 }
0x72cb   : > { %v9405_v39 = vsel %vm1382_vm2, %v13433_v38, 0.0 }
0x72cc   : > { %9406 = vadd.xlane.f32.xlu0 %v9405_v39  ;;  %v11637_v39 = vld [vmem:[%s15468_s15 + $0xa8] sm:$0xff] }
0x72e2   : > { %9410 = vrot.lane.b32.xlu0 %v9319_v26, %s15489_s7  ;;  %v11632_v26 = vld [vmem:[#allocation10 + $0x4] ss:$0 sm:$0xff] }
0x7355   : > { %v9407_v43 = vpop.xlane.xlu0 %9406 }
0x7356   : > { %13434 = vrcp.f32 %v9407_v43 }
0x7359   : > { %v9411_v44 = vpop.permute.xlu0 %9410 }
0x735a   : > { %13007 = vmatpush3.msra.mxu1 %v9411_v44 }
0x735b   : > { %13022 = vmatprep.subr.mxu1 %v13765_v0 }
0x7363   : > { %v13435_v45 = vpop.eup %13434 }
0x7364   : > { %v9409_v46 = vmul.f32 %v13435_v45, %v13433_v38  ;;  %v11638_v38 = vld [vmem:[%s15468_s15 + $0xb0] sm:$0xff] }
0x7365   : > { %v11634_v45 = vld [vmem:[#allocation11 + $0x4] ss:$0 sm:$0xff] }
0x7366   : > { %13009 = vmatmul.mubr.msk.f32.vlgmr.msra.gmra.mxu1 %vm1382_vm2, %v9409_v46 }
0x7367   : > { %13030 = vmatprep.mubr.msk.f32.mxu1 %vm13766_vm0, %v13765_v0  ;;  %13023 = vmatpush3.msra.mxu1 %v9608_v62 }
0x7368   : > { %13024 = vmatprep.subr.mxu1 %v13765_v0 }
0x7369   : > { %13025 = vmatpush3.msra.mxu1 %v9607_v63 }
0x736a   : > { %13026 = vmatprep.subr.mxu1 %v13765_v0 }
0x736b   : > { %13027 = vmatpush3.msra.mxu1 %v9606_v1 }
0x736c   : > { %13028 = vmatprep.subr.mxu1 %v13765_v0 }
0x736d   : > { %13029 = vmatpush3.msra.mxu1 %v9605_v2 }
0x736e   : > { %13052 = vmatprep.subr.mxu1 %v13765_v0 }
0x7426   : > { %v9482_v48 = vpop.f32.mrf.mxu1 }
0x7427   : > { %13020 = vmatmul.mubr.msk.f32.vlgmr.msra.gmra.mxu0 %vm1230_vm1, %v9482_v48 }
0x7428   : > { %v13010_v49 = vpop.f32.mrf.mxu1  ;;  %13049 = vmatprep.mubr.msk.f32.mxu0 %vm13766_vm0, %v13765_v0  ;;  %13034 = vmatpush3.msra.mxu0 %v11631_v3  ;;  %v11649_v3 = vld [vmem:[%s15475_s11 + $0xb8] sm:$0xff] }
0x7429   : > { %13035 = vmatprep.subr.mxu0 %v13765_v0 }
0x742a   : > { %13036 = vmatpush3.msra.mxu0 %v11630_v5  ;;  %v11648_v5 = vld [vmem:[%s15475_s11 + $0xb0] sm:$0xff] }
0x742b   : > { %13037 = vmatprep.subr.mxu0 %v13765_v0 }
0x742c   : > { %13038 = vmatpush3.msra.mxu0 %v11629_v6  ;;  %v11646_v6 = vld [vmem:[%s15475_s11 + $0xa0] sm:$0xff] }
0x742d   : > { %13039 = vmatprep.subr.mxu0 %v13765_v0 }
0x742e   : > { %13040 = vmatpush3.msra.mxu0 %v11628_v7 }
0x742f   : > { %13041 = vmatprep.subr.mxu0 %v13765_v0 }
0x7430   : > { %13042 = vmatpush3.msra.mxu0 %v11627_v8 }
0x7431   : > { %13043 = vmatprep.subr.mxu0 %v13765_v0 }
0x7432   : > { %13044 = vmatpush3.msra.mxu0 %v11626_v18 }
0x7433   : > { %13045 = vmatprep.subr.mxu0 %v13765_v0 }
0x7434   : > { %13046 = vmatpush3.msra.mxu0 %v11625_v19 }
0x7435   : > { %13047 = vmatprep.subr.mxu0 %v13765_v0 }
0x7436   : > { %13048 = vmatpush3.msra.mxu0 %v11624_v20 }
0x7437   : > { %13073 = vmatprep.subr.mxu0 %v13765_v0 }
0x74e7   : > { %v9568_v51 = vpop.f32.mrf.mxu0 }
0x74e8   : > { %v9569_v52 = vadd.f32 %v11617_v50, %v9568_v51  ;;  %v11641_v50 = vld [vmem:[%s15471_s26 + $0x5] ss:$0 sm:$0xff] }
0x74e9   : > { %v13021_v53 = vpop.f32.mrf.mxu0 }
0x74ea   : > { %v9572_v54 = vadd.f32 %v9569_v52, %v9152_v25 }
0x74ec   : > { %v9577_v55 = vsel %vm1230_vm1, %v9572_v54, 0.0 }
0x74ed   : > { %9578 = vadd.xlane.f32.xlu1 %v9577_v55 }
0x7576   : > { %v9579_v57 = vpop.xlane.xlu1 %9578 }
0x7577   : > { %v9580_v58 = vmul.f32 0.03125, %v9579_v57 }
0x7579   : > { %v9581_v59 = vsub.f32 %v9572_v54, %v9580_v58 }
0x757b   : > { %v9582_v60 = vmul.f32 %v9581_v59, %v9581_v59 }
0x757d   : > { %v9583_v61 = vsel %vm1230_vm1, %v9582_v60, 0.0 }
0x757e   : > { %9584 = vadd.xlane.f32.xlu1 %v9583_v61 }
0x7607   : > { %v9585_v9 = vpop.xlane.xlu1 %9584 }
0x7608   : > { %v9586_v10 = vmul.f32 0.03125, %v9585_v9 }
0x760a   : > { %v9587_v11 = vadd.f32 1e-05, %v9586_v10 }
0x760c   : > { %13436 = vrsqrt.f32 %v9587_v11  ;;  %v11667_v11 = vld [vmem:[%s15479_s5 + $0xb8] sm:$0xff] }
0x7619   : > { %v13437_v12 = vpop.eup %13436 }
0x761a   : > { %v9589_v14 = vmul.f32 %v13437_v12, %v9581_v59 }
0x761c   : > { %v9596_v16 = vmul.f32 %v11620_v13, %v9589_v14  ;;  %v11666_v13 = vld [vmem:[%s15479_s5 + $0xb0] sm:$0xff] }
0x761e   : > { %v9603_v17 = vadd.f32 %v11621_v15, %v9596_v16  ;;  %v11665_v15 = vld [vmem:[%s15479_s5 + $0xa8] sm:$0xff]  ;;  %v11664_v16 = vld [vmem:[%s15479_s5 + $0xa0] sm:$0xff] }
0x7620   : > { %13031 = vmatmul.mubr.msk.f32.vlgmr.msra.gmra.mxu1 %vm1230_vm1, %v9603_v17 }
0x7621   : > { %13060 = vmatprep.mubr.msk.f32.mxu1 %vm13766_vm0, %v13765_v0  ;;  %13053 = vmatpush3.msra.mxu1 %v11639_v37  ;;  %v11655_v37 = vld [vmem:[%s15483_s8 + $0x5] ss:$0 sm:$0xff] }
0x7622   : > { %13054 = vmatprep.subr.mxu1 %v13765_v0 }
0x7623   : > { %13055 = vmatpush3.msra.mxu1 %v11638_v38 }
0x7624   : > { %13056 = vmatprep.subr.mxu1 %v13765_v0 }
0x7625   : > { %13057 = vmatpush3.msra.mxu1 %v11637_v39  ;;  %v11656_v39 = vld [vmem:[%s15485_s12 + $0x5] ss:$0 sm:$0xff] }
0x7626   : > { %13058 = vmatprep.subr.mxu1 %v13765_v0 }
0x7627   : > { %13059 = vmatpush3.msra.mxu1 %v11636_v40  ;;  %v11669_v40 = vld [vmem:[%s15486_s4 + $0x5] ss:$0 sm:$0xff] }
0x7628   : > { %13063 = vmatprep.subr.mxu1 %v13765_v0 }
0x76e0   : > { %v9686_v22 = vpop.f32.mrf.mxu1 }
0x76e1   : > { %v9687_v23 = vadd.f32 %v11622_v21, %v9686_v22 }
0x76e2   : > { %v13032_v24 = vpop.f32.mrf.mxu1 }
0x76e3   : > { %v9690_v25 = vmax.f32 %v9687_v23, 0.0 }
0x76e5   : > { %13050 = vmatmul.mubr.msk.f32.vlgmr.msra.gmra.mxu0 %vm1685_vm3, %v9690_v25 }
0x76e6   : > { %13081 = vmatprep.mubr.msk.f32.mxu0 %vm13766_vm0, %v13765_v0  ;;  %13074 = vmatpush3.msra.mxu0 %v11649_v3 }
0x76e7   : > { %13075 = vmatprep.subr.mxu0 %v13765_v0 }
0x76e8   : > { %13076 = vmatpush3.msra.mxu0 %v11648_v5 }
0x76e9   : > { %13077 = vmatprep.subr.mxu0 %v13765_v0 }
0x76ea   : > { %13078 = vmatpush3.msra.mxu0 %v11647_v4  ;;  %v11675_v4 = vld [vmem:[%s15491_s13 + $0x5] ss:$0 sm:$0xff] }
0x76eb   : > { %13079 = vmatprep.subr.mxu0 %v13765_v0 }
0x76ec   : > { %13080 = vmatpush3.msra.mxu0 %v11646_v6 }
0x76ed   : > { %13095 = vmatprep.subr.mxu0 %v13765_v0 }
0x77a5   : > { %v9777_v27 = vpop.f32.mrf.mxu0 }
0x77a6   : > { %v9778_v28 = vadd.f32 %v11632_v26, %v9777_v27 }
0x77a7   : > { %v13051_v29 = vpop.f32.mrf.mxu0 }
0x77a8   : > { %v9781_v30 = vadd.f32 %v9778_v28, %v9603_v17  ;;  %v11651_v17 = vld [vmem:[%s15477_s23 + $0x5] ss:$0 sm:$0xff]  ;;  %v11660_v29 = vld [vmem:[%s15481_s6 + $0xb8] sm:$0xff] }
0x77aa   : > { %v9786_v31 = vsel %vm1230_vm1, %v9781_v30, 0.0 }
0x77ab   : > { %9787 = vadd.xlane.f32.xlu1 %v9786_v31  ;;  %v11658_v31 = vld [vmem:[%s15481_s6 + $0xa8] sm:$0xff] }
0x7834   : > { %v9788_v32 = vpop.xlane.xlu1 %9787 }
0x7835   : > { %v9789_v33 = vmul.f32 0.03125, %v9788_v32  ;;  %v11657_v32 = vld [vmem:[%s15481_s6 + $0xa0] sm:$0xff] }
0x7837   : > { %v9790_v34 = vsub.f32 %v9781_v30, %v9789_v33  ;;  %v11659_v30 = vld [vmem:[%s15481_s6 + $0xb0] sm:$0xff] }
0x7839   : > { %v9791_v35 = vmul.f32 %v9790_v34, %v9790_v34 }
0x783b   : > { %v9792_v36 = vsel %vm1230_vm1, %v9791_v35, 0.0 }
0x783c   : > { %9793 = vadd.xlane.f32.xlu0 %v9792_v36 }
0x78c5   : > { %v9794_v41 = vpop.xlane.xlu0 %9793 }
0x78c6   : > { %v9795_v42 = vmul.f32 0.03125, %v9794_v41 }
0x78c8   : > { %v9796_v43 = vadd.f32 1e-05, %v9795_v42 }
0x78ca   : > { %13438 = vrsqrt.f32 %v9796_v43 }
0x78d7   : > { %v13439_v44 = vpop.eup %13438 }
0x78d8   : > { %v9798_v46 = vmul.f32 %v13439_v44, %v9790_v34  ;;  %v11662_v44 = vld [vmem:[%s15488_s10 + $0x5] ss:$0 sm:$0xff]  ;;  %s13769_s10 = smov [#allocation14]  }
0x78d9   : > { %s13644_s11 = sshll.u32 %s13769_s10, 4  ;;  %s13645_s11 = int_to_ptr.vmem [resolvable:$false] %s13644_s11 }
0x78da   : > { %v9805_v48 = vmul.f32 %v11634_v45, %v9798_v46  ;;  %s13646_s12 = scalar_lea.vmem %s13645_s11, 256 }
0x78dc   : > { %v15203_v49 = vadd.f32 %v11635_v47, %v9805_v48 }
0x78de   : > { %13061 = vmatmul.mubr.msk.f32.vlgmr.msra.gmra.mxu1 %vm1230_vm1, %v15203_v49 }
0x78df   : > { %13065 = vmatprep.mubr.msk.f32.mxu1 %vm13766_vm0, %v13765_v0 }
0x799e   : > { %v9895_v51 = vpop.f32.mrf.mxu1 }
0x799f   : > { %v9896_v52 = vadd.f32 %v11641_v50, %v9895_v51 }
0x79a0   : > { %v13062_v53 = vpop.f32.mrf.mxu1 }
0x79a1   : > { %9900 = vrot.lane.b32.xlu1 %v9896_v52, %s15489_s7 }
0x7a13   : > { %v9901_v54 = vpop.permute.xlu1 %9900 }
0x7a14   : > { %13064 = vmatpush3.xpose.msk.msra.mxu1 %vm1230_vm1, %v9901_v54 }
0x7a15   : > { %13068 = vmatprep.subr.mxu1 %v13765_v0 }
0x7a17   : > { %13066 = vmatmul.mubr.msk.f32.vlgmr.msra.gmra.mxu1 %vm1230_vm1, %v9896_v52 }
0x7a18   : > { %13070 = vmatprep.mubr.msk.f32.mxu1 %vm13766_vm0, %v13765_v0 }
0x7ad7   : > { %v9972_v55 = vpop.f32.mrf.mxu1 }
0x7ad8   : > { %v9976_v57 = vmul.f32 0.17677669, %v9972_v55 }
0x7ad9   : > { %v13067_v58 = vpop.f32.mrf.mxu1 }
0x7ada   : > { %v9977_v59 = vsel %vm14590_vm4, %v9976_v57, -1e+09  ;;  %v10520_v58 = vld [vmem:[#allocation2 + $0xb8] sm:$0xff] }
0x7adb   : > { %v9978_v60 = vsel %vm1382_vm2, %v9977_v59, -inf }
0x7adc   : > { %9979 = vmax.xlane.f32.xlu1 %v9978_v60  ;;  %v10518_v60 = vld [vmem:[#allocation2 + $0xa8] sm:$0xff] }
0x7b65   : > { %v9980_v61 = vpop.xlane.xlu1 %9979 }
0x7b66   : > { %v9981_v62 = vsub.f32 %v9977_v59, %v9980_v61  ;;  %v10519_v59 = vld [vmem:[#allocation2 + $0xb0] sm:$0xff] }
0x7b68   : > { %v9982_v63 = vmul.f32 1.442695, %v9981_v62 }
0x7b6a   : > { %13440 = vpow2.f32 %v9982_v63 }
0x7b77   : > { %v13441_v1 = vpop.eup %13440 }
0x7b78   : > { %v9984_v2 = vsel %vm1382_vm2, %v13441_v1, 0.0 }
0x7b79   : > { %9985 = vadd.xlane.f32.xlu0 %v9984_v2  ;;  %v10517_v2 = vld [vmem:[#allocation2 + $0xa0] sm:$0xff] }
0x7b8f   : > { %9989 = vrot.lane.b32.xlu0 %v9896_v52, %s15496_s2  ;;  %s11697_s2 = sshll.u32 %s13981_s0, 7 }
0x7b90   : > { %s10949_s6 = scalar_lea.hbm %s13958_s3, %s11697_s2 }
0x7c02   : > { %v9986_v7 = vpop.xlane.xlu0 %9985 }
0x7c03   : > { %13442 = vrcp.f32 %v9986_v7 }
0x7c06   : > { %v9990_v8 = vpop.permute.xlu0 %9989 }
0x7c07   : > { %13069 = vmatpush3.msra.mxu1 %v9990_v8 }
0x7c08   : > { %13084 = vmatprep.subr.mxu1 %v13765_v0 }
0x7c10   : > { %v13443_v9 = vpop.eup %13442 }
0x7c11   : > { %v9988_v10 = vmul.f32 %v13443_v9, %v13441_v1 }
0x7c13   : > { %13071 = vmatmul.mubr.msk.f32.vlgmr.msra.gmra.mxu1 %vm1382_vm2, %v9988_v10 }
0x7c14   : > { %13092 = vmatprep.mubr.msk.f32.mxu1 %vm13766_vm0, %v13765_v0  ;;  %13085 = vmatpush3.msra.mxu1 %v11660_v29 }
0x7c15   : > { %13086 = vmatprep.subr.mxu1 %v13765_v0 }
0x7c16   : > { %13087 = vmatpush3.msra.mxu1 %v11659_v30  ;;  %v11679_v30 = vld [vmem:[#allocation5 + $0x5] ss:$0 sm:$0xff] }
0x7c17   : > { %13088 = vmatprep.subr.mxu1 %v13765_v0 }
0x7c18   : > { %13089 = vmatpush3.msra.mxu1 %v11658_v31 }
0x7c19   : > { %13090 = vmatprep.subr.mxu1 %v13765_v0 }
0x7c1a   : > { %13091 = vmatpush3.msra.mxu1 %v11657_v32 }
0x7c1b   : > { %13106 = vmatprep.subr.mxu1 %v13765_v0 }
0x7cd3   : > { %v10061_v12 = vpop.f32.mrf.mxu1 }
0x7cd4   : > { %13082 = vmatmul.mubr.msk.f32.vlgmr.msra.gmra.mxu0 %vm1230_vm1, %v10061_v12 }
0x7cd5   : > { %13096 = vmatpush3.msra.mxu0 %v11667_v11  ;;  %v13072_v14 = vpop.f32.mrf.mxu1  ;;  %13103 = vmatprep.mubr.msk.f32.mxu0 %vm13766_vm0, %v13765_v0 }
0x7cd6   : > { %13097 = vmatprep.subr.mxu0 %v13765_v0 }
0x7cd7   : > { %13098 = vmatpush3.msra.mxu0 %v11666_v13 }
0x7cd8   : > { %13099 = vmatprep.subr.mxu0 %v13765_v0 }
0x7cd9   : > { %13100 = vmatpush3.msra.mxu0 %v11665_v15 }
0x7cda   : > { %13101 = vmatprep.subr.mxu0 %v13765_v0 }
0x7cdb   : > { %13102 = vmatpush3.msra.mxu0 %v11664_v16  ;;  %v10638_v16 = vld [vmem:[#allocation7 + $0xb8] sm:$0xff] }
0x7cdc   : > { %13104 = vmatmul.mubr.msk.f32.vlgmr.msra.gmra.mxu0 %vm1230_vm1, %v14631_v56  ;;  %13116 = vmatprep.subr.mxu0 %v13765_v0 }
0x7cdd   : > { %13124 = vmatprep.mubr.msk.f32.mxu0 %vm13766_vm0, %v13765_v0  ;;  %13117 = vmatpush3.msra.mxu0 %v10520_v58 }
0x7cde   : > { %13118 = vmatprep.subr.mxu0 %v13765_v0 }
0x7cdf   : > { %13119 = vmatpush3.msra.mxu0 %v10519_v59 }
0x7ce0   : > { %13120 = vmatprep.subr.mxu0 %v13765_v0 }
0x7ce1   : > { %13121 = vmatpush3.msra.mxu0 %v10518_v60 }
0x7ce2   : > { %13122 = vmatprep.subr.mxu0 %v13765_v0 }
0x7ce3   : > { %13123 = vmatpush3.msra.mxu0 %v10517_v2 }
0x7ce4   : > { %13138 = vmatprep.subr.mxu0 %v13765_v0 }
0x7d94   : > { %v10147_v18 = vpop.f32.mrf.mxu0 }
0x7d95   : > { %v10148_v19 = vadd.f32 %v11651_v17, %v10147_v18  ;;  %v10637_v17 = vld [vmem:[#allocation7 + $0xb0] sm:$0xff]  ;;  %v10636_v18 = vld [vmem:[#allocation7 + $0xa8] sm:$0xff] }
0x7d96   : > { %v13083_v20 = vpop.f32.mrf.mxu0 }
0x7d97   : > { %v10151_v21 = vadd.f32 %v10148_v19, %v15203_v49  ;;  %v10635_v19 = vld [vmem:[#allocation7 + $0xa0] sm:$0xff]  ;;  %v11689_v20 = vld [vmem:[%s15493_s16 + $0x178] sm:$0xff] }
0x7d99   : > { %v10156_v22 = vsel %vm1230_vm1, %v10151_v21, 0.0 }
0x7d9a   : > { %10157 = vadd.xlane.f32.xlu1 %v10156_v22  ;;  %v11687_v22 = vld [vmem:[%s15493_s16 + $0x168] sm:$0xff] }
0x7d9c   : > { %v10348_v23 = vpop.f32.mrf.mxu0 }
0x7d9d   : > { %v10349_v43 = vadd.f32 %v11669_v40, %v10348_v23  ;;  %v11686_v23 = vld [vmem:[%s15493_s16 + $0x160] sm:$0xff] }
0x7d9e   : > { %v13105_v56 = vpop.f32.mrf.mxu0 }
0x7d9f   : > { %v11685_v56 = vld [vmem:[%s15493_s16 + $0x158] sm:$0xff] }
0x7e23   : > { %v10158_v24 = vpop.xlane.xlu1 %10157 }
0x7e24   : > { %v10159_v25 = vmul.f32 0.03125, %v10158_v24 }
0x7e26   : > { %v10160_v26 = vsub.f32 %v10151_v21, %v10159_v25  ;;  %v11688_v21 = vld [vmem:[%s15493_s16 + $0x170] sm:$0xff] }
0x7e28   : > { %v10161_v27 = vmul.f32 %v10160_v26, %v10160_v26 }
0x7e2a   : > { %v10162_v28 = vsel %vm1230_vm1, %v10161_v27, 0.0 }
0x7e2b   : > { %10163 = vadd.xlane.f32.xlu0 %v10162_v28  ;;  %v11678_v28 = vld [vmem:[%s15495_s17 + $0x5] ss:$0 sm:$0xff] }
0x7eb4   : > { %v10164_v33 = vpop.xlane.xlu0 %10163 }
0x7eb5   : > { %v10165_v34 = vmul.f32 0.03125, %v10164_v33  ;;  %v11684_v33 = vld [vmem:[%s15493_s16 + $0x150] sm:$0xff] }
0x7eb7   : > { %v10166_v35 = vadd.f32 1e-05, %v10165_v34  ;;  %v11683_v34 = vld [vmem:[%s15493_s16 + $0x148] sm:$0xff] }
0x7eb9   : > { %13444 = vrsqrt.f32 %v10166_v35  ;;  %v11682_v35 = vld [vmem:[%s15493_s16 + $0x140] sm:$0xff] }
0x7ec6   : > { %v13445_v36 = vpop.eup %13444 }
0x7ec7   : > { %v10168_v38 = vmul.f32 %v13445_v36, %v10160_v26  ;;  %v11680_v36 = vld [vmem:[#allocation8 + $0x5] ss:$0 sm:$0xff] }
0x7ec9   : > { %v10175_v41 = vmul.f32 %v11655_v37, %v10168_v38 }
0x7ecb   : > { %v10182_v42 = vadd.f32 %v11656_v39, %v10175_v41  ;;  %v11690_v41 = vld [vmem:[#allocation10 + $0x5] ss:$0 sm:$0xff] }
0x7ecd   : > { %13093 = vmatmul.mubr.msk.f32.vlgmr.msra.gmra.mxu1 %vm1230_vm1, %v10182_v42 }
0x7ece   : > { %13107 = vmatpush3.xpose.msk.msra.mxu1 %vm1230_vm1, %v10349_v43  ;;  %13108 = vmatprep.mubr.msk.f32.mxu1 %vm13766_vm0, %v13765_v0 }
0x7ecf   : > { %13111 = vmatprep.subr.mxu1 %v13765_v0 }
0x7f8d   : > { %v10265_v45 = vpop.f32.mrf.mxu1 }
0x7f8e   : > { %v10266_v46 = vadd.f32 %v11662_v44, %v10265_v45 }
0x7f8f   : > { %v13094_v47 = vpop.f32.mrf.mxu1 }
0x7f90   : > { %13109 = vmatmul.mubr.msk.f32.vlgmr.msra.gmra.mxu1 %vm1230_vm1, %v10266_v46 }
0x7f91   : > { %13113 = vmatprep.mubr.msk.f32.mxu1 %vm13766_vm0, %v13765_v0 }
0x8050   : > { %v10424_v48 = vpop.f32.mrf.mxu1 }
0x8051   : > { %v10428_v49 = vmul.f32 0.17677669, %v10424_v48 }
0x8052   : > { %v13110_v50 = vpop.f32.mrf.mxu1 }
0x8053   : > { %v10429_v51 = vsel %vm1382_vm2, %v10428_v49, -inf }
0x8054   : > { %10430 = vmax.xlane.f32.xlu1 %v10429_v51 }
0x80dd   : > { %v10431_v52 = vpop.xlane.xlu1 %10430 }
0x80de   : > { %v10432_v53 = vsub.f32 %v10428_v49, %v10431_v52  ;;  %v10846_v52 = vld [vmem:[%s15430_s9 + $0x18] sm:$0xff] }
0x80e0   : > { %v10433_v54 = vmul.f32 1.442695, %v10432_v53  ;;  %v10845_v53 = vld [vmem:[%s15430_s9 + $0x10] sm:$0xff] }
0x80e2   : > { %13446 = vpow2.f32 %v10433_v54  ;;  %v10844_v54 = vld [vmem:[%s15430_s9 + $0x8] sm:$0xff] }
0x80ef   : > { %v13447_v55 = vpop.eup %13446 }
0x80f0   : > { %v10435_v57 = vsel %vm1382_vm2, %v13447_v55, 0.0 }
0x80f1   : > { %10436 = vadd.xlane.f32.xlu1 %v10435_v57 }
0x8102   : > { %10440 = vrot.lane.b32.xlu1 %v10349_v43, %s15489_s7  ;;  %s1202_s7 = sand.u32 1, %s13708_s1  }
0x8103   : > { %s11145_s28 = sshll.u32 %s1202_s7, 3  ;;  %s10938_s8 = scalar_lea.sflag [#allocation4], %s1202_s7 }
0x8104   : > { %s1204_s4 = scalar_lea.vmem [#allocation14], %s11145_s28 }
0x8105   : > { %s10951_s5 = sshll.u32 %s1204_s4, 4  ;;  %s10952_s5 = int_to_ptr.vmem [resolvable:$true] %s10951_s5 }
0x8106   : > { %p13647_p4 = scmp.lt.s32.totalorder %s10952_s5, %s13645_s11 }
0x817a   : > { %v10437_v61 = vpop.xlane.xlu1 %10436 }
0x817b   : > { %13448 = vrcp.f32 %v10437_v61  ;;  %v11692_v61 = vld [vmem:[#allocation11 + $0x5] ss:$0 sm:$0xff] }
0x817e   : > { %v10441_v62 = vpop.permute.xlu1 %10440 }
0x817f   : > { %13112 = vmatpush3.msra.mxu1 %v10441_v62 }
0x8180   : > { %13127 = vmatprep.subr.mxu1 %v13765_v0 }
0x8188   : > { %v13449_v63 = vpop.eup %13448 }
0x8189   : > { %v10439_v1 = vmul.f32 %v13449_v63, %v13447_v55  ;;  %v10843_v55 = vld [vmem:[%s15430_s9] sm:$0xff]  ;;  %v11693_v63 = vld [vmem:[#allocation13 + $0x5] ss:$0 sm:$0xff]  ;;  %s13640_s9 = scalar_lea.vmem %s10952_s5, 128 }
0x818a   : > { %p13641_p1 = scmp.ne.s32.totalorder %s10952_s5, %s13640_s9  ;;  %p13648_p5 = scmp.lt.s32.totalorder %s13646_s12, %s13640_s9 }
0x818b   : > { %13114 = vmatmul.mubr.msk.f32.vlgmr.msra.gmra.mxu1 %vm1382_vm2, %v10439_v1 }
0x818c   : > { %13135 = vmatprep.mubr.msk.f32.mxu1 %vm13766_vm0, %v13765_v0  ;;  %13128 = vmatpush3.msra.mxu1 %v10638_v16  ;;  %p13642_p3 = pnand %p13641_p1, %p15497_p10  ;;  %p13649_p13 = por %p13648_p5, %p13647_p4 }
0x818d   : > { %13129 = vmatprep.subr.mxu1 %v13765_v0 }
0x818e   : > { %13130 = vmatpush3.msra.mxu1 %v10637_v17  ;;  %p13643_p2 = pneg %p13642_p3 }
0x818f   : > { %13131 = vmatprep.subr.mxu1 %v13765_v0 }
0x8190   : > { %13132 = vmatpush3.msra.mxu1 %v10636_v18  ;;  %p13650_p7 = pnand %p13649_p13, %p13643_p2 }
0x8191   : > { %13133 = vmatprep.subr.mxu1 %v13765_v0 }
0x8192   : > { %13134 = vmatpush3.msra.mxu1 %v10635_v19 }
0x8193   : > { %13157 = vmatprep.subr.mxu1 %v13765_v0 }
0x824b   : > { %v10512_v3 = vpop.f32.mrf.mxu1 }
0x824c   : > { %13125 = vmatmul.mubr.msk.f32.vlgmr.msra.gmra.mxu0 %vm1230_vm1, %v10512_v3  ;;  %v11694_v3 = vld [vmem:[%s13953_s14] ss:$0 sm:$0xff] }
0x824d   : > { %v13115_v5 = vpop.f32.mrf.mxu1  ;;  %13154 = vmatprep.mubr.msk.f32.mxu0 %vm13766_vm0, %v13765_v0  ;;  %13139 = vmatpush3.msra.mxu0 %v11689_v20 }
0x824e   : > { %13140 = vmatprep.subr.mxu0 %v13765_v0 }
0x824f   : > { %13141 = vmatpush3.msra.mxu0 %v11688_v21 }
0x8250   : > { %13142 = vmatprep.subr.mxu0 %v13765_v0 }
0x8251   : > { %13143 = vmatpush3.msra.mxu0 %v11687_v22 }
0x8252   : > { %13144 = vmatprep.subr.mxu0 %v13765_v0 }
0x8253   : > { %13145 = vmatpush3.msra.mxu0 %v11686_v23 }
0x8254   : > { %13146 = vmatprep.subr.mxu0 %v13765_v0 }
0x8255   : > { %13147 = vmatpush3.msra.mxu0 %v11685_v56 }
0x8256   : > { %13148 = vmatprep.subr.mxu0 %v13765_v0 }
0x8257   : > { %13149 = vmatpush3.msra.mxu0 %v11684_v33 }
0x8258   : > { %13150 = vmatprep.subr.mxu0 %v13765_v0 }
0x8259   : > { %13151 = vmatpush3.msra.mxu0 %v11683_v34 }
0x825a   : > { %13152 = vmatprep.subr.mxu0 %v13765_v0 }
0x825b   : > { %13153 = vmatpush3.msra.mxu0 %v11682_v35 }
0x830c   : > { %v10598_v6 = vpop.f32.mrf.mxu0 }
0x830d   : > { %v10599_v7 = vadd.f32 %v11675_v4, %v10598_v6 }
0x830e   : > { %v13126_v8 = vpop.f32.mrf.mxu0 }
0x830f   : > { %v10602_v9 = vadd.f32 %v10599_v7, %v10182_v42 }
0x8311   : > { %v10607_v10 = vsel %vm1230_vm1, %v10602_v9, 0.0 }
0x8312   : > { %10608 = vadd.xlane.f32.xlu1 %v10607_v10 }
0x839b   : > { %v10609_v11 = vpop.xlane.xlu1 %10608 }
0x839c   : > { %v10610_v12 = vmul.f32 0.03125, %v10609_v11 }
0x839e   : > { %v10611_v13 = vsub.f32 %v10602_v9, %v10610_v12 }
0x83a0   : > { %v10612_v14 = vmul.f32 %v10611_v13, %v10611_v13 }
0x83a2   : > { %v10613_v15 = vsel %vm1230_vm1, %v10612_v14, 0.0 }
0x83a3   : > { %10614 = vadd.xlane.f32.xlu0 %v10613_v15 }
0x842c   : > { %v10615_v24 = vpop.xlane.xlu0 %10614 }
0x842d   : > { %v10616_v25 = vmul.f32 0.03125, %v10615_v24 }
0x842f   : > { %v10617_v26 = vadd.f32 1e-05, %v10616_v25 }
0x8431   : > { %13450 = vrsqrt.f32 %v10617_v26 }
0x843e   : > { %v13451_v27 = vpop.eup %13450 }
0x843f   : > { %v10619_v29 = vmul.f32 %v13451_v27, %v10611_v13 }
0x8441   : > { %v10626_v31 = vmul.f32 %v11678_v28, %v10619_v29 }
0x8443   : > { %v10633_v32 = vadd.f32 %v11679_v30, %v10626_v31 }
0x8445   : > { %13136 = vmatmul.mubr.msk.f32.vlgmr.msra.gmra.mxu1 %vm1230_vm1, %v10633_v32 }
0x8446   : > { %13165 = vmatprep.mubr.msk.f32.mxu1 %vm13766_vm0, %v13765_v0  ;;  %13158 = vmatpush3.msra.mxu1 %v10846_v52 }
0x8447   : > { %13159 = vmatprep.subr.mxu1 %v13765_v0 }
0x8448   : > { %13160 = vmatpush3.msra.mxu1 %v10845_v53 }
0x8449   : > { %13161 = vmatprep.subr.mxu1 %v13765_v0 }
0x844a   : > { %13162 = vmatpush3.msra.mxu1 %v10844_v54 }
0x844b   : > { %13163 = vmatprep.subr.mxu1 %v13765_v0 }
0x844c   : > { %13164 = vmatpush3.msra.mxu1 %v10843_v55 }
0x8505   : > { %v10716_v37 = vpop.f32.mrf.mxu1 }
0x8506   : > { %v10717_v38 = vadd.f32 %v11680_v36, %v10716_v37 }
0x8507   : > { %v13137_v39 = vpop.f32.mrf.mxu1 }
0x8508   : > { %v10720_v40 = vmax.f32 %v10717_v38, 0.0 }
0x850a   : > { %13155 = vmatmul.mubr.msk.f32.vlgmr.msra.gmra.mxu0 %vm1685_vm3, %v10720_v40 }
0x85ca   : > { %v10807_v42 = vpop.f32.mrf.mxu0 }
0x85cb   : > { %v10808_v43 = vadd.f32 %v11690_v41, %v10807_v42 }
0x85cc   : > { %v13156_v44 = vpop.f32.mrf.mxu0 }
0x85cd   : > { %v10811_v45 = vadd.f32 %v10808_v43, %v10633_v32 }
0x85cf   : > { %v10816_v46 = vsel %vm1230_vm1, %v10811_v45, 0.0 }
0x85d0   : > { %10817 = vadd.xlane.f32.xlu0 %v10816_v46 }
0x8659   : > { %v10818_v47 = vpop.xlane.xlu0 %10817 }
0x865a   : > { %v10819_v48 = vmul.f32 0.03125, %v10818_v47 }
0x865c   : > { %v10820_v49 = vsub.f32 %v10811_v45, %v10819_v48 }
0x865e   : > { %v10821_v50 = vmul.f32 %v10820_v49, %v10820_v49 }
0x8660   : > { %v10822_v51 = vsel %vm1230_vm1, %v10821_v50, 0.0 }
0x8661   : > { %10823 = vadd.xlane.f32.xlu0 %v10822_v51 }
0x86ea   : > { %v10824_v57 = vpop.xlane.xlu0 %10823 }
0x86eb   : > { %v10825_v58 = vmul.f32 0.03125, %v10824_v57 }
0x86ed   : > { %v10826_v59 = vadd.f32 1e-05, %v10825_v58 }
0x86ef   : > { %13452 = vrsqrt.f32 %v10826_v59 }
0x86fc   : > { %v13453_v60 = vpop.eup %13452 }
0x86fd   : > { %v10828_v62 = vmul.f32 %v13453_v60, %v10820_v49 }
0x86ff   : > { %v10835_v1 = vmul.f32 %v11692_v61, %v10828_v62 }
0x8701   : > { %v10842_v2 = vadd.f32 %v11693_v63, %v10835_v1 }
0x8703   : > { %13166 = vmatmul.mubr.msk.f32.vlgmr.msra.gmra.mxu1 %vm1230_vm1, %v10842_v2 }
0x87c3   : > { %v10923_v5 = vpop.f32.mrf.mxu1 }
0x87c4   : > { %v10924_v4 = vadd.f32 %v11694_v3, %v10923_v5 }
0x87c5   : > { %v13167_v6 = vpop.f32.mrf.mxu1 }
0x87c6   : > { %10927 = vmax.xlane.f32.xlu0 %v10924_v4 }
0x884f   : > { %v10928_v0 = vpop.xlane.xlu0 %10927 }
0x8850   : > { %v10929_v7 = vsub.f32 %v10924_v4, %v10928_v0 }
0x8852   : > { %v10930_v8 = vmul.f32 1.442695, %v10929_v7 }
0x8854   : > { %13454 = vpow2.f32 %v10930_v8 }
0x8861   : > { %v13455_v9 = vpop.eup %13454 }
0x8862   : > { %10932 = vadd.xlane.f32.xlu0 %v13455_v9 }
0x88eb   : > { %v10933_v10 = vpop.xlane.xlu0 %10932 }
0x88ec   : > { %13456 = vrcp.f32 %v10933_v10 }
0x88f9   : > { %v13457_v11 = vpop.eup %13456 }
0x88fa   : > { %v10935_v12 = vmul.f32 %v13457_v11, %v13455_v9 }
0x88fc   : > { %10936 = vst [vmem:[%s1204_s4] sm:$0xff] %v10935_v12 }
0x88fd   : > { %13653 = shalt.err (!%p13650_p7)
}
0x88fe   : > { %s13654_s0 = scalar_lea.hbm %s10949_s6, 128  ;;  %s13658_s4 = scalar_lea.hbm %s13958_s3, 256 }
0x88ff   : > { %p13655_p8 = scmp.ne.s32.totalorder %s10949_s6, %s13654_s0  ;;  %p13659_p0 = scmp.lt.s32.totalorder %s10949_s6, %s13958_s3 }
0x8900   : > { %p13660_p6 = scmp.lt.s32.totalorder %s13658_s4, %s13654_s0 }
0x8901   : > { %p13656_p11 = pnand %p13655_p8, %p15497_p10 }
0x8902   : > { %p13661_p9 = por %p13660_p6, %p13659_p0 }
0x8903   : > { %p13657_p12 = pneg %p13656_p11 }
0x8905   : > { %p13662_p1 = pnand %p13661_p9, %p13657_p12 }
0x8907   : > { %13665 = shalt.err (!%p13662_p1)
}
0x8908   : > { %13196 = dma.vmem_to_hbm [thread:$0]  (%p15497_p10), %s10952_s5, 128, %s10949_s6, %s10938_s8  }
0x8909 PF: > { %s15498_s9 = sld [smem:[#allocation50_spill]] }
0x890a   : > { %s15499_s12 = sld [smem:[#allocation48_spill]] }
0x890b   : > { %s15500_s11 = sld [smem:[#allocation53_spill]] }
0x890f   : > { %p13238_p3 = scmp.ge.s32.totalorder %s15498_s9, 2 }
0x8910   : > { %s10963_s10 = sand.u32 1, %s15499_s12  }
0x8911   : > { %p15501_p2 = scmp.ne.s32.totalorder %s15500_s11, 0  ;;  %s10964_s7 = scalar_lea.sflag [#allocation4], %s10963_s10 }
0x8913   : > { %p13221_p4 = pnand %p13238_p3, %p15501_p2 }
0x8915   : > { %p13222_p5 = pneg %p13221_p4 }
0x8917   : > { %13699 = dma.done.wait (%p13222_p5), %s10964_s7, 128  }
0x8918   : > { %13701 = vsyncadd (%p13222_p5), %s10964_s7, 4294967168  ;;  %s15502_s7 = sld [smem:[#allocation51_spill]]  ;;  %s15505_s28 = smov %s13708_s1 }
0x8919   : > { %s15503_s2 = sld [smem:[#allocation49_spill]] }
0x891a   : > { %s15504_s0 = sld [smem:[#allocation52_spill]] }
0x891e   : > { %p87_p13 = scmp.ge.s32.totalorder %s15502_s7, 4  }
0x891f   : > { %s15506_s1 = smov %s15503_s2 }
0x8920   : > { %s15507_s2 = smov %s15504_s0  ;;  %89 = sbr.rel (!%p87_p13) target bundleno = 79 (0x4f), region = 427 }
0x8925   :  { %10969 = vsyncpa [#allocation3], 1 }
0x8926   :  { %10971 = vsyncpa [#allocation3 + $0x1], 1 }
0x8927   :  { %10972 = vsyncpa [#allocation6], 1 }
0x8928   :  { %10973 = vsyncpa [#allocation9], 1 }
0x8929   :  { %10974 = vsyncpa [#allocation12], 1 }
0x892a   :  { %10975 = vsyncpa [#allocation4], 1 }
0x892b   :  { %10977 = vsyncpa [#allocation4 + $0x1], 1 }

</bundles_post_ra>
